<compile_context>
chip_gen: v5e
topology: v5e:2x2
jax: 0.10.0
libtpu: 0.0.40
codegen_flags: <defaults>
</compile_context>

<pallas_src>
import functools

import jax
import jax.numpy as jnp
from jax.experimental import pallas as pl
from jax.experimental.pallas import tpu as pltpu


# ---------------------------------------------------------------------------
# Kernel 1: fused GroupNorm + activation (one sample per grid step).
# ---------------------------------------------------------------------------
def _gn_act_kernel(x_ref, gamma_ref, beta_ref, grp_ref, o_ref, *, inv_n, eps, act):
    """x_ref: (1, HW, C); grp_ref: (C, C) same-group indicator; o_ref: (1, HW, C)."""
    x = x_ref[0].astype(jnp.float32)                         # (HW, C)
    grp = grp_ref[...]                                       # (C, C)
    # (x @ grp)[hw, c] sums x over the channels in c's group; the column
    # reduction then adds the spatial dim -> per-channel group sums.
    gsum = jnp.sum(jnp.dot(x, grp, preferred_element_type=jnp.float32),
                   axis=0, keepdims=True)                    # (1, C)
    gsq = jnp.sum(jnp.dot(x * x, grp, preferred_element_type=jnp.float32),
                  axis=0, keepdims=True)                     # (1, C)
    mean = gsum * inv_n
    var = jnp.maximum(gsq * inv_n - mean * mean, 0.0)
    inv = jax.lax.rsqrt(var + eps)                           # EUP
    xn = (x - mean) * (inv * gamma_ref[...]) + beta_ref[...]
    if act == "swish":
        y = xn * jax.nn.sigmoid(xn)
    else:                                                    # "relu"
        y = jnp.maximum(xn, 0.0)
    o_ref[0] = y.astype(o_ref.dtype)


def group_norm_act(x_nhwc, gamma, beta, *, groups, act="swish", eps=1e-6):
    """GroupNorm (affine) + activation on NHWC activations via a fused kernel."""
    B, H, W, C = x_nhwc.shape
    assert C % groups == 0
    cpg = C // groups
    HW = H * W
    x2 = x_nhwc.reshape(B, HW, C)
    # Hoisted loop-invariant: (C, C) same-group indicator matrix.
    gid = jnp.arange(C, dtype=jnp.int32) // cpg
    grp = (gid[:, None] == gid[None, :]).astype(jnp.float32)
    kernel = functools.partial(_gn_act_kernel, inv_n=1.0 / float(HW * cpg),
                               eps=float(eps), act=act)
    y = pl.pallas_call(
        kernel,
        out_shape=jax.ShapeDtypeStruct((B, HW, C), jnp.float32),
        grid_spec=pltpu.PrefetchScalarGridSpec(
            num_scalar_prefetch=0,
            grid=(B,),
            in_specs=[
                pl.BlockSpec((1, HW, C), lambda b: (b, 0, 0)),
                pl.BlockSpec((1, C), lambda b: (0, 0)),        # gamma, resident
                pl.BlockSpec((1, C), lambda b: (0, 0)),        # beta, resident
                pl.BlockSpec((C, C), lambda b: (0, 0)),        # group map, resident
            ],
            out_specs=pl.BlockSpec((1, HW, C), lambda b: (b, 0, 0)),
        ),
        compiler_params=pltpu.CompilerParams(
            dimension_semantics=("parallel",)),
    )(x2, gamma.reshape(1, C).astype(jnp.float32),
      beta.reshape(1, C).astype(jnp.float32), grp)
    return y.reshape(B, H, W, C)


# ---------------------------------------------------------------------------
# Kernel 2: row-tiled  Y = X @ W + b  (used for every convolution).
# ---------------------------------------------------------------------------
def _matmul_bias_kernel(x_ref, w_ref, b_ref, o_ref):
    acc = jnp.dot(x_ref[...], w_ref[...], preferred_element_type=jnp.float32)
    o_ref[...] = (acc + b_ref[...]).astype(o_ref.dtype)


def _pick_row_tile(m, target=256):
    """Largest row tile <= target dividing m, preferring >= 2 grid steps (v7x)."""
    cands = [t for t in (256, 128, 64, 32, 16, 8) if t <= target and m % t == 0]
    for t in cands:
        if m // t >= 2:
            return t
    return cands[0] if cands else m


def _matmul_bias(x, w, bias):
    m, k = x.shape
    kw, n = w.shape
    assert kw == k
    tile = _pick_row_tile(m)
    return pl.pallas_call(
        _matmul_bias_kernel,
        out_shape=jax.ShapeDtypeStruct((m, n), jnp.float32),
        grid_spec=pltpu.PrefetchScalarGridSpec(
            num_scalar_prefetch=0,
            grid=(m // tile,),
            in_specs=[
                pl.BlockSpec((tile, k), lambda i: (i, 0)),     # activation rows
                pl.BlockSpec((k, n), lambda i: (0, 0)),        # weights, resident
                pl.BlockSpec((1, n), lambda i: (0, 0)),        # bias, resident
            ],
            out_specs=pl.BlockSpec((tile, n), lambda i: (i, 0)),  # lane-dense rows
        ),
        compiler_params=pltpu.CompilerParams(
            dimension_semantics=("parallel",)),
    )(x, w, bias)


def conv3x3(x_nhwc, w, b):
    """3x3 'same' conv, NHWC activations, PyTorch (Cout, Cin, 3, 3) weights."""
    B, H, W, Cin = x_nhwc.shape
    Cout = w.shape[0]
    # im2col (plain-JAX layout plumbing): (B*H*W, 9*Cin) patch matrix.
    xp = jnp.pad(x_nhwc, ((0, 0), (1, 1), (1, 1), (0, 0)))
    taps = [xp[:, dy:dy + H, dx:dx + W, :] for dy in range(3) for dx in range(3)]
    patches = jnp.concatenate(taps, axis=-1).reshape(B * H * W, 9 * Cin)
    # Hoisted weight relayout: (Cout, Cin, 3, 3) -> (9*Cin, Cout).
    wmat = jnp.transpose(w, (2, 3, 1, 0)).reshape(9 * Cin, Cout)
    bias = (jnp.zeros((1, Cout), jnp.float32) if b is None
            else b.reshape(1, Cout).astype(jnp.float32))
    y = _matmul_bias(patches, wmat, bias)
    return y.reshape(B, H, W, Cout)


def conv1x1(x_nhwc, w, b):
    """1x1 convolution as a row-tiled matmul."""
    B, H, W, Cin = x_nhwc.shape
    Cout = w.shape[0]
    wmat = jnp.transpose(w.reshape(Cout, Cin))                 # (Cin, Cout), hoisted
    bias = (jnp.zeros((1, Cout), jnp.float32) if b is None
            else b.reshape(1, Cout).astype(jnp.float32))
    y = _matmul_bias(x_nhwc.reshape(B * H * W, Cin), wmat, bias)
    return y.reshape(B, H, W, Cout)


def upsample_nearest_2x(x_nhwc):
    # TODO(synk): nearest-neighbour upsample and residual adds are pure data
    # movement; kept as plain-JAX glue rather than dedicated Pallas kernels.
    return jnp.repeat(jnp.repeat(x_nhwc, 2, axis=1), 2, axis=2)


# ---------------------------------------------------------------------------
# Pure-JAX reference primitives (for the correctness check).
# ---------------------------------------------------------------------------
def _ref_conv(x_nhwc, w, b, pad):
    y = jax.lax.conv_general_dilated(
        x_nhwc, jnp.transpose(w, (2, 3, 1, 0)), (1, 1), [(pad, pad), (pad, pad)],
        dimension_numbers=("NHWC", "HWIO", "NHWC"),
        precision=jax.lax.Precision.HIGHEST)
    return y if b is None else y + b


def _ref_conv3x3(x, w, b):
    return _ref_conv(x, w, b, 1)


def _ref_conv1x1(x, w, b):
    return _ref_conv(x, w, b, 0)


def _ref_group_norm_act(x, gamma, beta, *, groups, act="swish", eps=1e-6):
    B, H, W, C = x.shape
    xg = x.reshape(B, H, W, groups, C // groups)
    mean = xg.mean(axis=(1, 2, 4), keepdims=True)
    var = xg.var(axis=(1, 2, 4), keepdims=True)
    xn = ((xg - mean) / jnp.sqrt(var + eps)).reshape(B, H, W, C) * gamma + beta
    return xn * jax.nn.sigmoid(xn) if act == "swish" else jnp.maximum(xn, 0.0)


# ---------------------------------------------------------------------------
# Decoder forward (mirrors the PyTorch module graph exactly).
# ---------------------------------------------------------------------------
def decoder_forward(x_nchw, params, *, groups, act="swish", use_pallas=True):
    """Forward pass of maskgit's Decoder (eval mode). Input and output are NCHW."""
    c3 = conv3x3 if use_pallas else _ref_conv3x3
    c1 = conv1x1 if use_pallas else _ref_conv1x1
    gn = group_norm_act if use_pallas else _ref_group_norm_act

    def res_block(h, p):
        r = h
        h = gn(h, p["norm0_gamma"], p["norm0_beta"], groups=groups, act=act)
        h = c3(h, p["conv0_w"], None)
        h = gn(h, p["norm1_gamma"], p["norm1_beta"], groups=groups, act=act)
        h = c3(h, p["conv1_w"], None)
        if "conv_res_w" in p:
            # Faithful to the reference code: conv_res is applied to the conv1
            # output (not to the saved residual).
            r = c1(h, p["conv_res_w"], None)
        return h + r

    x = jnp.transpose(x_nchw, (0, 2, 3, 1))                   # NCHW -> NHWC
    x = c3(x, params["conv_in_w"], params["conv_in_b"])
    for block in params["res_blocks"]:
        for layer in block:
            kind = layer["type"]
            if kind == "res":
                x = res_block(x, layer)
            elif kind == "upsample":
                x = upsample_nearest_2x(x)
            else:                                             # "conv"
                x = c3(x, layer["w"], layer["b"])
    x = gn(x, params["norm_out_gamma"], params["norm_out_beta"],
           groups=groups, act=act)
    x = c3(x, params["conv_out_w"], params["conv_out_b"])
    return jnp.transpose(x, (0, 3, 1, 2))                     # NHWC -> NCHW


def init_decoder_params(key, *, embedding_dim, filters, num_res_blocks,
                        channel_multipliers, output_dim):
    """Mirrors the PyTorch Decoder constructor; PyTorch weight layouts."""
    keys = iter(jax.random.split(key, 64))

    def conv_w(cin, cout, k):
        scale = 1.0 / float(k * k * cin) ** 0.5
        return scale * jax.random.normal(next(keys), (cout, cin, k, k), jnp.float32)

    def conv_b(cout):
        return 0.1 * jax.random.normal(next(keys), (cout,), jnp.float32)

    def gn_p(c):
        return (1.0 + 0.1 * jax.random.normal(next(keys), (c,), jnp.float32),
                0.1 * jax.random.normal(next(keys), (c,), jnp.float32))

    def make_res(cin, cout):
        g0, b0 = gn_p(cin)
        g1, b1 = gn_p(cout)
        p = dict(type="res",
                 norm0_gamma=g0, norm0_beta=b0, conv0_w=conv_w(cin, cout, 3),
                 norm1_gamma=g1, norm1_beta=b1, conv1_w=conv_w(cout, cout, 3))
        if cin != cout:
            # Matches the reference: Conv2d(filters, filters, kernel_size=1, bias=False)
            p["conv_res_w"] = conv_w(cout, cout, 1)
        return p

    params = {}
    num_blocks = len(channel_multipliers)
    curr = filters * channel_multipliers[-1]
    params["conv_in_w"] = conv_w(embedding_dim, curr, 3)
    params["conv_in_b"] = conv_b(curr)

    blocks = [[make_res(curr, curr) for _ in range(num_res_blocks)]]
    prev = curr
    for i in reversed(range(num_blocks)):
        group = []
        curr = filters * channel_multipliers[i]
        for _ in range(num_res_blocks):
            group.append(make_res(prev, curr))
            prev = curr
        if i > 0:
            group.append(dict(type="upsample"))
            group.append(dict(type="conv", w=conv_w(curr, curr, 3), b=conv_b(curr)))
        blocks.append(group)
    params["res_blocks"] = blocks

    g, b = gn_p(curr)
    params["norm_out_gamma"] = g
    params["norm_out_beta"] = b
    params["conv_out_w"] = conv_w(curr, output_dim, 3)
    params["conv_out_b"] = conv_b(output_dim)
    return params


if __name__ == "__main__":
    key = jax.random.PRNGKey(0)
    k_x, k_p = jax.random.split(key)

    # Small deterministic maskgit-style config: filters=32, multipliers (1, 2),
    # one ResBlock per stage, GroupNorm(32), swish, 3 output channels.
    B, H, W = 2, 8, 8
    embedding_dim, filters, num_res_blocks = 32, 32, 1
    channel_multipliers = (1, 2)
    output_dim, groups = 3, 32

    x = jax.random.normal(k_x, (B, embedding_dim, H, W), jnp.float32)
    params = init_decoder_params(
        k_p, embedding_dim=embedding_dim, filters=filters,
        num_res_blocks=num_res_blocks, channel_multipliers=channel_multipliers,
        output_dim=output_dim)

    fwd = jax.jit(lambda inp: decoder_forward(inp, params, groups=groups,
                                              act="swish", use_pallas=True))
    out = fwd(x)
    jax.block_until_ready(out)
    assert out.shape == (B, output_dim, 2 * H, 2 * W), out.shape

    # Pure-JAX reference (lax.conv + explicit GroupNorm) with the same params.
    ref = decoder_forward(x, params, groups=groups, act="swish", use_pallas=False)
    max_err = float(jnp.max(jnp.abs(out - ref)))
    assert jnp.allclose(out, ref, atol=2e-3, rtol=2e-3), max_err

    print("KERNEL_OK")
</pallas_src>

<mosaic_0001>
module attributes {stable_mosaic.version = 11 : i64} {
  func.func @_matmul_bias_kernel(%arg0: i32, %arg1: memref<64x288xf32, #tpu.memory_space<vmem>>, %arg2: memref<288x64xf32, #tpu.memory_space<vmem>>, %arg3: memref<1x64xf32, #tpu.memory_space<vmem>>, %arg4: memref<64x64xf32, #tpu.memory_space<vmem>>) attributes {dimension_semantics = [#tpu.dimension_semantics<parallel>], iteration_bounds = array<i64: 2>, scalar_prefetch = 0 : i64, scratch_operands = 0 : i64, tpu.core_type = #tpu.core_type<tc>, window_params = [{transform_indices = @transform_0, window_bounds = array<i64: 64, 288>}, {pipeline_mode = #tpu.pipeline_mode<synchronous>, transform_indices = @transform_1, window_bounds = array<i64: 288, 64>}, {pipeline_mode = #tpu.pipeline_mode<synchronous>, transform_indices = @transform_2, window_bounds = array<i64: 1, 64>}, {transform_indices = @transform_3, window_bounds = array<i64: 64, 64>}]} {
    %c0 = arith.constant 0 : index
    %c0_0 = arith.constant 0 : index
    %0 = vector.load %arg1[%c0, %c0_0] : memref<64x288xf32, #tpu.memory_space<vmem>>, vector<64x288xf32>
    %c0_1 = arith.constant 0 : index
    %c0_2 = arith.constant 0 : index
    %1 = vector.load %arg2[%c0_1, %c0_2] : memref<288x64xf32, #tpu.memory_space<vmem>>, vector<288x64xf32>
    %cst = arith.constant dense<0.000000e+00> : vector<64x64xf32>
    %2 = tpu.matmul %0, %1, %cst {dimension_numbers = #tpu.dot_dimension_numbers<[1], [0], [0], [1], [0, 0, 1, 1], [], []>} : vector<64x288xf32>, vector<288x64xf32>, vector<64x64xf32> -> vector<64x64xf32>
    %c0_3 = arith.constant 0 : index
    %c0_4 = arith.constant 0 : index
    %3 = vector.load %arg3[%c0_3, %c0_4] : memref<1x64xf32, #tpu.memory_space<vmem>>, vector<1x64xf32>
    %4 = vector.broadcast %3 : vector<1x64xf32> to vector<64x64xf32>
    %5 = arith.addf %2, %4 : vector<64x64xf32>
    %c0_5 = arith.constant 0 : index
    %c0_6 = arith.constant 0 : index
    %6 = vector.load %arg4[%c0_5, %c0_6] : memref<64x64xf32, #tpu.memory_space<vmem>>, vector<64x64xf32>
    tpu.vector_store %arg4[%c0_5, %c0_6], %5 {strides = array<i32>} : memref<64x64xf32, #tpu.memory_space<vmem>>, vector<64x64xf32>,
    return
  }
  func.func @transform_0(%arg0: i32) -> (i32, i32) {
    %c0_i32 = arith.constant 0 : i32
    %c0_i32_0 = arith.constant 0 : i32
    return %arg0, %c0_i32 : i32, i32
  }
  func.func @transform_1(%arg0: i32) -> (i32, i32) {
    %c0_i32 = arith.constant 0 : i32
    %c0_i32_0 = arith.constant 0 : i32
    %c0_i32_1 = arith.constant 0 : i32
    return %c0_i32, %c0_i32_0 : i32, i32
  }
  func.func @transform_2(%arg0: i32) -> (i32, i32) {
    %c0_i32 = arith.constant 0 : i32
    %c0_i32_0 = arith.constant 0 : i32
    %c0_i32_1 = arith.constant 0 : i32
    return %c0_i32, %c0_i32_0 : i32, i32
  }
  func.func @transform_3(%arg0: i32) -> (i32, i32) {
    %c0_i32 = arith.constant 0 : i32
    %c0_i32_0 = arith.constant 0 : i32
    return %arg0, %c0_i32 : i32, i32
  }
}

module attributes {stable_mosaic.version = 11 : i64} {
  func.func @_gn_act_kernel(%arg0: i32, %arg1: memref<1x64x64xf32, #tpu.memory_space<vmem>>, %arg2: memref<1x64xf32, #tpu.memory_space<vmem>>, %arg3: memref<1x64xf32, #tpu.memory_space<vmem>>, %arg4: memref<64x64xf32, #tpu.memory_space<vmem>>, %arg5: memref<1x64x64xf32, #tpu.memory_space<vmem>>) attributes {dimension_semantics = [#tpu.dimension_semantics<parallel>], iteration_bounds = array<i64: 2>, scalar_prefetch = 0 : i64, scratch_operands = 0 : i64, tpu.core_type = #tpu.core_type<tc>, window_params = [{transform_indices = @transform_0, window_bounds = array<i64: 1, 64, 64>}, {pipeline_mode = #tpu.pipeline_mode<synchronous>, transform_indices = @transform_1, window_bounds = array<i64: 1, 64>}, {pipeline_mode = #tpu.pipeline_mode<synchronous>, transform_indices = @transform_2, window_bounds = array<i64: 1, 64>}, {pipeline_mode = #tpu.pipeline_mode<synchronous>, transform_indices = @transform_3, window_bounds = array<i64: 64, 64>}, {transform_indices = @transform_4, window_bounds = array<i64: 1, 64, 64>}]} {
    %c0 = arith.constant 0 : index
    %c0_0 = arith.constant 0 : index
    %c0_1 = arith.constant 0 : index
    %0 = vector.load %arg1[%c0, %c0_0, %c0_1] : memref<1x64x64xf32, #tpu.memory_space<vmem>>, vector<1x64x64xf32>
    %1 = vector.shape_cast %0 : vector<1x64x64xf32> to vector<64x64xf32>
    %c0_2 = arith.constant 0 : index
    %c0_3 = arith.constant 0 : index
    %2 = vector.load %arg4[%c0_2, %c0_3] : memref<64x64xf32, #tpu.memory_space<vmem>>, vector<64x64xf32>
    %cst = arith.constant dense<0.000000e+00> : vector<64x64xf32>
    %3 = tpu.matmul %1, %2, %cst {dimension_numbers = #tpu.dot_dimension_numbers<[1], [0], [0], [1], [0, 0, 1, 1], [], []>} : vector<64x64xf32>, vector<64x64xf32>, vector<64x64xf32> -> vector<64x64xf32>
    %cst_4 = arith.constant dense<0.000000e+00> : vector<64xf32>
    %4 = vector.multi_reduction <add>, %3, %cst_4 [0] : vector<64x64xf32> to vector<64xf32>
    %5 = vector.shape_cast %4 : vector<64xf32> to vector<1x64xf32>
    %6 = arith.mulf %1, %1 : vector<64x64xf32>
    %cst_5 = arith.constant dense<0.000000e+00> : vector<64x64xf32>
    %7 = tpu.matmul %6, %2, %cst_5 {dimension_numbers = #tpu.dot_dimension_numbers<[1], [0], [0], [1], [0, 0, 1, 1], [], []>} : vector<64x64xf32>, vector<64x64xf32>, vector<64x64xf32> -> vector<64x64xf32>
    %cst_6 = arith.constant dense<0.000000e+00> : vector<64xf32>
    %8 = vector.multi_reduction <add>, %7, %cst_6 [0] : vector<64x64xf32> to vector<64xf32>
    %9 = vector.shape_cast %8 : vector<64xf32> to vector<1x64xf32>
    %cst_7 = arith.constant 7.812500e-03 : f32
    %10 = vector.broadcast %cst_7 : f32 to vector<1x64xf32>
    %11 = arith.mulf %5, %10 : vector<1x64xf32>
    %cst_8 = arith.constant 7.812500e-03 : f32
    %12 = vector.broadcast %cst_8 : f32 to vector<1x64xf32>
    %13 = arith.mulf %9, %12 : vector<1x64xf32>
    %14 = arith.mulf %11, %11 : vector<1x64xf32>
    %15 = arith.subf %13, %14 : vector<1x64xf32>
    %cst_9 = arith.constant 0.000000e+00 : f32
    %16 = vector.broadcast %cst_9 : f32 to vector<1x64xf32>
    %17 = arith.maximumf %15, %16 : vector<1x64xf32>
    %cst_10 = arith.constant 9.99999997E-7 : f32
    %18 = vector.broadcast %cst_10 : f32 to vector<1x64xf32>
    %19 = arith.addf %17, %18 : vector<1x64xf32>
    %20 = math.rsqrt %19 : vector<1x64xf32>
    %21 = vector.broadcast %11 : vector<1x64xf32> to vector<64x64xf32>
    %22 = arith.subf %1, %21 : vector<64x64xf32>
    %c0_11 = arith.constant 0 : index
    %c0_12 = arith.constant 0 : index
    %23 = vector.load %arg2[%c0_11, %c0_12] : memref<1x64xf32, #tpu.memory_space<vmem>>, vector<1x64xf32>
    %24 = arith.mulf %20, %23 : vector<1x64xf32>
    %25 = vector.broadcast %24 : vector<1x64xf32> to vector<64x64xf32>
    %26 = arith.mulf %22, %25 : vector<64x64xf32>
    %c0_13 = arith.constant 0 : index
    %c0_14 = arith.constant 0 : index
    %27 = vector.load %arg3[%c0_13, %c0_14] : memref<1x64xf32, #tpu.memory_space<vmem>>, vector<1x64xf32>
    %28 = vector.broadcast %27 : vector<1x64xf32> to vector<64x64xf32>
    %29 = arith.addf %26, %28 : vector<64x64xf32>
    %30 = arith.negf %29 : vector<64x64xf32>
    %31 = math.exp %30 : vector<64x64xf32>
    %cst_15 = arith.constant 1.000000e+00 : f32
    %32 = vector.broadcast %cst_15 : f32 to vector<64x64xf32>
    %33 = arith.addf %32, %31 : vector<64x64xf32>
    %34 = arith.divf %32, %33 : vector<64x64xf32>
    %35 = arith.mulf %29, %34 : vector<64x64xf32>
    %c0_16 = arith.constant 0 : index
    %c0_17 = arith.constant 0 : index
    %c0_18 = arith.constant 0 : index
    %36 = vector.load %arg5[%c0_16, %c0_17, %c0_18] : memref<1x64x64xf32, #tpu.memory_space<vmem>>, vector<1x64x64xf32>
    %37 = vector.shape_cast %36 : vector<1x64x64xf32> to vector<64x64xf32>
    %38 = vector.shape_cast %35 : vector<64x64xf32> to vector<1x64x64xf32>
    tpu.vector_store %arg5[%c0_16, %c0_17, %c0_18], %38 {strides = array<i32>} : memref<1x64x64xf32, #tpu.memory_space<vmem>>, vector<1x64x64xf32>,
    return
  }
  func.func @transform_0(%arg0: i32) -> (i32, i32, i32) {
    %c0_i32 = arith.constant 0 : i32
    %c0_i32_0 = arith.constant 0 : i32
    %c0_i32_1 = arith.constant 0 : i32
    return %arg0, %c0_i32, %c0_i32_0 : i32, i32, i32
  }
  func.func @transform_1(%arg0: i32) -> (i32, i32) {
    %c0_i32 = arith.constant 0 : i32
    %c0_i32_0 = arith.constant 0 : i32
    %c0_i32_1 = arith.constant 0 : i32
    return %c0_i32, %c0_i32_0 : i32, i32
  }
  func.func @transform_2(%arg0: i32) -> (i32, i32) {
    %c0_i32 = arith.constant 0 : i32
    %c0_i32_0 = arith.constant 0 : i32
    %c0_i32_1 = arith.constant 0 : i32
    return %c0_i32, %c0_i32_0 : i32, i32
  }
  func.func @transform_3(%arg0: i32) -> (i32, i32) {
    %c0_i32 = arith.constant 0 : i32
    %c0_i32_0 = arith.constant 0 : i32
    %c0_i32_1 = arith.constant 0 : i32
    return %c0_i32, %c0_i32_0 : i32, i32
  }
  func.func @transform_4(%arg0: i32) -> (i32, i32, i32) {
    %c0_i32 = arith.constant 0 : i32
    %c0_i32_0 = arith.constant 0 : i32
    %c0_i32_1 = arith.constant 0 : i32
    return %arg0, %c0_i32, %c0_i32_0 : i32, i32, i32
  }
}

module attributes {stable_mosaic.version = 11 : i64} {
  func.func @_matmul_bias_kernel(%arg0: i32, %arg1: memref<64x576xf32, #tpu.memory_space<vmem>>, %arg2: memref<576x64xf32, #tpu.memory_space<vmem>>, %arg3: memref<1x64xf32, #tpu.memory_space<vmem>>, %arg4: memref<64x64xf32, #tpu.memory_space<vmem>>) attributes {dimension_semantics = [#tpu.dimension_semantics<parallel>], iteration_bounds = array<i64: 2>, scalar_prefetch = 0 : i64, scratch_operands = 0 : i64, tpu.core_type = #tpu.core_type<tc>, window_params = [{transform_indices = @transform_0, window_bounds = array<i64: 64, 576>}, {pipeline_mode = #tpu.pipeline_mode<synchronous>, transform_indices = @transform_1, window_bounds = array<i64: 576, 64>}, {pipeline_mode = #tpu.pipeline_mode<synchronous>, transform_indices = @transform_2, window_bounds = array<i64: 1, 64>}, {transform_indices = @transform_3, window_bounds = array<i64: 64, 64>}]} {
    %c0 = arith.constant 0 : index
    %c0_0 = arith.constant 0 : index
    %0 = vector.load %arg1[%c0, %c0_0] : memref<64x576xf32, #tpu.memory_space<vmem>>, vector<64x576xf32>
    %c0_1 = arith.constant 0 : index
    %c0_2 = arith.constant 0 : index
    %1 = vector.load %arg2[%c0_1, %c0_2] : memref<576x64xf32, #tpu.memory_space<vmem>>, vector<576x64xf32>
    %cst = arith.constant dense<0.000000e+00> : vector<64x64xf32>
    %2 = tpu.matmul %0, %1, %cst {dimension_numbers = #tpu.dot_dimension_numbers<[1], [0], [0], [1], [0, 0, 1, 1], [], []>} : vector<64x576xf32>, vector<576x64xf32>, vector<64x64xf32> -> vector<64x64xf32>
    %c0_3 = arith.constant 0 : index
    %c0_4 = arith.constant 0 : index
    %3 = vector.load %arg3[%c0_3, %c0_4] : memref<1x64xf32, #tpu.memory_space<vmem>>, vector<1x64xf32>
    %4 = vector.broadcast %3 : vector<1x64xf32> to vector<64x64xf32>
    %5 = arith.addf %2, %4 : vector<64x64xf32>
    %c0_5 = arith.constant 0 : index
    %c0_6 = arith.constant 0 : index
    %6 = vector.load %arg4[%c0_5, %c0_6] : memref<64x64xf32, #tpu.memory_space<vmem>>, vector<64x64xf32>
    tpu.vector_store %arg4[%c0_5, %c0_6], %5 {strides = array<i32>} : memref<64x64xf32, #tpu.memory_space<vmem>>, vector<64x64xf32>,
    return
  }
  func.func @transform_0(%arg0: i32) -> (i32, i32) {
    %c0_i32 = arith.constant 0 : i32
    %c0_i32_0 = arith.constant 0 : i32
    return %arg0, %c0_i32 : i32, i32
  }
  func.func @transform_1(%arg0: i32) -> (i32, i32) {
    %c0_i32 = arith.constant 0 : i32
    %c0_i32_0 = arith.constant 0 : i32
    %c0_i32_1 = arith.constant 0 : i32
    return %c0_i32, %c0_i32_0 : i32, i32
  }
  func.func @transform_2(%arg0: i32) -> (i32, i32) {
    %c0_i32 = arith.constant 0 : i32
    %c0_i32_0 = arith.constant 0 : i32
    %c0_i32_1 = arith.constant 0 : i32
    return %c0_i32, %c0_i32_0 : i32, i32
  }
  func.func @transform_3(%arg0: i32) -> (i32, i32) {
    %c0_i32 = arith.constant 0 : i32
    %c0_i32_0 = arith.constant 0 : i32
    return %arg0, %c0_i32 : i32, i32
  }
}

module attributes {stable_mosaic.version = 11 : i64} {
  func.func @_matmul_bias_kernel(%arg0: i32, %arg1: memref<256x576xf32, #tpu.memory_space<vmem>>, %arg2: memref<576x64xf32, #tpu.memory_space<vmem>>, %arg3: memref<1x64xf32, #tpu.memory_space<vmem>>, %arg4: memref<256x64xf32, #tpu.memory_space<vmem>>) attributes {dimension_semantics = [#tpu.dimension_semantics<parallel>], iteration_bounds = array<i64: 2>, scalar_prefetch = 0 : i64, scratch_operands = 0 : i64, tpu.core_type = #tpu.core_type<tc>, window_params = [{transform_indices = @transform_0, window_bounds = array<i64: 256, 576>}, {pipeline_mode = #tpu.pipeline_mode<synchronous>, transform_indices = @transform_1, window_bounds = array<i64: 576, 64>}, {pipeline_mode = #tpu.pipeline_mode<synchronous>, transform_indices = @transform_2, window_bounds = array<i64: 1, 64>}, {transform_indices = @transform_3, window_bounds = array<i64: 256, 64>}]} {
    %c0 = arith.constant 0 : index
    %c0_0 = arith.constant 0 : index
    %0 = vector.load %arg1[%c0, %c0_0] : memref<256x576xf32, #tpu.memory_space<vmem>>, vector<256x576xf32>
    %c0_1 = arith.constant 0 : index
    %c0_2 = arith.constant 0 : index
    %1 = vector.load %arg2[%c0_1, %c0_2] : memref<576x64xf32, #tpu.memory_space<vmem>>, vector<576x64xf32>
    %cst = arith.constant dense<0.000000e+00> : vector<256x64xf32>
    %2 = tpu.matmul %0, %1, %cst {dimension_numbers = #tpu.dot_dimension_numbers<[1], [0], [0], [1], [0, 0, 1, 1], [], []>} : vector<256x576xf32>, vector<576x64xf32>, vector<256x64xf32> -> vector<256x64xf32>
    %c0_3 = arith.constant 0 : index
    %c0_4 = arith.constant 0 : index
    %3 = vector.load %arg3[%c0_3, %c0_4] : memref<1x64xf32, #tpu.memory_space<vmem>>, vector<1x64xf32>
    %4 = vector.broadcast %3 : vector<1x64xf32> to vector<256x64xf32>
    %5 = arith.addf %2, %4 : vector<256x64xf32>
    %c0_5 = arith.constant 0 : index
    %c0_6 = arith.constant 0 : index
    %6 = vector.load %arg4[%c0_5, %c0_6] : memref<256x64xf32, #tpu.memory_space<vmem>>, vector<256x64xf32>
    tpu.vector_store %arg4[%c0_5, %c0_6], %5 {strides = array<i32>} : memref<256x64xf32, #tpu.memory_space<vmem>>, vector<256x64xf32>,
    return
  }
  func.func @transform_0(%arg0: i32) -> (i32, i32) {
    %c0_i32 = arith.constant 0 : i32
    %c0_i32_0 = arith.constant 0 : i32
    return %arg0, %c0_i32 : i32, i32
  }
  func.func @transform_1(%arg0: i32) -> (i32, i32) {
    %c0_i32 = arith.constant 0 : i32
    %c0_i32_0 = arith.constant 0 : i32
    %c0_i32_1 = arith.constant 0 : i32
    return %c0_i32, %c0_i32_0 : i32, i32
  }
  func.func @transform_2(%arg0: i32) -> (i32, i32) {
    %c0_i32 = arith.constant 0 : i32
    %c0_i32_0 = arith.constant 0 : i32
    %c0_i32_1 = arith.constant 0 : i32
    return %c0_i32, %c0_i32_0 : i32, i32
  }
  func.func @transform_3(%arg0: i32) -> (i32, i32) {
    %c0_i32 = arith.constant 0 : i32
    %c0_i32_0 = arith.constant 0 : i32
    return %arg0, %c0_i32 : i32, i32
  }
}

module attributes {stable_mosaic.version = 11 : i64} {
  func.func @_gn_act_kernel(%arg0: i32, %arg1: memref<1x256x64xf32, #tpu.memory_space<vmem>>, %arg2: memref<1x64xf32, #tpu.memory_space<vmem>>, %arg3: memref<1x64xf32, #tpu.memory_space<vmem>>, %arg4: memref<64x64xf32, #tpu.memory_space<vmem>>, %arg5: memref<1x256x64xf32, #tpu.memory_space<vmem>>) attributes {dimension_semantics = [#tpu.dimension_semantics<parallel>], iteration_bounds = array<i64: 2>, scalar_prefetch = 0 : i64, scratch_operands = 0 : i64, tpu.core_type = #tpu.core_type<tc>, window_params = [{transform_indices = @transform_0, window_bounds = array<i64: 1, 256, 64>}, {pipeline_mode = #tpu.pipeline_mode<synchronous>, transform_indices = @transform_1, window_bounds = array<i64: 1, 64>}, {pipeline_mode = #tpu.pipeline_mode<synchronous>, transform_indices = @transform_2, window_bounds = array<i64: 1, 64>}, {pipeline_mode = #tpu.pipeline_mode<synchronous>, transform_indices = @transform_3, window_bounds = array<i64: 64, 64>}, {transform_indices = @transform_4, window_bounds = array<i64: 1, 256, 64>}]} {
    %c0 = arith.constant 0 : index
    %c0_0 = arith.constant 0 : index
    %c0_1 = arith.constant 0 : index
    %0 = vector.load %arg1[%c0, %c0_0, %c0_1] : memref<1x256x64xf32, #tpu.memory_space<vmem>>, vector<1x256x64xf32>
    %1 = vector.shape_cast %0 : vector<1x256x64xf32> to vector<256x64xf32>
    %c0_2 = arith.constant 0 : index
    %c0_3 = arith.constant 0 : index
    %2 = vector.load %arg4[%c0_2, %c0_3] : memref<64x64xf32, #tpu.memory_space<vmem>>, vector<64x64xf32>
    %cst = arith.constant dense<0.000000e+00> : vector<256x64xf32>
    %3 = tpu.matmul %1, %2, %cst {dimension_numbers = #tpu.dot_dimension_numbers<[1], [0], [0], [1], [0, 0, 1, 1], [], []>} : vector<256x64xf32>, vector<64x64xf32>, vector<256x64xf32> -> vector<256x64xf32>
    %cst_4 = arith.constant dense<0.000000e+00> : vector<64xf32>
    %4 = vector.multi_reduction <add>, %3, %cst_4 [0] : vector<256x64xf32> to vector<64xf32>
    %5 = vector.shape_cast %4 : vector<64xf32> to vector<1x64xf32>
    %6 = arith.mulf %1, %1 : vector<256x64xf32>
    %cst_5 = arith.constant dense<0.000000e+00> : vector<256x64xf32>
    %7 = tpu.matmul %6, %2, %cst_5 {dimension_numbers = #tpu.dot_dimension_numbers<[1], [0], [0], [1], [0, 0, 1, 1], [], []>} : vector<256x64xf32>, vector<64x64xf32>, vector<256x64xf32> -> vector<256x64xf32>
    %cst_6 = arith.constant dense<0.000000e+00> : vector<64xf32>
    %8 = vector.multi_reduction <add>, %7, %cst_6 [0] : vector<256x64xf32> to vector<64xf32>
    %9 = vector.shape_cast %8 : vector<64xf32> to vector<1x64xf32>
    %cst_7 = arith.constant 0.001953125 : f32
    %10 = vector.broadcast %cst_7 : f32 to vector<1x64xf32>
    %11 = arith.mulf %5, %10 : vector<1x64xf32>
    %cst_8 = arith.constant 0.001953125 : f32
    %12 = vector.broadcast %cst_8 : f32 to vector<1x64xf32>
    %13 = arith.mulf %9, %12 : vector<1x64xf32>
    %14 = arith.mulf %11, %11 : vector<1x64xf32>
    %15 = arith.subf %13, %14 : vector<1x64xf32>
    %cst_9 = arith.constant 0.000000e+00 : f32
    %16 = vector.broadcast %cst_9 : f32 to vector<1x64xf32>
    %17 = arith.maximumf %15, %16 : vector<1x64xf32>
    %cst_10 = arith.constant 9.99999997E-7 : f32
    %18 = vector.broadcast %cst_10 : f32 to vector<1x64xf32>
    %19 = arith.addf %17, %18 : vector<1x64xf32>
    %20 = math.rsqrt %19 : vector<1x64xf32>
    %21 = vector.broadcast %11 : vector<1x64xf32> to vector<256x64xf32>
    %22 = arith.subf %1, %21 : vector<256x64xf32>
    %c0_11 = arith.constant 0 : index
    %c0_12 = arith.constant 0 : index
    %23 = vector.load %arg2[%c0_11, %c0_12] : memref<1x64xf32, #tpu.memory_space<vmem>>, vector<1x64xf32>
    %24 = arith.mulf %20, %23 : vector<1x64xf32>
    %25 = vector.broadcast %24 : vector<1x64xf32> to vector<256x64xf32>
    %26 = arith.mulf %22, %25 : vector<256x64xf32>
    %c0_13 = arith.constant 0 : index
    %c0_14 = arith.constant 0 : index
    %27 = vector.load %arg3[%c0_13, %c0_14] : memref<1x64xf32, #tpu.memory_space<vmem>>, vector<1x64xf32>
    %28 = vector.broadcast %27 : vector<1x64xf32> to vector<256x64xf32>
    %29 = arith.addf %26, %28 : vector<256x64xf32>
    %30 = arith.negf %29 : vector<256x64xf32>
    %31 = math.exp %30 : vector<256x64xf32>
    %cst_15 = arith.constant 1.000000e+00 : f32
    %32 = vector.broadcast %cst_15 : f32 to vector<256x64xf32>
    %33 = arith.addf %32, %31 : vector<256x64xf32>
    %34 = arith.divf %32, %33 : vector<256x64xf32>
    %35 = arith.mulf %29, %34 : vector<256x64xf32>
    %c0_16 = arith.constant 0 : index
    %c0_17 = arith.constant 0 : index
    %c0_18 = arith.constant 0 : index
    %36 = vector.load %arg5[%c0_16, %c0_17, %c0_18] : memref<1x256x64xf32, #tpu.memory_space<vmem>>, vector<1x256x64xf32>
    %37 = vector.shape_cast %36 : vector<1x256x64xf32> to vector<256x64xf32>
    %38 = vector.shape_cast %35 : vector<256x64xf32> to vector<1x256x64xf32>
    tpu.vector_store %arg5[%c0_16, %c0_17, %c0_18], %38 {strides = array<i32>} : memref<1x256x64xf32, #tpu.memory_space<vmem>>, vector<1x256x64xf32>,
    return
  }
  func.func @transform_0(%arg0: i32) -> (i32, i32, i32) {
    %c0_i32 = arith.constant 0 : i32
    %c0_i32_0 = arith.constant 0 : i32
    %c0_i32_1 = arith.constant 0 : i32
    return %arg0, %c0_i32, %c0_i32_0 : i32, i32, i32
  }
  func.func @transform_1(%arg0: i32) -> (i32, i32) {
    %c0_i32 = arith.constant 0 : i32
    %c0_i32_0 = arith.constant 0 : i32
    %c0_i32_1 = arith.constant 0 : i32
    return %c0_i32, %c0_i32_0 : i32, i32
  }
  func.func @transform_2(%arg0: i32) -> (i32, i32) {
    %c0_i32 = arith.constant 0 : i32
    %c0_i32_0 = arith.constant 0 : i32
    %c0_i32_1 = arith.constant 0 : i32
    return %c0_i32, %c0_i32_0 : i32, i32
  }
  func.func @transform_3(%arg0: i32) -> (i32, i32) {
    %c0_i32 = arith.constant 0 : i32
    %c0_i32_0 = arith.constant 0 : i32
    %c0_i32_1 = arith.constant 0 : i32
    return %c0_i32, %c0_i32_0 : i32, i32
  }
  func.func @transform_4(%arg0: i32) -> (i32, i32, i32) {
    %c0_i32 = arith.constant 0 : i32
    %c0_i32_0 = arith.constant 0 : i32
    %c0_i32_1 = arith.constant 0 : i32
    return %arg0, %c0_i32, %c0_i32_0 : i32, i32, i32
  }
}

module attributes {stable_mosaic.version = 11 : i64} {
  func.func @_matmul_bias_kernel(%arg0: i32, %arg1: memref<256x576xf32, #tpu.memory_space<vmem>>, %arg2: memref<576x32xf32, #tpu.memory_space<vmem>>, %arg3: memref<1x32xf32, #tpu.memory_space<vmem>>, %arg4: memref<256x32xf32, #tpu.memory_space<vmem>>) attributes {dimension_semantics = [#tpu.dimension_semantics<parallel>], iteration_bounds = array<i64: 2>, scalar_prefetch = 0 : i64, scratch_operands = 0 : i64, tpu.core_type = #tpu.core_type<tc>, window_params = [{transform_indices = @transform_0, window_bounds = array<i64: 256, 576>}, {pipeline_mode = #tpu.pipeline_mode<synchronous>, transform_indices = @transform_1, window_bounds = array<i64: 576, 32>}, {pipeline_mode = #tpu.pipeline_mode<synchronous>, transform_indices = @transform_2, window_bounds = array<i64: 1, 32>}, {transform_indices = @transform_3, window_bounds = array<i64: 256, 32>}]} {
    %c0 = arith.constant 0 : index
    %c0_0 = arith.constant 0 : index
    %0 = vector.load %arg1[%c0, %c0_0] : memref<256x576xf32, #tpu.memory_space<vmem>>, vector<256x576xf32>
    %c0_1 = arith.constant 0 : index
    %c0_2 = arith.constant 0 : index
    %1 = vector.load %arg2[%c0_1, %c0_2] : memref<576x32xf32, #tpu.memory_space<vmem>>, vector<576x32xf32>
    %cst = arith.constant dense<0.000000e+00> : vector<256x32xf32>
    %2 = tpu.matmul %0, %1, %cst {dimension_numbers = #tpu.dot_dimension_numbers<[1], [0], [0], [1], [0, 0, 1, 1], [], []>} : vector<256x576xf32>, vector<576x32xf32>, vector<256x32xf32> -> vector<256x32xf32>
    %c0_3 = arith.constant 0 : index
    %c0_4 = arith.constant 0 : index
    %3 = vector.load %arg3[%c0_3, %c0_4] : memref<1x32xf32, #tpu.memory_space<vmem>>, vector<1x32xf32>
    %4 = vector.broadcast %3 : vector<1x32xf32> to vector<256x32xf32>
    %5 = arith.addf %2, %4 : vector<256x32xf32>
    %c0_5 = arith.constant 0 : index
    %c0_6 = arith.constant 0 : index
    %6 = vector.load %arg4[%c0_5, %c0_6] : memref<256x32xf32, #tpu.memory_space<vmem>>, vector<256x32xf32>
    tpu.vector_store %arg4[%c0_5, %c0_6], %5 {strides = array<i32>} : memref<256x32xf32, #tpu.memory_space<vmem>>, vector<256x32xf32>,
    return
  }
  func.func @transform_0(%arg0: i32) -> (i32, i32) {
    %c0_i32 = arith.constant 0 : i32
    %c0_i32_0 = arith.constant 0 : i32
    return %arg0, %c0_i32 : i32, i32
  }
  func.func @transform_1(%arg0: i32) -> (i32, i32) {
    %c0_i32 = arith.constant 0 : i32
    %c0_i32_0 = arith.constant 0 : i32
    %c0_i32_1 = arith.constant 0 : i32
    return %c0_i32, %c0_i32_0 : i32, i32
  }
  func.func @transform_2(%arg0: i32) -> (i32, i32) {
    %c0_i32 = arith.constant 0 : i32
    %c0_i32_0 = arith.constant 0 : i32
    %c0_i32_1 = arith.constant 0 : i32
    return %c0_i32, %c0_i32_0 : i32, i32
  }
  func.func @transform_3(%arg0: i32) -> (i32, i32) {
    %c0_i32 = arith.constant 0 : i32
    %c0_i32_0 = arith.constant 0 : i32
    return %arg0, %c0_i32 : i32, i32
  }
}

module attributes {stable_mosaic.version = 11 : i64} {
  func.func @_gn_act_kernel(%arg0: i32, %arg1: memref<1x256x32xf32, #tpu.memory_space<vmem>>, %arg2: memref<1x32xf32, #tpu.memory_space<vmem>>, %arg3: memref<1x32xf32, #tpu.memory_space<vmem>>, %arg4: memref<32x32xf32, #tpu.memory_space<vmem>>, %arg5: memref<1x256x32xf32, #tpu.memory_space<vmem>>) attributes {dimension_semantics = [#tpu.dimension_semantics<parallel>], iteration_bounds = array<i64: 2>, scalar_prefetch = 0 : i64, scratch_operands = 0 : i64, tpu.core_type = #tpu.core_type<tc>, window_params = [{transform_indices = @transform_0, window_bounds = array<i64: 1, 256, 32>}, {pipeline_mode = #tpu.pipeline_mode<synchronous>, transform_indices = @transform_1, window_bounds = array<i64: 1, 32>}, {pipeline_mode = #tpu.pipeline_mode<synchronous>, transform_indices = @transform_2, window_bounds = array<i64: 1, 32>}, {pipeline_mode = #tpu.pipeline_mode<synchronous>, transform_indices = @transform_3, window_bounds = array<i64: 32, 32>}, {transform_indices = @transform_4, window_bounds = array<i64: 1, 256, 32>}]} {
    %c0 = arith.constant 0 : index
    %c0_0 = arith.constant 0 : index
    %c0_1 = arith.constant 0 : index
    %0 = vector.load %arg1[%c0, %c0_0, %c0_1] : memref<1x256x32xf32, #tpu.memory_space<vmem>>, vector<1x256x32xf32>
    %1 = vector.shape_cast %0 : vector<1x256x32xf32> to vector<256x32xf32>
    %c0_2 = arith.constant 0 : index
    %c0_3 = arith.constant 0 : index
    %2 = vector.load %arg4[%c0_2, %c0_3] : memref<32x32xf32, #tpu.memory_space<vmem>>, vector<32x32xf32>
    %cst = arith.constant dense<0.000000e+00> : vector<256x32xf32>
    %3 = tpu.matmul %1, %2, %cst {dimension_numbers = #tpu.dot_dimension_numbers<[1], [0], [0], [1], [0, 0, 1, 1], [], []>} : vector<256x32xf32>, vector<32x32xf32>, vector<256x32xf32> -> vector<256x32xf32>
    %cst_4 = arith.constant dense<0.000000e+00> : vector<32xf32>
    %4 = vector.multi_reduction <add>, %3, %cst_4 [0] : vector<256x32xf32> to vector<32xf32>
    %5 = vector.shape_cast %4 : vector<32xf32> to vector<1x32xf32>
    %6 = arith.mulf %1, %1 : vector<256x32xf32>
    %cst_5 = arith.constant dense<0.000000e+00> : vector<256x32xf32>
    %7 = tpu.matmul %6, %2, %cst_5 {dimension_numbers = #tpu.dot_dimension_numbers<[1], [0], [0], [1], [0, 0, 1, 1], [], []>} : vector<256x32xf32>, vector<32x32xf32>, vector<256x32xf32> -> vector<256x32xf32>
    %cst_6 = arith.constant dense<0.000000e+00> : vector<32xf32>
    %8 = vector.multi_reduction <add>, %7, %cst_6 [0] : vector<256x32xf32> to vector<32xf32>
    %9 = vector.shape_cast %8 : vector<32xf32> to vector<1x32xf32>
    %cst_7 = arith.constant 3.906250e-03 : f32
    %10 = vector.broadcast %cst_7 : f32 to vector<1x32xf32>
    %11 = arith.mulf %5, %10 : vector<1x32xf32>
    %cst_8 = arith.constant 3.906250e-03 : f32
    %12 = vector.broadcast %cst_8 : f32 to vector<1x32xf32>
    %13 = arith.mulf %9, %12 : vector<1x32xf32>
    %14 = arith.mulf %11, %11 : vector<1x32xf32>
    %15 = arith.subf %13, %14 : vector<1x32xf32>
    %cst_9 = arith.constant 0.000000e+00 : f32
    %16 = vector.broadcast %cst_9 : f32 to vector<1x32xf32>
    %17 = arith.maximumf %15, %16 : vector<1x32xf32>
    %cst_10 = arith.constant 9.99999997E-7 : f32
    %18 = vector.broadcast %cst_10 : f32 to vector<1x32xf32>
    %19 = arith.addf %17, %18 : vector<1x32xf32>
    %20 = math.rsqrt %19 : vector<1x32xf32>
    %21 = vector.broadcast %11 : vector<1x32xf32> to vector<256x32xf32>
    %22 = arith.subf %1, %21 : vector<256x32xf32>
    %c0_11 = arith.constant 0 : index
    %c0_12 = arith.constant 0 : index
    %23 = vector.load %arg2[%c0_11, %c0_12] : memref<1x32xf32, #tpu.memory_space<vmem>>, vector<1x32xf32>
    %24 = arith.mulf %20, %23 : vector<1x32xf32>
    %25 = vector.broadcast %24 : vector<1x32xf32> to vector<256x32xf32>
    %26 = arith.mulf %22, %25 : vector<256x32xf32>
    %c0_13 = arith.constant 0 : index
    %c0_14 = arith.constant 0 : index
    %27 = vector.load %arg3[%c0_13, %c0_14] : memref<1x32xf32, #tpu.memory_space<vmem>>, vector<1x32xf32>
    %28 = vector.broadcast %27 : vector<1x32xf32> to vector<256x32xf32>
    %29 = arith.addf %26, %28 : vector<256x32xf32>
    %30 = arith.negf %29 : vector<256x32xf32>
    %31 = math.exp %30 : vector<256x32xf32>
    %cst_15 = arith.constant 1.000000e+00 : f32
    %32 = vector.broadcast %cst_15 : f32 to vector<256x32xf32>
    %33 = arith.addf %32, %31 : vector<256x32xf32>
    %34 = arith.divf %32, %33 : vector<256x32xf32>
    %35 = arith.mulf %29, %34 : vector<256x32xf32>
    %c0_16 = arith.constant 0 : index
    %c0_17 = arith.constant 0 : index
    %c0_18 = arith.constant 0 : index
    %36 = vector.load %arg5[%c0_16, %c0_17, %c0_18] : memref<1x256x32xf32, #tpu.memory_space<vmem>>, vector<1x256x32xf32>
    %37 = vector.shape_cast %36 : vector<1x256x32xf32> to vector<256x32xf32>
    %38 = vector.shape_cast %35 : vector<256x32xf32> to vector<1x256x32xf32>
    tpu.vector_store %arg5[%c0_16, %c0_17, %c0_18], %38 {strides = array<i32>} : memref<1x256x32xf32, #tpu.memory_space<vmem>>, vector<1x256x32xf32>,
    return
  }
  func.func @transform_0(%arg0: i32) -> (i32, i32, i32) {
    %c0_i32 = arith.constant 0 : i32
    %c0_i32_0 = arith.constant 0 : i32
    %c0_i32_1 = arith.constant 0 : i32
    return %arg0, %c0_i32, %c0_i32_0 : i32, i32, i32
  }
  func.func @transform_1(%arg0: i32) -> (i32, i32) {
    %c0_i32 = arith.constant 0 : i32
    %c0_i32_0 = arith.constant 0 : i32
    %c0_i32_1 = arith.constant 0 : i32
    return %c0_i32, %c0_i32_0 : i32, i32
  }
  func.func @transform_2(%arg0: i32) -> (i32, i32) {
    %c0_i32 = arith.constant 0 : i32
    %c0_i32_0 = arith.constant 0 : i32
    %c0_i32_1 = arith.constant 0 : i32
    return %c0_i32, %c0_i32_0 : i32, i32
  }
  func.func @transform_3(%arg0: i32) -> (i32, i32) {
    %c0_i32 = arith.constant 0 : i32
    %c0_i32_0 = arith.constant 0 : i32
    %c0_i32_1 = arith.constant 0 : i32
    return %c0_i32, %c0_i32_0 : i32, i32
  }
  func.func @transform_4(%arg0: i32) -> (i32, i32, i32) {
    %c0_i32 = arith.constant 0 : i32
    %c0_i32_0 = arith.constant 0 : i32
    %c0_i32_1 = arith.constant 0 : i32
    return %arg0, %c0_i32, %c0_i32_0 : i32, i32, i32
  }
}

module attributes {stable_mosaic.version = 11 : i64} {
  func.func @_matmul_bias_kernel(%arg0: i32, %arg1: memref<256x288xf32, #tpu.memory_space<vmem>>, %arg2: memref<288x32xf32, #tpu.memory_space<vmem>>, %arg3: memref<1x32xf32, #tpu.memory_space<vmem>>, %arg4: memref<256x32xf32, #tpu.memory_space<vmem>>) attributes {dimension_semantics = [#tpu.dimension_semantics<parallel>], iteration_bounds = array<i64: 2>, scalar_prefetch = 0 : i64, scratch_operands = 0 : i64, tpu.core_type = #tpu.core_type<tc>, window_params = [{transform_indices = @transform_0, window_bounds = array<i64: 256, 288>}, {pipeline_mode = #tpu.pipeline_mode<synchronous>, transform_indices = @transform_1, window_bounds = array<i64: 288, 32>}, {pipeline_mode = #tpu.pipeline_mode<synchronous>, transform_indices = @transform_2, window_bounds = array<i64: 1, 32>}, {transform_indices = @transform_3, window_bounds = array<i64: 256, 32>}]} {
    %c0 = arith.constant 0 : index
    %c0_0 = arith.constant 0 : index
    %0 = vector.load %arg1[%c0, %c0_0] : memref<256x288xf32, #tpu.memory_space<vmem>>, vector<256x288xf32>
    %c0_1 = arith.constant 0 : index
    %c0_2 = arith.constant 0 : index
    %1 = vector.load %arg2[%c0_1, %c0_2] : memref<288x32xf32, #tpu.memory_space<vmem>>, vector<288x32xf32>
    %cst = arith.constant dense<0.000000e+00> : vector<256x32xf32>
    %2 = tpu.matmul %0, %1, %cst {dimension_numbers = #tpu.dot_dimension_numbers<[1], [0], [0], [1], [0, 0, 1, 1], [], []>} : vector<256x288xf32>, vector<288x32xf32>, vector<256x32xf32> -> vector<256x32xf32>
    %c0_3 = arith.constant 0 : index
    %c0_4 = arith.constant 0 : index
    %3 = vector.load %arg3[%c0_3, %c0_4] : memref<1x32xf32, #tpu.memory_space<vmem>>, vector<1x32xf32>
    %4 = vector.broadcast %3 : vector<1x32xf32> to vector<256x32xf32>
    %5 = arith.addf %2, %4 : vector<256x32xf32>
    %c0_5 = arith.constant 0 : index
    %c0_6 = arith.constant 0 : index
    %6 = vector.load %arg4[%c0_5, %c0_6] : memref<256x32xf32, #tpu.memory_space<vmem>>, vector<256x32xf32>
    tpu.vector_store %arg4[%c0_5, %c0_6], %5 {strides = array<i32>} : memref<256x32xf32, #tpu.memory_space<vmem>>, vector<256x32xf32>,
    return
  }
  func.func @transform_0(%arg0: i32) -> (i32, i32) {
    %c0_i32 = arith.constant 0 : i32
    %c0_i32_0 = arith.constant 0 : i32
    return %arg0, %c0_i32 : i32, i32
  }
  func.func @transform_1(%arg0: i32) -> (i32, i32) {
    %c0_i32 = arith.constant 0 : i32
    %c0_i32_0 = arith.constant 0 : i32
    %c0_i32_1 = arith.constant 0 : i32
    return %c0_i32, %c0_i32_0 : i32, i32
  }
  func.func @transform_2(%arg0: i32) -> (i32, i32) {
    %c0_i32 = arith.constant 0 : i32
    %c0_i32_0 = arith.constant 0 : i32
    %c0_i32_1 = arith.constant 0 : i32
    return %c0_i32, %c0_i32_0 : i32, i32
  }
  func.func @transform_3(%arg0: i32) -> (i32, i32) {
    %c0_i32 = arith.constant 0 : i32
    %c0_i32_0 = arith.constant 0 : i32
    return %arg0, %c0_i32 : i32, i32
  }
}

module attributes {stable_mosaic.version = 11 : i64} {
  func.func @_matmul_bias_kernel(%arg0: i32, %arg1: memref<256x32xf32, #tpu.memory_space<vmem>>, %arg2: memref<32x32xf32, #tpu.memory_space<vmem>>, %arg3: memref<1x32xf32, #tpu.memory_space<vmem>>, %arg4: memref<256x32xf32, #tpu.memory_space<vmem>>) attributes {dimension_semantics = [#tpu.dimension_semantics<parallel>], iteration_bounds = array<i64: 2>, scalar_prefetch = 0 : i64, scratch_operands = 0 : i64, tpu.core_type = #tpu.core_type<tc>, window_params = [{transform_indices = @transform_0, window_bounds = array<i64: 256, 32>}, {pipeline_mode = #tpu.pipeline_mode<synchronous>, transform_indices = @transform_1, window_bounds = array<i64: 32, 32>}, {pipeline_mode = #tpu.pipeline_mode<synchronous>, transform_indices = @transform_2, window_bounds = array<i64: 1, 32>}, {transform_indices = @transform_3, window_bounds = array<i64: 256, 32>}]} {
    %c0 = arith.constant 0 : index
    %c0_0 = arith.constant 0 : index
    %0 = vector.load %arg1[%c0, %c0_0] : memref<256x32xf32, #tpu.memory_space<vmem>>, vector<256x32xf32>
    %c0_1 = arith.constant 0 : index
    %c0_2 = arith.constant 0 : index
    %1 = vector.load %arg2[%c0_1, %c0_2] : memref<32x32xf32, #tpu.memory_space<vmem>>, vector<32x32xf32>
    %cst = arith.constant dense<0.000000e+00> : vector<256x32xf32>
    %2 = tpu.matmul %0, %1, %cst {dimension_numbers = #tpu.dot_dimension_numbers<[1], [0], [0], [1], [0, 0, 1, 1], [], []>} : vector<256x32xf32>, vector<32x32xf32>, vector<256x32xf32> -> vector<256x32xf32>
    %c0_3 = arith.constant 0 : index
    %c0_4 = arith.constant 0 : index
    %3 = vector.load %arg3[%c0_3, %c0_4] : memref<1x32xf32, #tpu.memory_space<vmem>>, vector<1x32xf32>
    %4 = vector.broadcast %3 : vector<1x32xf32> to vector<256x32xf32>
    %5 = arith.addf %2, %4 : vector<256x32xf32>
    %c0_5 = arith.constant 0 : index
    %c0_6 = arith.constant 0 : index
    %6 = vector.load %arg4[%c0_5, %c0_6] : memref<256x32xf32, #tpu.memory_space<vmem>>, vector<256x32xf32>
    tpu.vector_store %arg4[%c0_5, %c0_6], %5 {strides = array<i32>} : memref<256x32xf32, #tpu.memory_space<vmem>>, vector<256x32xf32>,
    return
  }
  func.func @transform_0(%arg0: i32) -> (i32, i32) {
    %c0_i32 = arith.constant 0 : i32
    %c0_i32_0 = arith.constant 0 : i32
    return %arg0, %c0_i32 : i32, i32
  }
  func.func @transform_1(%arg0: i32) -> (i32, i32) {
    %c0_i32 = arith.constant 0 : i32
    %c0_i32_0 = arith.constant 0 : i32
    %c0_i32_1 = arith.constant 0 : i32
    return %c0_i32, %c0_i32_0 : i32, i32
  }
  func.func @transform_2(%arg0: i32) -> (i32, i32) {
    %c0_i32 = arith.constant 0 : i32
    %c0_i32_0 = arith.constant 0 : i32
    %c0_i32_1 = arith.constant 0 : i32
    return %c0_i32, %c0_i32_0 : i32, i32
  }
  func.func @transform_3(%arg0: i32) -> (i32, i32) {
    %c0_i32 = arith.constant 0 : i32
    %c0_i32_0 = arith.constant 0 : i32
    return %arg0, %c0_i32 : i32, i32
  }
}

module attributes {stable_mosaic.version = 11 : i64} {
  func.func @_matmul_bias_kernel(%arg0: i32, %arg1: memref<256x288xf32, #tpu.memory_space<vmem>>, %arg2: memref<288x3xf32, #tpu.memory_space<vmem>>, %arg3: memref<1x3xf32, #tpu.memory_space<vmem>>, %arg4: memref<256x3xf32, #tpu.memory_space<vmem>>) attributes {dimension_semantics = [#tpu.dimension_semantics<parallel>], iteration_bounds = array<i64: 2>, scalar_prefetch = 0 : i64, scratch_operands = 0 : i64, tpu.core_type = #tpu.core_type<tc>, window_params = [{transform_indices = @transform_0, window_bounds = array<i64: 256, 288>}, {pipeline_mode = #tpu.pipeline_mode<synchronous>, transform_indices = @transform_1, window_bounds = array<i64: 288, 3>}, {pipeline_mode = #tpu.pipeline_mode<synchronous>, transform_indices = @transform_2, window_bounds = array<i64: 1, 3>}, {transform_indices = @transform_3, window_bounds = array<i64: 256, 3>}]} {
    %c0 = arith.constant 0 : index
    %c0_0 = arith.constant 0 : index
    %0 = vector.load %arg1[%c0, %c0_0] : memref<256x288xf32, #tpu.memory_space<vmem>>, vector<256x288xf32>
    %c0_1 = arith.constant 0 : index
    %c0_2 = arith.constant 0 : index
    %1 = vector.load %arg2[%c0_1, %c0_2] : memref<288x3xf32, #tpu.memory_space<vmem>>, vector<288x3xf32>
    %cst = arith.constant dense<0.000000e+00> : vector<256x3xf32>
    %2 = tpu.matmul %0, %1, %cst {dimension_numbers = #tpu.dot_dimension_numbers<[1], [0], [0], [1], [0, 0, 1, 1], [], []>} : vector<256x288xf32>, vector<288x3xf32>, vector<256x3xf32> -> vector<256x3xf32>
    %c0_3 = arith.constant 0 : index
    %c0_4 = arith.constant 0 : index
    %3 = vector.load %arg3[%c0_3, %c0_4] : memref<1x3xf32, #tpu.memory_space<vmem>>, vector<1x3xf32>
    %4 = vector.broadcast %3 : vector<1x3xf32> to vector<256x3xf32>
    %5 = arith.addf %2, %4 : vector<256x3xf32>
    %c0_5 = arith.constant 0 : index
    %c0_6 = arith.constant 0 : index
    %6 = vector.load %arg4[%c0_5, %c0_6] : memref<256x3xf32, #tpu.memory_space<vmem>>, vector<256x3xf32>
    tpu.vector_store %arg4[%c0_5, %c0_6], %5 {strides = array<i32>} : memref<256x3xf32, #tpu.memory_space<vmem>>, vector<256x3xf32>,
    return
  }
  func.func @transform_0(%arg0: i32) -> (i32, i32) {
    %c0_i32 = arith.constant 0 : i32
    %c0_i32_0 = arith.constant 0 : i32
    return %arg0, %c0_i32 : i32, i32
  }
  func.func @transform_1(%arg0: i32) -> (i32, i32) {
    %c0_i32 = arith.constant 0 : i32
    %c0_i32_0 = arith.constant 0 : i32
    %c0_i32_1 = arith.constant 0 : i32
    return %c0_i32, %c0_i32_0 : i32, i32
  }
  func.func @transform_2(%arg0: i32) -> (i32, i32) {
    %c0_i32 = arith.constant 0 : i32
    %c0_i32_0 = arith.constant 0 : i32
    %c0_i32_1 = arith.constant 0 : i32
    return %c0_i32, %c0_i32_0 : i32, i32
  }
  func.func @transform_3(%arg0: i32) -> (i32, i32) {
    %c0_i32 = arith.constant 0 : i32
    %c0_i32_0 = arith.constant 0 : i32
    return %arg0, %c0_i32 : i32, i32
  }
}

</mosaic_0001>

<bundles_post_ra>
// kernel: _lambda_.17
= control target key start
LH: loop header
LB: loop body
LE: loop exit
PB: predicated region body
PF: predicated region fallthrough
CT: control target
= control target key end

     0   :  { %s543_s12 = smov 0   ;;  %s771_s0 = inlined_call_operand.vmem [shape: f32[128,288], index: 0, kind: input, shape index: {}]   ;;  %s772_s1 = inlined_call_operand.vmem [shape: f32[288,64], index: 1, kind: input, shape index: {}]   ;;  %s773_s2 = inlined_call_operand.vmem [shape: f32[1,64], index: 2, kind: input, shape index: {}]   ;;  %s774_s3 = inlined_call_operand.vmem [shape: f32[128,64], index: 3, kind: output, shape index: {}]  }
   0x1 LB: > { %s454_s13 = sadd.s32 4294967295, %s521_s12   ;;  %p458_p0 = scmp.ge.s32.totalorder %s521_s12, 1  ;;  %s521_s12 = sphi %s543_s12, %s13_s12  }
   0x2   : > { %p139_p1 = scmp.lt.s32.totalorder %s521_s12, 3 }
   0x4   : > { %p140_p2 = pnand %p458_p0, %p139_p1 }
   0x5   : > { %s459_s20 = sshll.u32 (!%p140_p2), %s454_s13, 3 }
   0x6   : > { %143 = sbr.rel (%p140_p2) target bundleno = 220 (0xdc), region = 32  ;;  %p165_p3 = scmp.lt.s32.totalorder (!%p140_p2), %s459_s20, 15 }
   0xb   : > { %v216_v0 = vld [vmem:[%s772_s1 + $0x78] sm:$0xff]  ;;  %v215_v1 = vld [vmem:[%s772_s1 + $0x70] sm:$0xff]  ;;  %v214_v4 = vld [vmem:[%s772_s1 + $0x68] sm:$0xff]  ;;  %s776_s20 = smov (!%p165_p3, %s459_s20), 15  ;;  %vm241_vm0 = vcmask 261120   ;;  %vm389_vm1 = vcmask 523264  }
   0xc   : > { %v560_v2 = vld [vmem:[%s772_s1 + $0xf8] sm:$0xff]  ;;  %266 = vmatpush.msra.mxu0 %v216_v0  ;;  %473 = vmatpush.msra.mxu3 %v216_v0  ;;  %v565_v3 = vld [vmem:[%s772_s1 + $0xf0] sm:$0xff]  ;;  %v574_v5 = vld [vmem:[%s772_s1 + $0xe8] sm:$0xff]  ;;  %s505_s10 = smul.u32 24, %s776_s20  ;;  %s462_s18 = sshll.u32 %s776_s20, 3 }
   0xd   : > { %307 = vmatpush.msra.mxu1 %v560_v2  ;;  %v236_v6 = vld [vmem:[%s772_s1 + $0x118] sm:$0xff]  ;;  %v213_v7 = vld [vmem:[%s772_s1 + $0x60] sm:$0xff]  ;;  %v235_v8 = vld [vmem:[%s772_s1 + $0x110] sm:$0xff]  ;;  %s750_s23 = scalar_lea.vmem %s774_s3, %s462_s18 }
   0xe   : > { %267 = vmatpush.msra.mxu0 %v215_v1  ;;  %474 = vmatpush.msra.mxu3 %v215_v1  ;;  %v591_v9 = vld [vmem:[%s772_s1 + $0xe0] sm:$0xff]  ;;  %v234_v10 = vld [vmem:[%s772_s1 + $0x108] sm:$0xff]  ;;  %v212_v11 = vld [vmem:[%s772_s1 + $0x58] sm:$0xff]  ;;  %s612_s21 = scalar_lea.vmem %s771_s0, %s505_s10 }
   0xf   : > { %308 = vmatpush.msra.mxu1 %v565_v3  ;;  %360 = vmatpush.msra.mxu2 %v236_v6  ;;  %v604_v12 = vld [vmem:[%s772_s1 + $0xd8] sm:$0xff]  ;;  %v233_v13 = vld [vmem:[%s772_s1 + $0x100] sm:$0xff]  ;;  %v211_v14 = vld [vmem:[%s772_s1 + $0x50] sm:$0xff] }
  0x10   : > { %268 = vmatpush.msra.mxu0 %v214_v4  ;;  %475 = vmatpush.msra.mxu3 %v214_v4  ;;  %v621_v15 = vld [vmem:[%s772_s1 + $0xd0] sm:$0xff]  ;;  %v210_v17 = vld [vmem:[%s772_s1 + $0x48] sm:$0xff]  ;;  %v209_v19 = vld [vmem:[%s772_s1 + $0x40] sm:$0xff] }
  0x11   : > { %309 = vmatpush.msra.mxu1 %v574_v5  ;;  %361 = vmatpush.msra.mxu2 %v235_v8  ;;  %v179_v16 = vld [vmem:[%s612_s21 + $0x10] sm:$0xff]  ;;  %v631_v18 = vld [vmem:[%s772_s1 + $0xc8] sm:$0xff]  ;;  %v641_v20 = vld [vmem:[%s772_s1 + $0xc0] sm:$0xff] }
  0x12   : > { %269 = vmatpush.msra.mxu0 %v213_v7  ;;  %476 = vmatpush.msra.mxu3 %v213_v7  ;;  %v208_v21 = vld [vmem:[%s772_s1 + $0x38] sm:$0xff]  ;;  %v207_v23 = vld [vmem:[%s772_s1 + $0x30] sm:$0xff]  ;;  %v182_v25 = vld [vmem:[%s612_s21 + $0x28] sm:$0xff] }
  0x13   : > { %310 = vmatpush.msra.mxu1 %v591_v9  ;;  %362 = vmatpush.msra.mxu2 %v234_v10  ;;  %v650_v22 = vld [vmem:[%s772_s1 + $0xb8] sm:$0xff]  ;;  %v659_v24 = vld [vmem:[%s772_s1 + $0xb0] sm:$0xff]  ;;  %v206_v26 = vld [vmem:[%s772_s1 + $0x28] sm:$0xff] }
  0x14   : > { %270 = vmatpush.msra.mxu0 %v212_v11  ;;  %477 = vmatpush.msra.mxu3 %v212_v11  ;;  %v669_v27 = vld [vmem:[%s772_s1 + $0xa8] sm:$0xff]  ;;  %v205_v28 = vld [vmem:[%s772_s1 + $0x20] sm:$0xff]  ;;  %v204_v30 = vld [vmem:[%s772_s1 + $0x18] sm:$0xff] }
  0x15   : > { %311 = vmatpush.msra.mxu1 %v604_v12  ;;  %363 = vmatpush.msra.mxu2 %v233_v13  ;;  %v221_v29 = vld [vmem:[%s772_s1 + $0xa0] sm:$0xff]  ;;  %v220_v31 = vld [vmem:[%s772_s1 + $0x98] sm:$0xff]  ;;  %v203_v32 = vld [vmem:[%s772_s1 + $0x10] sm:$0xff] }
  0x16   : > { %271 = vmatpush.msra.mxu0 %v211_v14  ;;  %478 = vmatpush.msra.mxu3 %v211_v14  ;;  %v219_v33 = vld [vmem:[%s772_s1 + $0x90] sm:$0xff]  ;;  %v185_v34 = vld [vmem:[%s612_s21 + $0x40] sm:$0xff]  ;;  %v202_v35 = vld [vmem:[%s772_s1 + $0x8] sm:$0xff] }
  0x17   : > { %312 = vmatpush.msra.mxu1 %v621_v15  ;;  %463 = vmatmul.msk.f32.vlgmr.msra.gmra.mxu2 %vm241_vm0, %v179_v16  ;;  %v218_v36 = vld [vmem:[%s772_s1 + $0x88] sm:$0xff]  ;;  %v201_v37 = vld [vmem:[%s772_s1] sm:$0xff]  ;;  %v195_v40 = vld [vmem:[%s612_s21 + $0x90] sm:$0xff] }
  0x18   : > { %272 = vmatpush.msra.mxu0 %v210_v17  ;;  %479 = vmatpush.msra.mxu3 %v210_v17  ;;  %v177_v38 = vld [vmem:[%s612_s21] sm:$0xff]  ;;  %v178_v41 = vld [vmem:[%s612_s21 + $0x8] sm:$0xff]  ;;  %v188_v42 = vld [vmem:[%s612_s21 + $0x58] sm:$0xff] }
  0x19   : > { %313 = vmatpush.msra.mxu1 %v631_v18  ;;  %v217_v39 = vld [vmem:[%s772_s1 + $0x80] sm:$0xff]  ;;  %v180_v43 = vld [vmem:[%s612_s21 + $0x18] sm:$0xff]  ;;  %v198_v44 = vld [vmem:[%s612_s21 + $0xa8] sm:$0xff] }
  0x1a   : > { %273 = vmatpush.msra.mxu0 %v209_v19  ;;  %480 = vmatpush.msra.mxu3 %v209_v19  ;;  %v181_v45 = vld [vmem:[%s612_s21 + $0x20] sm:$0xff]  ;;  %v191_v46 = vld [vmem:[%s612_s21 + $0x70] sm:$0xff]  ;;  %v184_v48 = vld [vmem:[%s612_s21 + $0x38] sm:$0xff] }
  0x1b   : > { %314 = vmatpush.msra.mxu1 %v641_v20  ;;  %v183_v47 = vld [vmem:[%s612_s21 + $0x30] sm:$0xff]  ;;  %v194_v49 = vld [vmem:[%s612_s21 + $0x88] sm:$0xff]  ;;  %v197_v52 = vld [vmem:[%s612_s21 + $0xa0] sm:$0xff] }
  0x1c   : > { %274 = vmatpush.msra.mxu0 %v208_v21  ;;  %481 = vmatpush.msra.mxu3 %v208_v21  ;;  %v186_v50 = vld [vmem:[%s612_s21 + $0x48] sm:$0xff]  ;;  %v187_v51 = vld [vmem:[%s612_s21 + $0x50] sm:$0xff]  ;;  %v196_v53 = vld [vmem:[%s612_s21 + $0x98] sm:$0xff] }
  0x1d   : > { %315 = vmatpush.msra.mxu1 %v650_v22  ;;  %v189_v54 = vld [vmem:[%s612_s21 + $0x60] sm:$0xff]  ;;  %v190_v55 = vld [vmem:[%s612_s21 + $0x68] sm:$0xff]  ;;  %v200_v56 = vld [vmem:[%s612_s21 + $0xb8] sm:$0xff] }
  0x1e   : > { %275 = vmatpush.msra.mxu0 %v207_v23  ;;  %482 = vmatpush.msra.mxu3 %v207_v23  ;;  %v199_v57 = vld [vmem:[%s612_s21 + $0xb0] sm:$0xff]  ;;  %v192_v58 = vld [vmem:[%s612_s21 + $0x78] sm:$0xff]  ;;  %v193_v59 = vld [vmem:[%s612_s21 + $0x80] sm:$0xff] }
  0x1f   : > { %316 = vmatpush.msra.mxu1 %v659_v24  ;;  %464 = vmatmul.msk.f32.gmra.mxu2 %vm241_vm0, %v182_v25  ;;  %v514_v62 = vld [vmem:[%s773_s2] ss:$0 sm:$0xff] }
  0x20   : > { %276 = vmatpush.msra.mxu0 %v206_v26  ;;  %483 = vmatpush.msra.mxu3 %v206_v26 }
  0x21   : > { %317 = vmatpush.msra.mxu1 %v669_v27 }
  0x22   : > { %277 = vmatpush.msra.mxu0 %v205_v28  ;;  %484 = vmatpush.msra.mxu3 %v205_v28 }
  0x23   : > { %318 = vmatpush.msra.mxu1 %v221_v29 }
  0x24   : > { %278 = vmatpush.msra.mxu0 %v204_v30  ;;  %485 = vmatpush.msra.mxu3 %v204_v30 }
  0x25   : > { %319 = vmatpush.msra.mxu1 %v220_v31 }
  0x26   : > { %279 = vmatpush.msra.mxu0 %v203_v32  ;;  %486 = vmatpush.msra.mxu3 %v203_v32 }
  0x27   : > { %320 = vmatpush.msra.mxu1 %v219_v33  ;;  %465 = vmatmul.msk.f32.gmra.mxu2 %vm241_vm0, %v185_v34 }
  0x28   : > { %280 = vmatpush.msra.mxu0 %v202_v35  ;;  %487 = vmatpush.msra.mxu3 %v202_v35 }
  0x29   : > { %321 = vmatpush.msra.mxu1 %v218_v36 }
  0x2a   : > { %281 = vmatpush.msra.mxu0 %v201_v37  ;;  %488 = vmatpush.msra.mxu3 %v201_v37 }
  0x2b   : > { %282 = vmatmul.f32.vlgmr.msra.gmra.mxu0 %v177_v38  ;;  %322 = vmatpush.msra.mxu1 %v217_v39 }
  0x2c   : > { %489 = vmatpush.msrb.mxu3 %v560_v2  ;;  %323 = vmatmul.f32.vlgmr.msra.gmra.mxu1 %v178_v41 }
  0x2d   : > { %300 = vmatmul.f32.vlgmr.msra.gmra.mxu3 %v195_v40 }
  0x2e   : > { %490 = vmatpush.msrb.mxu3 %v565_v3 }
  0x2f   : > { %466 = vmatmul.msk.f32.gmra.mxu2 %vm241_vm0, %v188_v42 }
  0x30   : > { %491 = vmatpush.msrb.mxu3 %v574_v5 }
  0x32   : > { %492 = vmatpush.msrb.mxu3 %v591_v9 }
  0x33   : > { %285 = vmatmul.f32.gmra.mxu0 %v180_v43 }
  0x34   : > { %493 = vmatpush.msrb.mxu3 %v604_v12  ;;  %326 = vmatmul.f32.gmra.mxu1 %v181_v45 }
  0x35   : > { %303 = vmatmul.f32.gmra.mxu3 %v198_v44 }
  0x36   : > { %494 = vmatpush.msrb.mxu3 %v621_v15 }
  0x37   : > { %467 = vmatmul.msk.f32.gmra.mxu2 %vm241_vm0, %v191_v46 }
  0x38   : > { %495 = vmatpush.msrb.mxu3 %v631_v18 }
  0x3a   : > { %496 = vmatpush.msrb.mxu3 %v641_v20 }
  0x3b   : > { %288 = vmatmul.f32.gmra.mxu0 %v183_v47 }
  0x3c   : > { %497 = vmatpush.msrb.mxu3 %v650_v22  ;;  %329 = vmatmul.f32.gmra.mxu1 %v184_v48 }
  0x3e   : > { %498 = vmatpush.msrb.mxu3 %v659_v24 }
  0x3f   : > { %468 = vmatmul.msk.f32.gmra.mxu2 %vm241_vm0, %v194_v49 }
  0x40   : > { %499 = vmatpush.msrb.mxu3 %v669_v27 }
  0x42   : > { %500 = vmatpush.msrb.mxu3 %v221_v29 }
  0x43   : > { %291 = vmatmul.f32.gmra.mxu0 %v186_v50 }
  0x44   : > { %501 = vmatpush.msrb.mxu3 %v220_v31  ;;  %332 = vmatmul.f32.gmra.mxu1 %v187_v51 }
  0x46   : > { %502 = vmatpush.msrb.mxu3 %v219_v33 }
  0x47   : > { %469 = vmatmul.msk.f32.gmra.mxu2 %vm241_vm0, %v197_v52 }
  0x48   : > { %503 = vmatpush.msrb.mxu3 %v218_v36 }
  0x4a   : > { %504 = vmatpush.msrb.mxu3 %v217_v39 }
  0x4b   : > { %341 = vmatmul.f32.vlgmr.msrb.gmra.mxu3 %v196_v53  ;;  %294 = vmatmul.f32.gmra.mxu0 %v189_v54 }
  0x4c   : > { %335 = vmatmul.f32.gmra.mxu1 %v190_v55 }
  0x4f   : > { %470 = vmatmul.msk.f32.gmra.mxu2 %vm241_vm0, %v200_v56 }
  0x53   : > { %344 = vmatmul.f32.gmra.mxu3 %v199_v57  ;;  %297 = vmatmul.f32.gmra.mxu0 %v192_v58 }
  0x54   : > { %338 = vmatmul.f32.gmra.mxu1 %v193_v59 }
  0x9a   : > { %v365_v60 = vpop.f32.mrf.mxu2 }
  0xa2   : > { %v368_v61 = vpop.f32.mrf.mxu2 }
  0xa8   : > { %v283_v63 = vpop.f32.mrf.mxu0 }
  0xa9   : > { %v284_v0 = vadd.f32 %v514_v62, %v283_v63  ;;  %v324_v1 = vpop.f32.mrf.mxu1 }
  0xaa   : > { %v371_v2 = vpop.f32.mrf.mxu2 }
  0xab   : > { %v325_v3 = vadd.f32 %v324_v1, %v284_v0 }
  0xad   : > { %v366_v4 = vadd.f32 %v365_v60, %v325_v3 }
  0xaf   : > { %390 = vst.msk [vmem:[%s750_s23] sm:$0xff] %vm389_vm1, %v366_v4 }
  0xb0   : > { %v286_v5 = vpop.f32.mrf.mxu0  ;;  %v301_v13 = vpop.f32.mrf.mxu3 }
  0xb1   : > { %v287_v6 = vadd.f32 %v514_v62, %v286_v5  ;;  %v327_v7 = vpop.f32.mrf.mxu1  ;;  %v302_v30 = vadd.f32 %v514_v62, %v301_v13 }
  0xb2   : > { %v374_v8 = vpop.f32.mrf.mxu2 }
  0xb3   : > { %v328_v9 = vadd.f32 %v327_v7, %v287_v6 }
  0xb5   : > { %v369_v10 = vadd.f32 %v368_v61, %v328_v9 }
  0xb7   : > { %391 = vst.msk [vmem:[%s750_s23 + $0x8] sm:$0xff] %vm389_vm1, %v369_v10 }
  0xb8   : > { %v289_v11 = vpop.f32.mrf.mxu0  ;;  %v304_v23 = vpop.f32.mrf.mxu3 }
  0xb9   : > { %v290_v12 = vadd.f32 %v514_v62, %v289_v11  ;;  %v330_v14 = vpop.f32.mrf.mxu1  ;;  %v305_v39 = vadd.f32 %v514_v62, %v304_v23 }
  0xba   : > { %v377_v15 = vpop.f32.mrf.mxu2 }
  0xbb   : > { %v331_v16 = vadd.f32 %v330_v14, %v290_v12 }
  0xbd   : > { %v372_v17 = vadd.f32 %v371_v2, %v331_v16 }
  0xbf   : > { %392 = vst.msk [vmem:[%s750_s23 + $0x10] sm:$0xff] %vm389_vm1, %v372_v17 }
  0xc0   : > { %v292_v18 = vpop.f32.mrf.mxu0 }
  0xc1   : > { %v293_v19 = vadd.f32 %v514_v62, %v292_v18  ;;  %v333_v20 = vpop.f32.mrf.mxu1 }
  0xc2   : > { %v380_v21 = vpop.f32.mrf.mxu2 }
  0xc3   : > { %v334_v22 = vadd.f32 %v333_v20, %v293_v19 }
  0xc5   : > { %v375_v24 = vadd.f32 %v374_v8, %v334_v22 }
  0xc7   : > { %393 = vst.msk [vmem:[%s750_s23 + $0x18] sm:$0xff] %vm389_vm1, %v375_v24 }
  0xc8   : > { %v295_v25 = vpop.f32.mrf.mxu0 }
  0xc9   : > { %v296_v26 = vadd.f32 %v514_v62, %v295_v25  ;;  %v336_v27 = vpop.f32.mrf.mxu1 }
  0xca   : > { %v383_v29 = vpop.f32.mrf.mxu2 }
  0xcb   : > { %v337_v28 = vadd.f32 %v336_v27, %v296_v26 }
  0xcd   : > { %v378_v31 = vadd.f32 %v377_v15, %v337_v28 }
  0xce   : > { %v342_v32 = vpop.f32.mrf.mxu3 }
  0xcf   : > { %v343_v33 = vadd.f32 %v342_v32, %v302_v30  ;;  %394 = vst.msk [vmem:[%s750_s23 + $0x20] sm:$0xff] %vm389_vm1, %v378_v31 }
  0xd0   : > { %v298_v35 = vpop.f32.mrf.mxu0 }
  0xd1   : > { %v384_v34 = vadd.f32 %v383_v29, %v343_v33  ;;  %v299_v36 = vadd.f32 %v514_v62, %v298_v35  ;;  %v339_v37 = vpop.f32.mrf.mxu1 }
  0xd2   : > { %v386_v42 = vpop.f32.mrf.mxu2 }
  0xd3   : > { %396 = vst.msk [vmem:[%s750_s23 + $0x30] sm:$0xff] %vm389_vm1, %v384_v34  ;;  %v340_v38 = vadd.f32 %v339_v37, %v299_v36 }
  0xd5   : > { %v381_v40 = vadd.f32 %v380_v21, %v340_v38 }
  0xd6   : > { %v345_v41 = vpop.f32.mrf.mxu3 }
  0xd7   : > { %v346_v43 = vadd.f32 %v345_v41, %v305_v39  ;;  %395 = vst.msk [vmem:[%s750_s23 + $0x28] sm:$0xff] %vm389_vm1, %v381_v40 }
  0xd9   : > { %v387_v44 = vadd.f32 %v386_v42, %v346_v43 }
  0xdb   : > { %397 = vst.msk [vmem:[%s750_s23 + $0x38] sm:$0xff] %vm389_vm1, %v387_v44 }
  0xdc PF: > { %s13_s12 = sadd.s32 1, %s521_s12  }
  0xdd   : > { %p10_p4 = scmp.ge.s32.totalorder %s13_s12, 4  }
  0xdf   :  { %12 = sbr.rel (!%p10_p4) target bundleno = 1 (0x1), region = 62 }

// kernel: _lambda_.18
= control target key start
LH: loop header
LB: loop body
LE: loop exit
PB: predicated region body
PF: predicated region fallthrough
CT: control target
= control target key end

     0   :  { %s794_s15 = smov 0   ;;  %s1127_s0 = inlined_call_operand.vmem [shape: f32[2,64,64], index: 0, kind: input, shape index: {}]   ;;  %s1128_s1 = inlined_call_operand.vmem [shape: f32[1,64], index: 1, kind: input, shape index: {}]   ;;  %s1129_s2 = inlined_call_operand.vmem [shape: f32[1,64], index: 2, kind: input, shape index: {}]   ;;  %s1130_s3 = inlined_call_operand.vmem [shape: f32[64,64], index: 3, kind: input, shape index: {}]   ;;  %s1131_s4 = inlined_call_operand.vmem [shape: f32[2,64,64], index: 4, kind: output, shape index: {}]  }
   0x1 LB: > { %s665_s16 = sadd.s32 4294967295, %s767_s15   ;;  %p669_p0 = scmp.ge.s32.totalorder %s767_s15, 1  ;;  %s767_s15 = sphi %s794_s15, %s14_s15  }
   0x2   : > { %p162_p1 = scmp.lt.s32.totalorder %s767_s15, 3 }
   0x4   : > { %p163_p2 = pnand %p669_p0, %p162_p1 }
   0x5   : > { %p188_p3 = scmp.lt.s32.totalorder (!%p163_p2), %s665_s16, 1 }
   0x6   : > { %166 = sbr.rel (%p163_p2) target bundleno = 285 (0x11d), region = 36 }
   0xb   : > { %v213_v0 = vld [vmem:[%s1130_s3 + $0x38] sm:$0xff]  ;;  %v212_v1 = vld [vmem:[%s1130_s3 + $0x30] sm:$0xff]  ;;  %v211_v2 = vld [vmem:[%s1130_s3 + $0x28] sm:$0xff]  ;;  %s1149_s16 = smov (!%p188_p3, %s665_s16), 1  ;;  %vm214_vm0 = vcmask 523264  }
   0xc   : > { %247 = vmatpush.msra.mxu0 %v213_v0  ;;  %341 = vmatpush.msra.mxu1 %v213_v0  ;;  %v210_v3 = vld [vmem:[%s1130_s3 + $0x20] sm:$0xff]  ;;  %s700_s25 = sshll.u32 %s1149_s16, 6  ;;  %v209_v4 = vld [vmem:[%s1130_s3 + $0x18] sm:$0xff]  ;;  %v208_v5 = vld [vmem:[%s1130_s3 + $0x10] sm:$0xff] }
   0xd   : > { %702 = vmatpush.msra.mxu2 %v213_v0  ;;  %710 = vmatpush.msra.mxu3 %v213_v0  ;;  %s825_s30 = scalar_lea.vmem %s1127_s0, %s700_s25  ;;  %v207_v7 = vld [vmem:[%s1130_s3 + $0x8] sm:$0xff]  ;;  %v206_v9 = vld [vmem:[%s1130_s3] sm:$0xff]  ;;  %s1087_s19 = scalar_lea.vmem %s1131_s4, %s700_s25 }
   0xe   : > { %248 = vmatpush.msra.mxu0 %v212_v1  ;;  %342 = vmatpush.msra.mxu1 %v212_v1  ;;  %v831_v6 = vld [vmem:[%s825_s30] sm:$0xff]  ;;  %v850_v12 = vld [vmem:[%s825_s30 + $0x8] sm:$0xff]  ;;  %v866_v16 = vld [vmem:[%s825_s30 + $0x10] sm:$0xff] }
   0xf   : > { %703 = vmatpush.msra.mxu2 %v212_v1  ;;  %711 = vmatpush.msra.mxu3 %v212_v1  ;;  %v837_v8 = vld [vmem:[%s825_s30 + $0x20] sm:$0xff]  ;;  %v301_v10 = vmul.f32 %v831_v6, %v831_v6  ;;  %v856_v13 = vld [vmem:[%s825_s30 + $0x28] sm:$0xff]  ;;  %v302_v14 = vmul.f32 %v850_v12, %v850_v12  ;;  %v872_v17 = vld [vmem:[%s825_s30 + $0x30] sm:$0xff]  ;;  %v303_v18 = vmul.f32 %v866_v16, %v866_v16 }
  0x10   : > { %249 = vmatpush.msra.mxu0 %v211_v2  ;;  %343 = vmatpush.msra.mxu1 %v211_v2  ;;  %v305_v11 = vmul.f32 %v837_v8, %v837_v8  ;;  %v306_v15 = vmul.f32 %v856_v13, %v856_v13  ;;  %v307_v19 = vmul.f32 %v872_v17, %v872_v17  ;;  %v882_v20 = vld [vmem:[%s825_s30 + $0x18] sm:$0xff] }
  0x11   : > { %704 = vmatpush.msra.mxu2 %v211_v2  ;;  %712 = vmatpush.msra.mxu3 %v211_v2  ;;  %v888_v21 = vld [vmem:[%s825_s30 + $0x38] sm:$0xff]  ;;  %v304_v22 = vmul.f32 %v882_v20, %v882_v20 }
  0x12   : > { %250 = vmatpush.msra.mxu0 %v210_v3  ;;  %344 = vmatpush.msra.mxu1 %v210_v3  ;;  %v308_v23 = vmul.f32 %v888_v21, %v888_v21 }
  0x13   : > { %705 = vmatpush.msra.mxu2 %v210_v3  ;;  %713 = vmatpush.msra.mxu3 %v210_v3 }
  0x14   : > { %251 = vmatpush.msra.mxu0 %v209_v4  ;;  %345 = vmatpush.msra.mxu1 %v209_v4 }
  0x15   : > { %706 = vmatpush.msra.mxu2 %v209_v4  ;;  %714 = vmatpush.msra.mxu3 %v209_v4 }
  0x16   : > { %252 = vmatpush.msra.mxu0 %v208_v5  ;;  %346 = vmatpush.msra.mxu1 %v208_v5 }
  0x17   : > { %707 = vmatpush.msra.mxu2 %v208_v5  ;;  %715 = vmatpush.msra.mxu3 %v208_v5 }
  0x18   : > { %253 = vmatpush.msra.mxu0 %v207_v7  ;;  %347 = vmatpush.msra.mxu1 %v207_v7 }
  0x19   : > { %708 = vmatpush.msra.mxu2 %v207_v7  ;;  %716 = vmatpush.msra.mxu3 %v207_v7 }
  0x1a   : > { %254 = vmatpush.msra.mxu0 %v206_v9  ;;  %348 = vmatpush.msra.mxu1 %v206_v9 }
  0x1b   : > { %674 = vmatmul.msk.f32.vlgmr.msra.gmra.mxu0 %vm214_vm0, %v831_v6  ;;  %682 = vmatmul.msk.f32.vlgmr.msra.gmra.mxu1 %vm214_vm0, %v301_v10 }
  0x1c   : > { %709 = vmatpush.msra.mxu2 %v206_v9  ;;  %717 = vmatpush.msra.mxu3 %v206_v9 }
  0x1d   : > { %678 = vmatmul.msk.f32.vlgmr.msra.gmra.mxu2 %vm214_vm0, %v837_v8  ;;  %686 = vmatmul.msk.f32.vlgmr.msra.gmra.mxu3 %vm214_vm0, %v305_v11 }
  0x23   : > { %675 = vmatmul.msk.f32.gmra.mxu0 %vm214_vm0, %v850_v12  ;;  %683 = vmatmul.msk.f32.gmra.mxu1 %vm214_vm0, %v302_v14 }
  0x25   : > { %679 = vmatmul.msk.f32.gmra.mxu2 %vm214_vm0, %v856_v13  ;;  %687 = vmatmul.msk.f32.gmra.mxu3 %vm214_vm0, %v306_v15 }
  0x2b   : > { %676 = vmatmul.msk.f32.gmra.mxu0 %vm214_vm0, %v866_v16  ;;  %684 = vmatmul.msk.f32.gmra.mxu1 %vm214_vm0, %v303_v18 }
  0x2d   : > { %680 = vmatmul.msk.f32.gmra.mxu2 %vm214_vm0, %v872_v17  ;;  %688 = vmatmul.msk.f32.gmra.mxu3 %vm214_vm0, %v307_v19 }
  0x33   : > { %677 = vmatmul.msk.f32.gmra.mxu0 %vm214_vm0, %v882_v20  ;;  %685 = vmatmul.msk.f32.gmra.mxu1 %vm214_vm0, %v304_v22 }
  0x35   : > { %681 = vmatmul.msk.f32.gmra.mxu2 %vm214_vm0, %v888_v21  ;;  %689 = vmatmul.msk.f32.gmra.mxu3 %vm214_vm0, %v308_v23 }
  0x98   : > { %v256_v24 = vpop.f32.mrf.mxu0  ;;  %v350_v25 = vpop.f32.mrf.mxu1 }
  0x99   : > { %v280_v36 = vsel %vm214_vm0, %v256_v24, 0.0  ;;  %v374_v38 = vsel %vm214_vm0, %v350_v25, 0.0 }
  0xa0   : > { %v259_v26 = vpop.f32.mrf.mxu0  ;;  %v268_v27 = vpop.f32.mrf.mxu2 }
  0xa1   : > { %v353_v28 = vpop.f32.mrf.mxu1  ;;  %v362_v29 = vpop.f32.mrf.mxu3  ;;  %v281_v34 = vsel %vm214_vm0, %v259_v26, 0.0  ;;  %v287_v51 = vsel %vm214_vm0, %v268_v27, 0.0 }
  0xa2   : > { %v375_v35 = vsel %vm214_vm0, %v353_v28, 0.0  ;;  %v282_v39 = vadd.f32 %v281_v34, %v280_v36  ;;  %v381_v53 = vsel %vm214_vm0, %v362_v29, 0.0 }
  0xa3   : > { %v376_v41 = vadd.f32 %v375_v35, %v374_v38  ;;  %v419_v38 = vld [vmem:[%s1128_s1] sm:$0x1] }
  0xa8   : > { %v262_v30 = vpop.f32.mrf.mxu0  ;;  %v271_v31 = vpop.f32.mrf.mxu2 }
  0xa9   : > { %v356_v32 = vpop.f32.mrf.mxu1  ;;  %v365_v33 = vpop.f32.mrf.mxu3  ;;  %v283_v37 = vsel %vm214_vm0, %v262_v30, 0.0  ;;  %v289_v55 = vsel %vm214_vm0, %v271_v31, 0.0 }
  0xaa   : > { %v377_v40 = vsel %vm214_vm0, %v356_v32, 0.0  ;;  %v284_v42 = vadd.f32 %v283_v37, %v282_v39  ;;  %v383_v57 = vsel %vm214_vm0, %v365_v33, 0.0 }
  0xab   : > { %v378_v45 = vadd.f32 %v377_v40, %v376_v41 }
  0xb0   : > { %v265_v43 = vpop.f32.mrf.mxu0  ;;  %v274_v44 = vpop.f32.mrf.mxu2 }
  0xb1   : > { %v285_v46 = vsel %vm214_vm0, %v265_v43, 0.0  ;;  %v359_v47 = vpop.f32.mrf.mxu1  ;;  %v368_v48 = vpop.f32.mrf.mxu3  ;;  %v291_v59 = vsel %vm214_vm0, %v274_v44, 0.0 }
  0xb2   : > { %v286_v49 = vadd.f32 %v285_v46, %v284_v42  ;;  %v379_v50 = vsel %vm214_vm0, %v359_v47, 0.0  ;;  %v385_v62 = vsel %vm214_vm0, %v368_v48, 0.0  ;;  %v726_v46 = vld [vmem:[%s1129_s2] ss:$0 sm:$0xff] }
  0xb3   : > { %v380_v52 = vadd.f32 %v379_v50, %v378_v45 }
  0xb4   : > { %v288_v54 = vadd.f32 %v287_v51, %v286_v49 }
  0xb5   : > { %v382_v56 = vadd.f32 %v381_v53, %v380_v52 }
  0xb6   : > { %v290_v58 = vadd.f32 %v289_v55, %v288_v54 }
  0xb7   : > { %v384_v60 = vadd.f32 %v383_v57, %v382_v56 }
  0xb8   : > { %v292_v61 = vadd.f32 %v291_v59, %v290_v58  ;;  %v277_v63 = vpop.f32.mrf.mxu2 }
  0xb9   : > { %v386_v0 = vadd.f32 %v385_v62, %v384_v60  ;;  %v293_v1 = vsel %vm214_vm0, %v277_v63, 0.0  ;;  %v371_v2 = vpop.f32.mrf.mxu3 }
  0xba   : > { %v294_v3 = vadd.f32 %v293_v1, %v292_v61  ;;  %v387_v4 = vsel %vm214_vm0, %v371_v2, 0.0 }
  0xbb   : > { %v388_v5 = vadd.f32 %v387_v4, %v386_v0 }
  0xbc   : > { %v295_v7 = vrot.slane %v294_v3, 4 }
  0xbd   : > { %v389_v9 = vrot.slane %v388_v5, 4 }
  0xbe   : > { %v296_v10 = vadd.f32 %v295_v7, %v294_v3 }
  0xbf   : > { %v390_v11 = vadd.f32 %v389_v9, %v388_v5 }
  0xc0   : > { %v297_v14 = vrot.slane %v296_v10, 2 }
  0xc1   : > { %v391_v15 = vrot.slane %v390_v11, 2 }
  0xc2   : > { %v298_v18 = vadd.f32 %v297_v14, %v296_v10 }
  0xc3   : > { %v392_v19 = vadd.f32 %v391_v15, %v390_v11 }
  0xc4   : > { %v299_v22 = vrot.slane %v298_v18, 1 }
  0xc5   : > { %v393_v23 = vrot.slane %v392_v19, 1 }
  0xc6   : > { %v300_v24 = vadd.f32 %v299_v22, %v298_v18 }
  0xc7   : > { %v394_v26 = vadd.f32 %v393_v23, %v392_v19 }
  0xc8   : > { %v395_v25 = vmul.f32 0.0078125, %v300_v24 }
  0xc9   : > { %v396_v27 = vmul.f32 0.0078125, %v394_v26 }
  0xca   : > { %v397_v28 = vmul.f32 %v395_v25, %v395_v25  ;;  %v411_v41 = vsub.f32 %v831_v6, %v395_v25  ;;  %v412_v42 = vsub.f32 %v850_v12, %v395_v25  ;;  %v413_v43 = vsub.f32 %v866_v16, %v395_v25 }
  0xcb   : > { %v414_v44 = vsub.f32 %v882_v20, %v395_v25  ;;  %v415_v47 = vsub.f32 %v837_v8, %v395_v25  ;;  %v416_v48 = vsub.f32 %v856_v13, %v395_v25  ;;  %v417_v49 = vsub.f32 %v872_v17, %v395_v25 }
  0xcc   : > { %v398_v29 = vsub.f32 %v396_v27, %v397_v28  ;;  %v418_v50 = vsub.f32 %v888_v21, %v395_v25 }
  0xce   : > { %v399_v30 = vmax.f32 %v398_v29, 0.0 }
  0xd0   : > { %v400_v31 = vadd.f32 1e-06, %v399_v30 }
  0xd2   : > { %727 = vrsqrt.f32 %v400_v31  ;;  %vm407_vm2 = vweird.f32 %v400_v31 }
  0xd8   : > { %v728_v32 = vpop.eup %727 }
  0xd9   : > { %v402_v33 = vmul.f32 %v728_v32, %v400_v31  ;;  %vm408_vm1 = vweird.f32 %v728_v32 }
  0xda   : > { %vm409_vm3 = vmor %vm407_vm2, %vm408_vm1 }
  0xdb   : > { %v403_v34 = vmul.f32 %v728_v32, %v402_v33 }
  0xdd   : > { %v404_v35 = vmul.f32 0.5, %v403_v34 }
  0xdf   : > { %v405_v36 = vsub.f32 1.5, %v404_v35 }
  0xe1   : > { %v406_v37 = vmul.f32 %v728_v32, %v405_v36 }
  0xe3   : > { %v410_v39 = vsel %vm409_vm3, %v728_v32, %v406_v37 }
  0xe4   : > { %v420_v40 = vmul.f32 %v419_v38, %v410_v39 }
  0xe6   : > { %v421_v45 = vperm.slane %v420_v40, 0 }
  0xe8   : > { %v422_v6 = vmul.f32 %v421_v45, %v411_v41  ;;  %v423_v51 = vmul.f32 %v421_v45, %v412_v42  ;;  %v424_v12 = vmul.f32 %v421_v45, %v413_v43  ;;  %v425_v52 = vmul.f32 %v421_v45, %v414_v44 }
  0xe9   : > { %v426_v16 = vmul.f32 %v421_v45, %v415_v47  ;;  %v427_v53 = vmul.f32 %v421_v45, %v416_v48  ;;  %v428_v20 = vmul.f32 %v421_v45, %v417_v49  ;;  %v429_v54 = vmul.f32 %v421_v45, %v418_v50 }
  0xea   : > { %v930_v55 = vadd.f32 %v726_v46, %v422_v6  ;;  %v932_v56 = vadd.f32 %v726_v46, %v423_v51  ;;  %v934_v57 = vadd.f32 %v726_v46, %v424_v12  ;;  %v936_v8 = vadd.f32 %v726_v46, %v425_v52 }
  0xeb   : > { %v938_v13 = vadd.f32 %v726_v46, %v426_v16  ;;  %v940_v17 = vadd.f32 %v726_v46, %v427_v53  ;;  %v945_v60 = vadd.f32 %v726_v46, %v428_v20  ;;  %v948_v62 = vadd.f32 %v726_v46, %v429_v54 }
  0xec   : > { %v690_v21 = vmul.f32 -1.442695, %v930_v55  ;;  %v691_v58 = vmul.f32 -1.442695, %v932_v56  ;;  %v692_v59 = vmul.f32 -1.442695, %v934_v57 }
  0xed   : > { %v693_v61 = vmul.f32 -1.442695, %v936_v8  ;;  %v694_v63 = vmul.f32 -1.442695, %v938_v13  ;;  %v695_v0 = vmul.f32 -1.442695, %v940_v17 }
  0xee   : > { %729 = vpow2.f32 %v690_v21  ;;  %v696_v1 = vmul.f32 -1.442695, %v945_v60  ;;  %v697_v2 = vmul.f32 -1.442695, %v948_v62 }
  0xef   : > { %731 = vpow2.f32 %v691_v58 }
  0xf0   : > { %733 = vpow2.f32 %v692_v59 }
  0xf1   : > { %735 = vpow2.f32 %v693_v61 }
  0xf2   : > { %737 = vpow2.f32 %v694_v63 }
  0xf3   : > { %739 = vpow2.f32 %v695_v0 }
  0xf4   : > { %v730_v3 = vpop.eup %729  ;;  %741 = vpow2.f32 %v696_v1 }
  0xf5   : > { %v732_v4 = vpop.eup %731  ;;  %v954_v5 = vadd.f32 1.0, %v730_v3  ;;  %743 = vpow2.f32 %v697_v2 }
  0xf6   : > { %v734_v7 = vpop.eup %733  ;;  %v956_v9 = vadd.f32 1.0, %v732_v4 }
  0xf7   : > { %v736_v10 = vpop.eup %735  ;;  %v958_v11 = vadd.f32 1.0, %v734_v7  ;;  %745 = vrcp.f32 %v954_v5  ;;  %v485_v22 = vand.u32 2147483648, %v954_v5  ;;  %vm479_vm4 = vweird.f32 %v954_v5 }
  0xf8   : > { %v738_v14 = vpop.eup %737  ;;  %v961_v15 = vadd.f32 1.0, %v736_v10  ;;  %747 = vrcp.f32 %v956_v9  ;;  %v500_v24 = vand.u32 2147483648, %v956_v9  ;;  %v483_v28 = vand.u32 2147483647, %v954_v5 }
  0xf9   : > { %v740_v18 = vpop.eup %739  ;;  %v964_v19 = vadd.f32 1.0, %v738_v14  ;;  %749 = vrcp.f32 %v958_v11  ;;  %v486_v31 = vor.u32 1.1754944e-38, %v485_v22  ;;  %vm494_vm5 = vweird.f32 %v956_v9 }
  0xfa   : > { %v742_v23 = vpop.eup %741  ;;  %v969_v26 = vadd.f32 1.0, %v740_v18  ;;  %751 = vrcp.f32 %v961_v15  ;;  %v498_v32 = vand.u32 2147483647, %v956_v9  ;;  %v515_v33 = vand.u32 2147483648, %v958_v11 }
  0xfb   : > { %v744_v25 = vpop.eup %743  ;;  %753 = vrcp.f32 %v964_v19  ;;  %v984_v34 = vadd.f32 1.0, %v742_v23  ;;  %v501_v36 = vor.u32 1.1754944e-38, %v500_v24  ;;  %vm509_vm6 = vweird.f32 %v958_v11 }
  0xfc   : > { %v513_v37 = vand.u32 2147483647, %v958_v11  ;;  %v992_v39 = vadd.f32 1.0, %v744_v25  ;;  %v528_v41 = vand.u32 2147483647, %v961_v15  ;;  %755 = vrcp.f32 %v969_v26 }
  0xfd   : > { %v972_v27 = vpop.eup %745  ;;  %vm997_vm8 = vcmp.eq.f32.partialorder %v483_v28, 8.507059e+37  ;;  %vm524_vm9 = vweird.f32 %v961_v15  ;;  %v530_v45 = vand.u32 2147483648, %v961_v15  ;;  %vm1006_vm10 = vcmp.eq.f32.partialorder %v498_v32, 8.507059e+37 }
  0xfe   : > { %v977_v29 = vpop.eup %747  ;;  %v475_v30 = vmul.f32 %v972_v27, %v954_v5  ;;  %vm480_vm7 = vweird.f32 %v972_v27  ;;  %v516_v49 = vor.u32 1.1754944e-38, %v515_v33  ;;  %vm539_vm11 = vweird.f32 %v964_v19 }
  0xff   : > { %v490_v35 = vmul.f32 %v977_v29, %v956_v9  ;;  %v990_v38 = vpop.eup %749  ;;  %v543_v50 = vand.u32 2147483647, %v964_v19  ;;  %vm495_vm12 = vweird.f32 %v977_v29  ;;  %vm1014_vm13 = vcmp.eq.f32.partialorder %v513_v37, 8.507059e+37  ;;  %vm1033_vm1 = vmor %vm479_vm4, %vm480_vm7 }
 0x100   : > { %v476_v40 = vsub.f32 1.0, %v475_v30  ;;  %v505_v44 = vmul.f32 %v990_v38, %v958_v11  ;;  %v752_v46 = vpop.eup %751  ;;  %vm1020_vm14 = vcmp.eq.f32.partialorder %v528_v41, 8.507059e+37  ;;  %v545_v21 = vand.u32 2147483648, %v964_v19  ;;  %vm1049_vm3 = vmor %vm494_vm5, %vm495_vm12 }
 0x101   : > { %v491_v43 = vsub.f32 1.0, %v490_v35  ;;  %v754_v6 = vpop.eup %753  ;;  %v520_v16 = vmul.f32 %v752_v46, %v961_v15  ;;  %vm510_vm15 = vweird.f32 %v990_v38  ;;  %v531_v1 = vor.u32 1.1754944e-38, %v530_v45 }
 0x102   : > { %v477_v47 = vmul.f32 %v972_v27, %v476_v40  ;;  %v506_v12 = vsub.f32 1.0, %v505_v44  ;;  %v535_v54 = vmul.f32 %v754_v6, %v964_v19  ;;  %v756_v63 = vpop.eup %755  ;;  %vm1037_vm2 = vcmp.eq.f32.partialorder %v543_v50, 8.507059e+37  ;;  %vm1059_vm7 = vmor %vm509_vm6, %vm510_vm15 }
 0x103   : > { %v492_v51 = vmul.f32 %v977_v29, %v491_v43  ;;  %v521_v61 = vsub.f32 1.0, %v520_v16  ;;  %757 = vrcp.f32 %v984_v34  ;;  %vm525_vm4 = vweird.f32 %v752_v46 }
 0x104   : > { %v478_v53 = vadd.f32 %v972_v27, %v477_v47  ;;  %v507_v59 = vmul.f32 %v990_v38, %v506_v12  ;;  %v536_v2 = vsub.f32 1.0, %v535_v54  ;;  %v550_v9 = vmul.f32 %v756_v63, %v969_v26  ;;  %vm526_vm5 = vmor %vm524_vm9, %vm525_vm4 }
 0x105   : > { %v493_v58 = vadd.f32 %v977_v29, %v492_v51  ;;  %v522_v10 = vmul.f32 %v752_v46, %v521_v61  ;;  %v546_v25 = vor.u32 1.1754944e-38, %v545_v21  ;;  %v560_v30 = vand.u32 2147483648, %v969_v26 }
 0x106   : > { %v482_v4 = vsel %vm1033_vm1, %v972_v27, %v478_v53  ;;  %v508_v7 = vadd.f32 %v990_v38, %v507_v59  ;;  %v537_v22 = vmul.f32 %v754_v6, %v536_v2  ;;  %vm540_vm1 = vweird.f32 %v754_v6 }
 0x107   : > { %v497_v14 = vsel %vm1049_vm3, %v977_v29, %v493_v58  ;;  %v523_v24 = vadd.f32 %v752_v46, %v522_v10  ;;  %v558_v27 = vand.u32 2147483647, %v969_v26  ;;  %v487_v11 = vsel %vm997_vm8, %v486_v31, %v482_v4  ;;  %vm541_vm6 = vmor %vm539_vm11, %vm540_vm1 }
 0x108   : > { %v512_v23 = vsel %vm1059_vm7, %v990_v38, %v508_v7  ;;  %v538_v28 = vadd.f32 %v754_v6, %v537_v22  ;;  %v551_v29 = vsub.f32 1.0, %v550_v9  ;;  %v502_v32 = vsel %vm1006_vm10, %v501_v36, %v497_v14 }
 0x109   : > { %v527_v33 = vsel %vm526_vm5, %v752_v46, %v523_v24  ;;  %vm555_vm12 = vweird.f32 %v756_v63  ;;  %759 = vrcp.f32 %v992_v39  ;;  %v758_v35 = vpop.eup %757  ;;  %v517_v31 = vsel %vm1014_vm13, %v516_v49, %v512_v23 }
 0x10a   : > { %v532_v15 = vsel %vm1020_vm14, %v531_v1, %v527_v33  ;;  %v542_v37 = vsel %vm541_vm6, %v754_v6, %v538_v28  ;;  %v552_v38 = vmul.f32 %v756_v63, %v551_v29  ;;  %v565_v36 = vmul.f32 %v758_v35, %v984_v34 }
 0x10b   : > { %v547_v19 = vsel %vm1037_vm2, %v546_v25, %v542_v37  ;;  %vm554_vm8 = vweird.f32 %v969_v26  ;;  %v594_v41 = vmul.f32 %v487_v11, %v930_v55  ;;  %v595_v42 = vmul.f32 %v502_v32, %v932_v56 }
 0x10c   : > { %v553_v40 = vadd.f32 %v756_v63, %v552_v38  ;;  %vm556_vm9 = vmor %vm554_vm8, %vm555_vm12  ;;  %v561_v43 = vor.u32 1.1754944e-38, %v560_v30  ;;  %v566_v44 = vsub.f32 1.0, %v565_v36  ;;  %v596_v45 = vmul.f32 %v517_v31, %v934_v57 }
 0x10d   : > { %v597_v46 = vmul.f32 %v532_v15, %v936_v8  ;;  %vm559_vm10 = vcmp.eq.f32.partialorder %v558_v27, 8.507059e+37  ;;  %v575_v48 = vand.u32 2147483648, %v984_v34  ;;  %v598_v26 = vmul.f32 %v547_v19, %v938_v13  ;;  %602 = vst.msk [vmem:[%s1087_s19] sm:$0xff] %vm214_vm0, %v594_v41 }
 0x10e   : > { %v557_v47 = vsel %vm556_vm9, %v756_v63, %v553_v40  ;;  %v567_v49 = vmul.f32 %v758_v35, %v566_v44  ;;  %vm570_vm11 = vweird.f32 %v758_v35  ;;  %v573_v50 = vand.u32 2147483647, %v984_v34  ;;  %603 = vst.msk [vmem:[%s1087_s19 + $0x8] sm:$0xff] %vm214_vm0, %v595_v42 }
 0x10f   : > { %v760_v55 = vpop.eup %759  ;;  %v562_v56 = vsel %vm559_vm10, %v561_v43, %v557_v47  ;;  %604 = vst.msk [vmem:[%s1087_s19 + $0x10] sm:$0xff] %vm214_vm0, %v596_v45  ;;  %vm569_vm13 = vweird.f32 %v984_v34  ;;  %v576_v13 = vor.u32 1.1754944e-38, %v575_v48  ;;  %v590_v52 = vand.u32 2147483648, %v992_v39 }
 0x110   : > { %v580_v57 = vmul.f32 %v760_v55, %v992_v39  ;;  %v599_v8 = vmul.f32 %v562_v56, %v940_v17  ;;  %v568_v6 = vadd.f32 %v758_v35, %v567_v49  ;;  %605 = vst.msk [vmem:[%s1087_s19 + $0x18] sm:$0xff] %vm214_vm0, %v597_v46  ;;  %vm571_vm14 = vmor %vm569_vm13, %vm570_vm11  ;;  %vm574_vm15 = vcmp.eq.f32.partialorder %v573_v50, 8.507059e+37 }
 0x111   : > { %606 = vst.msk [vmem:[%s1087_s19 + $0x20] sm:$0xff] %vm214_vm0, %v598_v26  ;;  %vm585_vm2 = vweird.f32 %v760_v55  ;;  %v588_v34 = vand.u32 2147483647, %v992_v39  ;;  %vm584_vm3 = vweird.f32 %v992_v39  ;;  %v591_v54 = vor.u32 1.1754944e-38, %v590_v52 }
 0x112   : > { %v581_v51 = vsub.f32 1.0, %v580_v57  ;;  %v572_v12 = vsel %vm571_vm14, %v758_v35, %v568_v6  ;;  %607 = vst.msk [vmem:[%s1087_s19 + $0x28] sm:$0xff] %vm214_vm0, %v599_v8  ;;  %vm586_vm4 = vmor %vm584_vm3, %vm585_vm2 }
 0x113   : > { %v577_v17 = vsel %vm574_vm15, %v576_v13, %v572_v12  ;;  %vm589_vm7 = vcmp.eq.f32.partialorder %v588_v34, 8.507059e+37 }
 0x114   : > { %v582_v16 = vmul.f32 %v760_v55, %v581_v51  ;;  %v600_v53 = vmul.f32 %v577_v17, %v945_v60 }
 0x116   : > { %v583_v20 = vadd.f32 %v760_v55, %v582_v16  ;;  %608 = vst.msk [vmem:[%s1087_s19 + $0x30] sm:$0xff] %vm214_vm0, %v600_v53 }
 0x118   : > { %v587_v21 = vsel %vm586_vm4, %v760_v55, %v583_v20 }
 0x119   : > { %v592_v58 = vsel %vm589_vm7, %v591_v54, %v587_v21 }
 0x11a   : > { %v601_v59 = vmul.f32 %v592_v58, %v948_v62 }
 0x11c   : > { %609 = vst.msk [vmem:[%s1087_s19 + $0x38] sm:$0xff] %vm214_vm0, %v601_v59 }
 0x11d PF: > { %s14_s15 = sadd.s32 1, %s767_s15  }
 0x11e   : > { %p11_p4 = scmp.ge.s32.totalorder %s14_s15, 4  }
 0x120   :  { %13 = sbr.rel (!%p11_p4) target bundleno = 1 (0x1), region = 66 }

// kernel: _lambda_.19
= control target key start
LH: loop header
LB: loop body
LE: loop exit
PB: predicated region body
PF: predicated region fallthrough
CT: control target
= control target key end

     0   :  { %s676_s12 = smov 0   ;;  %s1002_s0 = inlined_call_operand.vmem [shape: f32[128,576], index: 0, kind: input, shape index: {}]   ;;  %s1003_s1 = inlined_call_operand.vmem [shape: f32[576,64], index: 1, kind: input, shape index: {}]   ;;  %s1004_s2 = inlined_call_operand.vmem [shape: f32[1,64], index: 2, kind: input, shape index: {}]   ;;  %s1005_s3 = inlined_call_operand.vmem [shape: f32[128,64], index: 3, kind: output, shape index: {}]  }
   0x1 LB: > { %s587_s13 = sadd.s32 4294967295, %s654_s12   ;;  %p591_p0 = scmp.ge.s32.totalorder %s654_s12, 1  ;;  %s654_s12 = sphi %s676_s12, %s13_s12  }
   0x2   : > { %p139_p1 = scmp.lt.s32.totalorder %s654_s12, 3 }
   0x4   : > { %p140_p2 = pnand %p591_p0, %p139_p1 }
   0x5   : > { %s592_s7 = sshll.u32 (!%p140_p2), %s587_s13, 3 }
   0x6   : > { %143 = sbr.rel (%p140_p2) target bundleno = 270 (0x10e), region = 32  ;;  %p165_p3 = scmp.lt.s32.totalorder (!%p140_p2), %s592_s7, 15 }
   0xb   : > { %v232_v0 = vld [vmem:[%s1003_s1 + $0x78] sm:$0xff]  ;;  %v231_v1 = vld [vmem:[%s1003_s1 + $0x70] sm:$0xff]  ;;  %v230_v2 = vld [vmem:[%s1003_s1 + $0x68] sm:$0xff]  ;;  %s1007_s7 = smov (!%p165_p3, %s592_s7), 15  ;;  %vm293_vm0 = vcmask 523264  }
   0xc   : > { %606 = vmatpush.msra.mxu1 %v232_v0  ;;  %607 = vmatpush.msra.mxu2 %v232_v0  ;;  %v229_v3 = vld [vmem:[%s1003_s1 + $0x60] sm:$0xff]  ;;  %v228_v4 = vld [vmem:[%s1003_s1 + $0x58] sm:$0xff]  ;;  %v279_v6 = vld [vmem:[%s1003_s1 + $0x1f0] sm:$0xff]  ;;  %s638_s6 = smul.u32 40, %s1007_s7 }
   0xd   : > { %318 = vmatpush.msra.mxu0 %v232_v0  ;;  %v280_v5 = vld [vmem:[%s1003_s1 + $0x1f8] sm:$0xff]  ;;  %v227_v7 = vld [vmem:[%s1003_s1 + $0x50] sm:$0xff]  ;;  %v278_v8 = vld [vmem:[%s1003_s1 + $0x1e8] sm:$0xff] }
   0xe   : > { %608 = vmatpush.msra.mxu1 %v231_v1  ;;  %609 = vmatpush.msra.mxu2 %v231_v1  ;;  %v226_v9 = vld [vmem:[%s1003_s1 + $0x48] sm:$0xff]  ;;  %v277_v10 = vld [vmem:[%s1003_s1 + $0x1e0] sm:$0xff]  ;;  %v276_v12 = vld [vmem:[%s1003_s1 + $0x1d8] sm:$0xff]  ;;  %s770_s19 = scalar_lea.vmem %s1002_s0, %s638_s6 }
   0xf   : > { %319 = vmatpush.msra.mxu0 %v231_v1  ;;  %441 = vmatpush.msra.mxu3 %v280_v5  ;;  %v225_v11 = vld [vmem:[%s1003_s1 + $0x40] sm:$0xff]  ;;  %v224_v13 = vld [vmem:[%s1003_s1 + $0x38] sm:$0xff]  ;;  %v275_v14 = vld [vmem:[%s1003_s1 + $0x1d0] sm:$0xff] }
  0x10   : > { %610 = vmatpush.msra.mxu1 %v230_v2  ;;  %611 = vmatpush.msra.mxu2 %v230_v2  ;;  %v223_v15 = vld [vmem:[%s1003_s1 + $0x30] sm:$0xff]  ;;  %v274_v16 = vld [vmem:[%s1003_s1 + $0x1c8] sm:$0xff]  ;;  %v273_v18 = vld [vmem:[%s1003_s1 + $0x1c0] sm:$0xff] }
  0x11   : > { %320 = vmatpush.msra.mxu0 %v230_v2  ;;  %442 = vmatpush.msra.mxu3 %v279_v6  ;;  %v222_v17 = vld [vmem:[%s1003_s1 + $0x28] sm:$0xff]  ;;  %v221_v19 = vld [vmem:[%s1003_s1 + $0x20] sm:$0xff]  ;;  %v272_v20 = vld [vmem:[%s1003_s1 + $0x1b8] sm:$0xff] }
  0x12   : > { %612 = vmatpush.msra.mxu1 %v229_v3  ;;  %613 = vmatpush.msra.mxu2 %v229_v3  ;;  %v220_v21 = vld [vmem:[%s1003_s1 + $0x18] sm:$0xff]  ;;  %v271_v22 = vld [vmem:[%s1003_s1 + $0x1b0] sm:$0xff]  ;;  %v270_v24 = vld [vmem:[%s1003_s1 + $0x1a8] sm:$0xff] }
  0x13   : > { %321 = vmatpush.msra.mxu0 %v229_v3  ;;  %443 = vmatpush.msra.mxu3 %v278_v8  ;;  %v219_v23 = vld [vmem:[%s1003_s1 + $0x10] sm:$0xff]  ;;  %v218_v25 = vld [vmem:[%s1003_s1 + $0x8] sm:$0xff]  ;;  %v269_v26 = vld [vmem:[%s1003_s1 + $0x1a0] sm:$0xff] }
  0x14   : > { %614 = vmatpush.msra.mxu1 %v228_v4  ;;  %615 = vmatpush.msra.mxu2 %v228_v4  ;;  %v217_v27 = vld [vmem:[%s1003_s1] sm:$0xff]  ;;  %v187_v28 = vld [vmem:[%s770_s19 + $0x50] sm:$0xff]  ;;  %v264_v29 = vld [vmem:[%s1003_s1 + $0x178] sm:$0xff] }
  0x15   : > { %322 = vmatpush.msra.mxu0 %v228_v4  ;;  %444 = vmatpush.msra.mxu3 %v277_v10  ;;  %v248_v30 = vld [vmem:[%s1003_s1 + $0xf8] sm:$0xff]  ;;  %v207_v31 = vld [vmem:[%s770_s19 + $0xf0] sm:$0xff]  ;;  %v177_v34 = vld [vmem:[%s770_s19] sm:$0xff] }
  0x16   : > { %616 = vmatpush.msra.mxu1 %v227_v7  ;;  %617 = vmatpush.msra.mxu2 %v227_v7  ;;  %v263_v32 = vld [vmem:[%s1003_s1 + $0x170] sm:$0xff]  ;;  %v262_v35 = vld [vmem:[%s1003_s1 + $0x168] sm:$0xff]  ;;  %v288_v36 = vld [vmem:[%s1003_s1 + $0x238] sm:$0xff] }
  0x17   : > { %323 = vmatpush.msra.mxu0 %v227_v7  ;;  %445 = vmatpush.msra.mxu3 %v276_v12  ;;  %v247_v33 = vld [vmem:[%s1003_s1 + $0xf0] sm:$0xff]  ;;  %v246_v37 = vld [vmem:[%s1003_s1 + $0xe8] sm:$0xff]  ;;  %v268_v38 = vld [vmem:[%s1003_s1 + $0x198] sm:$0xff] }
  0x18   : > { %618 = vmatpush.msra.mxu1 %v226_v9  ;;  %619 = vmatpush.msra.mxu2 %v226_v9  ;;  %v261_v39 = vld [vmem:[%s1003_s1 + $0x160] sm:$0xff]  ;;  %v287_v40 = vld [vmem:[%s1003_s1 + $0x230] sm:$0xff]  ;;  %v192_v43 = vld [vmem:[%s770_s19 + $0x78] sm:$0xff] }
  0x19   : > { %324 = vmatpush.msra.mxu0 %v226_v9  ;;  %446 = vmatpush.msra.mxu3 %v275_v14  ;;  %v245_v41 = vld [vmem:[%s1003_s1 + $0xe0] sm:$0xff]  ;;  %v267_v42 = vld [vmem:[%s1003_s1 + $0x190] sm:$0xff]  ;;  %v260_v44 = vld [vmem:[%s1003_s1 + $0x158] sm:$0xff] }
  0x1a   : > { %620 = vmatpush.msra.mxu1 %v225_v11  ;;  %621 = vmatpush.msra.mxu2 %v225_v11  ;;  %v244_v45 = vld [vmem:[%s1003_s1 + $0xd8] sm:$0xff]  ;;  %v259_v47 = vld [vmem:[%s1003_s1 + $0x150] sm:$0xff]  ;;  %v286_v48 = vld [vmem:[%s1003_s1 + $0x228] sm:$0xff] }
  0x1b   : > { %325 = vmatpush.msra.mxu0 %v225_v11  ;;  %447 = vmatpush.msra.mxu3 %v274_v16  ;;  %v212_v46 = vld [vmem:[%s770_s19 + $0x118] sm:$0xff]  ;;  %v243_v49 = vld [vmem:[%s1003_s1 + $0xd0] sm:$0xff]  ;;  %v266_v50 = vld [vmem:[%s1003_s1 + $0x188] sm:$0xff] }
  0x1c   : > { %622 = vmatpush.msra.mxu1 %v224_v13  ;;  %623 = vmatpush.msra.mxu2 %v224_v13  ;;  %v258_v51 = vld [vmem:[%s1003_s1 + $0x148] sm:$0xff]  ;;  %v285_v52 = vld [vmem:[%s1003_s1 + $0x220] sm:$0xff]  ;;  %v180_v58 = vld [vmem:[%s770_s19 + $0x18] sm:$0xff] }
  0x1d   : > { %326 = vmatpush.msra.mxu0 %v224_v13  ;;  %448 = vmatpush.msra.mxu3 %v273_v18  ;;  %v242_v53 = vld [vmem:[%s1003_s1 + $0xc8] sm:$0xff]  ;;  %v265_v54 = vld [vmem:[%s1003_s1 + $0x180] sm:$0xff]  ;;  %v256_v60 = vld [vmem:[%s1003_s1 + $0x138] sm:$0xff] }
  0x1e   : > { %624 = vmatpush.msra.mxu1 %v223_v15  ;;  %625 = vmatpush.msra.mxu2 %v223_v15  ;;  %v257_v55 = vld [vmem:[%s1003_s1 + $0x140] sm:$0xff]  ;;  %v182_v56 = vld [vmem:[%s770_s19 + $0x28] sm:$0xff]  ;;  %v240_v61 = vld [vmem:[%s1003_s1 + $0xb8] sm:$0xff] }
  0x1f   : > { %327 = vmatpush.msra.mxu0 %v223_v15  ;;  %449 = vmatpush.msra.mxu3 %v272_v20  ;;  %v241_v57 = vld [vmem:[%s1003_s1 + $0xc0] sm:$0xff]  ;;  %v284_v62 = vld [vmem:[%s1003_s1 + $0x218] sm:$0xff]  ;;  %v255_v63 = vld [vmem:[%s1003_s1 + $0x130] sm:$0xff] }
  0x20   : > { %626 = vmatpush.msra.mxu1 %v222_v17  ;;  %627 = vmatpush.msra.mxu2 %v222_v17  ;;  %v197_v59 = vld [vmem:[%s770_s19 + $0xa0] sm:$0xff]  ;;  %v239_v0 = vld [vmem:[%s1003_s1 + $0xb0] sm:$0xff]  ;;  %v254_v2 = vld [vmem:[%s1003_s1 + $0x128] sm:$0xff] }
  0x21   : > { %328 = vmatpush.msra.mxu0 %v222_v17  ;;  %450 = vmatpush.msra.mxu3 %v271_v22  ;;  %v283_v1 = vld [vmem:[%s1003_s1 + $0x210] sm:$0xff]  ;;  %v238_v3 = vld [vmem:[%s1003_s1 + $0xa8] sm:$0xff]  ;;  %v253_v5 = vld [vmem:[%s1003_s1 + $0x120] sm:$0xff] }
  0x22   : > { %628 = vmatpush.msra.mxu1 %v221_v19  ;;  %629 = vmatpush.msra.mxu2 %v221_v19  ;;  %v282_v4 = vld [vmem:[%s1003_s1 + $0x208] sm:$0xff]  ;;  %v237_v6 = vld [vmem:[%s1003_s1 + $0xa0] sm:$0xff]  ;;  %v252_v9 = vld [vmem:[%s1003_s1 + $0x118] sm:$0xff] }
  0x23   : > { %329 = vmatpush.msra.mxu0 %v221_v19  ;;  %451 = vmatpush.msra.mxu3 %v270_v24  ;;  %v281_v7 = vld [vmem:[%s1003_s1 + $0x200] sm:$0xff]  ;;  %v202_v8 = vld [vmem:[%s770_s19 + $0xc8] sm:$0xff]  ;;  %v236_v10 = vld [vmem:[%s1003_s1 + $0x98] sm:$0xff] }
  0x24   : > { %630 = vmatpush.msra.mxu1 %v220_v21  ;;  %631 = vmatpush.msra.mxu2 %v220_v21  ;;  %v185_v11 = vld [vmem:[%s770_s19 + $0x40] sm:$0xff]  ;;  %v251_v12 = vld [vmem:[%s1003_s1 + $0x110] sm:$0xff]  ;;  %v250_v15 = vld [vmem:[%s1003_s1 + $0x108] sm:$0xff] }
  0x25   : > { %330 = vmatpush.msra.mxu0 %v220_v21  ;;  %452 = vmatpush.msra.mxu3 %v269_v26  ;;  %v181_v13 = vld [vmem:[%s770_s19 + $0x20] sm:$0xff]  ;;  %v235_v14 = vld [vmem:[%s1003_s1 + $0x90] sm:$0xff]  ;;  %v234_v16 = vld [vmem:[%s1003_s1 + $0x88] sm:$0xff] }
  0x26   : > { %632 = vmatpush.msra.mxu1 %v219_v23  ;;  %633 = vmatpush.msra.mxu2 %v219_v23  ;;  %v249_v17 = vld [vmem:[%s1003_s1 + $0x100] sm:$0xff]  ;;  %v179_v19 = vld [vmem:[%s770_s19 + $0x10] sm:$0xff]  ;;  %v178_v20 = vld [vmem:[%s770_s19 + $0x8] sm:$0xff] }
  0x27   : > { %331 = vmatpush.msra.mxu0 %v219_v23  ;;  %453 = vmatpush.msra.mxu3 %v268_v38  ;;  %v233_v18 = vld [vmem:[%s1003_s1 + $0x80] sm:$0xff]  ;;  %v190_v21 = vld [vmem:[%s770_s19 + $0x68] sm:$0xff]  ;;  %v184_v23 = vld [vmem:[%s770_s19 + $0x38] sm:$0xff] }
  0x28   : > { %634 = vmatpush.msra.mxu1 %v218_v25  ;;  %635 = vmatpush.msra.mxu2 %v218_v25  ;;  %v186_v22 = vld [vmem:[%s770_s19 + $0x48] sm:$0xff]  ;;  %v183_v24 = vld [vmem:[%s770_s19 + $0x30] sm:$0xff] }
  0x29   : > { %332 = vmatpush.msra.mxu0 %v218_v25  ;;  %454 = vmatpush.msra.mxu3 %v267_v42  ;;  %v195_v25 = vld [vmem:[%s770_s19 + $0x90] sm:$0xff]  ;;  %v206_v38 = vld [vmem:[%s770_s19 + $0xe8] sm:$0xff] }
  0x2a   : > { %636 = vmatpush.msra.mxu1 %v217_v27  ;;  %637 = vmatpush.msra.mxu2 %v217_v27  ;;  %v191_v26 = vld [vmem:[%s770_s19 + $0x70] sm:$0xff] }
  0x2b   : > { %340 = vmatmul.f32.vlgmr.msra.gmra.mxu1 %v187_v28  ;;  %352 = vmatmul.f32.vlgmr.msra.gmra.mxu2 %v207_v31  ;;  %v188_v28 = vld [vmem:[%s770_s19 + $0x58] sm:$0xff]  ;;  %v194_v31 = vld [vmem:[%s770_s19 + $0x88] sm:$0xff]  ;;  %v211_v42 = vld [vmem:[%s770_s19 + $0x110] sm:$0xff] }
  0x2c   : > { %400 = vmatpush.msrb.mxu2 %v264_v29  ;;  %359 = vmatpush.msrb.mxu1 %v248_v30  ;;  %v200_v29 = vld [vmem:[%s770_s19 + $0xb8] sm:$0xff] }
  0x2d   : > { %333 = vmatpush.msra.mxu0 %v217_v27  ;;  %455 = vmatpush.msra.mxu3 %v266_v50  ;;  %v189_v27 = vld [vmem:[%s770_s19 + $0x60] sm:$0xff]  ;;  %v196_v30 = vld [vmem:[%s770_s19 + $0x98] sm:$0xff] }
  0x2e   : > { %401 = vmatpush.msrb.mxu2 %v263_v32  ;;  %360 = vmatpush.msrb.mxu1 %v247_v33  ;;  %v193_v32 = vld [vmem:[%s770_s19 + $0x80] sm:$0xff] }
  0x2f   : > { %334 = vmatmul.f32.vlgmr.msra.gmra.mxu0 %v177_v34  ;;  %456 = vmatpush.msra.mxu3 %v265_v54  ;;  %v205_v33 = vld [vmem:[%s770_s19 + $0xe0] sm:$0xff] }
  0x30   : > { %402 = vmatpush.msrb.mxu2 %v262_v35  ;;  %490 = vmatpush.msrb.mxu0 %v288_v36  ;;  %v201_v34 = vld [vmem:[%s770_s19 + $0xc0] sm:$0xff]  ;;  %v199_v35 = vld [vmem:[%s770_s19 + $0xb0] sm:$0xff]  ;;  %v198_v36 = vld [vmem:[%s770_s19 + $0xa8] sm:$0xff] }
  0x31   : > { %361 = vmatpush.msrb.mxu1 %v246_v37  ;;  %457 = vmatmul.f32.vlgmr.msra.gmra.mxu3 %v180_v58  ;;  %v210_v37 = vld [vmem:[%s770_s19 + $0x108] sm:$0xff]  ;;  %v965_v58 = vld [vmem:[%s1004_s2] ss:$0 sm:$0xff] }
  0x32   : > { %403 = vmatpush.msrb.mxu2 %v261_v39  ;;  %491 = vmatpush.msrb.mxu0 %v287_v40  ;;  %v204_v39 = vld [vmem:[%s770_s19 + $0xd8] sm:$0xff]  ;;  %v203_v40 = vld [vmem:[%s770_s19 + $0xd0] sm:$0xff] }
  0x33   : > { %362 = vmatpush.msrb.mxu1 %v245_v41  ;;  %355 = vmatmul.f32.gmra.mxu2 %v212_v46  ;;  %v215_v41 = vld [vmem:[%s770_s19 + $0x130] sm:$0xff]  ;;  %v214_v46 = vld [vmem:[%s770_s19 + $0x128] sm:$0xff] }
  0x34   : > { %343 = vmatmul.f32.gmra.mxu1 %v192_v43  ;;  %404 = vmatpush.msrb.mxu2 %v260_v44  ;;  %v209_v43 = vld [vmem:[%s770_s19 + $0x100] sm:$0xff]  ;;  %v208_v44 = vld [vmem:[%s770_s19 + $0xf8] sm:$0xff] }
  0x35   : > { %363 = vmatpush.msrb.mxu1 %v244_v45  ;;  %492 = vmatpush.msrb.mxu0 %v286_v48  ;;  %v216_v45 = vld [vmem:[%s770_s19 + $0x138] sm:$0xff] }
  0x36   : > { %405 = vmatpush.msrb.mxu2 %v259_v47  ;;  %v213_v47 = vld [vmem:[%s770_s19 + $0x120] sm:$0xff]  ;;  %s595_s19 = sshll.u32 %s1007_s7, 3 }
  0x37   : > { %364 = vmatpush.msrb.mxu1 %v243_v49  ;;  %493 = vmatpush.msrb.mxu0 %v285_v52  ;;  %s972_s20 = scalar_lea.vmem %s1005_s3, %s595_s19 }
  0x38   : > { %406 = vmatpush.msrb.mxu2 %v258_v51  ;;  %337 = vmatmul.f32.gmra.mxu0 %v182_v56 }
  0x39   : > { %365 = vmatpush.msrb.mxu1 %v242_v53  ;;  %494 = vmatpush.msrb.mxu0 %v284_v62 }
  0x3a   : > { %407 = vmatpush.msrb.mxu2 %v257_v55  ;;  %460 = vmatmul.f32.gmra.mxu3 %v185_v11 }
  0x3b   : > { %366 = vmatpush.msrb.mxu1 %v241_v57  ;;  %495 = vmatpush.msrb.mxu0 %v283_v1 }
  0x3c   : > { %346 = vmatmul.f32.gmra.mxu1 %v197_v59  ;;  %408 = vmatpush.msrb.mxu2 %v256_v60 }
  0x3d   : > { %367 = vmatpush.msrb.mxu1 %v240_v61  ;;  %496 = vmatpush.msrb.mxu0 %v282_v4 }
  0x3e   : > { %409 = vmatpush.msrb.mxu2 %v255_v63 }
  0x3f   : > { %368 = vmatpush.msrb.mxu1 %v239_v0  ;;  %497 = vmatpush.msrb.mxu0 %v281_v7 }
  0x40   : > { %410 = vmatpush.msrb.mxu2 %v254_v2  ;;  %596 = vmatmul.msk.f32.vlgmr.msrb.gmra.mxu0 %vm293_vm0, %v181_v13 }
  0x41   : > { %369 = vmatpush.msrb.mxu1 %v238_v3 }
  0x42   : > { %411 = vmatpush.msrb.mxu2 %v253_v5  ;;  %463 = vmatmul.f32.gmra.mxu3 %v190_v21 }
  0x43   : > { %370 = vmatpush.msrb.mxu1 %v237_v6 }
  0x44   : > { %349 = vmatmul.f32.gmra.mxu1 %v202_v8  ;;  %412 = vmatpush.msrb.mxu2 %v252_v9 }
  0x45   : > { %371 = vmatpush.msrb.mxu1 %v236_v10 }
  0x46   : > { %413 = vmatpush.msrb.mxu2 %v251_v12 }
  0x47   : > { %372 = vmatpush.msrb.mxu1 %v235_v14 }
  0x48   : > { %414 = vmatpush.msrb.mxu2 %v250_v15  ;;  %597 = vmatmul.msk.f32.gmra.mxu0 %vm293_vm0, %v186_v22 }
  0x49   : > { %373 = vmatpush.msrb.mxu1 %v234_v16 }
  0x4a   : > { %415 = vmatpush.msrb.mxu2 %v249_v17  ;;  %466 = vmatmul.f32.gmra.mxu3 %v195_v25 }
  0x4b   : > { %374 = vmatpush.msrb.mxu1 %v233_v18  ;;  %416 = vmatmul.f32.vlgmr.msrb.gmra.mxu2 %v179_v19 }
  0x4c   : > { %375 = vmatmul.f32.vlgmr.msrb.gmra.mxu1 %v178_v20 }
  0x50   : > { %598 = vmatmul.msk.f32.gmra.mxu0 %vm293_vm0, %v191_v26 }
  0x52   : > { %469 = vmatmul.f32.gmra.mxu3 %v200_v29 }
  0x53   : > { %419 = vmatmul.f32.gmra.mxu2 %v184_v23 }
  0x54   : > { %378 = vmatmul.f32.gmra.mxu1 %v183_v24 }
  0x58   : > { %599 = vmatmul.msk.f32.gmra.mxu0 %vm293_vm0, %v196_v30 }
  0x5a   : > { %472 = vmatmul.f32.gmra.mxu3 %v205_v33 }
  0x5b   : > { %422 = vmatmul.f32.gmra.mxu2 %v189_v27 }
  0x5c   : > { %381 = vmatmul.f32.gmra.mxu1 %v188_v28 }
  0x60   : > { %600 = vmatmul.msk.f32.gmra.mxu0 %vm293_vm0, %v201_v34 }
  0x62   : > { %475 = vmatmul.f32.gmra.mxu3 %v210_v37 }
  0x63   : > { %425 = vmatmul.f32.gmra.mxu2 %v194_v31 }
  0x64   : > { %384 = vmatmul.f32.gmra.mxu1 %v193_v32 }
  0x68   : > { %601 = vmatmul.msk.f32.gmra.mxu0 %vm293_vm0, %v206_v38 }
  0x6a   : > { %478 = vmatmul.f32.gmra.mxu3 %v215_v41 }
  0x6b   : > { %428 = vmatmul.f32.gmra.mxu2 %v199_v35 }
  0x6c   : > { %387 = vmatmul.f32.gmra.mxu1 %v198_v36 }
  0x70   : > { %602 = vmatmul.msk.f32.gmra.mxu0 %vm293_vm0, %v211_v42 }
  0x73   : > { %431 = vmatmul.f32.gmra.mxu2 %v204_v39 }
  0x74   : > { %390 = vmatmul.f32.gmra.mxu1 %v203_v40 }
  0x78   : > { %603 = vmatmul.msk.f32.gmra.mxu0 %vm293_vm0, %v216_v45 }
  0x7b   : > { %434 = vmatmul.f32.gmra.mxu2 %v209_v43 }
  0x7c   : > { %393 = vmatmul.f32.gmra.mxu1 %v208_v44 }
  0x83   : > { %437 = vmatmul.f32.gmra.mxu2 %v214_v46 }
  0x84   : > { %396 = vmatmul.f32.gmra.mxu1 %v213_v47 }
  0xa8   : > { %v341_v48 = vpop.f32.mrf.mxu1 }
  0xa9   : > { %v342_v13 = vadd.f32 %v965_v58, %v341_v48 }
  0xac   : > { %v335_v49 = vpop.f32.mrf.mxu0 }
  0xad   : > { %v336_v61 = vadd.f32 %v965_v58, %v335_v49 }
  0xae   : > { %v958_v53 = vpop.f32.mrf.mxu2 }
  0xaf   : > { %v354_v47 = vadd.f32 %v965_v58, %v958_v53 }
  0xb1   : > { %v344_v50 = vpop.f32.mrf.mxu1 }
  0xb2   : > { %v345_v22 = vadd.f32 %v965_v58, %v344_v50 }
  0xb4   : > { %v458_v54 = vpop.f32.mrf.mxu3 }
  0xb5   : > { %v338_v52 = vpop.f32.mrf.mxu0 }
  0xb6   : > { %v960_v57 = vpop.f32.mrf.mxu2  ;;  %v339_v4 = vadd.f32 %v965_v58, %v338_v52 }
  0xb9   : > { %v347_v51 = vpop.f32.mrf.mxu1 }
  0xba   : > { %v348_v31 = vadd.f32 %v965_v58, %v347_v51 }
  0xbd   : > { %v499_v56 = vpop.f32.mrf.mxu0  ;;  %v461_v60 = vpop.f32.mrf.mxu3 }
  0xc1   : > { %v350_v55 = vpop.f32.mrf.mxu1 }
  0xc2   : > { %v351_v39 = vadd.f32 %v965_v58, %v350_v55 }
  0xc5   : > { %v502_v62 = vpop.f32.mrf.mxu0  ;;  %v464_v6 = vpop.f32.mrf.mxu3 }
  0xc9   : > { %v376_v59 = vpop.f32.mrf.mxu1 }
  0xca   : > { %v377_v63 = vadd.f32 %v376_v59, %v336_v61  ;;  %v357_v59 = vadd.f32 %v965_v58, %v960_v57 }
  0xcd   : > { %v505_v9 = vpop.f32.mrf.mxu0  ;;  %v467_v17 = vpop.f32.mrf.mxu3 }
  0xce   : > { %v417_v0 = vpop.f32.mrf.mxu2 }
  0xcf   : > { %v418_v1 = vadd.f32 %v417_v0, %v377_v63 }
  0xd1   : > { %v459_v2 = vadd.f32 %v458_v54, %v418_v1  ;;  %v379_v3 = vpop.f32.mrf.mxu1 }
  0xd2   : > { %v380_v7 = vadd.f32 %v379_v3, %v339_v4 }
  0xd3   : > { %v500_v5 = vadd.f32 %v499_v56, %v459_v2 }
  0xd5   : > { %523 = vst.msk [vmem:[%s972_s20] sm:$0xff] %vm293_vm0, %v500_v5  ;;  %v508_v19 = vpop.f32.mrf.mxu0  ;;  %v470_v27 = vpop.f32.mrf.mxu3 }
  0xd6   : > { %v420_v8 = vpop.f32.mrf.mxu2 }
  0xd7   : > { %v421_v10 = vadd.f32 %v420_v8, %v380_v7 }
  0xd9   : > { %v462_v11 = vadd.f32 %v461_v60, %v421_v10  ;;  %v382_v12 = vpop.f32.mrf.mxu1 }
  0xda   : > { %v383_v15 = vadd.f32 %v382_v12, %v342_v13 }
  0xdb   : > { %v503_v14 = vadd.f32 %v502_v62, %v462_v11 }
  0xdd   : > { %524 = vst.msk [vmem:[%s972_s20 + $0x8] sm:$0xff] %vm293_vm0, %v503_v14  ;;  %v511_v30 = vpop.f32.mrf.mxu0  ;;  %v473_v38 = vpop.f32.mrf.mxu3 }
  0xde   : > { %v423_v16 = vpop.f32.mrf.mxu2 }
  0xdf   : > { %v424_v18 = vadd.f32 %v423_v16, %v383_v15 }
  0xe1   : > { %v465_v20 = vadd.f32 %v464_v6, %v424_v18  ;;  %v385_v21 = vpop.f32.mrf.mxu1 }
  0xe2   : > { %v386_v24 = vadd.f32 %v385_v21, %v345_v22 }
  0xe3   : > { %v506_v23 = vadd.f32 %v505_v9, %v465_v20 }
  0xe5   : > { %525 = vst.msk [vmem:[%s972_s20 + $0x10] sm:$0xff] %vm293_vm0, %v506_v23  ;;  %v514_v41 = vpop.f32.mrf.mxu0  ;;  %v476_v49 = vpop.f32.mrf.mxu3 }
  0xe6   : > { %v426_v25 = vpop.f32.mrf.mxu2 }
  0xe7   : > { %v427_v26 = vadd.f32 %v426_v25, %v386_v24 }
  0xe9   : > { %v468_v28 = vadd.f32 %v467_v17, %v427_v26  ;;  %v388_v29 = vpop.f32.mrf.mxu1 }
  0xea   : > { %v389_v33 = vadd.f32 %v388_v29, %v348_v31 }
  0xeb   : > { %v509_v32 = vadd.f32 %v508_v19, %v468_v28 }
  0xed   : > { %526 = vst.msk [vmem:[%s972_s20 + $0x18] sm:$0xff] %vm293_vm0, %v509_v32  ;;  %v517_v52 = vpop.f32.mrf.mxu0  ;;  %v479_v53 = vpop.f32.mrf.mxu3 }
  0xee   : > { %v429_v34 = vpop.f32.mrf.mxu2 }
  0xef   : > { %v430_v35 = vadd.f32 %v429_v34, %v389_v33 }
  0xf1   : > { %v471_v36 = vadd.f32 %v470_v27, %v430_v35  ;;  %v391_v37 = vpop.f32.mrf.mxu1 }
  0xf2   : > { %v392_v42 = vadd.f32 %v391_v37, %v351_v39 }
  0xf3   : > { %v512_v40 = vadd.f32 %v511_v30, %v471_v36 }
  0xf5   : > { %527 = vst.msk [vmem:[%s972_s20 + $0x20] sm:$0xff] %vm293_vm0, %v512_v40  ;;  %v520_v0 = vpop.f32.mrf.mxu0 }
  0xf6   : > { %v432_v43 = vpop.f32.mrf.mxu2 }
  0xf7   : > { %v433_v44 = vadd.f32 %v432_v43, %v392_v42 }
  0xf9   : > { %v474_v45 = vadd.f32 %v473_v38, %v433_v44  ;;  %v394_v46 = vpop.f32.mrf.mxu1 }
  0xfa   : > { %v395_v50 = vadd.f32 %v394_v46, %v354_v47 }
  0xfb   : > { %v515_v48 = vadd.f32 %v514_v41, %v474_v45 }
  0xfd   : > { %528 = vst.msk [vmem:[%s972_s20 + $0x28] sm:$0xff] %vm293_vm0, %v515_v48 }
  0xfe   : > { %v435_v51 = vpop.f32.mrf.mxu2 }
  0xff   : > { %v436_v54 = vadd.f32 %v435_v51, %v395_v50 }
 0x101   : > { %v477_v55 = vadd.f32 %v476_v49, %v436_v54  ;;  %v397_v56 = vpop.f32.mrf.mxu1 }
 0x102   : > { %v398_v61 = vadd.f32 %v397_v56, %v357_v59 }
 0x103   : > { %v518_v60 = vadd.f32 %v517_v52, %v477_v55 }
 0x105   : > { %529 = vst.msk [vmem:[%s972_s20 + $0x30] sm:$0xff] %vm293_vm0, %v518_v60 }
 0x106   : > { %v438_v62 = vpop.f32.mrf.mxu2 }
 0x107   : > { %v439_v63 = vadd.f32 %v438_v62, %v398_v61 }
 0x109   : > { %v480_v1 = vadd.f32 %v479_v53, %v439_v63 }
 0x10b   : > { %v521_v2 = vadd.f32 %v520_v0, %v480_v1 }
 0x10d   : > { %530 = vst.msk [vmem:[%s972_s20 + $0x38] sm:$0xff] %vm293_vm0, %v521_v2 }
 0x10e PF: > { %s13_s12 = sadd.s32 1, %s654_s12  }
 0x10f   : > { %p10_p4 = scmp.ge.s32.totalorder %s13_s12, 4  }
 0x111   :  { %12 = sbr.rel (!%p10_p4) target bundleno = 1 (0x1), region = 62 }

// kernel: _lambda_.26
= control target key start
LH: loop header
LB: loop body
LE: loop exit
PB: predicated region body
PF: predicated region fallthrough
CT: control target
= control target key end

     0   :  { %s1292_s12 = smov 0   ;;  %s1924_s0 = inlined_call_operand.vmem [shape: f32[512,576], index: 0, kind: input, shape index: {}]   ;;  %s1925_s1 = inlined_call_operand.vmem [shape: f32[576,64], index: 1, kind: input, shape index: {}]   ;;  %s1926_s2 = inlined_call_operand.vmem [shape: f32[1,64], index: 2, kind: input, shape index: {}]   ;;  %s1927_s3 = inlined_call_operand.vmem [shape: f32[512,64], index: 3, kind: output, shape index: {}]  }
   0x1 LB: > { %s1163_s13 = sadd.s32 4294967295, %s1270_s12   ;;  %p1167_p0 = scmp.ge.s32.totalorder %s1270_s12, 1  ;;  %s1270_s12 = sphi %s1292_s12, %s13_s12  }
   0x2   : > { %p139_p1 = scmp.lt.s32.totalorder %s1270_s12, 3 }
   0x4   : > { %p140_p2 = pnand %p1167_p0, %p139_p1 }
   0x5   : > { %s1168_s28 = sshll.u32 (!%p140_p2), %s1163_s13, 5 }
   0x6   : > { %143 = sbr.rel (%p140_p2) target bundleno = 494 (0x1ee), region = 32  ;;  %p165_p3 = scmp.lt.s32.totalorder (!%p140_p2), %s1168_s28, 63 }
   0xb   : > { %v352_v0 = vld [vmem:[%s1925_s1 + $0x78] sm:$0xff]  ;;  %v351_v1 = vld [vmem:[%s1925_s1 + $0x70] sm:$0xff]  ;;  %v350_v2 = vld [vmem:[%s1925_s1 + $0x68] sm:$0xff]  ;;  %s1929_s28 = smov (!%p165_p3, %s1168_s28), 63  ;;  %vm413_vm0 = vcmask 523264  }
   0xc   : > { %1206 = vmatpush.msra.mxu1 %v352_v0  ;;  %1207 = vmatpush.msra.mxu2 %v352_v0  ;;  %v349_v3 = vld [vmem:[%s1925_s1 + $0x60] sm:$0xff]  ;;  %v348_v4 = vld [vmem:[%s1925_s1 + $0x58] sm:$0xff]  ;;  %v347_v5 = vld [vmem:[%s1925_s1 + $0x50] sm:$0xff]  ;;  %s1254_s15 = smul.u32 40, %s1929_s28  ;;  %s1171_s18 = sshll.u32 %s1929_s28, 3 }
   0xd   : > { %1208 = vmatpush.msra.mxu3 %v352_v0  ;;  %510 = vmatpush.msra.mxu0 %v352_v0  ;;  %v346_v6 = vld [vmem:[%s1925_s1 + $0x48] sm:$0xff]  ;;  %v345_v7 = vld [vmem:[%s1925_s1 + $0x40] sm:$0xff]  ;;  %v344_v8 = vld [vmem:[%s1925_s1 + $0x38] sm:$0xff]  ;;  %s1736_s21 = scalar_lea.vmem %s1927_s3, %s1171_s18 }
   0xe   : > { %1209 = vmatpush.msra.mxu1 %v351_v1  ;;  %1210 = vmatpush.msra.mxu2 %v351_v1  ;;  %v343_v9 = vld [vmem:[%s1925_s1 + $0x30] sm:$0xff]  ;;  %v342_v10 = vld [vmem:[%s1925_s1 + $0x28] sm:$0xff]  ;;  %v341_v11 = vld [vmem:[%s1925_s1 + $0x20] sm:$0xff]  ;;  %s1353_s22 = scalar_lea.vmem %s1924_s0, %s1254_s15 }
   0xf   : > { %1211 = vmatpush.msra.mxu3 %v351_v1  ;;  %511 = vmatpush.msra.mxu0 %v351_v1  ;;  %v340_v12 = vld [vmem:[%s1925_s1 + $0x18] sm:$0xff]  ;;  %v339_v13 = vld [vmem:[%s1925_s1 + $0x10] sm:$0xff]  ;;  %v338_v14 = vld [vmem:[%s1925_s1 + $0x8] sm:$0xff] }
  0x10   : > { %1212 = vmatpush.msra.mxu1 %v350_v2  ;;  %1213 = vmatpush.msra.mxu2 %v350_v2  ;;  %v337_v15 = vld [vmem:[%s1925_s1] sm:$0xff]  ;;  %v384_v18 = vld [vmem:[%s1925_s1 + $0x178] sm:$0xff]  ;;  %v383_v22 = vld [vmem:[%s1925_s1 + $0x170] sm:$0xff] }
  0x11   : > { %1214 = vmatpush.msra.mxu3 %v350_v2  ;;  %512 = vmatpush.msra.mxu0 %v350_v2  ;;  %v217_v16 = vld [vmem:[%s1353_s22 + $0x140] sm:$0xff]  ;;  %v368_v20 = vld [vmem:[%s1925_s1 + $0xf8] sm:$0xff]  ;;  %v367_v23 = vld [vmem:[%s1925_s1 + $0xf0] sm:$0xff] }
  0x12   : > { %1215 = vmatpush.msra.mxu1 %v349_v3  ;;  %1216 = vmatpush.msra.mxu2 %v349_v3  ;;  %v257_v17 = vld [vmem:[%s1353_s22 + $0x280] sm:$0xff]  ;;  %v400_v21 = vld [vmem:[%s1925_s1 + $0x1f8] sm:$0xff]  ;;  %v399_v24 = vld [vmem:[%s1925_s1 + $0x1f0] sm:$0xff] }
  0x13   : > { %1217 = vmatpush.msra.mxu3 %v349_v3  ;;  %513 = vmatpush.msra.mxu0 %v349_v3  ;;  %v297_v19 = vld [vmem:[%s1353_s22 + $0x3c0] sm:$0xff]  ;;  %v382_v25 = vld [vmem:[%s1925_s1 + $0x168] sm:$0xff]  ;;  %v408_v29 = vld [vmem:[%s1925_s1 + $0x238] sm:$0xff] }
  0x14   : > { %1218 = vmatpush.msra.mxu1 %v348_v4  ;;  %1219 = vmatpush.msra.mxu2 %v348_v4  ;;  %v177_v26 = vld [vmem:[%s1353_s22] sm:$0xff]  ;;  %v366_v27 = vld [vmem:[%s1925_s1 + $0xe8] sm:$0xff]  ;;  %v380_v36 = vld [vmem:[%s1925_s1 + $0x158] sm:$0xff] }
  0x15   : > { %1220 = vmatpush.msra.mxu3 %v348_v4  ;;  %514 = vmatpush.msra.mxu0 %v348_v4  ;;  %v398_v28 = vld [vmem:[%s1925_s1 + $0x1e8] sm:$0xff]  ;;  %v381_v32 = vld [vmem:[%s1925_s1 + $0x160] sm:$0xff]  ;;  %v396_v37 = vld [vmem:[%s1925_s1 + $0x1d8] sm:$0xff] }
  0x16   : > { %1221 = vmatpush.msra.mxu1 %v347_v5  ;;  %1222 = vmatpush.msra.mxu2 %v347_v5  ;;  %v222_v30 = vld [vmem:[%s1353_s22 + $0x168] sm:$0xff]  ;;  %v397_v33 = vld [vmem:[%s1925_s1 + $0x1e0] sm:$0xff]  ;;  %v407_v38 = vld [vmem:[%s1925_s1 + $0x230] sm:$0xff] }
  0x17   : > { %1223 = vmatpush.msra.mxu3 %v347_v5  ;;  %515 = vmatpush.msra.mxu0 %v347_v5  ;;  %v262_v31 = vld [vmem:[%s1353_s22 + $0x2a8] sm:$0xff]  ;;  %v365_v35 = vld [vmem:[%s1925_s1 + $0xe0] sm:$0xff]  ;;  %v364_v39 = vld [vmem:[%s1925_s1 + $0xd8] sm:$0xff] }
  0x18   : > { %1224 = vmatpush.msra.mxu1 %v346_v6  ;;  %1225 = vmatpush.msra.mxu2 %v346_v6  ;;  %v302_v34 = vld [vmem:[%s1353_s22 + $0x3e8] sm:$0xff]  ;;  %v379_v40 = vld [vmem:[%s1925_s1 + $0x150] sm:$0xff]  ;;  %v377_v51 = vld [vmem:[%s1925_s1 + $0x140] sm:$0xff] }
  0x19   : > { %1226 = vmatpush.msra.mxu3 %v346_v6  ;;  %516 = vmatpush.msra.mxu0 %v346_v6  ;;  %v395_v41 = vld [vmem:[%s1925_s1 + $0x1d0] sm:$0xff]  ;;  %v182_v42 = vld [vmem:[%s1353_s22 + $0x28] sm:$0xff]  ;;  %v393_v52 = vld [vmem:[%s1925_s1 + $0x1c0] sm:$0xff] }
  0x1a   : > { %1227 = vmatpush.msra.mxu1 %v345_v7  ;;  %1228 = vmatpush.msra.mxu2 %v345_v7  ;;  %v363_v43 = vld [vmem:[%s1925_s1 + $0xd0] sm:$0xff]  ;;  %v378_v44 = vld [vmem:[%s1925_s1 + $0x148] sm:$0xff]  ;;  %v361_v53 = vld [vmem:[%s1925_s1 + $0xc0] sm:$0xff] }
  0x1b   : > { %1229 = vmatpush.msra.mxu3 %v345_v7  ;;  %517 = vmatpush.msra.mxu0 %v345_v7  ;;  %v394_v45 = vld [vmem:[%s1925_s1 + $0x1c8] sm:$0xff]  ;;  %v227_v46 = vld [vmem:[%s1353_s22 + $0x190] sm:$0xff]  ;;  %v376_v54 = vld [vmem:[%s1925_s1 + $0x138] sm:$0xff] }
  0x1c   : > { %1230 = vmatpush.msra.mxu1 %v344_v8  ;;  %1231 = vmatpush.msra.mxu2 %v344_v8  ;;  %v267_v47 = vld [vmem:[%s1353_s22 + $0x2d0] sm:$0xff]  ;;  %v406_v48 = vld [vmem:[%s1925_s1 + $0x228] sm:$0xff]  ;;  %v405_v55 = vld [vmem:[%s1925_s1 + $0x220] sm:$0xff] }
  0x1d   : > { %1232 = vmatpush.msra.mxu3 %v344_v8  ;;  %518 = vmatpush.msra.mxu0 %v344_v8  ;;  %v362_v49 = vld [vmem:[%s1925_s1 + $0xc8] sm:$0xff]  ;;  %v307_v50 = vld [vmem:[%s1353_s22 + $0x410] sm:$0xff]  ;;  %v392_v56 = vld [vmem:[%s1925_s1 + $0x1b8] sm:$0xff] }
  0x1e   : > { %1233 = vmatpush.msra.mxu1 %v343_v9  ;;  %1234 = vmatpush.msra.mxu2 %v343_v9  ;;  %v360_v57 = vld [vmem:[%s1925_s1 + $0xb8] sm:$0xff]  ;;  %v187_v58 = vld [vmem:[%s1353_s22 + $0x50] sm:$0xff]  ;;  %v374_v0 = vld [vmem:[%s1925_s1 + $0x128] sm:$0xff] }
  0x1f   : > { %1235 = vmatpush.msra.mxu3 %v343_v9  ;;  %519 = vmatpush.msra.mxu0 %v343_v9  ;;  %v375_v59 = vld [vmem:[%s1925_s1 + $0x130] sm:$0xff]  ;;  %v232_v62 = vld [vmem:[%s1353_s22 + $0x1b8] sm:$0xff]  ;;  %v390_v1 = vld [vmem:[%s1925_s1 + $0x1a8] sm:$0xff] }
  0x20   : > { %1236 = vmatpush.msra.mxu1 %v342_v10  ;;  %1237 = vmatpush.msra.mxu2 %v342_v10  ;;  %v391_v60 = vld [vmem:[%s1925_s1 + $0x1b0] sm:$0xff]  ;;  %v272_v63 = vld [vmem:[%s1353_s22 + $0x2f8] sm:$0xff]  ;;  %v358_v4 = vld [vmem:[%s1925_s1 + $0xa8] sm:$0xff] }
  0x21   : > { %1238 = vmatpush.msra.mxu3 %v342_v10  ;;  %520 = vmatpush.msra.mxu0 %v342_v10  ;;  %v359_v61 = vld [vmem:[%s1925_s1 + $0xb0] sm:$0xff]  ;;  %v312_v2 = vld [vmem:[%s1353_s22 + $0x438] sm:$0xff]  ;;  %v373_v5 = vld [vmem:[%s1925_s1 + $0x120] sm:$0xff] }
  0x22   : > { %1239 = vmatpush.msra.mxu1 %v341_v11  ;;  %1240 = vmatpush.msra.mxu2 %v341_v11  ;;  %v404_v3 = vld [vmem:[%s1925_s1 + $0x218] sm:$0xff]  ;;  %v389_v6 = vld [vmem:[%s1925_s1 + $0x1a0] sm:$0xff]  ;;  %v403_v7 = vld [vmem:[%s1925_s1 + $0x210] sm:$0xff] }
  0x23   : > { %1241 = vmatpush.msra.mxu3 %v341_v11  ;;  %521 = vmatpush.msra.mxu0 %v341_v11  ;;  %v357_v8 = vld [vmem:[%s1925_s1 + $0xa0] sm:$0xff]  ;;  %v372_v9 = vld [vmem:[%s1925_s1 + $0x118] sm:$0xff] }
  0x24   : > { %1242 = vmatpush.msra.mxu1 %v340_v12  ;;  %1243 = vmatpush.msra.mxu2 %v340_v12  ;;  %v192_v10 = vld [vmem:[%s1353_s22 + $0x78] sm:$0xff] }
  0x25   : > { %1244 = vmatpush.msra.mxu3 %v340_v12  ;;  %522 = vmatpush.msra.mxu0 %v340_v12  ;;  %v388_v11 = vld [vmem:[%s1925_s1 + $0x198] sm:$0xff] }
  0x26   : > { %1245 = vmatpush.msra.mxu1 %v339_v13  ;;  %1246 = vmatpush.msra.mxu2 %v339_v13  ;;  %v356_v12 = vld [vmem:[%s1925_s1 + $0x98] sm:$0xff] }
  0x27   : > { %1247 = vmatpush.msra.mxu3 %v339_v13  ;;  %523 = vmatpush.msra.mxu0 %v339_v13  ;;  %v371_v13 = vld [vmem:[%s1925_s1 + $0x110] sm:$0xff] }
  0x28   : > { %1248 = vmatpush.msra.mxu1 %v338_v14  ;;  %1249 = vmatpush.msra.mxu2 %v338_v14 }
  0x29   : > { %1250 = vmatpush.msra.mxu3 %v338_v14  ;;  %524 = vmatpush.msra.mxu0 %v338_v14  ;;  %v237_v14 = vld [vmem:[%s1353_s22 + $0x1e0] sm:$0xff] }
  0x2a   : > { %1251 = vmatpush.msra.mxu1 %v337_v15  ;;  %1252 = vmatpush.msra.mxu2 %v337_v15 }
  0x2b   : > { %550 = vmatmul.f32.vlgmr.msra.gmra.mxu1 %v217_v16  ;;  %574 = vmatmul.f32.vlgmr.msra.gmra.mxu2 %v257_v17  ;;  %v387_v16 = vld [vmem:[%s1925_s1 + $0x190] sm:$0xff] }
  0x2c   : > { %736 = vmatpush.msrb.mxu2 %v384_v18  ;;  %1253 = vmatpush.msra.mxu3 %v337_v15  ;;  %v355_v17 = vld [vmem:[%s1925_s1 + $0x90] sm:$0xff]  ;;  %v317_v18 = vld [vmem:[%s1353_s22 + $0x460] sm:$0xff] }
  0x2d   : > { %598 = vmatmul.f32.vlgmr.msra.gmra.mxu3 %v297_v19  ;;  %623 = vmatpush.msrb.mxu1 %v368_v20  ;;  %v370_v19 = vld [vmem:[%s1925_s1 + $0x108] sm:$0xff] }
  0x2e   : > { %849 = vmatpush.msrb.mxu3 %v400_v21  ;;  %737 = vmatpush.msrb.mxu2 %v383_v22  ;;  %v386_v20 = vld [vmem:[%s1925_s1 + $0x188] sm:$0xff] }
  0x2f   : > { %624 = vmatpush.msrb.mxu1 %v367_v23  ;;  %525 = vmatpush.msra.mxu0 %v337_v15  ;;  %v277_v15 = vld [vmem:[%s1353_s22 + $0x320] sm:$0xff]  ;;  %v402_v21 = vld [vmem:[%s1925_s1 + $0x208] sm:$0xff] }
  0x30   : > { %850 = vmatpush.msrb.mxu3 %v399_v24  ;;  %738 = vmatpush.msrb.mxu2 %v382_v25  ;;  %v354_v22 = vld [vmem:[%s1925_s1 + $0x88] sm:$0xff]  ;;  %v369_v23 = vld [vmem:[%s1925_s1 + $0x100] sm:$0xff] }
  0x31   : > { %526 = vmatmul.f32.vlgmr.msra.gmra.mxu0 %v177_v26  ;;  %625 = vmatpush.msrb.mxu1 %v366_v27  ;;  %v385_v24 = vld [vmem:[%s1925_s1 + $0x180] sm:$0xff] }
  0x32   : > { %851 = vmatpush.msrb.mxu3 %v398_v28  ;;  %970 = vmatpush.msrb.mxu0 %v408_v29  ;;  %v401_v25 = vld [vmem:[%s1925_s1 + $0x200] sm:$0xff]  ;;  %v242_v28 = vld [vmem:[%s1353_s22 + $0x208] sm:$0xff] }
  0x33   : > { %553 = vmatmul.f32.gmra.mxu1 %v222_v30  ;;  %577 = vmatmul.f32.gmra.mxu2 %v262_v31  ;;  %v197_v26 = vld [vmem:[%s1353_s22 + $0xa0] sm:$0xff]  ;;  %v282_v29 = vld [vmem:[%s1353_s22 + $0x348] sm:$0xff] }
  0x34   : > { %739 = vmatpush.msrb.mxu2 %v381_v32  ;;  %852 = vmatpush.msrb.mxu3 %v397_v33  ;;  %v353_v27 = vld [vmem:[%s1925_s1 + $0x80] sm:$0xff]  ;;  %v322_v30 = vld [vmem:[%s1353_s22 + $0x488] sm:$0xff]  ;;  %v247_v32 = vld [vmem:[%s1353_s22 + $0x230] sm:$0xff] }
  0x35   : > { %601 = vmatmul.f32.gmra.mxu3 %v302_v34  ;;  %626 = vmatpush.msrb.mxu1 %v365_v35  ;;  %v202_v31 = vld [vmem:[%s1353_s22 + $0xc8] sm:$0xff]  ;;  %v287_v33 = vld [vmem:[%s1353_s22 + $0x370] sm:$0xff] }
  0x36   : > { %740 = vmatpush.msrb.mxu2 %v380_v36  ;;  %853 = vmatpush.msrb.mxu3 %v396_v37  ;;  %v327_v34 = vld [vmem:[%s1353_s22 + $0x4b0] sm:$0xff]  ;;  %v252_v36 = vld [vmem:[%s1353_s22 + $0x258] sm:$0xff] }
  0x37   : > { %971 = vmatpush.msrb.mxu0 %v407_v38  ;;  %627 = vmatpush.msrb.mxu1 %v364_v39  ;;  %v207_v35 = vld [vmem:[%s1353_s22 + $0xf0] sm:$0xff]  ;;  %v292_v37 = vld [vmem:[%s1353_s22 + $0x398] sm:$0xff] }
  0x38   : > { %741 = vmatpush.msrb.mxu2 %v379_v40  ;;  %854 = vmatpush.msrb.mxu3 %v395_v41  ;;  %v332_v38 = vld [vmem:[%s1353_s22 + $0x4d8] sm:$0xff]  ;;  %v178_v40 = vld [vmem:[%s1353_s22 + $0x8] sm:$0xff]  ;;  %v179_v41 = vld [vmem:[%s1353_s22 + $0x10] sm:$0xff] }
  0x39   : > { %529 = vmatmul.f32.gmra.mxu0 %v182_v42  ;;  %628 = vmatpush.msrb.mxu1 %v363_v43  ;;  %v212_v39 = vld [vmem:[%s1353_s22 + $0x118] sm:$0xff]  ;;  %v181_v43 = vld [vmem:[%s1353_s22 + $0x20] sm:$0xff] }
  0x3a   : > { %742 = vmatpush.msrb.mxu2 %v378_v44  ;;  %855 = vmatpush.msrb.mxu3 %v394_v45  ;;  %v180_v42 = vld [vmem:[%s1353_s22 + $0x18] sm:$0xff]  ;;  %v183_v44 = vld [vmem:[%s1353_s22 + $0x30] sm:$0xff] }
  0x3b   : > { %556 = vmatmul.f32.gmra.mxu1 %v227_v46  ;;  %580 = vmatmul.f32.gmra.mxu2 %v267_v47  ;;  %v184_v45 = vld [vmem:[%s1353_s22 + $0x38] sm:$0xff]  ;;  %v185_v46 = vld [vmem:[%s1353_s22 + $0x40] sm:$0xff]  ;;  %v186_v47 = vld [vmem:[%s1353_s22 + $0x48] sm:$0xff] }
  0x3c   : > { %972 = vmatpush.msrb.mxu0 %v406_v48  ;;  %629 = vmatpush.msrb.mxu1 %v362_v49  ;;  %v188_v48 = vld [vmem:[%s1353_s22 + $0x58] sm:$0xff]  ;;  %v189_v49 = vld [vmem:[%s1353_s22 + $0x60] sm:$0xff] }
  0x3d   : > { %604 = vmatmul.f32.gmra.mxu3 %v307_v50  ;;  %743 = vmatpush.msrb.mxu2 %v377_v51  ;;  %v190_v50 = vld [vmem:[%s1353_s22 + $0x68] sm:$0xff]  ;;  %v191_v51 = vld [vmem:[%s1353_s22 + $0x70] sm:$0xff] }
  0x3e   : > { %856 = vmatpush.msrb.mxu3 %v393_v52  ;;  %630 = vmatpush.msrb.mxu1 %v361_v53  ;;  %v193_v52 = vld [vmem:[%s1353_s22 + $0x80] sm:$0xff]  ;;  %v194_v53 = vld [vmem:[%s1353_s22 + $0x88] sm:$0xff] }
  0x3f   : > { %744 = vmatpush.msrb.mxu2 %v376_v54  ;;  %973 = vmatpush.msrb.mxu0 %v405_v55  ;;  %v195_v54 = vld [vmem:[%s1353_s22 + $0x90] sm:$0xff]  ;;  %v196_v55 = vld [vmem:[%s1353_s22 + $0x98] sm:$0xff] }
  0x40   : > { %857 = vmatpush.msrb.mxu3 %v392_v56  ;;  %631 = vmatpush.msrb.mxu1 %v360_v57  ;;  %v198_v56 = vld [vmem:[%s1353_s22 + $0xa8] sm:$0xff]  ;;  %v199_v57 = vld [vmem:[%s1353_s22 + $0xb0] sm:$0xff] }
  0x41   : > { %532 = vmatmul.f32.gmra.mxu0 %v187_v58  ;;  %745 = vmatpush.msrb.mxu2 %v375_v59  ;;  %v200_v58 = vld [vmem:[%s1353_s22 + $0xb8] sm:$0xff]  ;;  %v201_v59 = vld [vmem:[%s1353_s22 + $0xc0] sm:$0xff] }
  0x42   : > { %858 = vmatpush.msrb.mxu3 %v391_v60  ;;  %632 = vmatpush.msrb.mxu1 %v359_v61  ;;  %v203_v60 = vld [vmem:[%s1353_s22 + $0xd0] sm:$0xff]  ;;  %v204_v61 = vld [vmem:[%s1353_s22 + $0xd8] sm:$0xff] }
  0x43   : > { %559 = vmatmul.f32.gmra.mxu1 %v232_v62  ;;  %583 = vmatmul.f32.gmra.mxu2 %v272_v63  ;;  %v205_v62 = vld [vmem:[%s1353_s22 + $0xe0] sm:$0xff]  ;;  %v206_v63 = vld [vmem:[%s1353_s22 + $0xe8] sm:$0xff] }
  0x44   : > { %746 = vmatpush.msrb.mxu2 %v374_v0  ;;  %859 = vmatpush.msrb.mxu3 %v390_v1  ;;  %v208_v0 = vld [vmem:[%s1353_s22 + $0xf8] sm:$0xff]  ;;  %v209_v1 = vld [vmem:[%s1353_s22 + $0x100] sm:$0xff] }
  0x45   : > { %607 = vmatmul.f32.gmra.mxu3 %v312_v2  ;;  %974 = vmatpush.msrb.mxu0 %v404_v3  ;;  %v210_v2 = vld [vmem:[%s1353_s22 + $0x108] sm:$0xff]  ;;  %v211_v3 = vld [vmem:[%s1353_s22 + $0x110] sm:$0xff] }
  0x46   : > { %633 = vmatpush.msrb.mxu1 %v358_v4  ;;  %747 = vmatpush.msrb.mxu2 %v373_v5  ;;  %v213_v4 = vld [vmem:[%s1353_s22 + $0x120] sm:$0xff]  ;;  %v214_v5 = vld [vmem:[%s1353_s22 + $0x128] sm:$0xff] }
  0x47   : > { %860 = vmatpush.msrb.mxu3 %v389_v6  ;;  %975 = vmatpush.msrb.mxu0 %v403_v7  ;;  %v215_v6 = vld [vmem:[%s1353_s22 + $0x130] sm:$0xff]  ;;  %v216_v7 = vld [vmem:[%s1353_s22 + $0x138] sm:$0xff] }
  0x48   : > { %634 = vmatpush.msrb.mxu1 %v357_v8  ;;  %748 = vmatpush.msrb.mxu2 %v372_v9  ;;  %v218_v9 = vld [vmem:[%s1353_s22 + $0x148] sm:$0xff] }
  0x49   : > { %535 = vmatmul.f32.gmra.mxu0 %v192_v10  ;;  %861 = vmatpush.msrb.mxu3 %v388_v11  ;;  %v219_v10 = vld [vmem:[%s1353_s22 + $0x150] sm:$0xff]  ;;  %v220_v11 = vld [vmem:[%s1353_s22 + $0x158] sm:$0xff] }
  0x4a   : > { %635 = vmatpush.msrb.mxu1 %v356_v12  ;;  %749 = vmatpush.msrb.mxu2 %v371_v13  ;;  %v1606_v12 = vld [vmem:[%s1926_s2] ss:$0 sm:$0xff] }
  0x4b   : > { %562 = vmatmul.f32.gmra.mxu1 %v237_v14  ;;  %586 = vmatmul.f32.gmra.mxu2 %v277_v15  ;;  %v221_v15 = vld [vmem:[%s1353_s22 + $0x160] sm:$0xff] }
  0x4c   : > { %862 = vmatpush.msrb.mxu3 %v387_v16  ;;  %636 = vmatpush.msrb.mxu1 %v355_v17 }
  0x4d   : > { %610 = vmatmul.f32.gmra.mxu3 %v317_v18  ;;  %750 = vmatpush.msrb.mxu2 %v370_v19  ;;  %v223_v19 = vld [vmem:[%s1353_s22 + $0x170] sm:$0xff] }
  0x4e   : > { %863 = vmatpush.msrb.mxu3 %v386_v20  ;;  %976 = vmatpush.msrb.mxu0 %v402_v21  ;;  %v224_v20 = vld [vmem:[%s1353_s22 + $0x178] sm:$0xff] }
  0x4f   : > { %637 = vmatpush.msrb.mxu1 %v354_v22  ;;  %751 = vmatpush.msrb.mxu2 %v369_v23  ;;  %v225_v22 = vld [vmem:[%s1353_s22 + $0x180] sm:$0xff] }
  0x50   : > { %864 = vmatpush.msrb.mxu3 %v385_v24  ;;  %977 = vmatpush.msrb.mxu0 %v401_v25  ;;  %v226_v25 = vld [vmem:[%s1353_s22 + $0x188] sm:$0xff] }
  0x51   : > { %538 = vmatmul.f32.gmra.mxu0 %v197_v26  ;;  %638 = vmatpush.msrb.mxu1 %v353_v27 }
  0x53   : > { %565 = vmatmul.f32.gmra.mxu1 %v242_v28  ;;  %589 = vmatmul.f32.gmra.mxu2 %v282_v29  ;;  %v228_v29 = vld [vmem:[%s1353_s22 + $0x198] sm:$0xff] }
  0x55   : > { %613 = vmatmul.f32.gmra.mxu3 %v322_v30  ;;  %v229_v30 = vld [vmem:[%s1353_s22 + $0x1a0] sm:$0xff] }
  0x59   : > { %541 = vmatmul.f32.gmra.mxu0 %v202_v31 }
  0x5b   : > { %568 = vmatmul.f32.gmra.mxu1 %v247_v32  ;;  %592 = vmatmul.f32.gmra.mxu2 %v287_v33  ;;  %v230_v32 = vld [vmem:[%s1353_s22 + $0x1a8] sm:$0xff] }
  0x5d   : > { %616 = vmatmul.f32.gmra.mxu3 %v327_v34 }
  0x61   : > { %544 = vmatmul.f32.gmra.mxu0 %v207_v35  ;;  %v231_v35 = vld [vmem:[%s1353_s22 + $0x1b0] sm:$0xff] }
  0x63   : > { %571 = vmatmul.f32.gmra.mxu1 %v252_v36  ;;  %595 = vmatmul.f32.gmra.mxu2 %v292_v37 }
  0x65   : > { %619 = vmatmul.f32.gmra.mxu3 %v332_v38 }
  0x69   : > { %547 = vmatmul.f32.gmra.mxu0 %v212_v39  ;;  %v233_v39 = vld [vmem:[%s1353_s22 + $0x1c0] sm:$0xff] }
  0x6b   : > { %639 = vmatmul.f32.vlgmr.msrb.gmra.mxu1 %v178_v40  ;;  %752 = vmatmul.f32.vlgmr.msrb.gmra.mxu2 %v179_v41  ;;  %v234_v40 = vld [vmem:[%s1353_s22 + $0x1c8] sm:$0xff] }
  0x6d   : > { %865 = vmatmul.f32.vlgmr.msrb.gmra.mxu3 %v180_v42  ;;  %v235_v42 = vld [vmem:[%s1353_s22 + $0x1d0] sm:$0xff] }
  0x71   : > { %1172 = vmatmul.msk.f32.vlgmr.msrb.gmra.mxu0 %vm413_vm0, %v181_v43 }
  0x73   : > { %642 = vmatmul.f32.gmra.mxu1 %v183_v44  ;;  %755 = vmatmul.f32.gmra.mxu2 %v184_v45  ;;  %v236_v45 = vld [vmem:[%s1353_s22 + $0x1d8] sm:$0xff] }
  0x75   : > { %868 = vmatmul.f32.gmra.mxu3 %v185_v46 }
  0x79   : > { %1173 = vmatmul.msk.f32.gmra.mxu0 %vm413_vm0, %v186_v47 }
  0x7b   : > { %645 = vmatmul.f32.gmra.mxu1 %v188_v48  ;;  %758 = vmatmul.f32.gmra.mxu2 %v189_v49  ;;  %v238_v49 = vld [vmem:[%s1353_s22 + $0x1e8] sm:$0xff] }
  0x7d   : > { %871 = vmatmul.f32.gmra.mxu3 %v190_v50  ;;  %v239_v50 = vld [vmem:[%s1353_s22 + $0x1f0] sm:$0xff] }
  0x81   : > { %1174 = vmatmul.msk.f32.gmra.mxu0 %vm413_vm0, %v191_v51 }
  0x83   : > { %648 = vmatmul.f32.gmra.mxu1 %v193_v52  ;;  %761 = vmatmul.f32.gmra.mxu2 %v194_v53  ;;  %v240_v52 = vld [vmem:[%s1353_s22 + $0x1f8] sm:$0xff] }
  0x85   : > { %874 = vmatmul.f32.gmra.mxu3 %v195_v54 }
  0x89   : > { %1175 = vmatmul.msk.f32.gmra.mxu0 %vm413_vm0, %v196_v55  ;;  %v241_v55 = vld [vmem:[%s1353_s22 + $0x200] sm:$0xff] }
  0x8b   : > { %651 = vmatmul.f32.gmra.mxu1 %v198_v56  ;;  %764 = vmatmul.f32.gmra.mxu2 %v199_v57 }
  0x8d   : > { %877 = vmatmul.f32.gmra.mxu3 %v200_v58 }
  0x91   : > { %1176 = vmatmul.msk.f32.gmra.mxu0 %vm413_vm0, %v201_v59  ;;  %v243_v59 = vld [vmem:[%s1353_s22 + $0x210] sm:$0xff] }
  0x93   : > { %654 = vmatmul.f32.gmra.mxu1 %v203_v60  ;;  %767 = vmatmul.f32.gmra.mxu2 %v204_v61  ;;  %v244_v60 = vld [vmem:[%s1353_s22 + $0x218] sm:$0xff] }
  0x95   : > { %880 = vmatmul.f32.gmra.mxu3 %v205_v62  ;;  %v245_v62 = vld [vmem:[%s1353_s22 + $0x220] sm:$0xff] }
  0x99   : > { %1177 = vmatmul.msk.f32.gmra.mxu0 %vm413_vm0, %v206_v63 }
  0x9b   : > { %657 = vmatmul.f32.gmra.mxu1 %v208_v0  ;;  %770 = vmatmul.f32.gmra.mxu2 %v209_v1  ;;  %v246_v1 = vld [vmem:[%s1353_s22 + $0x228] sm:$0xff] }
  0x9d   : > { %883 = vmatmul.f32.gmra.mxu3 %v210_v2 }
  0xa1   : > { %1178 = vmatmul.msk.f32.gmra.mxu0 %vm413_vm0, %v211_v3 }
  0xa3   : > { %660 = vmatmul.f32.gmra.mxu1 %v213_v4  ;;  %773 = vmatmul.f32.gmra.mxu2 %v214_v5  ;;  %v248_v5 = vld [vmem:[%s1353_s22 + $0x238] sm:$0xff] }
  0xa5   : > { %886 = vmatmul.f32.gmra.mxu3 %v215_v6  ;;  %v249_v6 = vld [vmem:[%s1353_s22 + $0x240] sm:$0xff] }
  0xa8   : > { %v1597_v8 = vpop.f32.mrf.mxu1 }
  0xa9   : > { %1179 = vmatmul.msk.f32.gmra.mxu0 %vm413_vm0, %v216_v7 }
  0xab   : > { %663 = vmatmul.f32.gmra.mxu1 %v218_v9  ;;  %776 = vmatmul.f32.gmra.mxu2 %v219_v10  ;;  %v250_v9 = vld [vmem:[%s1353_s22 + $0x248] sm:$0xff] }
  0xad   : > { %889 = vmatmul.f32.gmra.mxu3 %v220_v11 }
  0xae   : > { %v575_v13 = vpop.f32.mrf.mxu2  ;;  %v1608_v14 = vpop.f32.mrf.mxu0 }
  0xaf   : > { %v1612_v16 = vadd.f32 %v1606_v12, %v575_v13  ;;  %v251_v13 = vld [vmem:[%s1353_s22 + $0x250] sm:$0xff] }
  0xb0   : > { %v1614_v17 = vpop.f32.mrf.mxu1  ;;  %v599_v18 = vpop.f32.mrf.mxu3 }
  0xb1   : > { %v1619_v21 = vadd.f32 %v1606_v12, %v599_v18  ;;  %1180 = vmatmul.msk.f32.gmra.mxu0 %vm413_vm0, %v221_v15 }
  0xb3   : > { %666 = vmatmul.f32.gmra.mxu1 %v223_v19  ;;  %779 = vmatmul.f32.gmra.mxu2 %v224_v20  ;;  %v253_v20 = vld [vmem:[%s1353_s22 + $0x260] sm:$0xff] }
  0xb5   : > { %892 = vmatmul.f32.gmra.mxu3 %v225_v22  ;;  %v254_v22 = vld [vmem:[%s1353_s22 + $0x268] sm:$0xff] }
  0xb6   : > { %v578_v23 = vpop.f32.mrf.mxu2  ;;  %v1623_v24 = vpop.f32.mrf.mxu0 }
  0xb7   : > { %v1627_v26 = vadd.f32 %v1606_v12, %v578_v23 }
  0xb8   : > { %v1629_v27 = vpop.f32.mrf.mxu1  ;;  %v602_v28 = vpop.f32.mrf.mxu3 }
  0xb9   : > { %v1634_v31 = vadd.f32 %v1606_v12, %v602_v28  ;;  %1181 = vmatmul.msk.f32.gmra.mxu0 %vm413_vm0, %v226_v25  ;;  %v255_v25 = vld [vmem:[%s1353_s22 + $0x270] sm:$0xff] }
  0xbb   : > { %669 = vmatmul.f32.gmra.mxu1 %v228_v29  ;;  %782 = vmatmul.f32.gmra.mxu2 %v229_v30  ;;  %v256_v30 = vld [vmem:[%s1353_s22 + $0x278] sm:$0xff] }
  0xbd   : > { %895 = vmatmul.f32.gmra.mxu3 %v230_v32 }
  0xbe   : > { %v581_v33 = vpop.f32.mrf.mxu2  ;;  %v1638_v34 = vpop.f32.mrf.mxu0 }
  0xbf   : > { %v1642_v36 = vadd.f32 %v1606_v12, %v581_v33 }
  0xc0   : > { %v1644_v37 = vpop.f32.mrf.mxu1  ;;  %v605_v38 = vpop.f32.mrf.mxu3 }
  0xc1   : > { %v1649_v41 = vadd.f32 %v1606_v12, %v605_v38  ;;  %1182 = vmatmul.msk.f32.gmra.mxu0 %vm413_vm0, %v231_v35  ;;  %v258_v38 = vld [vmem:[%s1353_s22 + $0x288] sm:$0xff] }
  0xc3   : > { %672 = vmatmul.f32.gmra.mxu1 %v233_v39  ;;  %785 = vmatmul.f32.gmra.mxu2 %v234_v40  ;;  %v259_v39 = vld [vmem:[%s1353_s22 + $0x290] sm:$0xff] }
  0xc5   : > { %898 = vmatmul.f32.gmra.mxu3 %v235_v42  ;;  %v260_v42 = vld [vmem:[%s1353_s22 + $0x298] sm:$0xff] }
  0xc6   : > { %v584_v43 = vpop.f32.mrf.mxu2  ;;  %v1653_v44 = vpop.f32.mrf.mxu0 }
  0xc7   : > { %v1657_v46 = vadd.f32 %v1606_v12, %v584_v43  ;;  %v528_v43 = vadd.f32 %v1606_v12, %v1608_v14  ;;  %v265_v14 = vld [vmem:[%s1353_s22 + $0x2c0] sm:$0xff] }
  0xc8   : > { %v1659_v47 = vpop.f32.mrf.mxu1  ;;  %v608_v48 = vpop.f32.mrf.mxu3 }
  0xc9   : > { %v1664_v51 = vadd.f32 %v1606_v12, %v608_v48  ;;  %1183 = vmatmul.msk.f32.gmra.mxu0 %vm413_vm0, %v236_v45 }
  0xcb   : > { %675 = vmatmul.f32.gmra.mxu1 %v238_v49  ;;  %788 = vmatmul.f32.gmra.mxu2 %v239_v50  ;;  %v261_v50 = vld [vmem:[%s1353_s22 + $0x2a0] sm:$0xff] }
  0xcd   : > { %901 = vmatmul.f32.gmra.mxu3 %v240_v52 }
  0xce   : > { %v587_v53 = vpop.f32.mrf.mxu2  ;;  %v1668_v54 = vpop.f32.mrf.mxu0 }
  0xcf   : > { %v1672_v56 = vadd.f32 %v1606_v12, %v587_v53 }
  0xd0   : > { %v1674_v57 = vpop.f32.mrf.mxu1  ;;  %v611_v58 = vpop.f32.mrf.mxu3 }
  0xd1   : > { %v1679_v61 = vadd.f32 %v1606_v12, %v611_v58  ;;  %1184 = vmatmul.msk.f32.gmra.mxu0 %vm413_vm0, %v241_v55  ;;  %v263_v58 = vld [vmem:[%s1353_s22 + $0x2b0] sm:$0xff] }
  0xd3   : > { %678 = vmatmul.f32.gmra.mxu1 %v243_v59  ;;  %791 = vmatmul.f32.gmra.mxu2 %v244_v60  ;;  %v264_v59 = vld [vmem:[%s1353_s22 + $0x2b8] sm:$0xff] }
  0xd5   : > { %904 = vmatmul.f32.gmra.mxu3 %v245_v62  ;;  %v531_v62 = vadd.f32 %v1606_v12, %v1623_v24  ;;  %v270_v24 = vld [vmem:[%s1353_s22 + $0x2e8] sm:$0xff] }
  0xd6   : > { %v590_v63 = vpop.f32.mrf.mxu2  ;;  %v1683_v0 = vpop.f32.mrf.mxu0 }
  0xd7   : > { %v1687_v2 = vadd.f32 %v1606_v12, %v590_v63 }
  0xd8   : > { %v1689_v3 = vpop.f32.mrf.mxu1  ;;  %v614_v4 = vpop.f32.mrf.mxu3 }
  0xd9   : > { %v1694_v7 = vadd.f32 %v1606_v12, %v614_v4  ;;  %1185 = vmatmul.msk.f32.gmra.mxu0 %vm413_vm0, %v246_v1 }
  0xdb   : > { %681 = vmatmul.f32.gmra.mxu1 %v248_v5  ;;  %794 = vmatmul.f32.gmra.mxu2 %v249_v6  ;;  %v266_v6 = vld [vmem:[%s1353_s22 + $0x2c8] sm:$0xff] }
  0xdd   : > { %907 = vmatmul.f32.gmra.mxu3 %v250_v9 }
  0xde   : > { %v593_v10 = vpop.f32.mrf.mxu2  ;;  %v1698_v11 = vpop.f32.mrf.mxu0 }
  0xdf   : > { %v1702_v15 = vadd.f32 %v1606_v12, %v593_v10 }
  0xe0   : > { %v1704_v18 = vpop.f32.mrf.mxu1  ;;  %v617_v19 = vpop.f32.mrf.mxu3 }
  0xe1   : > { %v1709_v23 = vadd.f32 %v1606_v12, %v617_v19  ;;  %1186 = vmatmul.msk.f32.gmra.mxu0 %vm413_vm0, %v251_v13  ;;  %v268_v19 = vld [vmem:[%s1353_s22 + $0x2d8] sm:$0xff] }
  0xe3   : > { %684 = vmatmul.f32.gmra.mxu1 %v253_v20  ;;  %797 = vmatmul.f32.gmra.mxu2 %v254_v22  ;;  %v269_v20 = vld [vmem:[%s1353_s22 + $0x2e0] sm:$0xff] }
  0xe5   : > { %910 = vmatmul.f32.gmra.mxu3 %v255_v25  ;;  %v534_v25 = vadd.f32 %v1606_v12, %v1638_v34  ;;  %v275_v34 = vld [vmem:[%s1353_s22 + $0x310] sm:$0xff] }
  0xe6   : > { %v596_v28 = vpop.f32.mrf.mxu2  ;;  %v1713_v29 = vpop.f32.mrf.mxu0 }
  0xe7   : > { %v1717_v32 = vadd.f32 %v1606_v12, %v596_v28 }
  0xe8   : > { %v620_v33 = vpop.f32.mrf.mxu3  ;;  %v640_v35 = vpop.f32.mrf.mxu1 }
  0xe9   : > { %v1722_v40 = vadd.f32 %v1606_v12, %v620_v33  ;;  %1187 = vmatmul.msk.f32.gmra.mxu0 %vm413_vm0, %v256_v30  ;;  %v641_v45 = vadd.f32 %v640_v35, %v528_v43 }
  0xeb   : > { %687 = vmatmul.f32.gmra.mxu1 %v258_v38  ;;  %800 = vmatmul.f32.gmra.mxu2 %v259_v39  ;;  %v271_v38 = vld [vmem:[%s1353_s22 + $0x2f0] sm:$0xff] }
  0xed   : > { %913 = vmatmul.f32.gmra.mxu3 %v260_v42 }
  0xee   : > { %v753_v48 = vpop.f32.mrf.mxu2  ;;  %v979_v49 = vpop.f32.mrf.mxu0 }
  0xef   : > { %v754_v52 = vadd.f32 %v753_v48, %v641_v45  ;;  %v273_v45 = vld [vmem:[%s1353_s22 + $0x300] sm:$0xff]  ;;  %v274_v48 = vld [vmem:[%s1353_s22 + $0x308] sm:$0xff] }
  0xf0   : > { %v643_v53 = vpop.f32.mrf.mxu1  ;;  %v866_v55 = vpop.f32.mrf.mxu3 }
  0xf1   : > { %v867_v60 = vadd.f32 %v866_v55, %v754_v52  ;;  %1188 = vmatmul.msk.f32.gmra.mxu0 %vm413_vm0, %v261_v50  ;;  %v644_v1 = vadd.f32 %v643_v53, %v531_v62  ;;  %v537_v50 = vadd.f32 %v1606_v12, %v1653_v44  ;;  %v280_v44 = vld [vmem:[%s1353_s22 + $0x338] sm:$0xff] }
  0xf3   : > { %v980_v63 = vadd.f32 %v979_v49, %v867_v60  ;;  %690 = vmatmul.f32.gmra.mxu1 %v263_v58  ;;  %803 = vmatmul.f32.gmra.mxu2 %v264_v59  ;;  %v276_v59 = vld [vmem:[%s1353_s22 + $0x318] sm:$0xff] }
  0xf5   : > { %1075 = vst.msk [vmem:[%s1736_s21] sm:$0xff] %vm413_vm0, %v980_v63  ;;  %916 = vmatmul.f32.gmra.mxu3 %v265_v14  ;;  %v278_v63 = vld [vmem:[%s1353_s22 + $0x328] sm:$0xff] }
  0xf6   : > { %v756_v4 = vpop.f32.mrf.mxu2  ;;  %v982_v5 = vpop.f32.mrf.mxu0 }
  0xf7   : > { %v757_v9 = vadd.f32 %v756_v4, %v644_v1  ;;  %v279_v1 = vld [vmem:[%s1353_s22 + $0x330] sm:$0xff] }
  0xf8   : > { %v646_v10 = vpop.f32.mrf.mxu1  ;;  %v869_v13 = vpop.f32.mrf.mxu3 }
  0xf9   : > { %v870_v22 = vadd.f32 %v869_v13, %v757_v9  ;;  %1189 = vmatmul.msk.f32.gmra.mxu0 %vm413_vm0, %v266_v6  ;;  %v647_v30 = vadd.f32 %v646_v10, %v534_v25  ;;  %v283_v25 = vld [vmem:[%s1353_s22 + $0x350] sm:$0xff] }
  0xfb   : > { %v983_v28 = vadd.f32 %v982_v5, %v870_v22  ;;  %693 = vmatmul.f32.gmra.mxu1 %v268_v19  ;;  %806 = vmatmul.f32.gmra.mxu2 %v269_v20  ;;  %v540_v5 = vadd.f32 %v1606_v12, %v1668_v54  ;;  %v281_v19 = vld [vmem:[%s1353_s22 + $0x340] sm:$0xff] }
  0xfc   : > { %v285_v54 = vld [vmem:[%s1353_s22 + $0x360] sm:$0xff] }
  0xfd   : > { %1076 = vst.msk [vmem:[%s1736_s21 + $0x8] sm:$0xff] %vm413_vm0, %v983_v28  ;;  %919 = vmatmul.f32.gmra.mxu3 %v270_v24  ;;  %v284_v28 = vld [vmem:[%s1353_s22 + $0x358] sm:$0xff] }
  0xfe   : > { %v759_v33 = vpop.f32.mrf.mxu2  ;;  %v985_v35 = vpop.f32.mrf.mxu0 }
  0xff   : > { %v760_v39 = vadd.f32 %v759_v33, %v647_v30  ;;  %v543_v33 = vadd.f32 %v1606_v12, %v1683_v0  ;;  %v290_v0 = vld [vmem:[%s1353_s22 + $0x388] sm:$0xff] }
 0x100   : > { %v649_v42 = vpop.f32.mrf.mxu1  ;;  %v872_v43 = vpop.f32.mrf.mxu3 }
 0x101   : > { %v873_v49 = vadd.f32 %v872_v43, %v760_v39  ;;  %1190 = vmatmul.msk.f32.gmra.mxu0 %vm413_vm0, %v271_v38  ;;  %v650_v53 = vadd.f32 %v649_v42, %v537_v50  ;;  %v286_v43 = vld [vmem:[%s1353_s22 + $0x368] sm:$0xff]  ;;  %v289_v50 = vld [vmem:[%s1353_s22 + $0x380] sm:$0xff] }
 0x103   : > { %v986_v52 = vadd.f32 %v985_v35, %v873_v49  ;;  %696 = vmatmul.f32.gmra.mxu1 %v273_v45  ;;  %809 = vmatmul.f32.gmra.mxu2 %v274_v48 }
 0x105   : > { %1077 = vst.msk [vmem:[%s1736_s21 + $0x10] sm:$0xff] %vm413_vm0, %v986_v52  ;;  %922 = vmatmul.f32.gmra.mxu3 %v275_v34  ;;  %v288_v34 = vld [vmem:[%s1353_s22 + $0x378] sm:$0xff] }
 0x106   : > { %v762_v55 = vpop.f32.mrf.mxu2  ;;  %v988_v58 = vpop.f32.mrf.mxu0 }
 0x107   : > { %v763_v60 = vadd.f32 %v762_v55, %v650_v53  ;;  %v546_v53 = vadd.f32 %v1606_v12, %v1698_v11  ;;  %v295_v11 = vld [vmem:[%s1353_s22 + $0x3b0] sm:$0xff] }
 0x108   : > { %v652_v14 = vpop.f32.mrf.mxu1  ;;  %v875_v62 = vpop.f32.mrf.mxu3 }
 0x109   : > { %v876_v4 = vadd.f32 %v875_v62, %v763_v60  ;;  %1191 = vmatmul.msk.f32.gmra.mxu0 %vm413_vm0, %v276_v59  ;;  %v653_v9 = vadd.f32 %v652_v14, %v540_v5  ;;  %v291_v14 = vld [vmem:[%s1353_s22 + $0x390] sm:$0xff] }
 0x10b   : > { %v989_v6 = vadd.f32 %v988_v58, %v876_v4  ;;  %699 = vmatmul.f32.gmra.mxu1 %v278_v63  ;;  %812 = vmatmul.f32.gmra.mxu2 %v279_v1  ;;  %v293_v4 = vld [vmem:[%s1353_s22 + $0x3a0] sm:$0xff] }
 0x10d   : > { %1078 = vst.msk [vmem:[%s1736_s21 + $0x18] sm:$0xff] %vm413_vm0, %v989_v6  ;;  %925 = vmatmul.f32.gmra.mxu3 %v280_v44  ;;  %v294_v44 = vld [vmem:[%s1353_s22 + $0x3a8] sm:$0xff]  ;;  %v549_v6 = vadd.f32 %v1606_v12, %v1713_v29  ;;  %v300_v29 = vld [vmem:[%s1353_s22 + $0x3d8] sm:$0xff] }
 0x10e   : > { %v765_v10 = vpop.f32.mrf.mxu2  ;;  %v991_v13 = vpop.f32.mrf.mxu0 }
 0x10f   : > { %v766_v20 = vadd.f32 %v765_v10, %v653_v9 }
 0x110   : > { %v655_v22 = vpop.f32.mrf.mxu1  ;;  %v878_v24 = vpop.f32.mrf.mxu3 }
 0x111   : > { %v879_v30 = vadd.f32 %v878_v24, %v766_v20  ;;  %1192 = vmatmul.msk.f32.gmra.mxu0 %vm413_vm0, %v281_v19  ;;  %v656_v38 = vadd.f32 %v655_v22, %v543_v33  ;;  %v296_v20 = vld [vmem:[%s1353_s22 + $0x3b8] sm:$0xff]  ;;  %v552_v33 = vadd.f32 %v1606_v12, %v1597_v8  ;;  %v305_v8 = vld [vmem:[%s1353_s22 + $0x400] sm:$0xff] }
 0x113   : > { %v992_v35 = vadd.f32 %v991_v13, %v879_v30  ;;  %702 = vmatmul.f32.gmra.mxu1 %v283_v25  ;;  %815 = vmatmul.f32.gmra.mxu2 %v284_v28  ;;  %v298_v28 = vld [vmem:[%s1353_s22 + $0x3c8] sm:$0xff]  ;;  %v299_v30 = vld [vmem:[%s1353_s22 + $0x3d0] sm:$0xff] }
 0x115   : > { %1079 = vst.msk [vmem:[%s1736_s21 + $0x20] sm:$0xff] %vm413_vm0, %v992_v35  ;;  %928 = vmatmul.f32.gmra.mxu3 %v285_v54 }
 0x116   : > { %v768_v39 = vpop.f32.mrf.mxu2  ;;  %v994_v42 = vpop.f32.mrf.mxu0 }
 0x117   : > { %v769_v45 = vadd.f32 %v768_v39, %v656_v38 }
 0x118   : > { %v658_v48 = vpop.f32.mrf.mxu1  ;;  %v881_v49 = vpop.f32.mrf.mxu3 }
 0x119   : > { %v882_v52 = vadd.f32 %v881_v49, %v769_v45  ;;  %1193 = vmatmul.msk.f32.gmra.mxu0 %vm413_vm0, %v286_v43  ;;  %v659_v58 = vadd.f32 %v658_v48, %v546_v53  ;;  %v301_v43 = vld [vmem:[%s1353_s22 + $0x3e0] sm:$0xff] }
 0x11b   : > { %v995_v55 = vadd.f32 %v994_v42, %v882_v52  ;;  %705 = vmatmul.f32.gmra.mxu1 %v288_v34  ;;  %818 = vmatmul.f32.gmra.mxu2 %v289_v50  ;;  %v303_v34 = vld [vmem:[%s1353_s22 + $0x3f0] sm:$0xff]  ;;  %v304_v50 = vld [vmem:[%s1353_s22 + $0x3f8] sm:$0xff] }
 0x11d   : > { %1080 = vst.msk [vmem:[%s1736_s21 + $0x28] sm:$0xff] %vm413_vm0, %v995_v55  ;;  %931 = vmatmul.f32.gmra.mxu3 %v290_v0  ;;  %v555_v0 = vadd.f32 %v1606_v12, %v1614_v17  ;;  %v310_v17 = vld [vmem:[%s1353_s22 + $0x428] sm:$0xff] }
 0x11e   : > { %v771_v59 = vpop.f32.mrf.mxu2  ;;  %v997_v60 = vpop.f32.mrf.mxu0 }
 0x11f   : > { %v772_v62 = vadd.f32 %v771_v59, %v659_v58 }
 0x120   : > { %v661_v63 = vpop.f32.mrf.mxu1  ;;  %v884_v1 = vpop.f32.mrf.mxu3 }
 0x121   : > { %v885_v5 = vadd.f32 %v884_v1, %v772_v62  ;;  %1194 = vmatmul.msk.f32.gmra.mxu0 %vm413_vm0, %v291_v14  ;;  %v662_v10 = vadd.f32 %v661_v63, %v549_v6  ;;  %v308_v1 = vld [vmem:[%s1353_s22 + $0x418] sm:$0xff] }
 0x123   : > { %v998_v9 = vadd.f32 %v997_v60, %v885_v5  ;;  %708 = vmatmul.f32.gmra.mxu1 %v293_v4  ;;  %821 = vmatmul.f32.gmra.mxu2 %v294_v44  ;;  %v306_v60 = vld [vmem:[%s1353_s22 + $0x408] sm:$0xff]  ;;  %v309_v4 = vld [vmem:[%s1353_s22 + $0x420] sm:$0xff]  ;;  %v558_v5 = vadd.f32 %v1606_v12, %v1629_v27  ;;  %v315_v27 = vld [vmem:[%s1353_s22 + $0x450] sm:$0xff] }
 0x125   : > { %1081 = vst.msk [vmem:[%s1736_s21 + $0x30] sm:$0xff] %vm413_vm0, %v998_v9  ;;  %934 = vmatmul.f32.gmra.mxu3 %v295_v11 }
 0x126   : > { %v774_v13 = vpop.f32.mrf.mxu2  ;;  %v1000_v19 = vpop.f32.mrf.mxu0 }
 0x127   : > { %v775_v22 = vadd.f32 %v774_v13, %v662_v10  ;;  %v311_v13 = vld [vmem:[%s1353_s22 + $0x430] sm:$0xff] }
 0x128   : > { %v664_v24 = vpop.f32.mrf.mxu1  ;;  %v887_v25 = vpop.f32.mrf.mxu3 }
 0x129   : > { %v888_v54 = vadd.f32 %v887_v25, %v775_v22  ;;  %1195 = vmatmul.msk.f32.gmra.mxu0 %vm413_vm0, %v296_v20  ;;  %v665_v38 = vadd.f32 %v664_v24, %v552_v33  ;;  %v313_v24 = vld [vmem:[%s1353_s22 + $0x440] sm:$0xff]  ;;  %v314_v25 = vld [vmem:[%s1353_s22 + $0x448] sm:$0xff] }
 0x12b   : > { %v1001_v35 = vadd.f32 %v1000_v19, %v888_v54  ;;  %711 = vmatmul.f32.gmra.mxu1 %v298_v28  ;;  %824 = vmatmul.f32.gmra.mxu2 %v299_v30  ;;  %v561_v30 = vadd.f32 %v1606_v12, %v1644_v37  ;;  %v320_v37 = vld [vmem:[%s1353_s22 + $0x478] sm:$0xff] }
 0x12d   : > { %1082 = vst.msk [vmem:[%s1736_s21 + $0x38] sm:$0xff] %vm413_vm0, %v1001_v35  ;;  %937 = vmatmul.f32.gmra.mxu3 %v300_v29 }
 0x12e   : > { %v777_v39 = vpop.f32.mrf.mxu2  ;;  %v1003_v42 = vpop.f32.mrf.mxu0 }
 0x12f   : > { %v778_v45 = vadd.f32 %v777_v39, %v665_v38  ;;  %v316_v38 = vld [vmem:[%s1353_s22 + $0x458] sm:$0xff] }
 0x130   : > { %v667_v48 = vpop.f32.mrf.mxu1  ;;  %v890_v49 = vpop.f32.mrf.mxu3 }
 0x131   : > { %v891_v52 = vadd.f32 %v890_v49, %v778_v45  ;;  %1196 = vmatmul.msk.f32.gmra.mxu0 %vm413_vm0, %v301_v43  ;;  %v668_v55 = vadd.f32 %v667_v48, %v555_v0  ;;  %v318_v45 = vld [vmem:[%s1353_s22 + $0x468] sm:$0xff]  ;;  %v319_v48 = vld [vmem:[%s1353_s22 + $0x470] sm:$0xff] }
 0x133   : > { %v1004_v53 = vadd.f32 %v1003_v42, %v891_v52  ;;  %714 = vmatmul.f32.gmra.mxu1 %v303_v34  ;;  %827 = vmatmul.f32.gmra.mxu2 %v304_v50  ;;  %v564_v34 = vadd.f32 %v1606_v12, %v1659_v47  ;;  %v325_v47 = vld [vmem:[%s1353_s22 + $0x4a0] sm:$0xff] }
 0x135   : > { %1083 = vst.msk [vmem:[%s1736_s21 + $0x40] sm:$0xff] %vm413_vm0, %v1004_v53  ;;  %940 = vmatmul.f32.gmra.mxu3 %v305_v8  ;;  %v321_v53 = vld [vmem:[%s1353_s22 + $0x480] sm:$0xff] }
 0x136   : > { %v780_v58 = vpop.f32.mrf.mxu2  ;;  %v1006_v59 = vpop.f32.mrf.mxu0 }
 0x137   : > { %v781_v14 = vadd.f32 %v780_v58, %v668_v55 }
 0x138   : > { %v670_v62 = vpop.f32.mrf.mxu1  ;;  %v893_v63 = vpop.f32.mrf.mxu3 }
 0x139   : > { %v894_v44 = vadd.f32 %v893_v63, %v781_v14  ;;  %1197 = vmatmul.msk.f32.gmra.mxu0 %vm413_vm0, %v306_v60  ;;  %v671_v6 = vadd.f32 %v670_v62, %v558_v5  ;;  %v323_v60 = vld [vmem:[%s1353_s22 + $0x490] sm:$0xff]  ;;  %v324_v14 = vld [vmem:[%s1353_s22 + $0x498] sm:$0xff]  ;;  %v567_v63 = vadd.f32 %v1606_v12, %v1674_v57  ;;  %v326_v5 = vld [vmem:[%s1353_s22 + $0x4a8] sm:$0xff] }
 0x13a   : > { %v330_v57 = vld [vmem:[%s1353_s22 + $0x4c8] sm:$0xff] }
 0x13b   : > { %v1007_v11 = vadd.f32 %v1006_v59, %v894_v44  ;;  %717 = vmatmul.f32.gmra.mxu1 %v308_v1  ;;  %830 = vmatmul.f32.gmra.mxu2 %v309_v4 }
 0x13d   : > { %1084 = vst.msk [vmem:[%s1736_s21 + $0x48] sm:$0xff] %vm413_vm0, %v1007_v11  ;;  %943 = vmatmul.f32.gmra.mxu3 %v310_v17 }
 0x13e   : > { %v783_v9 = vpop.f32.mrf.mxu2  ;;  %v1009_v10 = vpop.f32.mrf.mxu0 }
 0x13f   : > { %v784_v19 = vadd.f32 %v783_v9, %v671_v6 }
 0x140   : > { %v673_v20 = vpop.f32.mrf.mxu1  ;;  %v896_v22 = vpop.f32.mrf.mxu3 }
 0x141   : > { %v897_v28 = vadd.f32 %v896_v22, %v784_v19  ;;  %1198 = vmatmul.msk.f32.gmra.mxu0 %vm413_vm0, %v311_v13  ;;  %v674_v29 = vadd.f32 %v673_v20, %v561_v30  ;;  %v329_v13 = vld [vmem:[%s1353_s22 + $0x4c0] sm:$0xff]  ;;  %v570_v20 = vadd.f32 %v1606_v12, %v1689_v3  ;;  %v335_v3 = vld [vmem:[%s1353_s22 + $0x4f0] sm:$0xff] }
 0x143   : > { %v1010_v54 = vadd.f32 %v1009_v10, %v897_v28  ;;  %720 = vmatmul.f32.gmra.mxu1 %v313_v24  ;;  %833 = vmatmul.f32.gmra.mxu2 %v314_v25  ;;  %v328_v10 = vld [vmem:[%s1353_s22 + $0x4b8] sm:$0xff] }
 0x145   : > { %1085 = vst.msk [vmem:[%s1736_s21 + $0x50] sm:$0xff] %vm413_vm0, %v1010_v54  ;;  %946 = vmatmul.f32.gmra.mxu3 %v315_v27  ;;  %v331_v27 = vld [vmem:[%s1353_s22 + $0x4d0] sm:$0xff] }
 0x146   : > { %v786_v33 = vpop.f32.mrf.mxu2  ;;  %v1012_v35 = vpop.f32.mrf.mxu0 }
 0x147   : > { %v787_v39 = vadd.f32 %v786_v33, %v674_v29  ;;  %v333_v33 = vld [vmem:[%s1353_s22 + $0x4e0] sm:$0xff] }
 0x148   : > { %v676_v42 = vpop.f32.mrf.mxu1  ;;  %v899_v43 = vpop.f32.mrf.mxu3 }
 0x149   : > { %v900_v49 = vadd.f32 %v899_v43, %v787_v39  ;;  %1199 = vmatmul.msk.f32.gmra.mxu0 %vm413_vm0, %v316_v38  ;;  %v677_v52 = vadd.f32 %v676_v42, %v564_v34  ;;  %v573_v39 = vadd.f32 %v1606_v12, %v1704_v18 }
 0x14b   : > { %v1013_v50 = vadd.f32 %v1012_v35, %v900_v49  ;;  %723 = vmatmul.f32.gmra.mxu1 %v318_v45  ;;  %836 = vmatmul.f32.gmra.mxu2 %v319_v48  ;;  %v334_v35 = vld [vmem:[%s1353_s22 + $0x4e8] sm:$0xff]  ;;  %v336_v49 = vld [vmem:[%s1353_s22 + $0x4f8] sm:$0xff] }
 0x14d   : > { %1086 = vst.msk [vmem:[%s1736_s21 + $0x58] sm:$0xff] %vm413_vm0, %v1013_v50  ;;  %949 = vmatmul.f32.gmra.mxu3 %v320_v37 }
 0x14e   : > { %v789_v8 = vpop.f32.mrf.mxu2  ;;  %v1015_v0 = vpop.f32.mrf.mxu0 }
 0x14f   : > { %v790_v55 = vadd.f32 %v789_v8, %v677_v52 }
 0x150   : > { %v679_v58 = vpop.f32.mrf.mxu1  ;;  %v902_v59 = vpop.f32.mrf.mxu3 }
 0x151   : > { %v903_v62 = vadd.f32 %v902_v59, %v790_v55  ;;  %1200 = vmatmul.msk.f32.gmra.mxu0 %vm413_vm0, %v321_v53  ;;  %v680_v4 = vadd.f32 %v679_v58, %v567_v63 }
 0x153   : > { %v1016_v1 = vadd.f32 %v1015_v0, %v903_v62  ;;  %726 = vmatmul.f32.gmra.mxu1 %v323_v60  ;;  %839 = vmatmul.f32.gmra.mxu2 %v324_v14 }
 0x155   : > { %1087 = vst.msk [vmem:[%s1736_s21 + $0x60] sm:$0xff] %vm413_vm0, %v1016_v1  ;;  %952 = vmatmul.f32.gmra.mxu3 %v325_v47 }
 0x156   : > { %v792_v44 = vpop.f32.mrf.mxu2  ;;  %v1018_v17 = vpop.f32.mrf.mxu0 }
 0x157   : > { %v793_v11 = vadd.f32 %v792_v44, %v680_v4 }
 0x158   : > { %v682_v6 = vpop.f32.mrf.mxu1  ;;  %v905_v9 = vpop.f32.mrf.mxu3 }
 0x159   : > { %v906_v19 = vadd.f32 %v905_v9, %v793_v11  ;;  %1201 = vmatmul.msk.f32.gmra.mxu0 %vm413_vm0, %v326_v5  ;;  %v683_v24 = vadd.f32 %v682_v6, %v570_v20 }
 0x15b   : > { %v1019_v22 = vadd.f32 %v1018_v17, %v906_v19  ;;  %729 = vmatmul.f32.gmra.mxu1 %v328_v10  ;;  %842 = vmatmul.f32.gmra.mxu2 %v329_v13 }
 0x15d   : > { %1088 = vst.msk [vmem:[%s1736_s21 + $0x68] sm:$0xff] %vm413_vm0, %v1019_v22  ;;  %955 = vmatmul.f32.gmra.mxu3 %v330_v57 }
 0x15e   : > { %v795_v25 = vpop.f32.mrf.mxu2  ;;  %v1021_v28 = vpop.f32.mrf.mxu0 }
 0x15f   : > { %v796_v30 = vadd.f32 %v795_v25, %v683_v24 }
 0x160   : > { %v685_v54 = vpop.f32.mrf.mxu1  ;;  %v908_v29 = vpop.f32.mrf.mxu3 }
 0x161   : > { %v909_v38 = vadd.f32 %v908_v29, %v796_v30  ;;  %1202 = vmatmul.msk.f32.gmra.mxu0 %vm413_vm0, %v331_v27  ;;  %v686_v43 = vadd.f32 %v685_v54, %v573_v39 }
 0x163   : > { %v1022_v42 = vadd.f32 %v1021_v28, %v909_v38  ;;  %732 = vmatmul.f32.gmra.mxu1 %v333_v33  ;;  %845 = vmatmul.f32.gmra.mxu2 %v334_v35 }
 0x165   : > { %1089 = vst.msk [vmem:[%s1736_s21 + $0x70] sm:$0xff] %vm413_vm0, %v1022_v42  ;;  %958 = vmatmul.f32.gmra.mxu3 %v335_v3 }
 0x166   : > { %v798_v45 = vpop.f32.mrf.mxu2  ;;  %v1024_v48 = vpop.f32.mrf.mxu0 }
 0x167   : > { %v799_v37 = vadd.f32 %v798_v45, %v686_v43 }
 0x168   : > { %v688_v34 = vpop.f32.mrf.mxu1  ;;  %v911_v50 = vpop.f32.mrf.mxu3 }
 0x169   : > { %v912_v52 = vadd.f32 %v911_v50, %v799_v37  ;;  %1203 = vmatmul.msk.f32.gmra.mxu0 %vm413_vm0, %v336_v49  ;;  %v689_v12 = vadd.f32 %v688_v34, %v1612_v16 }
 0x16b   : > { %v1025_v8 = vadd.f32 %v1024_v48, %v912_v52 }
 0x16d   : > { %1090 = vst.msk [vmem:[%s1736_s21 + $0x78] sm:$0xff] %vm413_vm0, %v1025_v8 }
 0x16e   : > { %v801_v18 = vpop.f32.mrf.mxu2  ;;  %v1027_v0 = vpop.f32.mrf.mxu0 }
 0x16f   : > { %v802_v53 = vadd.f32 %v801_v18, %v689_v12 }
 0x170   : > { %v691_v55 = vpop.f32.mrf.mxu1  ;;  %v914_v58 = vpop.f32.mrf.mxu3 }
 0x171   : > { %v915_v59 = vadd.f32 %v914_v58, %v802_v53  ;;  %v692_v14 = vadd.f32 %v691_v55, %v1627_v26 }
 0x173   : > { %v1028_v60 = vadd.f32 %v1027_v0, %v915_v59 }
 0x175   : > { %1091 = vst.msk [vmem:[%s1736_s21 + $0x80] sm:$0xff] %vm413_vm0, %v1028_v60 }
 0x176   : > { %v804_v62 = vpop.f32.mrf.mxu2  ;;  %v1030_v47 = vpop.f32.mrf.mxu0 }
 0x177   : > { %v805_v63 = vadd.f32 %v804_v62, %v692_v14 }
 0x178   : > { %v694_v1 = vpop.f32.mrf.mxu1  ;;  %v917_v16 = vpop.f32.mrf.mxu3 }
 0x179   : > { %v918_v4 = vadd.f32 %v917_v16, %v805_v63  ;;  %v695_v17 = vadd.f32 %v694_v1, %v1642_v36 }
 0x17b   : > { %v1031_v44 = vadd.f32 %v1030_v47, %v918_v4 }
 0x17d   : > { %1092 = vst.msk [vmem:[%s1736_s21 + $0x88] sm:$0xff] %vm413_vm0, %v1031_v44 }
 0x17e   : > { %v807_v5 = vpop.f32.mrf.mxu2  ;;  %v1033_v11 = vpop.f32.mrf.mxu0 }
 0x17f   : > { %v808_v6 = vadd.f32 %v807_v5, %v695_v17 }
 0x180   : > { %v697_v9 = vpop.f32.mrf.mxu1  ;;  %v920_v26 = vpop.f32.mrf.mxu3 }
 0x181   : > { %v921_v10 = vadd.f32 %v920_v26, %v808_v6  ;;  %v698_v19 = vadd.f32 %v697_v9, %v1657_v46 }
 0x183   : > { %v1034_v13 = vadd.f32 %v1033_v11, %v921_v10 }
 0x185   : > { %1093 = vst.msk [vmem:[%s1736_s21 + $0x90] sm:$0xff] %vm413_vm0, %v1034_v13 }
 0x186   : > { %v810_v57 = vpop.f32.mrf.mxu2  ;;  %v1036_v20 = vpop.f32.mrf.mxu0 }
 0x187   : > { %v811_v22 = vadd.f32 %v810_v57, %v698_v19 }
 0x188   : > { %v700_v24 = vpop.f32.mrf.mxu1  ;;  %v923_v36 = vpop.f32.mrf.mxu3 }
 0x189   : > { %v924_v25 = vadd.f32 %v923_v36, %v811_v22  ;;  %v701_v27 = vadd.f32 %v700_v24, %v1672_v56 }
 0x18b   : > { %v1037_v28 = vadd.f32 %v1036_v20, %v924_v25 }
 0x18d   : > { %1094 = vst.msk [vmem:[%s1736_s21 + $0x98] sm:$0xff] %vm413_vm0, %v1037_v28 }
 0x18e   : > { %v813_v30 = vpop.f32.mrf.mxu2  ;;  %v1039_v54 = vpop.f32.mrf.mxu0 }
 0x18f   : > { %v814_v29 = vadd.f32 %v813_v30, %v701_v27 }
 0x190   : > { %v703_v33 = vpop.f32.mrf.mxu1  ;;  %v926_v46 = vpop.f32.mrf.mxu3 }
 0x191   : > { %v927_v35 = vadd.f32 %v926_v46, %v814_v29  ;;  %v704_v3 = vadd.f32 %v703_v33, %v1687_v2 }
 0x193   : > { %v1040_v38 = vadd.f32 %v1039_v54, %v927_v35 }
 0x195   : > { %1095 = vst.msk [vmem:[%s1736_s21 + $0xa0] sm:$0xff] %vm413_vm0, %v1040_v38 }
 0x196   : > { %v816_v39 = vpop.f32.mrf.mxu2  ;;  %v1042_v42 = vpop.f32.mrf.mxu0 }
 0x197   : > { %v817_v43 = vadd.f32 %v816_v39, %v704_v3 }
 0x198   : > { %v706_v45 = vpop.f32.mrf.mxu1  ;;  %v929_v56 = vpop.f32.mrf.mxu3 }
 0x199   : > { %v930_v48 = vadd.f32 %v929_v56, %v817_v43  ;;  %v707_v37 = vadd.f32 %v706_v45, %v1702_v15 }
 0x19b   : > { %v1043_v49 = vadd.f32 %v1042_v42, %v930_v48 }
 0x19d   : > { %1096 = vst.msk [vmem:[%s1736_s21 + $0xa8] sm:$0xff] %vm413_vm0, %v1043_v49 }
 0x19e   : > { %v819_v34 = vpop.f32.mrf.mxu2  ;;  %v1045_v50 = vpop.f32.mrf.mxu0 }
 0x19f   : > { %v820_v52 = vadd.f32 %v819_v34, %v707_v37 }
 0x1a0   : > { %v709_v8 = vpop.f32.mrf.mxu1  ;;  %v932_v2 = vpop.f32.mrf.mxu3 }
 0x1a1   : > { %v933_v12 = vadd.f32 %v932_v2, %v820_v52  ;;  %v710_v0 = vadd.f32 %v709_v8, %v1717_v32 }
 0x1a3   : > { %v1046_v18 = vadd.f32 %v1045_v50, %v933_v12 }
 0x1a5   : > { %1097 = vst.msk [vmem:[%s1736_s21 + $0xb0] sm:$0xff] %vm413_vm0, %v1046_v18 }
 0x1a6   : > { %v822_v53 = vpop.f32.mrf.mxu2  ;;  %v1048_v55 = vpop.f32.mrf.mxu0 }
 0x1a7   : > { %v823_v58 = vadd.f32 %v822_v53, %v710_v0 }
 0x1a8   : > { %v712_v59 = vpop.f32.mrf.mxu1  ;;  %v935_v15 = vpop.f32.mrf.mxu3 }
 0x1a9   : > { %v936_v60 = vadd.f32 %v935_v15, %v823_v58  ;;  %v713_v62 = vadd.f32 %v712_v59, %v1619_v21 }
 0x1ab   : > { %v1049_v14 = vadd.f32 %v1048_v55, %v936_v60 }
 0x1ad   : > { %1098 = vst.msk [vmem:[%s1736_s21 + $0xb8] sm:$0xff] %vm413_vm0, %v1049_v14 }
 0x1ae   : > { %v825_v47 = vpop.f32.mrf.mxu2  ;;  %v1051_v63 = vpop.f32.mrf.mxu0 }
 0x1af   : > { %v826_v1 = vadd.f32 %v825_v47, %v713_v62 }
 0x1b0   : > { %v715_v16 = vpop.f32.mrf.mxu1  ;;  %v938_v32 = vpop.f32.mrf.mxu3 }
 0x1b1   : > { %v939_v4 = vadd.f32 %v938_v32, %v826_v1  ;;  %v716_v17 = vadd.f32 %v715_v16, %v1634_v31 }
 0x1b3   : > { %v1052_v44 = vadd.f32 %v1051_v63, %v939_v4 }
 0x1b5   : > { %1099 = vst.msk [vmem:[%s1736_s21 + $0xc0] sm:$0xff] %vm413_vm0, %v1052_v44 }
 0x1b6   : > { %v828_v5 = vpop.f32.mrf.mxu2  ;;  %v1054_v11 = vpop.f32.mrf.mxu0 }
 0x1b7   : > { %v829_v6 = vadd.f32 %v828_v5, %v716_v17 }
 0x1b8   : > { %v718_v9 = vpop.f32.mrf.mxu1  ;;  %v941_v21 = vpop.f32.mrf.mxu3 }
 0x1b9   : > { %v942_v26 = vadd.f32 %v941_v21, %v829_v6  ;;  %v719_v13 = vadd.f32 %v718_v9, %v1649_v41 }
 0x1bb   : > { %v1055_v10 = vadd.f32 %v1054_v11, %v942_v26 }
 0x1bd   : > { %1100 = vst.msk [vmem:[%s1736_s21 + $0xc8] sm:$0xff] %vm413_vm0, %v1055_v10 }
 0x1be   : > { %v831_v19 = vpop.f32.mrf.mxu2  ;;  %v1057_v57 = vpop.f32.mrf.mxu0 }
 0x1bf   : > { %v832_v20 = vadd.f32 %v831_v19, %v719_v13 }
 0x1c0   : > { %v721_v22 = vpop.f32.mrf.mxu1  ;;  %v944_v31 = vpop.f32.mrf.mxu3 }
 0x1c1   : > { %v945_v24 = vadd.f32 %v944_v31, %v832_v20  ;;  %v722_v25 = vadd.f32 %v721_v22, %v1664_v51 }
 0x1c3   : > { %v1058_v36 = vadd.f32 %v1057_v57, %v945_v24 }
 0x1c5   : > { %1101 = vst.msk [vmem:[%s1736_s21 + $0xd0] sm:$0xff] %vm413_vm0, %v1058_v36 }
 0x1c6   : > { %v834_v28 = vpop.f32.mrf.mxu2  ;;  %v1060_v27 = vpop.f32.mrf.mxu0 }
 0x1c7   : > { %v835_v30 = vadd.f32 %v834_v28, %v722_v25 }
 0x1c8   : > { %v724_v54 = vpop.f32.mrf.mxu1  ;;  %v947_v41 = vpop.f32.mrf.mxu3 }
 0x1c9   : > { %v948_v29 = vadd.f32 %v947_v41, %v835_v30  ;;  %v725_v46 = vadd.f32 %v724_v54, %v1679_v61 }
 0x1cb   : > { %v1061_v33 = vadd.f32 %v1060_v27, %v948_v29 }
 0x1cd   : > { %1102 = vst.msk [vmem:[%s1736_s21 + $0xd8] sm:$0xff] %vm413_vm0, %v1061_v33 }
 0x1ce   : > { %v837_v35 = vpop.f32.mrf.mxu2  ;;  %v1063_v38 = vpop.f32.mrf.mxu0 }
 0x1cf   : > { %v838_v3 = vadd.f32 %v837_v35, %v725_v46 }
 0x1d0   : > { %v727_v39 = vpop.f32.mrf.mxu1  ;;  %v950_v51 = vpop.f32.mrf.mxu3 }
 0x1d1   : > { %v951_v42 = vadd.f32 %v950_v51, %v838_v3  ;;  %v728_v45 = vadd.f32 %v727_v39, %v1694_v7 }
 0x1d3   : > { %v1064_v43 = vadd.f32 %v1063_v38, %v951_v42 }
 0x1d5   : > { %1103 = vst.msk [vmem:[%s1736_s21 + $0xe0] sm:$0xff] %vm413_vm0, %v1064_v43 }
 0x1d6   : > { %v840_v56 = vpop.f32.mrf.mxu2  ;;  %v1066_v48 = vpop.f32.mrf.mxu0 }
 0x1d7   : > { %v841_v49 = vadd.f32 %v840_v56, %v728_v45 }
 0x1d8   : > { %v730_v37 = vpop.f32.mrf.mxu1  ;;  %v953_v61 = vpop.f32.mrf.mxu3 }
 0x1d9   : > { %v954_v34 = vadd.f32 %v953_v61, %v841_v49  ;;  %v731_v52 = vadd.f32 %v730_v37, %v1709_v23 }
 0x1db   : > { %v1067_v50 = vadd.f32 %v1066_v48, %v954_v34 }
 0x1dd   : > { %1104 = vst.msk [vmem:[%s1736_s21 + $0xe8] sm:$0xff] %vm413_vm0, %v1067_v50 }
 0x1de   : > { %v843_v8 = vpop.f32.mrf.mxu2  ;;  %v1069_v2 = vpop.f32.mrf.mxu0 }
 0x1df   : > { %v844_v12 = vadd.f32 %v843_v8, %v731_v52 }
 0x1e0   : > { %v956_v18 = vpop.f32.mrf.mxu3  ;;  %v733_v0 = vpop.f32.mrf.mxu1 }
 0x1e1   : > { %v957_v7 = vadd.f32 %v956_v18, %v844_v12  ;;  %v734_v55 = vadd.f32 %v733_v0, %v1722_v40 }
 0x1e3   : > { %v1070_v53 = vadd.f32 %v1069_v2, %v957_v7 }
 0x1e5   : > { %1105 = vst.msk [vmem:[%s1736_s21 + $0xf0] sm:$0xff] %vm413_vm0, %v1070_v53 }
 0x1e6   : > { %v846_v58 = vpop.f32.mrf.mxu2  ;;  %v1072_v60 = vpop.f32.mrf.mxu0 }
 0x1e7   : > { %v847_v59 = vadd.f32 %v846_v58, %v734_v55 }
 0x1e8   : > { %v959_v15 = vpop.f32.mrf.mxu3 }
 0x1e9   : > { %v960_v14 = vadd.f32 %v959_v15, %v847_v59 }
 0x1eb   : > { %v1073_v23 = vadd.f32 %v1072_v60, %v960_v14 }
 0x1ed   : > { %1106 = vst.msk [vmem:[%s1736_s21 + $0xf8] sm:$0xff] %vm413_vm0, %v1073_v23 }
 0x1ee PF: > { %s13_s12 = sadd.s32 1, %s1270_s12  }
 0x1ef   : > { %p10_p4 = scmp.ge.s32.totalorder %s13_s12, 4  }
 0x1f1   :  { %12 = sbr.rel (!%p10_p4) target bundleno = 1 (0x1), region = 62 }

// kernel: _lambda_.27
= control target key start
LH: loop header
LB: loop body
LE: loop exit
PB: predicated region body
PF: predicated region fallthrough
CT: control target
= control target key end

     0   :  { %s1970_s15 = smov 0   ;;  %s3900_s0 = inlined_call_operand.vmem [shape: f32[2,256,64], index: 0, kind: input, shape index: {}]   ;;  %s3901_s1 = inlined_call_operand.vmem [shape: f32[1,64], index: 1, kind: input, shape index: {}]   ;;  %s3902_s2 = inlined_call_operand.vmem [shape: f32[1,64], index: 2, kind: input, shape index: {}]   ;;  %s3903_s3 = inlined_call_operand.vmem [shape: f32[64,64], index: 3, kind: input, shape index: {}]   ;;  %s3904_s4 = inlined_call_operand.vmem [shape: f32[2,256,64], index: 4, kind: output, shape index: {}]  }
   0x1 LB: > { %s1673_s16 = sadd.s32 4294967295, %s1943_s15   ;;  %p1677_p0 = scmp.ge.s32.totalorder %s1943_s15, 1  ;;  %s1943_s15 = sphi %s1970_s15, %s14_s15  }
   0x2   : > { %p162_p1 = scmp.lt.s32.totalorder %s1943_s15, 3 }
   0x4   : > { %p163_p2 = pnand %p1677_p0, %p162_p1 }
   0x6   : > { %166 = sbr.rel (%p163_p2) target bundleno = 520 (0x208), region = 36 }
   0xb   : > { %v237_v0 = vld [vmem:[%s3903_s3 + $0x38] sm:$0xff]  ;;  %v236_v1 = vld [vmem:[%s3903_s3 + $0x30] sm:$0xff]  ;;  %p188_p3 = scmp.lt.s32.totalorder %s1673_s16, 1  ;;  %v235_v2 = vld [vmem:[%s3903_s3 + $0x28] sm:$0xff]  ;;  %vm3969_vm0 = vcmask 523264  }
   0xc   : > { %343 = vmatpush.msra.mxu0 %v237_v0  ;;  %653 = vmatpush.msra.mxu1 %v237_v0  ;;  %v234_v3 = vld [vmem:[%s3903_s3 + $0x20] sm:$0xff]  ;;  %v233_v4 = vld [vmem:[%s3903_s3 + $0x18] sm:$0xff]  ;;  %v232_v5 = vld [vmem:[%s3903_s3 + $0x10] sm:$0xff] }
   0xd   : > { %s4272_s16 = smov (!%p188_p3, %s1673_s16), 1  ;;  %1782 = vmatpush.msra.mxu2 %v237_v0  ;;  %1790 = vmatpush.msra.mxu3 %v237_v0  ;;  %v231_v7 = vld [vmem:[%s3903_s3 + $0x8] sm:$0xff]  ;;  %v230_v9 = vld [vmem:[%s3903_s3] sm:$0xff] }
   0xe   : > { %344 = vmatpush.msra.mxu0 %v236_v1  ;;  %654 = vmatpush.msra.mxu1 %v236_v1  ;;  %s1780_s25 = sshll.u32 %s4272_s16, 8 }
   0xf   : > { %1783 = vmatpush.msra.mxu2 %v236_v1  ;;  %1791 = vmatpush.msra.mxu3 %v236_v1  ;;  %s2001_s30 = scalar_lea.vmem %s3900_s0, %s1780_s25  ;;  %s3550_s19 = scalar_lea.vmem %s3904_s4, %s1780_s25 }
  0x10   : > { %345 = vmatpush.msra.mxu0 %v235_v2  ;;  %655 = vmatpush.msra.mxu1 %v235_v2  ;;  %v2007_v6 = vld [vmem:[%s2001_s30] sm:$0xff]  ;;  %v2026_v12 = vld [vmem:[%s2001_s30 + $0x8] sm:$0xff]  ;;  %v2042_v16 = vld [vmem:[%s2001_s30 + $0x10] sm:$0xff] }
  0x11   : > { %1784 = vmatpush.msra.mxu2 %v235_v2  ;;  %1792 = vmatpush.msra.mxu3 %v235_v2  ;;  %v2013_v8 = vld [vmem:[%s2001_s30 + $0x80] sm:$0xff]  ;;  %v517_v10 = vmul.f32 %v2007_v6, %v2007_v6  ;;  %v2032_v13 = vld [vmem:[%s2001_s30 + $0x88] sm:$0xff]  ;;  %v518_v14 = vmul.f32 %v2026_v12, %v2026_v12  ;;  %v2048_v17 = vld [vmem:[%s2001_s30 + $0x90] sm:$0xff]  ;;  %v519_v18 = vmul.f32 %v2042_v16, %v2042_v16 }
  0x12   : > { %346 = vmatpush.msra.mxu0 %v234_v3  ;;  %656 = vmatpush.msra.mxu1 %v234_v3  ;;  %3970 = vst [vmem:[#allocation2_spill] sm:$0xff] %v2013_v8  ;;  %v533_v11 = vmul.f32 %v2013_v8, %v2013_v8  ;;  %v534_v15 = vmul.f32 %v2032_v13, %v2032_v13  ;;  %v2058_v20 = vld [vmem:[%s2001_s30 + $0x18] sm:$0xff]  ;;  %v2074_v24 = vld [vmem:[%s2001_s30 + $0x20] sm:$0xff]  ;;  %v2090_v28 = vld [vmem:[%s2001_s30 + $0x28] sm:$0xff] }
  0x13   : > { %1785 = vmatpush.msra.mxu2 %v234_v3  ;;  %1793 = vmatpush.msra.mxu3 %v234_v3  ;;  %3971 = vst [vmem:[#allocation3_spill] sm:$0xff] %v2032_v13  ;;  %v535_v19 = vmul.f32 %v2048_v17, %v2048_v17  ;;  %v2064_v21 = vld [vmem:[%s2001_s30 + $0x98] sm:$0xff]  ;;  %v520_v22 = vmul.f32 %v2058_v20, %v2058_v20  ;;  %v2080_v25 = vld [vmem:[%s2001_s30 + $0xa0] sm:$0xff]  ;;  %v2096_v29 = vld [vmem:[%s2001_s30 + $0xa8] sm:$0xff] }
  0x14   : > { %347 = vmatpush.msra.mxu0 %v233_v4  ;;  %657 = vmatpush.msra.mxu1 %v233_v4  ;;  %3972 = vst [vmem:[#allocation4_spill] sm:$0xff] %v2048_v17  ;;  %v536_v23 = vmul.f32 %v2064_v21, %v2064_v21  ;;  %v521_v26 = vmul.f32 %v2074_v24, %v2074_v24  ;;  %v2106_v32 = vld [vmem:[%s2001_s30 + $0x30] sm:$0xff]  ;;  %v2122_v36 = vld [vmem:[%s2001_s30 + $0x38] sm:$0xff]  ;;  %v2138_v40 = vld [vmem:[%s2001_s30 + $0x40] sm:$0xff] }
  0x15   : > { %1786 = vmatpush.msra.mxu2 %v233_v4  ;;  %1794 = vmatpush.msra.mxu3 %v233_v4  ;;  %3973 = vst [vmem:[#allocation5_spill] sm:$0xff] %v2064_v21  ;;  %v537_v27 = vmul.f32 %v2080_v25, %v2080_v25  ;;  %v522_v30 = vmul.f32 %v2090_v28, %v2090_v28  ;;  %v2112_v33 = vld [vmem:[%s2001_s30 + $0xb0] sm:$0xff]  ;;  %v2128_v37 = vld [vmem:[%s2001_s30 + $0xb8] sm:$0xff]  ;;  %v2144_v41 = vld [vmem:[%s2001_s30 + $0xc0] sm:$0xff] }
  0x16   : > { %348 = vmatpush.msra.mxu0 %v232_v5  ;;  %658 = vmatpush.msra.mxu1 %v232_v5  ;;  %3974 = vst [vmem:[#allocation6_spill] sm:$0xff] %v2080_v25  ;;  %v538_v31 = vmul.f32 %v2096_v29, %v2096_v29  ;;  %v523_v34 = vmul.f32 %v2106_v32, %v2106_v32  ;;  %v2154_v44 = vld [vmem:[%s2001_s30 + $0x48] sm:$0xff]  ;;  %v2170_v48 = vld [vmem:[%s2001_s30 + $0x50] sm:$0xff]  ;;  %v2186_v52 = vld [vmem:[%s2001_s30 + $0x58] sm:$0xff] }
  0x17   : > { %1787 = vmatpush.msra.mxu2 %v232_v5  ;;  %1795 = vmatpush.msra.mxu3 %v232_v5  ;;  %3975 = vst [vmem:[#allocation7_spill] sm:$0xff] %v2096_v29  ;;  %v539_v35 = vmul.f32 %v2112_v33, %v2112_v33  ;;  %v524_v38 = vmul.f32 %v2122_v36, %v2122_v36  ;;  %v2160_v45 = vld [vmem:[%s2001_s30 + $0xc8] sm:$0xff]  ;;  %v2176_v49 = vld [vmem:[%s2001_s30 + $0xd0] sm:$0xff]  ;;  %v2192_v53 = vld [vmem:[%s2001_s30 + $0xd8] sm:$0xff] }
  0x18   : > { %349 = vmatpush.msra.mxu0 %v231_v7  ;;  %659 = vmatpush.msra.mxu1 %v231_v7  ;;  %3976 = vst [vmem:[#allocation8_spill] sm:$0xff] %v2112_v33  ;;  %v540_v39 = vmul.f32 %v2128_v37, %v2128_v37  ;;  %v525_v42 = vmul.f32 %v2138_v40, %v2138_v40  ;;  %v2202_v56 = vld [vmem:[%s2001_s30 + $0x60] sm:$0xff]  ;;  %v2218_v60 = vld [vmem:[%s2001_s30 + $0x68] sm:$0xff]  ;;  %v2234_v0 = vld [vmem:[%s2001_s30 + $0x70] sm:$0xff] }
  0x19   : > { %1788 = vmatpush.msra.mxu2 %v231_v7  ;;  %1796 = vmatpush.msra.mxu3 %v231_v7  ;;  %3977 = vst [vmem:[#allocation9_spill] sm:$0xff] %v2128_v37  ;;  %v541_v43 = vmul.f32 %v2144_v41, %v2144_v41  ;;  %v526_v46 = vmul.f32 %v2154_v44, %v2154_v44  ;;  %v2208_v57 = vld [vmem:[%s2001_s30 + $0xe0] sm:$0xff]  ;;  %v2224_v61 = vld [vmem:[%s2001_s30 + $0xe8] sm:$0xff]  ;;  %v2240_v1 = vld [vmem:[%s2001_s30 + $0xf0] sm:$0xff] }
  0x1a   : > { %350 = vmatpush.msra.mxu0 %v230_v9  ;;  %660 = vmatpush.msra.mxu1 %v230_v9  ;;  %3978 = vst [vmem:[#allocation10_spill] sm:$0xff] %v2144_v41  ;;  %v542_v47 = vmul.f32 %v2160_v45, %v2160_v45  ;;  %v527_v50 = vmul.f32 %v2170_v48, %v2170_v48  ;;  %v2250_v4 = vld [vmem:[%s2001_s30 + $0x78] sm:$0xff] }
  0x1b   : > { %1682 = vmatmul.msk.f32.vlgmr.msra.gmra.mxu0 %vm3969_vm0, %v2007_v6  ;;  %1714 = vmatmul.msk.f32.vlgmr.msra.gmra.mxu1 %vm3969_vm0, %v517_v10  ;;  %3979 = vst [vmem:[#allocation11_spill] sm:$0xff] %v2160_v45  ;;  %v543_v51 = vmul.f32 %v2176_v49, %v2176_v49  ;;  %v528_v54 = vmul.f32 %v2186_v52, %v2186_v52  ;;  %v2256_v5 = vld [vmem:[%s2001_s30 + $0xf8] sm:$0xff] }
  0x1c   : > { %1789 = vmatpush.msra.mxu2 %v230_v9  ;;  %1797 = vmatpush.msra.mxu3 %v230_v9  ;;  %3980 = vst [vmem:[#allocation12_spill] sm:$0xff] %v2170_v48  ;;  %v544_v55 = vmul.f32 %v2192_v53, %v2192_v53  ;;  %v529_v58 = vmul.f32 %v2202_v56, %v2202_v56 }
  0x1d   : > { %1698 = vmatmul.msk.f32.vlgmr.msra.gmra.mxu2 %vm3969_vm0, %v2013_v8  ;;  %1730 = vmatmul.msk.f32.vlgmr.msra.gmra.mxu3 %vm3969_vm0, %v533_v11  ;;  %3981 = vst [vmem:[#allocation13_spill] sm:$0xff] %v2176_v49  ;;  %v545_v59 = vmul.f32 %v2208_v57, %v2208_v57  ;;  %v530_v62 = vmul.f32 %v2218_v60, %v2218_v60 }
  0x1e   : > { %3982 = vst [vmem:[#allocation14_spill] sm:$0xff] %v2186_v52  ;;  %v546_v63 = vmul.f32 %v2224_v61, %v2224_v61  ;;  %v531_v2 = vmul.f32 %v2234_v0, %v2234_v0  ;;  %v547_v3 = vmul.f32 %v2240_v1, %v2240_v1  ;;  %v532_v7 = vmul.f32 %v2250_v4, %v2250_v4 }
  0x1f   : > { %3983 = vst [vmem:[#allocation15_spill] sm:$0xff] %v2192_v53  ;;  %v548_v9 = vmul.f32 %v2256_v5, %v2256_v5 }
  0x20   : > { %3984 = vst [vmem:[#allocation16_spill] sm:$0xff] %v2202_v56 }
  0x21   : > { %3985 = vst [vmem:[#allocation17_spill] sm:$0xff] %v2208_v57 }
  0x22   : > { %3986 = vst [vmem:[#allocation18_spill] sm:$0xff] %v2218_v60 }
  0x23   : > { %1683 = vmatmul.msk.f32.gmra.mxu0 %vm3969_vm0, %v2026_v12  ;;  %1715 = vmatmul.msk.f32.gmra.mxu1 %vm3969_vm0, %v518_v14  ;;  %3987 = vst [vmem:[#allocation19_spill] sm:$0xff] %v2224_v61 }
  0x24   : > { %3988 = vst [vmem:[#allocation20_spill] sm:$0xff] %v2234_v0 }
  0x25   : > { %1699 = vmatmul.msk.f32.gmra.mxu2 %vm3969_vm0, %v2032_v13  ;;  %1731 = vmatmul.msk.f32.gmra.mxu3 %vm3969_vm0, %v534_v15  ;;  %3989 = vst [vmem:[#allocation21_spill] sm:$0xff] %v2240_v1 }
  0x26   : > { %3990 = vst [vmem:[#allocation22_spill] sm:$0xff] %v2250_v4 }
  0x27   : > { %3991 = vst [vmem:[#allocation23_spill] sm:$0xff] %v2256_v5 }
  0x2b   : > { %1684 = vmatmul.msk.f32.gmra.mxu0 %vm3969_vm0, %v2042_v16  ;;  %1716 = vmatmul.msk.f32.gmra.mxu1 %vm3969_vm0, %v519_v18 }
  0x2d   : > { %1700 = vmatmul.msk.f32.gmra.mxu2 %vm3969_vm0, %v2048_v17  ;;  %1732 = vmatmul.msk.f32.gmra.mxu3 %vm3969_vm0, %v535_v19 }
  0x33   : > { %1685 = vmatmul.msk.f32.gmra.mxu0 %vm3969_vm0, %v2058_v20  ;;  %1717 = vmatmul.msk.f32.gmra.mxu1 %vm3969_vm0, %v520_v22 }
  0x35   : > { %1701 = vmatmul.msk.f32.gmra.mxu2 %vm3969_vm0, %v2064_v21  ;;  %1733 = vmatmul.msk.f32.gmra.mxu3 %vm3969_vm0, %v536_v23 }
  0x3b   : > { %1686 = vmatmul.msk.f32.gmra.mxu0 %vm3969_vm0, %v2074_v24  ;;  %1718 = vmatmul.msk.f32.gmra.mxu1 %vm3969_vm0, %v521_v26 }
  0x3d   : > { %1702 = vmatmul.msk.f32.gmra.mxu2 %vm3969_vm0, %v2080_v25  ;;  %1734 = vmatmul.msk.f32.gmra.mxu3 %vm3969_vm0, %v537_v27 }
  0x43   : > { %1687 = vmatmul.msk.f32.gmra.mxu0 %vm3969_vm0, %v2090_v28  ;;  %1719 = vmatmul.msk.f32.gmra.mxu1 %vm3969_vm0, %v522_v30 }
  0x45   : > { %1703 = vmatmul.msk.f32.gmra.mxu2 %vm3969_vm0, %v2096_v29  ;;  %1735 = vmatmul.msk.f32.gmra.mxu3 %vm3969_vm0, %v538_v31 }
  0x4b   : > { %1688 = vmatmul.msk.f32.gmra.mxu0 %vm3969_vm0, %v2106_v32  ;;  %1720 = vmatmul.msk.f32.gmra.mxu1 %vm3969_vm0, %v523_v34 }
  0x4d   : > { %1704 = vmatmul.msk.f32.gmra.mxu2 %vm3969_vm0, %v2112_v33  ;;  %1736 = vmatmul.msk.f32.gmra.mxu3 %vm3969_vm0, %v539_v35 }
  0x53   : > { %1689 = vmatmul.msk.f32.gmra.mxu0 %vm3969_vm0, %v2122_v36  ;;  %1721 = vmatmul.msk.f32.gmra.mxu1 %vm3969_vm0, %v524_v38 }
  0x55   : > { %1705 = vmatmul.msk.f32.gmra.mxu2 %vm3969_vm0, %v2128_v37  ;;  %1737 = vmatmul.msk.f32.gmra.mxu3 %vm3969_vm0, %v540_v39 }
  0x5b   : > { %1690 = vmatmul.msk.f32.gmra.mxu0 %vm3969_vm0, %v2138_v40  ;;  %1722 = vmatmul.msk.f32.gmra.mxu1 %vm3969_vm0, %v525_v42 }
  0x5d   : > { %1706 = vmatmul.msk.f32.gmra.mxu2 %vm3969_vm0, %v2144_v41  ;;  %1738 = vmatmul.msk.f32.gmra.mxu3 %vm3969_vm0, %v541_v43 }
  0x63   : > { %1691 = vmatmul.msk.f32.gmra.mxu0 %vm3969_vm0, %v2154_v44  ;;  %1723 = vmatmul.msk.f32.gmra.mxu1 %vm3969_vm0, %v526_v46 }
  0x65   : > { %1707 = vmatmul.msk.f32.gmra.mxu2 %vm3969_vm0, %v2160_v45  ;;  %1739 = vmatmul.msk.f32.gmra.mxu3 %vm3969_vm0, %v542_v47 }
  0x6b   : > { %1692 = vmatmul.msk.f32.gmra.mxu0 %vm3969_vm0, %v2170_v48  ;;  %1724 = vmatmul.msk.f32.gmra.mxu1 %vm3969_vm0, %v527_v50 }
  0x6d   : > { %1708 = vmatmul.msk.f32.gmra.mxu2 %vm3969_vm0, %v2176_v49  ;;  %1740 = vmatmul.msk.f32.gmra.mxu3 %vm3969_vm0, %v543_v51 }
  0x73   : > { %1693 = vmatmul.msk.f32.gmra.mxu0 %vm3969_vm0, %v2186_v52  ;;  %1725 = vmatmul.msk.f32.gmra.mxu1 %vm3969_vm0, %v528_v54 }
  0x75   : > { %1709 = vmatmul.msk.f32.gmra.mxu2 %vm3969_vm0, %v2192_v53  ;;  %1741 = vmatmul.msk.f32.gmra.mxu3 %vm3969_vm0, %v544_v55 }
  0x7b   : > { %1694 = vmatmul.msk.f32.gmra.mxu0 %vm3969_vm0, %v2202_v56  ;;  %1726 = vmatmul.msk.f32.gmra.mxu1 %vm3969_vm0, %v529_v58 }
  0x7d   : > { %1710 = vmatmul.msk.f32.gmra.mxu2 %vm3969_vm0, %v2208_v57  ;;  %1742 = vmatmul.msk.f32.gmra.mxu3 %vm3969_vm0, %v545_v59 }
  0x83   : > { %1695 = vmatmul.msk.f32.gmra.mxu0 %vm3969_vm0, %v2218_v60  ;;  %1727 = vmatmul.msk.f32.gmra.mxu1 %vm3969_vm0, %v530_v62 }
  0x85   : > { %1711 = vmatmul.msk.f32.gmra.mxu2 %vm3969_vm0, %v2224_v61  ;;  %1743 = vmatmul.msk.f32.gmra.mxu3 %vm3969_vm0, %v546_v63 }
  0x8b   : > { %1696 = vmatmul.msk.f32.gmra.mxu0 %vm3969_vm0, %v2234_v0  ;;  %1728 = vmatmul.msk.f32.gmra.mxu1 %vm3969_vm0, %v531_v2 }
  0x8d   : > { %1712 = vmatmul.msk.f32.gmra.mxu2 %vm3969_vm0, %v2240_v1  ;;  %1744 = vmatmul.msk.f32.gmra.mxu3 %vm3969_vm0, %v547_v3 }
  0x93   : > { %1697 = vmatmul.msk.f32.gmra.mxu0 %vm3969_vm0, %v2250_v4  ;;  %1729 = vmatmul.msk.f32.gmra.mxu1 %vm3969_vm0, %v532_v7 }
  0x95   : > { %1713 = vmatmul.msk.f32.gmra.mxu2 %vm3969_vm0, %v2256_v5  ;;  %1745 = vmatmul.msk.f32.gmra.mxu3 %vm3969_vm0, %v548_v9 }
  0x98   : > { %v352_v10 = vpop.f32.mrf.mxu0  ;;  %v662_v11 = vpop.f32.mrf.mxu1 }
  0x99   : > { %v448_v18 = vsel %vm3969_vm0, %v352_v10, 0.0  ;;  %v758_v19 = vsel %vm3969_vm0, %v662_v11, 0.0 }
  0xa0   : > { %v355_v14 = vpop.f32.mrf.mxu0  ;;  %v665_v15 = vpop.f32.mrf.mxu1 }
  0xa1   : > { %v449_v22 = vsel %vm3969_vm0, %v355_v14, 0.0  ;;  %v759_v23 = vsel %vm3969_vm0, %v665_v15, 0.0  ;;  %v2272_v26 = vpop.f32.mrf.mxu2  ;;  %v2274_v27 = vpop.f32.mrf.mxu3 }
  0xa2   : > { %v450_v30 = vadd.f32 %v449_v22, %v448_v18  ;;  %v760_v31 = vadd.f32 %v759_v23, %v758_v19 }
  0xa8   : > { %v358_v34 = vpop.f32.mrf.mxu0  ;;  %v668_v35 = vpop.f32.mrf.mxu1 }
  0xa9   : > { %v451_v38 = vsel %vm3969_vm0, %v358_v34, 0.0  ;;  %v761_v39 = vsel %vm3969_vm0, %v668_v35, 0.0  ;;  %v2278_v42 = vpop.f32.mrf.mxu2  ;;  %v2280_v43 = vpop.f32.mrf.mxu3 }
  0xaa   : > { %v452_v46 = vadd.f32 %v451_v38, %v450_v30  ;;  %v762_v47 = vadd.f32 %v761_v39, %v760_v31 }
  0xb0   : > { %v361_v50 = vpop.f32.mrf.mxu0  ;;  %v671_v51 = vpop.f32.mrf.mxu1 }
  0xb1   : > { %v453_v54 = vsel %vm3969_vm0, %v361_v50, 0.0  ;;  %v763_v55 = vsel %vm3969_vm0, %v671_v51, 0.0  ;;  %v2284_v58 = vpop.f32.mrf.mxu2  ;;  %v2286_v59 = vpop.f32.mrf.mxu3 }
  0xb2   : > { %v454_v62 = vadd.f32 %v453_v54, %v452_v46  ;;  %v764_v63 = vadd.f32 %v763_v55, %v762_v47 }
  0xb8   : > { %v364_v2 = vpop.f32.mrf.mxu0  ;;  %v674_v3 = vpop.f32.mrf.mxu1 }
  0xb9   : > { %v455_v7 = vsel %vm3969_vm0, %v364_v2, 0.0  ;;  %v765_v9 = vsel %vm3969_vm0, %v674_v3, 0.0  ;;  %v2290_v10 = vpop.f32.mrf.mxu2  ;;  %v2292_v11 = vpop.f32.mrf.mxu3 }
  0xba   : > { %v456_v14 = vadd.f32 %v455_v7, %v454_v62  ;;  %v766_v15 = vadd.f32 %v765_v9, %v764_v63 }
  0xc0   : > { %v367_v18 = vpop.f32.mrf.mxu0  ;;  %v677_v19 = vpop.f32.mrf.mxu1 }
  0xc1   : > { %v2294_v22 = vpop.f32.mrf.mxu2  ;;  %v2296_v23 = vpop.f32.mrf.mxu3  ;;  %v457_v37 = vsel %vm3969_vm0, %v367_v18, 0.0  ;;  %v767_v33 = vsel %vm3969_vm0, %v677_v19, 0.0 }
  0xc2   : > { %v458_v21 = vadd.f32 %v457_v37, %v456_v14  ;;  %v768_v17 = vadd.f32 %v767_v33, %v766_v15 }
  0xc8   : > { %v370_v30 = vpop.f32.mrf.mxu0  ;;  %v680_v31 = vpop.f32.mrf.mxu1 }
  0xc9   : > { %v2298_v34 = vpop.f32.mrf.mxu2  ;;  %v2300_v35 = vpop.f32.mrf.mxu3  ;;  %v459_v29 = vsel %vm3969_vm0, %v370_v30, 0.0  ;;  %v769_v25 = vsel %vm3969_vm0, %v680_v31, 0.0 }
  0xca   : > { %v460_v4 = vadd.f32 %v459_v29, %v458_v21  ;;  %v770_v0 = vadd.f32 %v769_v25, %v768_v17 }
  0xd0   : > { %v373_v38 = vpop.f32.mrf.mxu0  ;;  %v683_v39 = vpop.f32.mrf.mxu1 }
  0xd1   : > { %v2302_v46 = vpop.f32.mrf.mxu2  ;;  %v2304_v47 = vpop.f32.mrf.mxu3  ;;  %v461_v13 = vsel %vm3969_vm0, %v373_v38, 0.0  ;;  %v771_v8 = vsel %vm3969_vm0, %v683_v39, 0.0 }
  0xd2   : > { %v462_v48 = vadd.f32 %v461_v13, %v460_v4  ;;  %v772_v19 = vadd.f32 %v771_v8, %v770_v0 }
  0xd8   : > { %v376_v50 = vpop.f32.mrf.mxu0  ;;  %v686_v51 = vpop.f32.mrf.mxu1 }
  0xd9   : > { %v2306_v54 = vpop.f32.mrf.mxu2  ;;  %v2308_v55 = vpop.f32.mrf.mxu3  ;;  %v463_v52 = vsel %vm3969_vm0, %v376_v50, 0.0  ;;  %v773_v18 = vsel %vm3969_vm0, %v686_v51, 0.0 }
  0xda   : > { %v464_v37 = vadd.f32 %v463_v52, %v462_v48  ;;  %v774_v33 = vadd.f32 %v773_v18, %v772_v19 }
  0xe0   : > { %v379_v62 = vpop.f32.mrf.mxu0  ;;  %v689_v63 = vpop.f32.mrf.mxu1 }
  0xe1   : > { %v2310_v2 = vpop.f32.mrf.mxu2  ;;  %v2312_v3 = vpop.f32.mrf.mxu3  ;;  %v465_v30 = vsel %vm3969_vm0, %v379_v62, 0.0  ;;  %v775_v31 = vsel %vm3969_vm0, %v689_v63, 0.0 }
  0xe2   : > { %v466_v25 = vadd.f32 %v465_v30, %v464_v37  ;;  %v776_v29 = vadd.f32 %v775_v31, %v774_v33 }
  0xe8   : > { %v382_v7 = vpop.f32.mrf.mxu0  ;;  %v692_v9 = vpop.f32.mrf.mxu1 }
  0xe9   : > { %v2314_v5 = vpop.f32.mrf.mxu2  ;;  %v2316_v1 = vpop.f32.mrf.mxu3  ;;  %v467_v17 = vsel %vm3969_vm0, %v382_v7, 0.0  ;;  %v777_v21 = vsel %vm3969_vm0, %v692_v9, 0.0 }
  0xea   : > { %v468_v13 = vadd.f32 %v467_v17, %v466_v25  ;;  %v778_v0 = vadd.f32 %v777_v21, %v776_v29  ;;  %v479_v25 = vsel %vm3969_vm0, %v2272_v26, 0.0  ;;  %v789_v29 = vsel %vm3969_vm0, %v2274_v27, 0.0 }
  0xf0   : > { %v385_v61 = vpop.f32.mrf.mxu0  ;;  %v695_v57 = vpop.f32.mrf.mxu1 }
  0xf1   : > { %v2318_v45 = vpop.f32.mrf.mxu2  ;;  %v2320_v41 = vpop.f32.mrf.mxu3  ;;  %v469_v38 = vsel %vm3969_vm0, %v385_v61, 0.0  ;;  %v779_v8 = vsel %vm3969_vm0, %v695_v57, 0.0 }
  0xf2   : > { %v470_v50 = vadd.f32 %v469_v38, %v468_v13  ;;  %v780_v51 = vadd.f32 %v779_v8, %v778_v0  ;;  %v481_v13 = vsel %vm3969_vm0, %v2278_v42, 0.0  ;;  %v791_v0 = vsel %vm3969_vm0, %v2280_v43, 0.0 }
  0xf3   : > { %v795_v42 = vsel %vm3969_vm0, %v2292_v11, 0.0  ;;  %v491_v11 = vsel %vm3969_vm0, %v2302_v46, 0.0  ;;  %v805_v46 = vsel %vm3969_vm0, %v2312_v3, 0.0 }
  0xf8   : > { %v388_v53 = vpop.f32.mrf.mxu0  ;;  %v698_v49 = vpop.f32.mrf.mxu1 }
  0xf9   : > { %v2332_v14 = vpop.f32.mrf.mxu2  ;;  %v2334_v15 = vpop.f32.mrf.mxu3  ;;  %v471_v48 = vsel %vm3969_vm0, %v388_v53, 0.0  ;;  %v781_v52 = vsel %vm3969_vm0, %v698_v49, 0.0 }
  0xfa   : > { %v472_v7 = vadd.f32 %v471_v48, %v470_v50  ;;  %v782_v9 = vadd.f32 %v781_v52, %v780_v51  ;;  %v483_v48 = vsel %vm3969_vm0, %v2284_v58, 0.0  ;;  %v793_v52 = vsel %vm3969_vm0, %v2286_v59, 0.0 }
  0xfb   : > { %v797_v58 = vsel %vm3969_vm0, %v2296_v23, 0.0  ;;  %v493_v23 = vsel %vm3969_vm0, %v2306_v54, 0.0  ;;  %v807_v54 = vsel %vm3969_vm0, %v2316_v1, 0.0  ;;  %v501_v3 = vsel %vm3969_vm0, %v2332_v14, 0.0 }
 0x100   : > { %v391_v60 = vpop.f32.mrf.mxu0  ;;  %v701_v56 = vpop.f32.mrf.mxu1 }
 0x101   : > { %v473_v62 = vsel %vm3969_vm0, %v391_v60, 0.0  ;;  %v783_v63 = vsel %vm3969_vm0, %v701_v56, 0.0  ;;  %v436_v30 = vpop.f32.mrf.mxu2  ;;  %v746_v31 = vpop.f32.mrf.mxu3 }
 0x102   : > { %v474_v18 = vadd.f32 %v473_v62, %v472_v7  ;;  %v784_v19 = vadd.f32 %v783_v63, %v782_v9  ;;  %v485_v62 = vsel %vm3969_vm0, %v2290_v10, 0.0  ;;  %v487_v7 = vsel %vm3969_vm0, %v2294_v22, 0.0 }
 0x103   : > { %v503_v1 = vsel %vm3969_vm0, %v436_v30, 0.0 }
 0x108   : > { %v394_v4 = vpop.f32.mrf.mxu0  ;;  %v704_v39 = vpop.f32.mrf.mxu1 }
 0x109   : > { %v475_v61 = vsel %vm3969_vm0, %v394_v4, 0.0  ;;  %v785_v57 = vsel %vm3969_vm0, %v704_v39, 0.0  ;;  %v439_v51 = vpop.f32.mrf.mxu2  ;;  %v749_v27 = vpop.f32.mrf.mxu3 }
 0x10a   : > { %v476_v37 = vadd.f32 %v475_v61, %v474_v18  ;;  %v786_v53 = vadd.f32 %v785_v57, %v784_v19  ;;  %v489_v61 = vsel %vm3969_vm0, %v2298_v34, 0.0  ;;  %v799_v57 = vsel %vm3969_vm0, %v2300_v35, 0.0 }
 0x10b   : > { %v801_v19 = vsel %vm3969_vm0, %v2304_v47, 0.0 }
 0x110   : > { %v397_v33 = vpop.f32.mrf.mxu0  ;;  %v707_v49 = vpop.f32.mrf.mxu1 }
 0x111   : > { %v477_v17 = vsel %vm3969_vm0, %v397_v33, 0.0  ;;  %v787_v60 = vsel %vm3969_vm0, %v707_v49, 0.0  ;;  %v442_v49 = vpop.f32.mrf.mxu2  ;;  %v752_v35 = vpop.f32.mrf.mxu3 }
 0x112   : > { %v478_v21 = vadd.f32 %v477_v17, %v476_v37  ;;  %v788_v56 = vadd.f32 %v787_v60, %v786_v53  ;;  %v803_v53 = vsel %vm3969_vm0, %v2308_v55, 0.0  ;;  %v495_v17 = vsel %vm3969_vm0, %v2310_v2, 0.0 }
 0x113   : > { %v507_v14 = vsel %vm3969_vm0, %v442_v49, 0.0 }
 0x114   : > { %v480_v38 = vadd.f32 %v479_v25, %v478_v21  ;;  %v790_v8 = vadd.f32 %v789_v29, %v788_v56  ;;  %v497_v21 = vsel %vm3969_vm0, %v2314_v5, 0.0  ;;  %v499_v25 = vsel %vm3969_vm0, %v2318_v45, 0.0 }
 0x115   : > { %v809_v29 = vsel %vm3969_vm0, %v2320_v41, 0.0  ;;  %v505_v41 = vsel %vm3969_vm0, %v439_v51, 0.0 }
 0x116   : > { %v482_v4 = vadd.f32 %v481_v13, %v480_v38  ;;  %v792_v39 = vadd.f32 %v791_v0, %v790_v8  ;;  %v811_v8 = vsel %vm3969_vm0, %v2334_v15, 0.0  ;;  %v813_v0 = vsel %vm3969_vm0, %v746_v31, 0.0 }
 0x117   : > { %v817_v15 = vsel %vm3969_vm0, %v752_v35, 0.0 }
 0x118   : > { %v484_v26 = vadd.f32 %v483_v48, %v482_v4  ;;  %v794_v50 = vadd.f32 %v793_v52, %v792_v39  ;;  %v815_v52 = vsel %vm3969_vm0, %v749_v27, 0.0 }
 0x119   : > { %v445_v45 = vpop.f32.mrf.mxu2  ;;  %v755_v48 = vpop.f32.mrf.mxu3 }
 0x11a   : > { %v486_v63 = vadd.f32 %v485_v62, %v484_v26  ;;  %v796_v43 = vadd.f32 %v795_v42, %v794_v50  ;;  %v509_v62 = vsel %vm3969_vm0, %v445_v45, 0.0  ;;  %v819_v30 = vsel %vm3969_vm0, %v755_v48, 0.0  ;;  %v3999_v45 = vld [vmem:[#allocation3_spill] sm:$0xff] }
 0x11c   : > { %v488_v9 = vadd.f32 %v487_v7, %v486_v63  ;;  %v798_v59 = vadd.f32 %v797_v58, %v796_v43 }
 0x11e   : > { %v490_v10 = vadd.f32 %v489_v61, %v488_v9  ;;  %v800_v18 = vadd.f32 %v799_v57, %v798_v59 }
 0x120   : > { %v492_v22 = vadd.f32 %v491_v11, %v490_v10  ;;  %v802_v37 = vadd.f32 %v801_v19, %v800_v18 }
 0x122   : > { %v494_v34 = vadd.f32 %v493_v23, %v492_v22  ;;  %v804_v33 = vadd.f32 %v803_v53, %v802_v37 }
 0x124   : > { %v496_v60 = vadd.f32 %v495_v17, %v494_v34  ;;  %v806_v47 = vadd.f32 %v805_v46, %v804_v33 }
 0x126   : > { %v498_v56 = vadd.f32 %v497_v21, %v496_v60  ;;  %v808_v55 = vadd.f32 %v807_v54, %v806_v47 }
 0x128   : > { %v500_v2 = vadd.f32 %v499_v25, %v498_v56  ;;  %v810_v38 = vadd.f32 %v809_v29, %v808_v55 }
 0x12a   : > { %v502_v5 = vadd.f32 %v501_v3, %v500_v2  ;;  %v812_v13 = vadd.f32 %v811_v8, %v810_v38  ;;  %v3992_v2 = vld [vmem:[#allocation12_spill] sm:$0xff] }
 0x12c   : > { %v504_v4 = vadd.f32 %v503_v1, %v502_v5  ;;  %v814_v39 = vadd.f32 %v813_v0, %v812_v13  ;;  %v3996_v5 = vld [vmem:[#allocation20_spill] sm:$0xff]  ;;  %v3997_v1 = vld [vmem:[#allocation22_spill] sm:$0xff] }
 0x12e   : > { %v506_v26 = vadd.f32 %v505_v41, %v504_v4  ;;  %v816_v50 = vadd.f32 %v815_v52, %v814_v39  ;;  %v3998_v4 = vld [vmem:[#allocation2_spill] sm:$0xff]  ;;  %v4000_v41 = vld [vmem:[#allocation4_spill] sm:$0xff] }
 0x130   : > { %v508_v42 = vadd.f32 %v507_v14, %v506_v26  ;;  %v818_v31 = vadd.f32 %v817_v15, %v816_v50  ;;  %v4001_v26 = vld [vmem:[#allocation5_spill] sm:$0xff]  ;;  %v4002_v14 = vld [vmem:[#allocation6_spill] sm:$0xff] }
 0x132   : > { %v510_v63 = vadd.f32 %v509_v62, %v508_v42  ;;  %v820_v43 = vadd.f32 %v819_v30, %v818_v31  ;;  %v4003_v30 = vld [vmem:[#allocation7_spill] sm:$0xff]  ;;  %v4004_v31 = vld [vmem:[#allocation8_spill] sm:$0xff] }
 0x134   : > { %v511_v7 = vrot.slane %v510_v63, 4  ;;  %v821_v58 = vrot.slane %v820_v43, 4 }
 0x136   : > { %v512_v9 = vadd.f32 %v511_v7, %v510_v63  ;;  %v822_v51 = vadd.f32 %v821_v58, %v820_v43  ;;  %v4005_v43 = vld [vmem:[#allocation9_spill] sm:$0xff]  ;;  %v4006_v58 = vld [vmem:[#allocation10_spill] sm:$0xff] }
 0x138   : > { %v513_v59 = vrot.slane %v512_v9, 2  ;;  %v823_v27 = vrot.slane %v822_v51, 2 }
 0x13a   : > { %v514_v61 = vadd.f32 %v513_v59, %v512_v9  ;;  %v824_v57 = vadd.f32 %v823_v27, %v822_v51  ;;  %v4007_v51 = vld [vmem:[#allocation11_spill] sm:$0xff]  ;;  %v4008_v27 = vld [vmem:[#allocation13_spill] sm:$0xff] }
 0x13c   : > { %v515_v10 = vrot.slane %v514_v61, 1  ;;  %v825_v18 = vrot.slane %v824_v57, 1 }
 0x13e   : > { %v516_v11 = vadd.f32 %v515_v10, %v514_v61  ;;  %v826_v19 = vadd.f32 %v825_v18, %v824_v57  ;;  %v4009_v57 = vld [vmem:[#allocation15_spill] sm:$0xff] }
 0x140   : > { %v2404_v22 = vmul.f32 0.001953125, %v516_v11  ;;  %v828_v37 = vmul.f32 0.001953125, %v826_v19  ;;  %v4010_v11 = vld [vmem:[#allocation17_spill] sm:$0xff] }
 0x142   : > { %v829_v23 = vmul.f32 %v2404_v22, %v2404_v22  ;;  %v843_v60 = vsub.f32 %v2007_v6, %v2404_v22  ;;  %v844_v47 = vsub.f32 %v2026_v12, %v2404_v22  ;;  %v845_v21 = vsub.f32 %v2042_v16, %v2404_v22 }
 0x143   : > { %v846_v56 = vsub.f32 %v2058_v20, %v2404_v22  ;;  %v847_v55 = vsub.f32 %v2074_v24, %v2404_v22  ;;  %v848_v25 = vsub.f32 %v2090_v28, %v2404_v22  ;;  %v849_v6 = vsub.f32 %v2106_v32, %v2404_v22  ;;  %v875_v28 = vld [vmem:[%s3901_s1] sm:$0x1] }
 0x144   : > { %v830_v53 = vsub.f32 %v828_v37, %v829_v23  ;;  %v850_v12 = vsub.f32 %v2122_v36, %v2404_v22  ;;  %v851_v16 = vsub.f32 %v2138_v40, %v2404_v22  ;;  %v852_v20 = vsub.f32 %v2154_v44, %v2404_v22  ;;  %v3993_v32 = vld [vmem:[#allocation14_spill] sm:$0xff]  ;;  %v3994_v36 = vld [vmem:[#allocation16_spill] sm:$0xff]  ;;  %v4011_v37 = vld [vmem:[#allocation19_spill] sm:$0xff] }
 0x145   : > { %v853_v24 = vsub.f32 %v3992_v2, %v2404_v22  ;;  %v854_v38 = vsub.f32 %v3993_v32, %v2404_v22  ;;  %v855_v3 = vsub.f32 %v3994_v36, %v2404_v22  ;;  %v3995_v40 = vld [vmem:[#allocation18_spill] sm:$0xff]  ;;  %v857_v44 = vsub.f32 %v3996_v5, %v2404_v22 }
 0x146   : > { %v831_v34 = vmax.f32 %v830_v53, 0.0  ;;  %v856_v8 = vsub.f32 %v3995_v40, %v2404_v22  ;;  %v858_v0 = vsub.f32 %v3997_v1, %v2404_v22  ;;  %v859_v39 = vsub.f32 %v3998_v4, %v2404_v22  ;;  %v4012_v53 = vld [vmem:[#allocation21_spill] sm:$0xff] }
 0x147   : > { %v860_v48 = vsub.f32 %v3999_v45, %v2404_v22  ;;  %v861_v52 = vsub.f32 %v4000_v41, %v2404_v22  ;;  %v862_v50 = vsub.f32 %v4001_v26, %v2404_v22  ;;  %v863_v15 = vsub.f32 %v4002_v14, %v2404_v22 }
 0x148   : > { %v832_v33 = vadd.f32 1e-06, %v831_v34  ;;  %v864_v42 = vsub.f32 %v4003_v30, %v2404_v22  ;;  %v865_v63 = vsub.f32 %v4004_v31, %v2404_v22  ;;  %v866_v7 = vsub.f32 %v4005_v43, %v2404_v22 }
 0x149   : > { %v867_v9 = vsub.f32 %v4006_v58, %v2404_v22  ;;  %v868_v59 = vsub.f32 %v4007_v51, %v2404_v22  ;;  %v869_v61 = vsub.f32 %v4008_v27, %v2404_v22  ;;  %v870_v10 = vsub.f32 %v4009_v57, %v2404_v22 }
 0x14a   : > { %1807 = vrsqrt.f32 %v832_v33  ;;  %vm839_vm2 = vweird.f32 %v832_v33  ;;  %v871_v19 = vsub.f32 %v4010_v11, %v2404_v22  ;;  %v872_v23 = vsub.f32 %v4011_v37, %v2404_v22 }
 0x14b   : > { %v873_v34 = vsub.f32 %v4012_v53, %v2404_v22 }
 0x150   : > { %v1808_v49 = vpop.eup %1807 }
 0x151   : > { %v834_v35 = vmul.f32 %v1808_v49, %v832_v33  ;;  %vm840_vm1 = vweird.f32 %v1808_v49  ;;  %v4013_v33 = vld [vmem:[#allocation23_spill] sm:$0xff] }
 0x152   : > { %vm841_vm3 = vmor %vm839_vm2, %vm840_vm1 }
 0x153   : > { %v835_v17 = vmul.f32 %v1808_v49, %v834_v35 }
 0x155   : > { %v836_v46 = vmul.f32 0.5, %v835_v17 }
 0x157   : > { %v837_v54 = vsub.f32 1.5, %v836_v46 }
 0x159   : > { %v838_v29 = vmul.f32 %v1808_v49, %v837_v54 }
 0x15b   : > { %v842_v13 = vsel %vm841_vm3, %v1808_v49, %v838_v29  ;;  %v874_v49 = vsub.f32 %v4013_v33, %v2404_v22 }
 0x15c   : > { %v876_v62 = vmul.f32 %v875_v28, %v842_v13 }
 0x15e   : > { %v877_v18 = vperm.slane %v876_v62, 0 }
 0x160   : > { %v878_v35 = vmul.f32 %v877_v18, %v843_v60  ;;  %v879_v17 = vmul.f32 %v877_v18, %v844_v47  ;;  %v880_v46 = vmul.f32 %v877_v18, %v845_v21  ;;  %v881_v54 = vmul.f32 %v877_v18, %v846_v56 }
 0x161   : > { %v882_v29 = vmul.f32 %v877_v18, %v847_v55  ;;  %v883_v2 = vmul.f32 %v877_v18, %v848_v25  ;;  %v884_v28 = vmul.f32 %v877_v18, %v849_v6  ;;  %v885_v32 = vmul.f32 %v877_v18, %v850_v12 }
 0x162   : > { %v886_v36 = vmul.f32 %v877_v18, %v851_v16  ;;  %v887_v40 = vmul.f32 %v877_v18, %v852_v20  ;;  %v888_v5 = vmul.f32 %v877_v18, %v853_v24  ;;  %v889_v13 = vmul.f32 %v877_v18, %v854_v38 }
 0x163   : > { %v890_v1 = vmul.f32 %v877_v18, %v855_v3  ;;  %v891_v4 = vmul.f32 %v877_v18, %v856_v8  ;;  %v892_v45 = vmul.f32 %v877_v18, %v857_v44  ;;  %v893_v41 = vmul.f32 %v877_v18, %v858_v0  ;;  %v2504_v3 = vld [vmem:[%s3902_s2] ss:$0 sm:$0xff] }
 0x164   : > { %v894_v26 = vmul.f32 %v877_v18, %v859_v39  ;;  %v895_v14 = vmul.f32 %v877_v18, %v860_v48  ;;  %v896_v62 = vmul.f32 %v877_v18, %v861_v52  ;;  %v2475_v22 = vmul.f32 %v877_v18, %v862_v50 }
 0x165   : > { %v2477_v60 = vmul.f32 %v877_v18, %v863_v15  ;;  %v2479_v47 = vmul.f32 %v877_v18, %v864_v42  ;;  %v2481_v21 = vmul.f32 %v877_v18, %v865_v63  ;;  %v2483_v56 = vmul.f32 %v877_v18, %v866_v7 }
 0x166   : > { %v2485_v55 = vmul.f32 %v877_v18, %v867_v9  ;;  %v2487_v25 = vmul.f32 %v877_v18, %v868_v59  ;;  %v2489_v6 = vmul.f32 %v877_v18, %v869_v61  ;;  %v2491_v12 = vmul.f32 %v877_v18, %v870_v10 }
 0x167   : > { %v2493_v16 = vmul.f32 %v877_v18, %v871_v19  ;;  %v2495_v20 = vmul.f32 %v877_v18, %v872_v23  ;;  %v2497_v24 = vmul.f32 %v877_v18, %v873_v34  ;;  %v2499_v38 = vmul.f32 %v877_v18, %v874_v49 }
 0x168   : > { %v2507_v8 = vadd.f32 %v2504_v3, %v878_v35  ;;  %v2510_v44 = vadd.f32 %v2504_v3, %v879_v17  ;;  %v2513_v0 = vadd.f32 %v2504_v3, %v880_v46  ;;  %v2516_v39 = vadd.f32 %v2504_v3, %v881_v54 }
 0x169   : > { %v2519_v48 = vadd.f32 %v2504_v3, %v882_v29  ;;  %v2523_v50 = vadd.f32 %v2504_v3, %v883_v2  ;;  %v2527_v30 = vadd.f32 %v2504_v3, %v884_v28  ;;  %v2531_v31 = vadd.f32 %v2504_v3, %v885_v32 }
 0x16a   : > { %4014 = vst [vmem:[#allocation12_spill] sm:$0xff] %v2507_v8  ;;  %v1746_v52 = vmul.f32 -1.442695, %v2507_v8  ;;  %v1747_v15 = vmul.f32 -1.442695, %v2510_v44  ;;  %v2535_v43 = vadd.f32 %v2504_v3, %v886_v36  ;;  %v2539_v58 = vadd.f32 %v2504_v3, %v887_v40 }
 0x16b   : > { %4015 = vst [vmem:[#allocation14_spill] sm:$0xff] %v2510_v44  ;;  %v1748_v42 = vmul.f32 -1.442695, %v2513_v0  ;;  %v1749_v63 = vmul.f32 -1.442695, %v2516_v39  ;;  %v2543_v51 = vadd.f32 %v2504_v3, %v888_v5  ;;  %v2547_v27 = vadd.f32 %v2504_v3, %v889_v13 }
 0x16c   : > { %4016 = vst [vmem:[#allocation16_spill] sm:$0xff] %v2513_v0  ;;  %1809 = vpow2.f32 %v1746_v52  ;;  %v1750_v7 = vmul.f32 -1.442695, %v2519_v48  ;;  %v1751_v9 = vmul.f32 -1.442695, %v2523_v50  ;;  %v2551_v57 = vadd.f32 %v2504_v3, %v890_v1 }
 0x16d   : > { %4017 = vst [vmem:[#allocation18_spill] sm:$0xff] %v2516_v39  ;;  %1811 = vpow2.f32 %v1747_v15  ;;  %v1752_v59 = vmul.f32 -1.442695, %v2527_v30  ;;  %v1753_v61 = vmul.f32 -1.442695, %v2531_v31  ;;  %v2555_v18 = vadd.f32 %v2504_v3, %v891_v4 }
 0x16e   : > { %4018 = vst [vmem:[#allocation20_spill] sm:$0xff] %v2519_v48  ;;  %1813 = vpow2.f32 %v1748_v42  ;;  %v1754_v10 = vmul.f32 -1.442695, %v2535_v43  ;;  %v1755_v11 = vmul.f32 -1.442695, %v2539_v58  ;;  %v2559_v37 = vadd.f32 %v2504_v3, %v892_v45 }
 0x16f   : > { %4019 = vst [vmem:[#allocation22_spill] sm:$0xff] %v2523_v50  ;;  %1815 = vpow2.f32 %v1749_v63  ;;  %v1756_v23 = vmul.f32 -1.442695, %v2543_v51  ;;  %v2563_v34 = vadd.f32 %v2504_v3, %v893_v41  ;;  %v1757_v33 = vmul.f32 -1.442695, %v2547_v27 }
 0x170   : > { %4020 = vst [vmem:[#allocation2_spill] sm:$0xff] %v2527_v30  ;;  %1817 = vpow2.f32 %v1750_v7  ;;  %v2569_v35 = vadd.f32 %v2504_v3, %v894_v26  ;;  %v1758_v17 = vmul.f32 -1.442695, %v2551_v57  ;;  %v2575_v54 = vadd.f32 %v2504_v3, %v895_v14 }
 0x171   : > { %4021 = vst [vmem:[#allocation3_spill] sm:$0xff] %v2531_v31  ;;  %1819 = vpow2.f32 %v1751_v9  ;;  %v1759_v29 = vmul.f32 -1.442695, %v2555_v18  ;;  %v2581_v28 = vadd.f32 %v2504_v3, %v896_v62  ;;  %v1760_v32 = vmul.f32 -1.442695, %v2559_v37 }
 0x172   : > { %4022 = vst [vmem:[#allocation4_spill] sm:$0xff] %v2535_v43  ;;  %v1810_v19 = vpop.eup %1809  ;;  %1821 = vpow2.f32 %v1752_v59  ;;  %v2588_v40 = vadd.f32 %v2504_v3, %v2475_v22  ;;  %v1761_v5 = vmul.f32 -1.442695, %v2563_v34  ;;  %v2595_v1 = vadd.f32 %v2504_v3, %v2477_v60 }
 0x173   : > { %4023 = vst [vmem:[#allocation5_spill] sm:$0xff] %v2539_v58  ;;  %v1812_v53 = vpop.eup %1811  ;;  %1823 = vpow2.f32 %v1753_v61  ;;  %v1762_v4 = vmul.f32 -1.442695, %v2569_v35  ;;  %v2602_v41 = vadd.f32 %v2504_v3, %v2479_v47  ;;  %v1763_v26 = vmul.f32 -1.442695, %v2575_v54 }
 0x174   : > { %4024 = vst [vmem:[#allocation6_spill] sm:$0xff] %v2543_v51  ;;  %v2566_v49 = vpop.eup %1813  ;;  %1825 = vpow2.f32 %v1754_v10  ;;  %v2609_v62 = vadd.f32 %v2504_v3, %v2481_v21  ;;  %v1764_v22 = vmul.f32 -1.442695, %v2581_v28  ;;  %v2616_v52 = vadd.f32 %v2504_v3, %v2483_v56 }
 0x175   : > { %4025 = vst [vmem:[#allocation7_spill] sm:$0xff] %v2547_v27  ;;  %v2572_v46 = vpop.eup %1815  ;;  %1827 = vpow2.f32 %v1755_v11  ;;  %v1765_v47 = vmul.f32 -1.442695, %v2588_v40  ;;  %v2623_v42 = vadd.f32 %v2504_v3, %v2485_v55  ;;  %v1766_v21 = vmul.f32 -1.442695, %v2595_v1 }
 0x176   : > { %4026 = vst [vmem:[#allocation8_spill] sm:$0xff] %v2551_v57  ;;  %v2578_v2 = vpop.eup %1817  ;;  %1829 = vpow2.f32 %v1756_v23  ;;  %v2630_v7 = vadd.f32 %v2504_v3, %v2487_v25  ;;  %v2634_v56 = vadd.f32 %v2504_v3, %v2489_v6  ;;  %v1767_v9 = vmul.f32 -1.442695, %v2602_v41 }
 0x177   : > { %4027 = vst [vmem:[#allocation9_spill] sm:$0xff] %v2555_v18  ;;  %v2584_v36 = vpop.eup %1819  ;;  %1831 = vpow2.f32 %v1757_v33  ;;  %v2641_v55 = vadd.f32 %v2504_v3, %v2491_v12  ;;  %v2645_v61 = vadd.f32 %v2504_v3, %v2493_v16  ;;  %v1768_v25 = vmul.f32 -1.442695, %v2609_v62 }
 0x178   : > { %4028 = vst [vmem:[#allocation10_spill] sm:$0xff] %v2559_v37  ;;  %v2591_v13 = vpop.eup %1821  ;;  %1833 = vpow2.f32 %v1758_v17  ;;  %v2652_v6 = vadd.f32 %v2504_v3, %v2495_v20  ;;  %v1769_v11 = vmul.f32 -1.442695, %v2616_v52  ;;  %v2655_v23 = vadd.f32 1.0, %v1810_v19 }
 0x179   : > { %4029 = vst [vmem:[#allocation11_spill] sm:$0xff] %v2563_v34  ;;  %v2598_v45 = vpop.eup %1823  ;;  %1835 = vpow2.f32 %v1759_v29  ;;  %v2661_v16 = vadd.f32 %v2504_v3, %v2497_v24  ;;  %v1770_v33 = vmul.f32 -1.442695, %v2623_v42  ;;  %v2664_v17 = vadd.f32 1.0, %v1812_v53 }
 0x17a   : > { %4030 = vst [vmem:[#allocation13_spill] sm:$0xff] %v2569_v35  ;;  %v2605_v14 = vpop.eup %1825  ;;  %1837 = vpow2.f32 %v1760_v32  ;;  %v2668_v20 = vadd.f32 %v2504_v3, %v2499_v38  ;;  %v1771_v19 = vmul.f32 -1.442695, %v2630_v7  ;;  %v1773_v24 = vmul.f32 -1.442695, %v2641_v55 }
 0x17b   : > { %4031 = vst [vmem:[#allocation15_spill] sm:$0xff] %v2575_v54  ;;  %v2612_v60 = vpop.eup %1827  ;;  %1839 = vpow2.f32 %v1761_v5  ;;  %v1772_v5 = vmul.f32 -1.442695, %v2634_v56  ;;  %v2675_v53 = vmul.f32 -1.442695, %v2652_v6  ;;  %v1085_v38 = vand.u32 2147483648, %v2655_v23 }
 0x17c   : > { %4032 = vst [vmem:[#allocation17_spill] sm:$0xff] %v2581_v28  ;;  %v2619_v15 = vpop.eup %1829  ;;  %1841 = vpow2.f32 %v1762_v4  ;;  %v1774_v4 = vmul.f32 -1.442695, %v2645_v61  ;;  %vm1079_vm4 = vweird.f32 %v2655_v23  ;;  %vm1094_vm5 = vweird.f32 %v2664_v17 }
 0x17d   : > { %4033 = vst [vmem:[#allocation19_spill] sm:$0xff] %v2588_v40  ;;  %v2626_v63 = vpop.eup %1831  ;;  %1843 = vpow2.f32 %v1763_v26 }
 0x17e   : > { %4034 = vst [vmem:[#allocation21_spill] sm:$0xff] %v2595_v1  ;;  %v2637_v59 = vpop.eup %1833  ;;  %1845 = vpow2.f32 %v1764_v22  ;;  %v2678_v22 = vadd.f32 1.0, %v2566_v49  ;;  %v2692_v49 = vadd.f32 1.0, %v2578_v2 }
 0x17f   : > { %4035 = vst [vmem:[#allocation23_spill] sm:$0xff] %v2602_v41  ;;  %v2648_v10 = vpop.eup %1835  ;;  %1847 = vpow2.f32 %v1765_v47  ;;  %v2682_v47 = vmul.f32 -1.442695, %v2661_v16 }
 0x180   : > { %4036 = vst [vmem:[#allocation24_spill] sm:$0xff] %v2609_v62  ;;  %v2657_v12 = vpop.eup %1837  ;;  %1849 = vpow2.f32 %v1766_v21  ;;  %v2685_v21 = vadd.f32 1.0, %v2572_v46  ;;  %v2699_v46 = vadd.f32 1.0, %v2591_v13  ;;  %v1115_v2 = vand.u32 2147483648, %v2678_v22 }
 0x181   : > { %4037 = vst [vmem:[#allocation25_spill] sm:$0xff] %v2616_v52  ;;  %v1840_v29 = vpop.eup %1839  ;;  %1851 = vpow2.f32 %v1767_v9  ;;  %v1100_v9 = vand.u32 2147483648, %v2664_v17  ;;  %v2736_v62 = vadd.f32 1.0, %v2648_v10  ;;  %vm1109_vm6 = vweird.f32 %v2678_v22 }
 0x182   : > { %4038 = vst [vmem:[#allocation26_spill] sm:$0xff] %v2623_v42  ;;  %v1842_v32 = vpop.eup %1841  ;;  %1853 = vpow2.f32 %v1768_v25  ;;  %v1130_v13 = vand.u32 2147483648, %v2685_v21  ;;  %vm1124_vm7 = vweird.f32 %v2685_v21  ;;  %vm1139_vm8 = vweird.f32 %v2692_v49 }
 0x183   : > { %4039 = vst [vmem:[#allocation27_spill] sm:$0xff] %v2630_v7  ;;  %v1844_v26 = vpop.eup %1843  ;;  %1855 = vpow2.f32 %v1769_v11  ;;  %v2689_v11 = vmul.f32 -1.442695, %v2668_v20  ;;  %v1145_v7 = vand.u32 2147483648, %v2692_v49  ;;  %v2751_v10 = vadd.f32 1.0, %v1842_v32 }
 0x184   : > { %4040 = vst [vmem:[#allocation28_spill] sm:$0xff] %v2634_v56  ;;  %v1846_v3 = vpop.eup %1845  ;;  %1857 = vpow2.f32 %v1770_v33  ;;  %v2696_v33 = vadd.f32 1.0, %v2584_v36  ;;  %v2712_v36 = vor.u32 1.1754944e-38, %v1100_v9 }
 0x185   : > { %4041 = vst [vmem:[#allocation29_spill] sm:$0xff] %v2641_v55  ;;  %v1848_v25 = vpop.eup %1847  ;;  %1859 = vpow2.f32 %v1771_v19  ;;  %v2703_v19 = vadd.f32 1.0, %v2598_v45  ;;  %v2719_v45 = vadd.f32 1.0, %v2619_v15  ;;  %v2732_v15 = vor.u32 1.1754944e-38, %v1115_v2 }
 0x186   : > { %4042 = vst [vmem:[#allocation30_spill] sm:$0xff] %v2645_v61  ;;  %v1850_v61 = vpop.eup %1849  ;;  %1861 = vpow2.f32 %v1772_v5  ;;  %v2709_v5 = vadd.f32 1.0, %v2605_v14  ;;  %v2724_v14 = vadd.f32 1.0, %v2626_v63  ;;  %v1160_v52 = vand.u32 2147483648, %v2696_v33 }
 0x187   : > { %4043 = vst [vmem:[#allocation31_spill] sm:$0xff] %v2652_v6  ;;  %v1852_v55 = vpop.eup %1851  ;;  %1863 = vpow2.f32 %v1773_v24  ;;  %v2716_v24 = vadd.f32 1.0, %v2612_v60  ;;  %v2730_v60 = vadd.f32 1.0, %v2637_v59  ;;  %v2739_v63 = vor.u32 1.1754944e-38, %v1130_v13 }
 0x188   : > { %4044 = vst [vmem:[#allocation32_spill] sm:$0xff] %v2661_v16  ;;  %v1854_v6 = vpop.eup %1853  ;;  %1865 = vrcp.f32 %v2655_v23  ;;  %v2745_v59 = vadd.f32 1.0, %v1840_v29  ;;  %v2753_v40 = vor.u32 1.1754944e-38, %v1145_v7  ;;  %v1175_v13 = vand.u32 2147483648, %v2699_v46 }
 0x189   : > { %4045 = vst [vmem:[#allocation33_spill] sm:$0xff] %v2668_v20  ;;  %v2705_v20 = vor.u32 1.1754944e-38, %v1085_v38  ;;  %v1856_v16 = vpop.eup %1855  ;;  %1867 = vrcp.f32 %v2664_v17  ;;  %v2761_v29 = vadd.f32 1.0, %v1846_v3  ;;  %v2763_v28 = vor.u32 1.1754944e-38, %v1160_v52 }
 0x18a   : > { %v1858_v56 = vpop.eup %1857  ;;  %1869 = vrcp.f32 %v2678_v22  ;;  %v2769_v7 = vadd.f32 1.0, %v1848_v25  ;;  %v1190_v54 = vand.u32 2147483648, %v2703_v19  ;;  %v2776_v3 = vadd.f32 1.0, %v1852_v55 }
 0x18b   : > { %v1860_v42 = vpop.eup %1859  ;;  %1871 = vpow2.f32 %v1774_v4  ;;  %v2743_v4 = vadd.f32 1.0, %v2657_v12  ;;  %v2759_v12 = vadd.f32 1.0, %v1844_v26  ;;  %v2774_v26 = vadd.f32 1.0, %v1850_v61 }
 0x18c   : > { %v1862_v38 = vpop.eup %1861  ;;  %1873 = vrcp.f32 %v2685_v21  ;;  %4046 = vst [vmem:[#allocation34_spill] sm:$0xff] %v2776_v3  ;;  %v2786_v32 = vor.u32 1.1754944e-38, %v1175_v13  ;;  %v2790_v61 = vadd.f32 1.0, %v1854_v6  ;;  %v2798_v52 = vadd.f32 1.0, %v1856_v16 }
 0x18d   : > { %v1864_v41 = vpop.eup %1863  ;;  %1875 = vrcp.f32 %v2692_v49  ;;  %v2800_v18 = vor.u32 1.1754944e-38, %v1190_v54  ;;  %v2806_v6 = vadd.f32 1.0, %v1858_v56  ;;  %v2808_v27 = vadd.f32 1.0, %v1860_v42 }
 0x18e   : > { %v2749_v1 = vpop.eup %1865  ;;  %1877 = vrcp.f32 %v2696_v33  ;;  %4047 = vst [vmem:[#allocation35_spill] sm:$0xff] %v2790_v61  ;;  %v1220_v51 = vand.u32 2147483648, %v2716_v24  ;;  %v2812_v43 = vadd.f32 1.0, %v1862_v38  ;;  %v2823_v39 = vadd.f32 1.0, %v1864_v41 }
 0x18f   : > { %v2757_v9 = vpop.eup %1867  ;;  %1879 = vrcp.f32 %v2699_v46  ;;  %4048 = vst [vmem:[#allocation36_spill] sm:$0xff] %v2798_v52  ;;  %vm1080_vm9 = vweird.f32 %v2749_v1  ;;  %vm1184_vm2 = vweird.f32 %v2703_v19 }
 0x190   : > { %v2766_v2 = vpop.eup %1869  ;;  %1881 = vpow2.f32 %v2675_v53  ;;  %v1075_v53 = vmul.f32 %v2749_v1, %v2655_v23  ;;  %v1090_v25 = vmul.f32 %v2757_v9, %v2664_v17  ;;  %4049 = vst [vmem:[#allocation37_spill] sm:$0xff] %v2806_v6  ;;  %vm1095_vm11 = vweird.f32 %v2757_v9  ;;  %vm2901_vm3 = vmor %vm1079_vm4, %vm1080_vm9 }
 0x191   : > { %v1872_v35 = vpop.eup %1871  ;;  %1883 = vpow2.f32 %v2682_v47  ;;  %v1105_v55 = vmul.f32 %v2766_v2, %v2678_v22  ;;  %v1205_v47 = vand.u32 2147483648, %v2709_v5  ;;  %4050 = vst [vmem:[#allocation38_spill] sm:$0xff] %v2808_v27  ;;  %vm1110_vm13 = vweird.f32 %v2766_v2  ;;  %vm2915_vm14 = vmor %vm1094_vm5, %vm1095_vm11 }
 0x192   : > { %v2779_v34 = vpop.eup %1873  ;;  %1885 = vpow2.f32 %v2689_v11  ;;  %4051 = vst [vmem:[#allocation39_spill] sm:$0xff] %v2812_v43  ;;  %v1076_v16 = vsub.f32 1.0, %v1075_v53  ;;  %v1091_v54 = vsub.f32 1.0, %v1090_v25  ;;  %v2825_v38 = vadd.f32 1.0, %v1872_v35  ;;  %vm2942_vm5 = vmor %vm1109_vm6, %vm1110_vm13 }
 0x193   : > { %v2788_v37 = vpop.eup %1875  ;;  %1887 = vrcp.f32 %v2703_v19  ;;  %v1106_v50 = vsub.f32 1.0, %v1105_v55  ;;  %v1120_v13 = vmul.f32 %v2779_v34, %v2685_v21  ;;  %v2819_v56 = vor.u32 1.1754944e-38, %v1205_v47  ;;  %4052 = vst [vmem:[#allocation40_spill] sm:$0xff] %v2823_v39 }
 0x194   : > { %v2796_v11 = vpop.eup %1877  ;;  %1889 = vrcp.f32 %v2709_v5  ;;  %v1135_v42 = vmul.f32 %v2788_v37, %v2692_v49  ;;  %4053 = vst [vmem:[#allocation41_spill] sm:$0xff] %v2825_v38  ;;  %v2837_v47 = vor.u32 1.1754944e-38, %v1220_v51  ;;  %v1077_v44 = vmul.f32 %v2749_v1, %v1076_v16 }
 0x195   : > { %v2804_v57 = vpop.eup %1879  ;;  %1891 = vrcp.f32 %v2716_v24  ;;  %v1150_v53 = vmul.f32 %v2796_v11, %v2696_v33  ;;  %v1092_v8 = vmul.f32 %v2757_v9, %v1091_v54  ;;  %v1107_v51 = vmul.f32 %v2766_v2, %v1106_v50 }
 0x196   : > { %v1882_v58 = vpop.eup %1881  ;;  %v1165_v25 = vmul.f32 %v2804_v57, %v2699_v46  ;;  %1893 = vrcp.f32 %v2719_v45  ;;  %v1121_v38 = vsub.f32 1.0, %v1120_v13  ;;  %v1136_v35 = vsub.f32 1.0, %v1135_v42 }
 0x197   : > { %v1884_v30 = vpop.eup %1883  ;;  %v2834_v31 = vadd.f32 1.0, %v1882_v58  ;;  %v4056_v58 = vand.u32 2147483647, %v2655_v23  ;;  %v4059_v13 = vand.u32 2147483647, %v2664_v17  ;;  %vm1125_vm1 = vweird.f32 %v2779_v34 }
 0x198   : > { %v2821_v48 = vpop.eup %1885  ;;  %v2843_v0 = vadd.f32 1.0, %v1884_v30  ;;  %v1151_v30 = vsub.f32 1.0, %v1150_v53  ;;  %v1166_v16 = vsub.f32 1.0, %v1165_v25  ;;  %v1078_v25 = vadd.f32 %v2749_v1, %v1077_v44  ;;  %vm2963_vm6 = vmor %vm1124_vm7, %vm1125_vm1 }
 0x199   : > { %v2832_v55 = vpop.eup %1887  ;;  %4054 = vst [vmem:[#allocation42_spill] sm:$0xff] %v2834_v31  ;;  %vm2861_vm10 = vcmp.eq.f32.partialorder %v4056_v58, 8.507059e+37  ;;  %vm2868_vm12 = vcmp.eq.f32.partialorder %v4059_v13, 8.507059e+37  ;;  %v1093_v58 = vadd.f32 %v2757_v9, %v1092_v8  ;;  %v4062_v39 = vand.u32 2147483647, %v2678_v22 }
 0x19a   : > { %v2841_v41 = vpop.eup %1889  ;;  %4055 = vst [vmem:[#allocation43_spill] sm:$0xff] %v2843_v0  ;;  %v1180_v54 = vmul.f32 %v2832_v55, %v2703_v19  ;;  %v1250_v0 = vand.u32 2147483648, %v2724_v14  ;;  %v1108_v6 = vadd.f32 %v2766_v2, %v1107_v51  ;;  %v1122_v44 = vmul.f32 %v2779_v34, %v1121_v38 }
 0x19b   : > { %v2849_v31 = vpop.eup %1891  ;;  %v1195_v53 = vmul.f32 %v2841_v41, %v2709_v5  ;;  %vm2880_vm15 = vcmp.eq.f32.partialorder %v4062_v39, 8.507059e+37  ;;  %v1137_v8 = vmul.f32 %v2788_v37, %v1136_v35  ;;  %1895 = vrcp.f32 %v2724_v14 }
 0x19c   : > { %v1210_v13 = vmul.f32 %v2849_v31, %v2716_v24  ;;  %v2888_v27 = vpop.eup %1893  ;;  %v1152_v39 = vmul.f32 %v2796_v11, %v1151_v30  ;;  %v1167_v52 = vmul.f32 %v2804_v57, %v1166_v16  ;;  %v1181_v61 = vsub.f32 1.0, %v1180_v54 }
 0x19d   : > { %1897 = vrcp.f32 %v2730_v60  ;;  %vm1140_vm0 = vweird.f32 %v2788_v37  ;;  %v1196_v38 = vsub.f32 1.0, %v1195_v53  ;;  %v1082_v35 = vsel %vm2901_vm3, %v2749_v1, %v1078_v25 }
 0x19e   : > { %1899 = vrcp.f32 %v2736_v62  ;;  %v4069_v51 = vand.u32 2147483647, %v2685_v21  ;;  %v4072_v16 = vand.u32 2147483647, %v2692_v49  ;;  %vm1170_vm3 = vweird.f32 %v2804_v57  ;;  %vm2986_vm7 = vmor %vm1139_vm8, %vm1140_vm0 }
 0x19f   : > { %v1211_v1 = vsub.f32 1.0, %v1210_v13  ;;  %v1225_v17 = vmul.f32 %v2888_v27, %v2719_v45  ;;  %v1097_v3 = vsel %vm2915_vm14, %v2757_v9, %v1093_v58  ;;  %v1123_v25 = vadd.f32 %v2779_v34, %v1122_v44 }
 0x1a0   : > { %vm2921_vm4 = vcmp.eq.f32.partialorder %v4069_v51, 8.507059e+37  ;;  %vm2927_vm9 = vcmp.eq.f32.partialorder %v4072_v16, 8.507059e+37  ;;  %v1138_v51 = vadd.f32 %v2788_v37, %v1137_v8  ;;  %v4077_v13 = vand.u32 2147483647, %v2696_v33 }
 0x1a1   : > { %vm1199_vm14 = vweird.f32 %v2709_v5  ;;  %1901 = vrcp.f32 %v2743_v4  ;;  %v1112_v22 = vsel %vm2942_vm5, %v2766_v2, %v1108_v6  ;;  %v1153_v58 = vadd.f32 %v2796_v11, %v1152_v39  ;;  %v2977_v6 = vpop.eup %1895 }
 0x1a2   : > { %vm2950_vm11 = vcmp.eq.f32.partialorder %v4077_v13, 8.507059e+37  ;;  %v1168_v44 = vadd.f32 %v2804_v57, %v1167_v52  ;;  %v4082_v8 = vand.u32 2147483647, %v2699_v46  ;;  %v1182_v2 = vmul.f32 %v2832_v55, %v1181_v61 }
 0x1a3   : > { %v2980_v21 = vadd.f32 1.0, %v2821_v48  ;;  %v1197_v39 = vmul.f32 %v2841_v41, %v1196_v38  ;;  %v4087_v53 = vand.u32 2147483648, %v2719_v45  ;;  %v2995_v13 = vor.u32 1.1754944e-38, %v1250_v0 }
 0x1a4   : > { %vm2971_vm13 = vcmp.eq.f32.partialorder %v4082_v8, 8.507059e+37  ;;  %v2997_v8 = vpop.eup %1897  ;;  %v3002_v48 = vsel %vm2861_vm10, %v2705_v20, %v1082_v35  ;;  %v3007_v49 = vsel %vm2868_vm12, %v2712_v36, %v1097_v3  ;;  %vm4088_vm0 = vweird.f32 %v2796_v11 }
 0x1a5   : > { %v2993_v61 = vor.u32 1.1754944e-38, %v4087_v53  ;;  %vm4089_vm8 = vweird.f32 %v2696_v33  ;;  %v4092_v0 = vand.u32 2147483647, %v2703_v19  ;;  %v1212_v20 = vmul.f32 %v2849_v31, %v1211_v1  ;;  %v3024_v42 = vpop.eup %1899 }
 0x1a6   : > { %vm3013_vm1 = vmor %vm4089_vm8, %vm4088_vm0  ;;  %v1226_v50 = vsub.f32 1.0, %v1225_v17  ;;  %v3029_v36 = vsel %vm2880_vm15, %v2732_v15, %v1112_v22  ;;  %v1127_v33 = vsel %vm2963_vm6, %v2779_v34, %v1123_v25  ;;  %v1142_v35 = vsel %vm2986_vm7, %v2788_v37, %v1138_v51 }
 0x1a7   : > { %vm3019_vm5 = vcmp.eq.f32.partialorder %v4092_v0, 8.507059e+37  ;;  %vm4095_vm10 = vweird.f32 %v2699_v46  ;;  %vm1185_vm0 = vweird.f32 %v2832_v55  ;;  %v1157_v43 = vsel %vm3013_vm1, %v2796_v11, %v1153_v58 }
 0x1a8   : > { %vm3041_vm12 = vmor %vm4095_vm10, %vm1170_vm3  ;;  %v1183_v37 = vadd.f32 %v2832_v55, %v1182_v2  ;;  %v4098_v15 = vand.u32 2147483647, %v2709_v5  ;;  %v4101_v17 = vand.u32 2147483647, %v2716_v24  ;;  %vm1229_vm6 = vweird.f32 %v2719_v45 }
 0x1a9   : > { %v1172_v34 = vsel %vm3041_vm12, %v2804_v57, %v1168_v44  ;;  %v1240_v11 = vmul.f32 %v2977_v6, %v2724_v14  ;;  %v3068_v57 = vpop.eup %1901  ;;  %v1198_v25 = vadd.f32 %v2841_v41, %v1197_v39  ;;  %vm1200_vm7 = vweird.f32 %v2841_v41  ;;  %vm3094_vm1 = vmor %vm1184_vm2, %vm1185_vm0 }
 0x1aa   : > { %vm3055_vm15 = vcmp.eq.f32.partialorder %v4098_v15, 8.507059e+37  ;;  %vm3061_vm3 = vcmp.eq.f32.partialorder %v4101_v17, 8.507059e+37  ;;  %v1255_v51 = vmul.f32 %v2997_v8, %v2730_v60  ;;  %1903 = vrcp.f32 %v2745_v59 }
 0x1ab   : > { %v1213_v22 = vadd.f32 %v2849_v31, %v1212_v20  ;;  %vm1215_vm8 = vweird.f32 %v2849_v31  ;;  %v1227_v9 = vmul.f32 %v2888_v27, %v1226_v50  ;;  %v1270_v58 = vmul.f32 %v3024_v42, %v2736_v62 }
 0x1ac   : > { %v3083_v44 = vsel %vm2921_vm4, %v2739_v63, %v1127_v33  ;;  %v3088_v2 = vsel %vm2927_vm9, %v2753_v40, %v1142_v35  ;;  %v1265_v39 = vand.u32 2147483648, %v2730_v60  ;;  %1905 = vrcp.f32 %v2751_v10  ;;  %vm3110_vm4 = vmor %vm1199_vm14, %vm1200_vm7 }
 0x1ad   : > { %v3103_v63 = vsel %vm2950_vm11, %v2763_v28, %v1157_v43  ;;  %v1187_v40 = vsel %vm3094_vm1, %v2832_v55, %v1183_v37  ;;  %v4108_v30 = vand.u32 2147483647, %v2719_v45  ;;  %v1241_v38 = vsub.f32 1.0, %v1240_v11 }
 0x1ae   : > { %v1285_v28 = vmul.f32 %v3068_v57, %v2743_v4  ;;  %v3125_v55 = vsel %vm2971_vm13, %v2786_v32, %v1172_v34  ;;  %v1202_v5 = vsel %vm3110_vm4, %v2841_v41, %v1198_v25  ;;  %vm4111_vm9 = vweird.f32 %v2716_v24 }
 0x1af   : > { %vm3116_vm2 = vcmp.eq.f32.partialorder %v4108_v30, 8.507059e+37  ;;  %vm3134_vm11 = vmor %vm4111_vm9, %vm1215_vm8  ;;  %vm1230_vm14 = vweird.f32 %v2888_v27  ;;  %v1256_v0 = vsub.f32 1.0, %v1255_v51  ;;  %v1228_v23 = vadd.f32 %v2888_v27, %v1227_v9 }
 0x1b0   : > { %v1217_v32 = vsel %vm3134_vm11, %v2849_v31, %v1213_v22  ;;  %vm1244_vm13 = vweird.f32 %v2724_v14  ;;  %v1271_v41 = vsub.f32 1.0, %v1270_v58  ;;  %1907 = vrcp.f32 %v2759_v12  ;;  %v3145_v20 = vpop.eup %1903 }
 0x1b1   : > { %v3150_v24 = vsel %vm3019_vm5, %v2800_v18, %v1187_v40  ;;  %vm1259_vm10 = vweird.f32 %v2730_v60  ;;  %v1263_v50 = vand.u32 2147483647, %v2730_v60  ;;  %v3154_v33 = vor.u32 1.1754944e-38, %v1265_v39  ;;  %vm3176_vm5 = vmor %vm1229_vm6, %vm1230_vm14 }
 0x1b2   : > { %v1242_v31 = vmul.f32 %v2977_v6, %v1241_v38  ;;  %vm1274_vm12 = vweird.f32 %v2736_v62  ;;  %v1278_v35 = vand.u32 2147483647, %v2736_v62  ;;  %v1280_v1 = vand.u32 2147483648, %v2736_v62  ;;  %v3160_v34 = vpop.eup %1905 }
 0x1b3   : > { %v1286_v43 = vsub.f32 1.0, %v1285_v28  ;;  %v3165_v18 = vsel %vm3055_vm15, %v2819_v56, %v1202_v5  ;;  %v3170_v53 = vsel %vm3061_vm3, %v2837_v47, %v1217_v32  ;;  %v1257_v15 = vmul.f32 %v2997_v8, %v1256_v0 }
 0x1b4   : > { %1909 = vrcp.f32 %v2761_v29  ;;  %v1232_v56 = vsel %vm3176_vm5, %v2888_v27, %v1228_v23  ;;  %vm1245_vm0 = vweird.f32 %v2977_v6  ;;  %v4116_v47 = vand.u32 2147483647, %v2724_v14 }
 0x1b5   : > { %v1272_v45 = vmul.f32 %v3024_v42, %v1271_v41  ;;  %v1300_v17 = vmul.f32 %v3145_v20, %v2745_v59  ;;  %vm1260_vm3 = vweird.f32 %v2997_v8  ;;  %vm3196_vm6 = vcmp.eq.f32.partialorder %v1263_v50, 8.507059e+37  ;;  %vm3230_vm4 = vmor %vm1244_vm13, %vm1245_vm0 }
 0x1b6   : > { %vm3188_vm15 = vcmp.eq.f32.partialorder %v4116_v47, 8.507059e+37  ;;  %v1293_v27 = vand.u32 2147483647, %v2743_v4  ;;  %v1295_v11 = vand.u32 2147483648, %v2743_v4  ;;  %1911 = vrcp.f32 %v2769_v7  ;;  %v3203_v25 = vpop.eup %1907  ;;  %vm3248_vm9 = vmor %vm1259_vm10, %vm1260_vm3  ;;  %v4134_v47 = vld [vmem:[#allocation35_spill] sm:$0xff] }
 0x1b7   : > { %v1243_v51 = vadd.f32 %v2977_v6, %v1242_v31  ;;  %vm3206_vm7 = vcmp.eq.f32.partialorder %v1278_v35, 8.507059e+37  ;;  %v1281_v9 = vor.u32 1.1754944e-38, %v1280_v1  ;;  %v1287_v58 = vmul.f32 %v3068_v57, %v1286_v43 }
 0x1b8   : > { %v1315_v52 = vmul.f32 %v3160_v34, %v2751_v10  ;;  %v3216_v39 = vsel %vm3116_vm2, %v2993_v61, %v1232_v56  ;;  %v1258_v40 = vadd.f32 %v2997_v8, %v1257_v15  ;;  %vm1289_vm8 = vweird.f32 %v2743_v4  ;;  %v4131_v15 = vld [vmem:[#allocation34_spill] sm:$0xff] }
 0x1b9   : > { %v1310_v19 = vand.u32 2147483648, %v2745_v59  ;;  %v1273_v30 = vadd.f32 %v3024_v42, %v1272_v45  ;;  %vm1275_vm1 = vweird.f32 %v3024_v42  ;;  %v1301_v38 = vsub.f32 1.0, %v1300_v17 }
 0x1ba   : > { %1913 = vrcp.f32 %v2774_v26  ;;  %v3224_v28 = vpop.eup %1909  ;;  %vm3234_vm2 = vcmp.eq.f32.partialorder %v1293_v27, 8.507059e+37  ;;  %v1296_v5 = vor.u32 1.1754944e-38, %v1295_v11  ;;  %v1308_v16 = vand.u32 2147483647, %v2745_v59  ;;  %vm3264_vm13 = vmor %vm1274_vm12, %vm1275_vm1 }
 0x1bb   : > { %v1330_v0 = vmul.f32 %v3203_v25, %v2759_v12  ;;  %v1247_v32 = vsel %vm3230_vm4, %v2977_v6, %v1243_v51  ;;  %v1288_v23 = vadd.f32 %v3068_v57, %v1287_v58  ;;  %vm1290_vm11 = vweird.f32 %v3068_v57 }
 0x1bc   : > { %vm1304_vm14 = vweird.f32 %v2745_v59  ;;  %v1316_v41 = vsub.f32 1.0, %v1315_v52  ;;  %v3255_v50 = vpop.eup %1911  ;;  %v1262_v6 = vsel %vm3248_vm9, %v2997_v8, %v1258_v40  ;;  %v1311_v31 = vor.u32 1.1754944e-38, %v1310_v19  ;;  %vm3284_vm10 = vmor %vm1289_vm8, %vm1290_vm11 }
 0x1bd   : > { %v1323_v35 = vand.u32 2147483647, %v2751_v10  ;;  %v1325_v1 = vand.u32 2147483648, %v2751_v10  ;;  %v1277_v43 = vsel %vm3264_vm13, %v3024_v42, %v1273_v30  ;;  %v1302_v37 = vmul.f32 %v3145_v20, %v1301_v38 }
 0x1be   : > { %v1345_v8 = vmul.f32 %v3224_v28, %v2761_v29  ;;  %1915 = vrcp.f32 %v4131_v15  ;;  %v3280_v62 = vsel %vm3188_vm15, %v2995_v13, %v1247_v32  ;;  %vm1319_vm12 = vweird.f32 %v2751_v10 }
 0x1bf   : > { %v1331_v42 = vsub.f32 1.0, %v1330_v0  ;;  %1917 = vrcp.f32 %v4134_v47  ;;  %v3295_v17 = vsel %vm3196_vm6, %v3154_v33, %v1262_v6  ;;  %v1292_v4 = vsel %vm3284_vm10, %v3068_v57, %v1288_v23  ;;  %v4143_v6 = vld [vmem:[#allocation36_spill] sm:$0xff] }
 0x1c0   : > { %v3290_v45 = vpop.eup %1913  ;;  %vm3300_vm5 = vcmp.eq.f32.partialorder %v1308_v16, 8.507059e+37  ;;  %v1317_v46 = vmul.f32 %v3160_v34, %v1316_v41  ;;  %v1360_v27 = vmul.f32 %v3255_v50, %v2769_v7  ;;  %v3309_v11 = vsel %vm3206_vm7, %v1281_v9, %v1277_v43  ;;  %v4146_v43 = vld [vmem:[#allocation37_spill] sm:$0xff] }
 0x1c1   : > { %vm1305_vm0 = vweird.f32 %v3145_v20  ;;  %v1338_v33 = vand.u32 2147483647, %v2759_v12  ;;  %v1340_v3 = vand.u32 2147483648, %v2759_v12  ;;  %v1303_v57 = vadd.f32 %v3145_v20, %v1302_v37 }
 0x1c2   : > { %vm3315_vm15 = vcmp.eq.f32.partialorder %v1323_v35, 8.507059e+37  ;;  %v1326_v58 = vor.u32 1.1754944e-38, %v1325_v1  ;;  %vm1334_vm3 = vweird.f32 %v2759_v12  ;;  %v1346_v52 = vsub.f32 1.0, %v1345_v8  ;;  %vm3340_vm8 = vmor %vm1304_vm14, %vm1305_vm0 }
 0x1c3   : > { %v3322_v22 = vsel %vm3234_vm2, %v1296_v5, %v1292_v4  ;;  %vm1320_vm6 = vweird.f32 %v3160_v34  ;;  %v1332_v9 = vmul.f32 %v3203_v25, %v1331_v42  ;;  %v1375_v40 = vmul.f32 %v3290_v45, %v2774_v26 }
 0x1c4   : > { %v3328_v19 = vpop.eup %1915  ;;  %v1318_v30 = vadd.f32 %v3160_v34, %v1317_v46  ;;  %vm1349_vm7 = vweird.f32 %v2761_v29  ;;  %v1353_v38 = vand.u32 2147483647, %v2761_v29  ;;  %v1355_v61 = vand.u32 2147483648, %v2761_v29  ;;  %vm3361_vm9 = vmor %vm1319_vm12, %vm1320_vm6 }
 0x1c5   : > { %v1361_v54 = vsub.f32 1.0, %v1360_v27  ;;  %v3334_v5 = vpop.eup %1917  ;;  %vm1335_vm1 = vweird.f32 %v3203_v25  ;;  %vm3345_vm4 = vcmp.eq.f32.partialorder %v1338_v33, 8.507059e+37  ;;  %v1341_v32 = vor.u32 1.1754944e-38, %v1340_v3 }
 0x1c6   : > { %v1368_v14 = vand.u32 2147483647, %v2769_v7  ;;  %v1307_v23 = vsel %vm3340_vm8, %v3145_v20, %v1303_v57  ;;  %v1347_v41 = vmul.f32 %v3224_v28, %v1346_v52  ;;  %vm1364_vm2 = vweird.f32 %v2769_v7  ;;  %vm3390_vm13 = vmor %vm1334_vm3, %vm1335_vm1 }
 0x1c7   : > { %v1370_v59 = vand.u32 2147483648, %v2769_v7  ;;  %1919 = vrcp.f32 %v4143_v6  ;;  %v1333_v35 = vadd.f32 %v3203_v25, %v1332_v9  ;;  %v1376_v1 = vsub.f32 1.0, %v1375_v40 }
 0x1c8   : > { %v1390_v20 = vmul.f32 %v3328_v19, %v4131_v15  ;;  %1921 = vrcp.f32 %v4146_v43  ;;  %v1322_v37 = vsel %vm3361_vm9, %v3160_v34, %v1318_v30  ;;  %vm3372_vm11 = vcmp.eq.f32.partialorder %v1353_v38, 8.507059e+37  ;;  %v4153_v38 = vld [vmem:[#allocation38_spill] sm:$0xff] }
 0x1c9   : > { %v1356_v10 = vor.u32 1.1754944e-38, %v1355_v61  ;;  %v1362_v56 = vmul.f32 %v3255_v50, %v1361_v54  ;;  %v1405_v42 = vmul.f32 %v3334_v5, %v4134_v47  ;;  %v3381_v4 = vsel %vm3300_vm5, %v1311_v31, %v1307_v23 }
 0x1ca   : > { %vm1350_vm14 = vweird.f32 %v3224_v28  ;;  %v1383_v46 = vand.u32 2147483647, %v2774_v26  ;;  %v1385_v34 = vand.u32 2147483648, %v2774_v26  ;;  %v1348_v33 = vadd.f32 %v3224_v28, %v1347_v41 }
 0x1cb   : > { %vm3395_vm10 = vcmp.eq.f32.partialorder %v1368_v14, 8.507059e+37  ;;  %v1371_v31 = vor.u32 1.1754944e-38, %v1370_v59  ;;  %vm1379_vm12 = vweird.f32 %v2774_v26  ;;  %v3402_v3 = vsel %vm3315_vm15, %v1326_v58, %v1322_v37  ;;  %vm3419_vm0 = vmor %vm1349_vm7, %vm1350_vm14 }
 0x1cc   : > { %v1337_v12 = vsel %vm3390_vm13, %v3203_v25, %v1333_v35  ;;  %v1377_v57 = vmul.f32 %v3290_v45, %v1376_v1  ;;  %v1391_v52 = vsub.f32 1.0, %v1390_v20  ;;  %v1363_v40 = vadd.f32 %v3255_v50, %v1362_v56  ;;  %v4160_v1 = vld [vmem:[#allocation39_spill] sm:$0xff] }
 0x1cd   : > { %v3408_v9 = vpop.eup %1919  ;;  %vm1365_vm5 = vweird.f32 %v3255_v50  ;;  %v1406_v30 = vsub.f32 1.0, %v1405_v42  ;;  %1923 = vrcp.f32 %v4153_v38  ;;  %vm3423_vm15 = vcmp.eq.f32.partialorder %v1383_v46, 8.507059e+37 }
 0x1ce   : > { %v3413_v61 = vpop.eup %1921  ;;  %v1386_v58 = vor.u32 1.1754944e-38, %v1385_v34  ;;  %vm1394_vm3 = vweird.f32 %v4131_v15  ;;  %v1398_v54 = vand.u32 2147483647, %v4131_v15  ;;  %v1400_v16 = vand.u32 2147483648, %v4131_v15  ;;  %vm3441_vm6 = vmor %vm1364_vm2, %vm1365_vm5  ;;  %v4183_v15 = vld [vmem:[#allocation20_spill] sm:$0xff] }
 0x1cf   : > { %v3432_v14 = vsel %vm3345_vm4, %v1341_v32, %v1337_v12  ;;  %v1352_v29 = vsel %vm3419_vm0, %v3224_v28, %v1348_v33  ;;  %v1413_v23 = vand.u32 2147483647, %v4134_v47  ;;  %v1415_v41 = vand.u32 2147483648, %v4134_v47 }
 0x1d0   : > { %v1378_v60 = vadd.f32 %v3290_v45, %v1377_v57  ;;  %vm1380_vm7 = vweird.f32 %v3290_v45  ;;  %v1392_v0 = vmul.f32 %v3328_v19, %v1391_v52  ;;  %v1420_v32 = vmul.f32 %v3408_v9, %v4143_v6 }
 0x1d1   : > { %v1367_v28 = vsel %vm3441_vm6, %v3255_v50, %v1363_v40  ;;  %v1407_v35 = vmul.f32 %v3334_v5, %v1406_v30  ;;  %v1435_v7 = vmul.f32 %v3413_v61, %v4146_v43  ;;  %1925 = vrcp.f32 %v4160_v1  ;;  %vm3470_vm4 = vmor %vm1379_vm12, %vm1380_vm7 }
 0x1d2   : > { %v3459_v20 = vsel %vm3372_vm11, %v1356_v10, %v1352_v29  ;;  %vm3461_vm8 = vcmp.eq.f32.partialorder %v1398_v54, 8.507059e+37  ;;  %v1401_v56 = vor.u32 1.1754944e-38, %v1400_v16  ;;  %vm1409_vm1 = vweird.f32 %v4134_v47  ;;  %v4203_v47 = vld [vmem:[#allocation6_spill] sm:$0xff] }
 0x1d3   : > { %v3466_v42 = vpop.eup %1923  ;;  %vm1395_vm2 = vweird.f32 %v3328_v19  ;;  %vm3475_vm9 = vcmp.eq.f32.partialorder %v1413_v23, 8.507059e+37  ;;  %v1416_v10 = vor.u32 1.1754944e-38, %v1415_v41  ;;  %v1430_v46 = vand.u32 2147483648, %v4143_v6  ;;  %v4170_v23 = vld [vmem:[#allocation41_spill] sm:$0xff]  ;;  %v4173_v41 = vld [vmem:[#allocation42_spill] sm:$0xff] }
 0x1d4   : > { %v3482_v34 = vsel %vm3395_vm10, %v1371_v31, %v1367_v28  ;;  %v1382_v26 = vsel %vm3470_vm4, %v3290_v45, %v1378_v60  ;;  %v1393_v27 = vadd.f32 %v3328_v19, %v1392_v0  ;;  %v1421_v33 = vsub.f32 1.0, %v1420_v32  ;;  %v4167_v45 = vld [vmem:[#allocation40_spill] sm:$0xff]  ;;  %vm3507_vm13 = vmor %vm1394_vm3, %vm1395_vm2  ;;  %v4174_v0 = vld [vmem:[#allocation43_spill] sm:$0xff] }
 0x1d5   : > { %v1408_v12 = vadd.f32 %v3334_v5, %v1407_v35  ;;  %vm1410_vm11 = vweird.f32 %v3334_v5  ;;  %v1428_v57 = vand.u32 2147483647, %v4143_v6  ;;  %v1436_v52 = vsub.f32 1.0, %v1435_v7 }
 0x1d6   : > { %vm1424_vm14 = vweird.f32 %v4143_v6  ;;  %v1443_v13 = vand.u32 2147483647, %v4146_v43  ;;  %v1445_v31 = vand.u32 2147483648, %v4146_v43  ;;  %v1450_v40 = vmul.f32 %v3466_v42, %v4153_v38  ;;  %vm3523_vm12 = vmor %vm1409_vm1, %vm1410_vm11 }
 0x1d7   : > { %1927 = vrcp.f32 %v4167_v45  ;;  %v3497_v30 = vpop.eup %1925  ;;  %v3501_v25 = vsel %vm3423_vm15, %v1386_v58, %v1382_v26  ;;  %v3511_v16 = vor.u32 1.1754944e-38, %v1430_v46  ;;  %vm1439_vm10 = vweird.f32 %v4146_v43 }
 0x1d8   : > { %v1460_v29 = vand.u32 2147483648, %v4153_v38  ;;  %1929 = vrcp.f32 %v4170_v23  ;;  %v1397_v51 = vsel %vm3507_vm13, %v3328_v19, %v1393_v27  ;;  %v1422_v58 = vmul.f32 %v3408_v9, %v1421_v33 }
 0x1d9   : > { %vm1425_vm5 = vweird.f32 %v3408_v9  ;;  %1931 = vrcp.f32 %v4173_v41  ;;  %v1412_v59 = vsel %vm3523_vm12, %v3334_v5, %v1408_v12  ;;  %v1437_v19 = vmul.f32 %v3413_v61, %v1436_v52 }
 0x1da   : > { %v1458_v60 = vand.u32 2147483647, %v4153_v38  ;;  %1933 = vrcp.f32 %v4174_v0  ;;  %vm3536_vm0 = vcmp.eq.f32.partialorder %v1428_v57, 8.507059e+37  ;;  %v3540_v32 = vor.u32 1.1754944e-38, %v1445_v31  ;;  %vm3598_vm1 = vmor %vm1424_vm14, %vm1425_vm5 }
 0x1db   : > { %v1451_v28 = vsub.f32 1.0, %v1450_v40  ;;  %v1465_v35 = vmul.f32 %v3497_v30, %v4160_v1  ;;  %1935 = vrcp.f32 %v2980_v21  ;;  %v3554_v5 = vsel %vm3461_vm8, %v1401_v56, %v1397_v51  ;;  %v4179_v56 = vld [vmem:[#allocation12_spill] sm:$0xff]  ;;  %v4182_v51 = vld [vmem:[#allocation18_spill] sm:$0xff] }
 0x1dc   : > { %vm1440_vm15 = vweird.f32 %v3413_v61  ;;  %v3557_v7 = vor.u32 1.1754944e-38, %v1460_v29  ;;  %v1475_v50 = vand.u32 2147483648, %v4160_v1  ;;  %v3564_v26 = vsel %vm3475_vm9, %v1416_v10, %v1412_v59  ;;  %v4180_v10 = vld [vmem:[#allocation14_spill] sm:$0xff] }
 0x1dd   : > { %v3560_v46 = vpop.eup %1927  ;;  %v1423_v27 = vadd.f32 %v3408_v9, %v1422_v58  ;;  %vm3567_vm3 = vcmp.eq.f32.partialorder %v1443_v13, 8.507059e+37  ;;  %vm1454_vm6 = vweird.f32 %v4153_v38  ;;  %v1473_v37 = vand.u32 2147483647, %v4160_v1  ;;  %v4181_v13 = vld [vmem:[#allocation16_spill] sm:$0xff]  ;;  %vm3620_vm2 = vmor %vm1439_vm10, %vm1440_vm15 }
 0x1de   : > { %v1554_v12 = vmul.f32 %v3002_v48, %v4179_v56  ;;  %v3575_v57 = vpop.eup %1929  ;;  %v1438_v8 = vadd.f32 %v3413_v61, %v1437_v19  ;;  %vm1455_vm7 = vweird.f32 %v3466_v42  ;;  %v1555_v52 = vmul.f32 %v3007_v49, %v4180_v10  ;;  %v4187_v19 = vld [vmem:[#allocation22_spill] sm:$0xff]  ;;  %v4195_v10 = vld [vmem:[#allocation3_spill] sm:$0xff] }
 0x1df   : > { %v1556_v31 = vmul.f32 %v3029_v36, %v4181_v13  ;;  %v3583_v40 = vpop.eup %1931  ;;  %v1452_v54 = vmul.f32 %v3466_v42, %v1451_v28  ;;  %v1466_v29 = vsub.f32 1.0, %v1465_v35  ;;  %v1557_v48 = vmul.f32 %v3083_v44, %v4182_v51  ;;  %v4197_v51 = vld [vmem:[#allocation4_spill] sm:$0xff] }
 0x1e0   : > { %v1558_v58 = vmul.f32 %v3088_v2, %v4183_v15  ;;  %vm4184_vm8 = vcmask 523264   ;;  %v3592_v59 = vpop.eup %1933  ;;  %v3602_v36 = vor.u32 1.1754944e-38, %v1475_v50  ;;  %v1480_v44 = vmul.f32 %v3560_v46, %v4167_v45 }
 0x1e1   : > { %1586 = vst.msk [vmem:[%s3550_s19] sm:$0xff] %vm4184_vm8, %v1554_v12  ;;  %v1488_v2 = vand.u32 2147483647, %v4167_v45  ;;  %v1559_v28 = vmul.f32 %v3103_v63, %v4187_v19  ;;  %vm4188_vm4 = vmmov %vm4184_vm8  ;;  %v3611_v35 = vpop.eup %1935  ;;  %v1427_v6 = vsel %vm3598_vm1, %v3408_v9, %v1423_v27  ;;  %vm3624_vm9 = vcmp.eq.f32.partialorder %v1458_v60, 8.507059e+37  ;;  %v4193_v27 = vld [vmem:[#allocation2_spill] sm:$0xff]  ;;  %v4207_v19 = vld [vmem:[#allocation7_spill] sm:$0xff] }
 0x1e2   : > { %1587 = vst.msk [vmem:[%s3550_s19 + $0x8] sm:$0xff] %vm4188_vm4, %v1555_v52  ;;  %vm1469_vm11 = vweird.f32 %v4160_v1  ;;  %v1490_v63 = vand.u32 2147483648, %v4167_v45  ;;  %v1495_v9 = vmul.f32 %v3575_v57, %v4170_v23  ;;  %v1560_v12 = vmul.f32 %v3125_v55, %v4193_v27  ;;  %vm4194_vm14 = vmmov %vm4188_vm4 }
 0x1e3   : > { %1588 = vst.msk [vmem:[%s3550_s19 + $0x10] sm:$0xff] %vm4194_vm14, %v1556_v31  ;;  %v1442_v43 = vsel %vm3620_vm2, %v3413_v61, %v1438_v8  ;;  %vm1470_vm13 = vweird.f32 %v3497_v30  ;;  %v1510_v60 = vmul.f32 %v3583_v40, %v4173_v41  ;;  %v1561_v52 = vmul.f32 %v3150_v24, %v4195_v10  ;;  %vm4196_vm10 = vmmov %vm4188_vm4 }
 0x1e4   : > { %1589 = vst.msk [vmem:[%s3550_s19 + $0x18] sm:$0xff] %vm4196_vm10, %v1557_v48  ;;  %v1453_v55 = vadd.f32 %v3466_v42, %v1452_v54  ;;  %v1467_v13 = vmul.f32 %v3497_v30, %v1466_v29  ;;  %v1525_v31 = vmul.f32 %v3592_v59, %v4174_v0  ;;  %v1562_v61 = vmul.f32 %v3165_v18, %v4197_v51  ;;  %vm4198_vm12 = vmmov %vm4188_vm4  ;;  %v4199_v48 = vld [vmem:[#allocation5_spill] sm:$0xff] }
 0x1e5   : > { %1590 = vst.msk [vmem:[%s3550_s19 + $0x20] sm:$0xff] %vm4198_vm12, %v1558_v58  ;;  %v3657_v8 = vsel %vm3536_vm0, %v3511_v16, %v1427_v6  ;;  %v1481_v24 = vsub.f32 1.0, %v1480_v44  ;;  %v1540_v54 = vmul.f32 %v3611_v35, %v2980_v21  ;;  %v1563_v29 = vmul.f32 %v3170_v53, %v4199_v48  ;;  %vm4200_vm5 = vmmov %vm4188_vm4  ;;  %v4209_v6 = vld [vmem:[#allocation8_spill] sm:$0xff]  ;;  %v4227_v48 = vld [vmem:[#allocation17_spill] sm:$0xff] }
 0x1e6   : > { %1591 = vst.msk [vmem:[%s3550_s19 + $0x28] sm:$0xff] %vm4200_vm5, %v1559_v28  ;;  %vm3665_vm15 = vcmp.eq.f32.partialorder %v1473_v37, 8.507059e+37  ;;  %v3669_v18 = vor.u32 1.1754944e-38, %v1490_v63  ;;  %v1496_v58 = vsub.f32 1.0, %v1495_v9  ;;  %v1505_v16 = vand.u32 2147483648, %v4170_v23  ;;  %vm4204_vm0 = vmmov %vm4188_vm4  ;;  %v4211_v9 = vld [vmem:[#allocation9_spill] sm:$0xff] }
 0x1e7   : > { %v1564_v49 = vmul.f32 %v3216_v39, %v4203_v47  ;;  %1592 = vst.msk [vmem:[%s3550_s19 + $0x30] sm:$0xff] %vm4204_vm0, %v1560_v12  ;;  %v3679_v53 = vsel %vm3567_vm3, %v3540_v32, %v1442_v43  ;;  %vm3685_vm8 = vmor %vm1454_vm6, %vm1455_vm7  ;;  %vm1484_vm1 = vweird.f32 %v4167_v45  ;;  %v1503_v39 = vand.u32 2147483647, %v4170_v23 }
 0x1e8   : > { %v1511_v44 = vsub.f32 1.0, %v1510_v60  ;;  %v1565_v28 = vmul.f32 %v3280_v62, %v4207_v19  ;;  %vm4208_vm4 = vmmov %vm4204_vm0  ;;  %v1457_v38 = vsel %vm3685_vm8, %v3466_v42, %v1453_v55  ;;  %v1468_v32 = vadd.f32 %v3497_v30, %v1467_v13  ;;  %v4219_v55 = vld [vmem:[#allocation11_spill] sm:$0xff] }
 0x1e9   : > { %1593 = vst.msk [vmem:[%s3550_s19 + $0x38] sm:$0xff] %vm4208_vm4, %v1561_v52  ;;  %vm1499_vm3 = vweird.f32 %v4170_v23  ;;  %v1526_v33 = vsub.f32 1.0, %v1525_v31  ;;  %v1566_v50 = vmul.f32 %v3295_v17, %v4209_v6  ;;  %vm4210_vm6 = vmmov %vm4204_vm0  ;;  %v1482_v63 = vmul.f32 %v3560_v46, %v1481_v24  ;;  %v4213_v17 = vld [vmem:[#allocation10_spill] sm:$0xff]  ;;  %v4223_v31 = vld [vmem:[#allocation13_spill] sm:$0xff] }
 0x1ea   : > { %1594 = vst.msk [vmem:[%s3550_s19 + $0x40] sm:$0xff] %vm4210_vm6, %v1562_v61  ;;  %vm1485_vm7 = vweird.f32 %v3560_v46  ;;  %v1541_v62 = vsub.f32 1.0, %v1540_v54  ;;  %v1567_v27 = vmul.f32 %v3309_v11, %v4211_v9  ;;  %vm4212_vm2 = vmmov %vm4204_vm0  ;;  %v1497_v42 = vmul.f32 %v3575_v57, %v1496_v58  ;;  %v4225_v61 = vld [vmem:[#allocation15_spill] sm:$0xff]  ;;  %v4259_v11 = vld [vmem:[#allocation30_spill] sm:$0xff] }
 0x1eb   : > { %1595 = vst.msk [vmem:[%s3550_s19 + $0x48] sm:$0xff] %vm4212_vm2, %v1563_v29  ;;  %v3711_v12 = vor.u32 1.1754944e-38, %v1505_v16  ;;  %vm1514_vm14 = vweird.f32 %v4173_v41  ;;  %v1568_v43 = vmul.f32 %v3322_v22, %v4213_v17  ;;  %vm4214_vm10 = vmmov %vm4204_vm0  ;;  %v1462_v60 = vsel %vm3624_vm9, %v3557_v7, %v1457_v38  ;;  %v4229_v16 = vld [vmem:[#allocation19_spill] sm:$0xff]  ;;  %v4257_v17 = vld [vmem:[#allocation29_spill] sm:$0xff] }
 0x1ec   : > { %1596 = vst.msk [vmem:[%s3550_s19 + $0x50] sm:$0xff] %vm4214_vm10, %v1564_v49  ;;  %vm3725_vm12 = vmor %vm1469_vm11, %vm1470_vm13  ;;  %vm3729_vm5 = vcmp.eq.f32.partialorder %v1488_v2, 8.507059e+37  ;;  %v1512_v22 = vmul.f32 %v3583_v40, %v1511_v44  ;;  %v1518_v52 = vand.u32 2147483647, %v4173_v41  ;;  %v1569_v7 = vmul.f32 %v3381_v4, %v4219_v55  ;;  %v4233_v49 = vld [vmem:[#allocation21_spill] sm:$0xff]  ;;  %v4263_v55 = vld [vmem:[#allocation32_spill] sm:$0xff] }
 0x1ed   : > { %vm4220_vm9 = vmmov %vm4204_vm0  ;;  %v1472_v1 = vsel %vm3725_vm12, %v3497_v30, %v1468_v32  ;;  %vm3742_vm11 = vcmp.eq.f32.partialorder %v1503_v39, 8.507059e+37  ;;  %v1520_v2 = vand.u32 2147483648, %v4173_v41  ;;  %v1527_v13 = vmul.f32 %v3592_v59, %v1526_v33 }
 0x1ee   : > { %1597 = vst.msk [vmem:[%s3550_s19 + $0x58] sm:$0xff] %vm4220_vm9, %v1565_v28  ;;  %v1570_v51 = vmul.f32 %v3402_v3, %v4223_v31  ;;  %vm4224_vm13 = vmmov %vm4204_vm0  ;;  %v1483_v4 = vadd.f32 %v3560_v46, %v1482_v63  ;;  %vm1529_vm0 = vweird.f32 %v4174_v0  ;;  %v1542_v30 = vmul.f32 %v3611_v35, %v1541_v62  ;;  %v4243_v28 = vld [vmem:[#allocation24_spill] sm:$0xff]  ;;  %v4253_v62 = vld [vmem:[#allocation27_spill] sm:$0xff] }
 0x1ef   : > { %1598 = vst.msk [vmem:[%s3550_s19 + $0x60] sm:$0xff] %vm4224_vm13, %v1566_v50  ;;  %v1571_v24 = vmul.f32 %v3432_v14, %v4225_v61  ;;  %vm4226_vm8 = vmmov %vm4212_vm2  ;;  %v1498_v54 = vadd.f32 %v3575_v57, %v1497_v42  ;;  %vm1500_vm4 = vweird.f32 %v3575_v57  ;;  %v1533_v3 = vand.u32 2147483647, %v4174_v0  ;;  %v4255_v42 = vld [vmem:[#allocation28_spill] sm:$0xff] }
 0x1f0   : > { %1599 = vst.msk [vmem:[%s3550_s19 + $0x68] sm:$0xff] %vm4226_vm8, %v1567_v27  ;;  %v1572_v29 = vmul.f32 %v3459_v20, %v4227_v48  ;;  %vm4228_vm6 = vmmov %vm4212_vm2  ;;  %v1477_v58 = vsel %vm3665_vm15, %v3602_v36, %v1472_v1  ;;  %v1513_v14 = vadd.f32 %v3583_v40, %v1512_v22  ;;  %vm1515_vm2 = vweird.f32 %v3583_v40  ;;  %v4261_v22 = vld [vmem:[#allocation31_spill] sm:$0xff]  ;;  %v4265_v1 = vld [vmem:[#allocation33_spill] sm:$0xff] }
 0x1f1   : > { %1600 = vst.msk [vmem:[%s3550_s19 + $0x70] sm:$0xff] %vm4228_vm6, %v1568_v43  ;;  %v1573_v47 = vmul.f32 %v3482_v34, %v4229_v16  ;;  %vm4230_vm10 = vmmov %vm4228_vm6  ;;  %v1528_v36 = vadd.f32 %v3592_v59, %v1527_v13  ;;  %vm1530_vm15 = vweird.f32 %v3592_v59  ;;  %v1535_v15 = vand.u32 2147483648, %v4174_v0 }
 0x1f2   : > { %1601 = vst.msk [vmem:[%s3550_s19 + $0x78] sm:$0xff] %vm4230_vm10, %v1569_v7  ;;  %vm3779_vm12 = vmor %vm1484_vm1, %vm1485_vm7  ;;  %v1574_v34 = vmul.f32 %v3501_v25, %v4233_v49  ;;  %v1543_v39 = vadd.f32 %v3611_v35, %v1542_v30  ;;  %vm1545_vm7 = vweird.f32 %v3611_v35  ;;  %v4237_v25 = vld [vmem:[#allocation23_spill] sm:$0xff]  ;;  %vm3818_vm8 = vcmp.eq.f32.partialorder %v1518_v52, 8.507059e+37 }
 0x1f3   : > { %vm4234_vm9 = vmmov %vm4228_vm6  ;;  %v1487_v45 = vsel %vm3779_vm12, %v3560_v46, %v1483_v4  ;;  %v1575_v44 = vmul.f32 %v3554_v5, %v4237_v25  ;;  %v1550_v5 = vand.u32 2147483648, %v2980_v21  ;;  %v1576_v38 = vmul.f32 %v3564_v26, %v4243_v28  ;;  %v4247_v26 = vld [vmem:[#allocation25_spill] sm:$0xff] }
 0x1f4   : > { %1602 = vst.msk [vmem:[%s3550_s19 + $0x80] sm:$0xff] %vm4234_vm9, %v1570_v51  ;;  %vm3797_vm1 = vmor %vm1499_vm3, %vm1500_vm4  ;;  %v1548_v32 = vand.u32 2147483647, %v2980_v21  ;;  %v1577_v33 = vmul.f32 %v3657_v8, %v4247_v26  ;;  %v1521_v0 = vor.u32 1.1754944e-38, %v1520_v2  ;;  %v1536_v63 = vor.u32 1.1754944e-38, %v1535_v15 }
 0x1f5   : > { %vm4238_vm13 = vmmov %vm4228_vm6  ;;  %v1502_v46 = vsel %vm3797_vm1, %v3575_v57, %v1498_v54  ;;  %v1579_v9 = vmul.f32 %v1462_v60, %v4253_v62  ;;  %vm1534_vm12 = vcmp.eq.f32.partialorder %v1533_v3, 8.507059e+37  ;;  %v1551_v27 = vor.u32 1.1754944e-38, %v1550_v5 }
 0x1f6   : > { %1603 = vst.msk [vmem:[%s3550_s19 + $0x88] sm:$0xff] %vm4238_vm13, %v1571_v24  ;;  %vm3814_vm3 = vmor %vm1514_vm14, %vm1515_vm2 }
 0x1f7   : > { %vm4244_vm4 = vmmov %vm4228_vm6  ;;  %v1517_v41 = vsel %vm3814_vm3, %v3583_v40, %v1513_v14  ;;  %vm1544_vm6 = vweird.f32 %v2980_v21  ;;  %v1492_v40 = vsel %vm3729_vm5, %v3669_v18, %v1487_v45  ;;  %v4251_v21 = vld [vmem:[#allocation26_spill] sm:$0xff]  ;;  %v1507_v18 = vsel %vm3742_vm11, %v3711_v12, %v1502_v46 }
 0x1f8   : > { %1604 = vst.msk [vmem:[%s3550_s19 + $0x90] sm:$0xff] %vm4244_vm4, %v1572_v29  ;;  %vm3834_vm14 = vmor %vm1529_vm0, %vm1530_vm15  ;;  %v1578_v8 = vmul.f32 %v3679_v53, %v4251_v21  ;;  %v1522_v53 = vsel %vm3818_vm8, %v1521_v0, %v1517_v41  ;;  %v1580_v12 = vmul.f32 %v1477_v58, %v4255_v42  ;;  %vm1549_vm15 = vcmp.eq.f32.partialorder %v1548_v32, 8.507059e+37 }
 0x1f9   : > { %vm4248_vm2 = vmmov %vm4244_vm4  ;;  %v1532_v6 = vsel %vm3834_vm14, %v3592_v59, %v1528_v36  ;;  %v1581_v43 = vmul.f32 %v1492_v40, %v4257_v17  ;;  %v1582_v10 = vmul.f32 %v1507_v18, %v4259_v11  ;;  %v1583_v52 = vmul.f32 %v1522_v53, %v4261_v22 }
 0x1fa   : > { %1605 = vst.msk [vmem:[%s3550_s19 + $0x98] sm:$0xff] %vm4248_vm2, %v1573_v47  ;;  %vm3852_vm0 = vmor %vm1544_vm6, %vm1545_vm7 }
 0x1fb   : > { %vm4252_vm10 = vmmov %vm4248_vm2  ;;  %v1547_v59 = vsel %vm3852_vm0, %v3611_v35, %v1543_v39  ;;  %v1537_v35 = vsel %vm1534_vm12, %v1536_v63, %v1532_v6 }
 0x1fc   : > { %1606 = vst.msk [vmem:[%s3550_s19 + $0xa0] sm:$0xff] %vm4252_vm10, %v1574_v34  ;;  %vm4254_vm5 = vmmov %vm4248_vm2  ;;  %v1552_v60 = vsel %vm1549_vm15, %v1551_v27, %v1547_v59  ;;  %v1584_v7 = vmul.f32 %v1537_v35, %v4263_v55 }
 0x1fd   : > { %1607 = vst.msk [vmem:[%s3550_s19 + $0xa8] sm:$0xff] %vm4254_vm5, %v1575_v44  ;;  %vm4256_vm11 = vmmov %vm4248_vm2  ;;  %v1585_v56 = vmul.f32 %v1552_v60, %v4265_v1 }
 0x1fe   : > { %1608 = vst.msk [vmem:[%s3550_s19 + $0xb0] sm:$0xff] %vm4256_vm11, %v1576_v38  ;;  %vm4258_vm9 = vmmov %vm4248_vm2 }
 0x1ff   : > { %1609 = vst.msk [vmem:[%s3550_s19 + $0xb8] sm:$0xff] %vm4258_vm9, %v1577_v33  ;;  %vm4260_vm1 = vmmov %vm4248_vm2 }
 0x200   : > { %1610 = vst.msk [vmem:[%s3550_s19 + $0xc0] sm:$0xff] %vm4260_vm1, %v1578_v8  ;;  %vm4262_vm7 = vmmov %vm4260_vm1 }
 0x201   : > { %1611 = vst.msk [vmem:[%s3550_s19 + $0xc8] sm:$0xff] %vm4262_vm7, %v1579_v9  ;;  %vm4264_vm13 = vmmov %vm4260_vm1 }
 0x202   : > { %1612 = vst.msk [vmem:[%s3550_s19 + $0xd0] sm:$0xff] %vm4264_vm13, %v1580_v12  ;;  %vm4266_vm3 = vmmov %vm4260_vm1 }
 0x203   : > { %1613 = vst.msk [vmem:[%s3550_s19 + $0xd8] sm:$0xff] %vm4266_vm3, %v1581_v43  ;;  %vm4267_vm8 = vmmov %vm4260_vm1 }
 0x204   : > { %1614 = vst.msk [vmem:[%s3550_s19 + $0xe0] sm:$0xff] %vm4267_vm8, %v1582_v10  ;;  %vm4268_vm4 = vmmov %vm4260_vm1 }
 0x205   : > { %1615 = vst.msk [vmem:[%s3550_s19 + $0xe8] sm:$0xff] %vm4268_vm4, %v1583_v52  ;;  %vm4269_vm14 = vmmov %vm4260_vm1 }
 0x206   : > { %1616 = vst.msk [vmem:[%s3550_s19 + $0xf0] sm:$0xff] %vm4269_vm14, %v1584_v7  ;;  %vm4270_vm6 = vmmov %vm4260_vm1 }
 0x207   : > { %1617 = vst.msk [vmem:[%s3550_s19 + $0xf8] sm:$0xff] %vm4270_vm6, %v1585_v56 }
 0x208 PF: > { %s14_s15 = sadd.s32 1, %s1943_s15  }
 0x209   : > { %p11_p4 = scmp.ge.s32.totalorder %s14_s15, 4  }
 0x20b   :  { %13 = sbr.rel (!%p11_p4) target bundleno = 1 (0x1), region = 66 }

// kernel: _lambda_.29
= control target key start
LH: loop header
LB: loop body
LE: loop exit
PB: predicated region body
PF: predicated region fallthrough
CT: control target
= control target key end

     0   :  { %s1958_s15 = smov 0   ;;  %s3882_s0 = inlined_call_operand.vmem [shape: f32[2,256,32], index: 0, kind: input, shape index: {}]   ;;  %s3883_s1 = inlined_call_operand.vmem [shape: f32[1,32], index: 1, kind: input, shape index: {}]   ;;  %s3884_s2 = inlined_call_operand.vmem [shape: f32[1,32], index: 2, kind: input, shape index: {}]   ;;  %s3885_s3 = inlined_call_operand.vmem [shape: f32[32,32], index: 3, kind: input, shape index: {}]   ;;  %s3886_s4 = inlined_call_operand.vmem [shape: f32[2,256,32], index: 4, kind: output, shape index: {}]  }
   0x1 LB: > { %s1669_s16 = sadd.s32 4294967295, %s1931_s15   ;;  %p1673_p0 = scmp.ge.s32.totalorder %s1931_s15, 1  ;;  %s1931_s15 = sphi %s1958_s15, %s14_s15  }
   0x2   : > { %p162_p1 = scmp.lt.s32.totalorder %s1931_s15, 3 }
   0x4   : > { %p163_p2 = pnand %p1673_p0, %p162_p1 }
   0x6   : > { %166 = sbr.rel (%p163_p2) target bundleno = 512 (0x200), region = 36 }
   0xb   : > { %v233_v0 = vld [vmem:[%s3885_s3 + $0x18] sm:$0xff]  ;;  %v232_v1 = vld [vmem:[%s3885_s3 + $0x10] sm:$0xff]  ;;  %p188_p3 = scmp.lt.s32.totalorder %s1669_s16, 1  ;;  %v231_v2 = vld [vmem:[%s3885_s3 + $0x8] sm:$0xff]  ;;  %vm3951_vm0 = vcmask 261120  }
   0xc   : > { %343 = vmatpush.msra.mxu0 %v233_v0  ;;  %653 = vmatpush.msra.mxu1 %v233_v0  ;;  %v230_v3 = vld [vmem:[%s3885_s3] sm:$0xff] }
   0xd   : > { %s4254_s16 = smov (!%p188_p3, %s1669_s16), 1  ;;  %1778 = vmatpush.msra.mxu2 %v233_v0  ;;  %1782 = vmatpush.msra.mxu3 %v233_v0 }
   0xe   : > { %344 = vmatpush.msra.mxu0 %v232_v1  ;;  %654 = vmatpush.msra.mxu1 %v232_v1  ;;  %s1776_s25 = sshll.u32 %s4254_s16, 8 }
   0xf   : > { %1779 = vmatpush.msra.mxu2 %v232_v1  ;;  %1783 = vmatpush.msra.mxu3 %v232_v1  ;;  %s1986_s28 = scalar_lea.vmem %s3882_s0, %s1776_s25  ;;  %s3532_s9 = scalar_lea.vmem %s3886_s4, %s1776_s25 }
  0x10   : > { %345 = vmatpush.msra.mxu0 %v231_v2  ;;  %655 = vmatpush.msra.mxu1 %v231_v2  ;;  %v1989_v4 = vld [vmem:[%s1986_s28] sm:$0xff]  ;;  %v2004_v8 = vld [vmem:[%s1986_s28 + $0x8] sm:$0xff]  ;;  %v2020_v12 = vld [vmem:[%s1986_s28 + $0x10] sm:$0xff] }
  0x11   : > { %1780 = vmatpush.msra.mxu2 %v231_v2  ;;  %1784 = vmatpush.msra.mxu3 %v231_v2  ;;  %v513_v5 = vmul.f32 %v1989_v4, %v1989_v4  ;;  %v1994_v6 = vld [vmem:[%s1986_s28 + $0x80] sm:$0xff]  ;;  %v2008_v9 = vld [vmem:[%s1986_s28 + $0x88] sm:$0xff]  ;;  %v514_v10 = vmul.f32 %v2004_v8, %v2004_v8  ;;  %v2024_v13 = vld [vmem:[%s1986_s28 + $0x90] sm:$0xff]  ;;  %v515_v14 = vmul.f32 %v2020_v12, %v2020_v12 }
  0x12   : > { %346 = vmatpush.msra.mxu0 %v230_v3  ;;  %656 = vmatpush.msra.mxu1 %v230_v3  ;;  %3952 = vst [vmem:[#allocation2_spill] sm:$0xff] %v1994_v6  ;;  %v529_v7 = vmul.f32 %v1994_v6, %v1994_v6  ;;  %v530_v11 = vmul.f32 %v2008_v9, %v2008_v9  ;;  %v2036_v16 = vld [vmem:[%s1986_s28 + $0x18] sm:$0xff]  ;;  %v2052_v20 = vld [vmem:[%s1986_s28 + $0x20] sm:$0xff]  ;;  %v2068_v24 = vld [vmem:[%s1986_s28 + $0x28] sm:$0xff] }
  0x13   : > { %1678 = vmatmul.msk.f32.vlgmr.msra.gmra.mxu0 %vm3951_vm0, %v1989_v4  ;;  %1781 = vmatpush.msra.mxu2 %v230_v3  ;;  %3953 = vst [vmem:[#allocation3_spill] sm:$0xff] %v2008_v9  ;;  %v531_v15 = vmul.f32 %v2024_v13, %v2024_v13  ;;  %v2040_v17 = vld [vmem:[%s1986_s28 + $0x98] sm:$0xff]  ;;  %v516_v18 = vmul.f32 %v2036_v16, %v2036_v16  ;;  %v2056_v21 = vld [vmem:[%s1986_s28 + $0xa0] sm:$0xff]  ;;  %v2072_v25 = vld [vmem:[%s1986_s28 + $0xa8] sm:$0xff] }
  0x14   : > { %1710 = vmatmul.msk.f32.vlgmr.msra.gmra.mxu1 %vm3951_vm0, %v513_v5  ;;  %1694 = vmatmul.msk.f32.vlgmr.msra.gmra.mxu2 %vm3951_vm0, %v1994_v6  ;;  %3954 = vst [vmem:[#allocation4_spill] sm:$0xff] %v2024_v13  ;;  %v532_v19 = vmul.f32 %v2040_v17, %v2040_v17  ;;  %v517_v22 = vmul.f32 %v2052_v20, %v2052_v20  ;;  %v2084_v28 = vld [vmem:[%s1986_s28 + $0x30] sm:$0xff]  ;;  %v2100_v32 = vld [vmem:[%s1986_s28 + $0x38] sm:$0xff]  ;;  %v2116_v36 = vld [vmem:[%s1986_s28 + $0x40] sm:$0xff] }
  0x15   : > { %1785 = vmatpush.msra.mxu3 %v230_v3  ;;  %3955 = vst [vmem:[#allocation5_spill] sm:$0xff] %v2040_v17  ;;  %v533_v23 = vmul.f32 %v2056_v21, %v2056_v21  ;;  %v518_v26 = vmul.f32 %v2068_v24, %v2068_v24  ;;  %v534_v27 = vmul.f32 %v2072_v25, %v2072_v25  ;;  %v2088_v29 = vld [vmem:[%s1986_s28 + $0xb0] sm:$0xff]  ;;  %v2104_v33 = vld [vmem:[%s1986_s28 + $0xb8] sm:$0xff]  ;;  %v2120_v37 = vld [vmem:[%s1986_s28 + $0xc0] sm:$0xff] }
  0x16   : > { %1726 = vmatmul.msk.f32.vlgmr.msra.gmra.mxu3 %vm3951_vm0, %v529_v7  ;;  %3956 = vst [vmem:[#allocation6_spill] sm:$0xff] %v2056_v21  ;;  %v519_v30 = vmul.f32 %v2084_v28, %v2084_v28  ;;  %v535_v31 = vmul.f32 %v2088_v29, %v2088_v29  ;;  %v520_v34 = vmul.f32 %v2100_v32, %v2100_v32  ;;  %v2132_v40 = vld [vmem:[%s1986_s28 + $0x48] sm:$0xff]  ;;  %v2148_v44 = vld [vmem:[%s1986_s28 + $0x50] sm:$0xff]  ;;  %v2164_v48 = vld [vmem:[%s1986_s28 + $0x58] sm:$0xff] }
  0x17   : > { %3957 = vst [vmem:[#allocation7_spill] sm:$0xff] %v2072_v25  ;;  %v536_v35 = vmul.f32 %v2104_v33, %v2104_v33  ;;  %v521_v38 = vmul.f32 %v2116_v36, %v2116_v36  ;;  %v537_v39 = vmul.f32 %v2120_v37, %v2120_v37  ;;  %v2136_v41 = vld [vmem:[%s1986_s28 + $0xc8] sm:$0xff]  ;;  %v522_v42 = vmul.f32 %v2132_v40, %v2132_v40  ;;  %v2152_v45 = vld [vmem:[%s1986_s28 + $0xd0] sm:$0xff]  ;;  %v2168_v49 = vld [vmem:[%s1986_s28 + $0xd8] sm:$0xff] }
  0x18   : > { %3958 = vst [vmem:[#allocation8_spill] sm:$0xff] %v2088_v29  ;;  %v538_v43 = vmul.f32 %v2136_v41, %v2136_v41  ;;  %v523_v46 = vmul.f32 %v2148_v44, %v2148_v44  ;;  %v539_v47 = vmul.f32 %v2152_v45, %v2152_v45  ;;  %v524_v50 = vmul.f32 %v2164_v48, %v2164_v48  ;;  %v2180_v52 = vld [vmem:[%s1986_s28 + $0x60] sm:$0xff]  ;;  %v2196_v56 = vld [vmem:[%s1986_s28 + $0x68] sm:$0xff]  ;;  %v2212_v60 = vld [vmem:[%s1986_s28 + $0x70] sm:$0xff] }
  0x19   : > { %3959 = vst [vmem:[#allocation9_spill] sm:$0xff] %v2104_v33  ;;  %v540_v51 = vmul.f32 %v2168_v49, %v2168_v49  ;;  %v2184_v53 = vld [vmem:[%s1986_s28 + $0xe0] sm:$0xff]  ;;  %v525_v54 = vmul.f32 %v2180_v52, %v2180_v52  ;;  %v2200_v57 = vld [vmem:[%s1986_s28 + $0xe8] sm:$0xff]  ;;  %v526_v58 = vmul.f32 %v2196_v56, %v2196_v56  ;;  %v2216_v61 = vld [vmem:[%s1986_s28 + $0xf0] sm:$0xff]  ;;  %v527_v62 = vmul.f32 %v2212_v60, %v2212_v60 }
  0x1a   : > { %3960 = vst [vmem:[#allocation10_spill] sm:$0xff] %v2120_v37  ;;  %v541_v55 = vmul.f32 %v2184_v53, %v2184_v53  ;;  %v542_v59 = vmul.f32 %v2200_v57, %v2200_v57  ;;  %v543_v63 = vmul.f32 %v2216_v61, %v2216_v61  ;;  %v2228_v0 = vld [vmem:[%s1986_s28 + $0x78] sm:$0xff] }
  0x1b   : > { %1679 = vmatmul.msk.f32.gmra.mxu0 %vm3951_vm0, %v2004_v8  ;;  %3961 = vst [vmem:[#allocation11_spill] sm:$0xff] %v2136_v41  ;;  %v2232_v1 = vld [vmem:[%s1986_s28 + $0xf8] sm:$0xff]  ;;  %v528_v2 = vmul.f32 %v2228_v0, %v2228_v0 }
  0x1c   : > { %1711 = vmatmul.msk.f32.gmra.mxu1 %vm3951_vm0, %v514_v10  ;;  %1695 = vmatmul.msk.f32.gmra.mxu2 %vm3951_vm0, %v2008_v9  ;;  %3962 = vst [vmem:[#allocation12_spill] sm:$0xff] %v2148_v44  ;;  %v544_v3 = vmul.f32 %v2232_v1, %v2232_v1 }
  0x1d   : > { %3963 = vst [vmem:[#allocation13_spill] sm:$0xff] %v2152_v45 }
  0x1e   : > { %1727 = vmatmul.msk.f32.gmra.mxu3 %vm3951_vm0, %v530_v11  ;;  %3964 = vst [vmem:[#allocation14_spill] sm:$0xff] %v2164_v48 }
  0x1f   : > { %3965 = vst [vmem:[#allocation15_spill] sm:$0xff] %v2168_v49 }
  0x20   : > { %3966 = vst [vmem:[#allocation16_spill] sm:$0xff] %v2180_v52 }
  0x21   : > { %3967 = vst [vmem:[#allocation17_spill] sm:$0xff] %v2184_v53 }
  0x22   : > { %3968 = vst [vmem:[#allocation18_spill] sm:$0xff] %v2196_v56 }
  0x23   : > { %1680 = vmatmul.msk.f32.gmra.mxu0 %vm3951_vm0, %v2020_v12  ;;  %3969 = vst [vmem:[#allocation19_spill] sm:$0xff] %v2200_v57 }
  0x24   : > { %1712 = vmatmul.msk.f32.gmra.mxu1 %vm3951_vm0, %v515_v14  ;;  %1696 = vmatmul.msk.f32.gmra.mxu2 %vm3951_vm0, %v2024_v13  ;;  %3970 = vst [vmem:[#allocation20_spill] sm:$0xff] %v2212_v60 }
  0x25   : > { %3971 = vst [vmem:[#allocation21_spill] sm:$0xff] %v2216_v61 }
  0x26   : > { %1728 = vmatmul.msk.f32.gmra.mxu3 %vm3951_vm0, %v531_v15  ;;  %3972 = vst [vmem:[#allocation22_spill] sm:$0xff] %v2228_v0 }
  0x27   : > { %3973 = vst [vmem:[#allocation23_spill] sm:$0xff] %v2232_v1 }
  0x2b   : > { %1681 = vmatmul.msk.f32.gmra.mxu0 %vm3951_vm0, %v2036_v16 }
  0x2c   : > { %1713 = vmatmul.msk.f32.gmra.mxu1 %vm3951_vm0, %v516_v18  ;;  %1697 = vmatmul.msk.f32.gmra.mxu2 %vm3951_vm0, %v2040_v17 }
  0x2e   : > { %1729 = vmatmul.msk.f32.gmra.mxu3 %vm3951_vm0, %v532_v19 }
  0x33   : > { %1682 = vmatmul.msk.f32.gmra.mxu0 %vm3951_vm0, %v2052_v20 }
  0x34   : > { %1714 = vmatmul.msk.f32.gmra.mxu1 %vm3951_vm0, %v517_v22  ;;  %1698 = vmatmul.msk.f32.gmra.mxu2 %vm3951_vm0, %v2056_v21 }
  0x36   : > { %1730 = vmatmul.msk.f32.gmra.mxu3 %vm3951_vm0, %v533_v23 }
  0x3b   : > { %1683 = vmatmul.msk.f32.gmra.mxu0 %vm3951_vm0, %v2068_v24 }
  0x3c   : > { %1715 = vmatmul.msk.f32.gmra.mxu1 %vm3951_vm0, %v518_v26  ;;  %1699 = vmatmul.msk.f32.gmra.mxu2 %vm3951_vm0, %v2072_v25 }
  0x3e   : > { %1731 = vmatmul.msk.f32.gmra.mxu3 %vm3951_vm0, %v534_v27 }
  0x43   : > { %1684 = vmatmul.msk.f32.gmra.mxu0 %vm3951_vm0, %v2084_v28 }
  0x44   : > { %1716 = vmatmul.msk.f32.gmra.mxu1 %vm3951_vm0, %v519_v30  ;;  %1700 = vmatmul.msk.f32.gmra.mxu2 %vm3951_vm0, %v2088_v29 }
  0x46   : > { %1732 = vmatmul.msk.f32.gmra.mxu3 %vm3951_vm0, %v535_v31 }
  0x4b   : > { %1685 = vmatmul.msk.f32.gmra.mxu0 %vm3951_vm0, %v2100_v32 }
  0x4c   : > { %1717 = vmatmul.msk.f32.gmra.mxu1 %vm3951_vm0, %v520_v34  ;;  %1701 = vmatmul.msk.f32.gmra.mxu2 %vm3951_vm0, %v2104_v33 }
  0x4e   : > { %1733 = vmatmul.msk.f32.gmra.mxu3 %vm3951_vm0, %v536_v35 }
  0x53   : > { %1686 = vmatmul.msk.f32.gmra.mxu0 %vm3951_vm0, %v2116_v36 }
  0x54   : > { %1718 = vmatmul.msk.f32.gmra.mxu1 %vm3951_vm0, %v521_v38  ;;  %1702 = vmatmul.msk.f32.gmra.mxu2 %vm3951_vm0, %v2120_v37 }
  0x56   : > { %1734 = vmatmul.msk.f32.gmra.mxu3 %vm3951_vm0, %v537_v39 }
  0x5b   : > { %1687 = vmatmul.msk.f32.gmra.mxu0 %vm3951_vm0, %v2132_v40 }
  0x5c   : > { %1719 = vmatmul.msk.f32.gmra.mxu1 %vm3951_vm0, %v522_v42  ;;  %1703 = vmatmul.msk.f32.gmra.mxu2 %vm3951_vm0, %v2136_v41 }
  0x5e   : > { %1735 = vmatmul.msk.f32.gmra.mxu3 %vm3951_vm0, %v538_v43 }
  0x63   : > { %1688 = vmatmul.msk.f32.gmra.mxu0 %vm3951_vm0, %v2148_v44 }
  0x64   : > { %1720 = vmatmul.msk.f32.gmra.mxu1 %vm3951_vm0, %v523_v46  ;;  %1704 = vmatmul.msk.f32.gmra.mxu2 %vm3951_vm0, %v2152_v45 }
  0x66   : > { %1736 = vmatmul.msk.f32.gmra.mxu3 %vm3951_vm0, %v539_v47 }
  0x6b   : > { %1689 = vmatmul.msk.f32.gmra.mxu0 %vm3951_vm0, %v2164_v48 }
  0x6c   : > { %1721 = vmatmul.msk.f32.gmra.mxu1 %vm3951_vm0, %v524_v50  ;;  %1705 = vmatmul.msk.f32.gmra.mxu2 %vm3951_vm0, %v2168_v49 }
  0x6e   : > { %1737 = vmatmul.msk.f32.gmra.mxu3 %vm3951_vm0, %v540_v51 }
  0x73   : > { %1690 = vmatmul.msk.f32.gmra.mxu0 %vm3951_vm0, %v2180_v52 }
  0x74   : > { %1722 = vmatmul.msk.f32.gmra.mxu1 %vm3951_vm0, %v525_v54  ;;  %1706 = vmatmul.msk.f32.gmra.mxu2 %vm3951_vm0, %v2184_v53 }
  0x76   : > { %1738 = vmatmul.msk.f32.gmra.mxu3 %vm3951_vm0, %v541_v55 }
  0x7b   : > { %1691 = vmatmul.msk.f32.gmra.mxu0 %vm3951_vm0, %v2196_v56 }
  0x7c   : > { %1723 = vmatmul.msk.f32.gmra.mxu1 %vm3951_vm0, %v526_v58  ;;  %1707 = vmatmul.msk.f32.gmra.mxu2 %vm3951_vm0, %v2200_v57 }
  0x7e   : > { %1739 = vmatmul.msk.f32.gmra.mxu3 %vm3951_vm0, %v542_v59 }
  0x83   : > { %1692 = vmatmul.msk.f32.gmra.mxu0 %vm3951_vm0, %v2212_v60 }
  0x84   : > { %1724 = vmatmul.msk.f32.gmra.mxu1 %vm3951_vm0, %v527_v62  ;;  %1708 = vmatmul.msk.f32.gmra.mxu2 %vm3951_vm0, %v2216_v61 }
  0x86   : > { %1740 = vmatmul.msk.f32.gmra.mxu3 %vm3951_vm0, %v543_v63 }
  0x8b   : > { %1693 = vmatmul.msk.f32.gmra.mxu0 %vm3951_vm0, %v2228_v0 }
  0x8c   : > { %1725 = vmatmul.msk.f32.gmra.mxu1 %vm3951_vm0, %v528_v2  ;;  %1709 = vmatmul.msk.f32.gmra.mxu2 %vm3951_vm0, %v2232_v1 }
  0x8e   : > { %1741 = vmatmul.msk.f32.gmra.mxu3 %vm3951_vm0, %v544_v3 }
  0x90   : > { %v348_v5 = vpop.f32.mrf.mxu0 }
  0x91   : > { %v658_v7 = vpop.f32.mrf.mxu1  ;;  %v444_v14 = vsel %vm3951_vm0, %v348_v5, 0.0 }
  0x92   : > { %v754_v22 = vsel %vm3951_vm0, %v658_v7, 0.0 }
  0x97   : > { %v2244_v10 = vpop.f32.mrf.mxu2 }
  0x98   : > { %v351_v11 = vpop.f32.mrf.mxu0 }
  0x99   : > { %v445_v15 = vsel %vm3951_vm0, %v351_v11, 0.0  ;;  %v661_v18 = vpop.f32.mrf.mxu1  ;;  %v2248_v19 = vpop.f32.mrf.mxu3 }
  0x9a   : > { %v446_v23 = vadd.f32 %v445_v15, %v444_v14  ;;  %v755_v26 = vsel %vm3951_vm0, %v661_v18, 0.0 }
  0x9b   : > { %v756_v27 = vadd.f32 %v755_v26, %v754_v22 }
  0x9f   : > { %v2252_v30 = vpop.f32.mrf.mxu2 }
  0xa0   : > { %v354_v31 = vpop.f32.mrf.mxu0 }
  0xa1   : > { %v447_v34 = vsel %vm3951_vm0, %v354_v31, 0.0  ;;  %v664_v35 = vpop.f32.mrf.mxu1  ;;  %v2255_v38 = vpop.f32.mrf.mxu3 }
  0xa2   : > { %v448_v39 = vadd.f32 %v447_v34, %v446_v23  ;;  %v757_v42 = vsel %vm3951_vm0, %v664_v35, 0.0 }
  0xa3   : > { %v758_v43 = vadd.f32 %v757_v42, %v756_v27 }
  0xa7   : > { %v2258_v46 = vpop.f32.mrf.mxu2 }
  0xa8   : > { %v357_v47 = vpop.f32.mrf.mxu0 }
  0xa9   : > { %v449_v50 = vsel %vm3951_vm0, %v357_v47, 0.0  ;;  %v667_v51 = vpop.f32.mrf.mxu1  ;;  %v2261_v54 = vpop.f32.mrf.mxu3 }
  0xaa   : > { %v450_v55 = vadd.f32 %v449_v50, %v448_v39  ;;  %v759_v58 = vsel %vm3951_vm0, %v667_v51, 0.0 }
  0xab   : > { %v760_v59 = vadd.f32 %v759_v58, %v758_v43 }
  0xaf   : > { %v2264_v62 = vpop.f32.mrf.mxu2 }
  0xb0   : > { %v360_v63 = vpop.f32.mrf.mxu0 }
  0xb1   : > { %v451_v2 = vsel %vm3951_vm0, %v360_v63, 0.0  ;;  %v670_v3 = vpop.f32.mrf.mxu1  ;;  %v2267_v5 = vpop.f32.mrf.mxu3 }
  0xb2   : > { %v452_v7 = vadd.f32 %v451_v2, %v450_v55  ;;  %v761_v11 = vsel %vm3951_vm0, %v670_v3, 0.0 }
  0xb3   : > { %v762_v14 = vadd.f32 %v761_v11, %v760_v59 }
  0xb7   : > { %v2270_v15 = vpop.f32.mrf.mxu2 }
  0xb8   : > { %v363_v18 = vpop.f32.mrf.mxu0 }
  0xb9   : > { %v673_v22 = vpop.f32.mrf.mxu1  ;;  %v2272_v23 = vpop.f32.mrf.mxu3  ;;  %v453_v37 = vsel %vm3951_vm0, %v363_v18, 0.0 }
  0xba   : > { %v763_v29 = vsel %vm3951_vm0, %v673_v22, 0.0  ;;  %v454_v21 = vadd.f32 %v453_v37, %v452_v7 }
  0xbb   : > { %v764_v13 = vadd.f32 %v763_v29, %v762_v14 }
  0xbf   : > { %v2274_v27 = vpop.f32.mrf.mxu2 }
  0xc0   : > { %v366_v26 = vpop.f32.mrf.mxu0 }
  0xc1   : > { %v676_v31 = vpop.f32.mrf.mxu1  ;;  %v2276_v34 = vpop.f32.mrf.mxu3  ;;  %v455_v25 = vsel %vm3951_vm0, %v366_v26, 0.0 }
  0xc2   : > { %v765_v17 = vsel %vm3951_vm0, %v676_v31, 0.0  ;;  %v456_v6 = vadd.f32 %v455_v25, %v454_v21 }
  0xc3   : > { %v766_v56 = vadd.f32 %v765_v17, %v764_v13 }
  0xc7   : > { %v2278_v42 = vpop.f32.mrf.mxu2 }
  0xc8   : > { %v369_v35 = vpop.f32.mrf.mxu0 }
  0xc9   : > { %v679_v39 = vpop.f32.mrf.mxu1  ;;  %v2280_v43 = vpop.f32.mrf.mxu3  ;;  %v457_v9 = vsel %vm3951_vm0, %v369_v35, 0.0 }
  0xca   : > { %v767_v0 = vsel %vm3951_vm0, %v679_v39, 0.0  ;;  %v458_v48 = vadd.f32 %v457_v9, %v456_v6 }
  0xcb   : > { %v768_v22 = vadd.f32 %v767_v0, %v766_v56 }
  0xcf   : > { %v2282_v51 = vpop.f32.mrf.mxu2 }
  0xd0   : > { %v372_v47 = vpop.f32.mrf.mxu0 }
  0xd1   : > { %v682_v50 = vpop.f32.mrf.mxu1  ;;  %v2284_v55 = vpop.f32.mrf.mxu3  ;;  %v459_v52 = vsel %vm3951_vm0, %v372_v47, 0.0 }
  0xd2   : > { %v769_v44 = vsel %vm3951_vm0, %v682_v50, 0.0  ;;  %v460_v37 = vadd.f32 %v459_v52, %v458_v48 }
  0xd3   : > { %v770_v14 = vadd.f32 %v769_v44, %v768_v22 }
  0xd7   : > { %v2286_v63 = vpop.f32.mrf.mxu2 }
  0xd8   : > { %v375_v58 = vpop.f32.mrf.mxu0 }
  0xd9   : > { %v685_v59 = vpop.f32.mrf.mxu1  ;;  %v2288_v2 = vpop.f32.mrf.mxu3  ;;  %v461_v26 = vsel %vm3951_vm0, %v375_v58, 0.0 }
  0xda   : > { %v771_v7 = vsel %vm3951_vm0, %v685_v59, 0.0  ;;  %v462_v13 = vadd.f32 %v461_v26, %v460_v37 }
  0xdb   : > { %v772_v31 = vadd.f32 %v771_v7, %v770_v14 }
  0xdf   : > { %v2290_v61 = vpop.f32.mrf.mxu2 }
  0xe0   : > { %v378_v3 = vpop.f32.mrf.mxu0 }
  0xe1   : > { %v688_v11 = vpop.f32.mrf.mxu1  ;;  %v2292_v53 = vpop.f32.mrf.mxu3  ;;  %v463_v21 = vsel %vm3951_vm0, %v378_v3, 0.0 }
  0xe2   : > { %v773_v17 = vsel %vm3951_vm0, %v688_v11, 0.0  ;;  %v464_v9 = vadd.f32 %v463_v21, %v462_v13  ;;  %v475_v13 = vsel %vm3951_vm0, %v2244_v10, 0.0  ;;  %v789_v10 = vsel %vm3951_vm0, %v2261_v54, 0.0 }
  0xe3   : > { %v774_v48 = vadd.f32 %v773_v17, %v772_v31  ;;  %v785_v31 = vsel %vm3951_vm0, %v2248_v19, 0.0  ;;  %v481_v19 = vsel %vm3951_vm0, %v2264_v62, 0.0  ;;  %v485_v54 = vsel %vm3951_vm0, %v2274_v27, 0.0 }
  0xe4   : > { %v795_v62 = vsel %vm3951_vm0, %v2276_v34, 0.0  ;;  %v799_v27 = vsel %vm3951_vm0, %v2284_v55, 0.0  ;;  %v491_v34 = vsel %vm3951_vm0, %v2286_v63, 0.0 }
  0xe7   : > { %v2294_v41 = vpop.f32.mrf.mxu2 }
  0xe8   : > { %v381_v1 = vpop.f32.mrf.mxu0  ;;  %v495_v55 = vsel %vm3951_vm0, %v2294_v41, 0.0 }
  0xe9   : > { %v691_v57 = vpop.f32.mrf.mxu1  ;;  %v2297_v33 = vpop.f32.mrf.mxu3  ;;  %v465_v6 = vsel %vm3951_vm0, %v381_v1, 0.0 }
  0xea   : > { %v775_v56 = vsel %vm3951_vm0, %v691_v57, 0.0  ;;  %v466_v39 = vadd.f32 %v465_v6, %v464_v9  ;;  %v477_v9 = vsel %vm3951_vm0, %v2252_v30, 0.0  ;;  %v791_v30 = vsel %vm3951_vm0, %v2267_v5, 0.0 }
  0xeb   : > { %v776_v47 = vadd.f32 %v775_v56, %v774_v48  ;;  %v487_v5 = vsel %vm3951_vm0, %v2278_v42, 0.0  ;;  %v801_v42 = vsel %vm3951_vm0, %v2288_v2, 0.0  ;;  %v805_v63 = vsel %vm3951_vm0, %v2297_v33, 0.0 }
  0xef   : > { %v2308_v29 = vpop.f32.mrf.mxu2 }
  0xf0   : > { %v384_v49 = vpop.f32.mrf.mxu0  ;;  %v497_v2 = vsel %vm3951_vm0, %v2308_v29, 0.0 }
  0xf1   : > { %v694_v45 = vpop.f32.mrf.mxu1  ;;  %v2311_v25 = vpop.f32.mrf.mxu3  ;;  %v467_v52 = vsel %vm3951_vm0, %v384_v49, 0.0 }
  0xf2   : > { %v777_v44 = vsel %vm3951_vm0, %v694_v45, 0.0  ;;  %v468_v58 = vadd.f32 %v467_v52, %v466_v39  ;;  %v479_v52 = vsel %vm3951_vm0, %v2258_v46, 0.0  ;;  %v793_v46 = vsel %vm3951_vm0, %v2272_v23, 0.0 }
  0xf3   : > { %v778_v3 = vadd.f32 %v777_v44, %v776_v47  ;;  %v489_v23 = vsel %vm3951_vm0, %v2282_v51, 0.0  ;;  %v803_v51 = vsel %vm3951_vm0, %v2292_v53, 0.0 }
  0xf7   : > { %v2322_v22 = vpop.f32.mrf.mxu2 }
  0xf8   : > { %v387_v60 = vpop.f32.mrf.mxu0  ;;  %v499_v53 = vsel %vm3951_vm0, %v2322_v22, 0.0 }
  0xf9   : > { %v697_v18 = vpop.f32.mrf.mxu1  ;;  %v469_v50 = vsel %vm3951_vm0, %v387_v60, 0.0  ;;  %v2324_v49 = vpop.f32.mrf.mxu3 }
  0xfa   : > { %v779_v59 = vsel %vm3951_vm0, %v697_v18, 0.0  ;;  %v470_v11 = vadd.f32 %v469_v50, %v468_v58  ;;  %v809_v41 = vsel %vm3951_vm0, %v2324_v49, 0.0 }
  0xfb   : > { %v780_v26 = vadd.f32 %v779_v59, %v778_v3 }
  0xff   : > { %v435_v44 = vpop.f32.mrf.mxu2 }
 0x100   : > { %v390_v0 = vpop.f32.mrf.mxu0  ;;  %v501_v33 = vsel %vm3951_vm0, %v435_v44, 0.0 }
 0x101   : > { %v700_v35 = vpop.f32.mrf.mxu1  ;;  %v471_v1 = vsel %vm3951_vm0, %v390_v0, 0.0  ;;  %v787_v0 = vsel %vm3951_vm0, %v2255_v38, 0.0  ;;  %v745_v50 = vpop.f32.mrf.mxu3  ;;  %v483_v38 = vsel %vm3951_vm0, %v2270_v15, 0.0  ;;  %v797_v15 = vsel %vm3951_vm0, %v2280_v43, 0.0 }
 0x102   : > { %v781_v57 = vsel %vm3951_vm0, %v700_v35, 0.0  ;;  %v472_v37 = vadd.f32 %v471_v1, %v470_v11  ;;  %v493_v43 = vsel %vm3951_vm0, %v2290_v61, 0.0  ;;  %v807_v61 = vsel %vm3951_vm0, %v2311_v25, 0.0 }
 0x103   : > { %v782_v45 = vadd.f32 %v781_v57, %v780_v26  ;;  %v811_v29 = vsel %vm3951_vm0, %v745_v50, 0.0 }
 0x108   : > { %v393_v7 = vpop.f32.mrf.mxu0 }
 0x109   : > { %v473_v14 = vsel %vm3951_vm0, %v393_v7, 0.0  ;;  %v703_v60 = vpop.f32.mrf.mxu1 }
 0x10a   : > { %v474_v21 = vadd.f32 %v473_v14, %v472_v37  ;;  %v783_v18 = vsel %vm3951_vm0, %v703_v60, 0.0  ;;  %v748_v60 = vpop.f32.mrf.mxu3 }
 0x10b   : > { %v784_v17 = vadd.f32 %v783_v18, %v782_v45  ;;  %v438_v45 = vpop.f32.mrf.mxu2  ;;  %v813_v22 = vsel %vm3951_vm0, %v748_v60, 0.0 }
 0x10c   : > { %v476_v6 = vadd.f32 %v475_v13, %v474_v21 }
 0x10d   : > { %v786_v56 = vadd.f32 %v785_v31, %v784_v17 }
 0x10e   : > { %v478_v48 = vadd.f32 %v477_v9, %v476_v6 }
 0x10f   : > { %v788_v35 = vadd.f32 %v787_v0, %v786_v56 }
 0x110   : > { %v480_v39 = vadd.f32 %v479_v52, %v478_v48 }
 0x111   : > { %v790_v47 = vadd.f32 %v789_v10, %v788_v35 }
 0x112   : > { %v482_v58 = vadd.f32 %v481_v19, %v480_v39  ;;  %v751_v35 = vpop.f32.mrf.mxu3  ;;  %v503_v19 = vsel %vm3951_vm0, %v438_v45, 0.0 }
 0x113   : > { %v792_v59 = vadd.f32 %v791_v30, %v790_v47  ;;  %v441_v48 = vpop.f32.mrf.mxu2  ;;  %v815_v30 = vsel %vm3951_vm0, %v751_v35, 0.0  ;;  %v3982_v35 = vld [vmem:[#allocation4_spill] sm:$0xff] }
 0x114   : > { %v484_v3 = vadd.f32 %v483_v38, %v482_v58  ;;  %v505_v25 = vsel %vm3951_vm0, %v441_v48, 0.0 }
 0x115   : > { %v794_v1 = vadd.f32 %v793_v46, %v792_v59 }
 0x116   : > { %v486_v11 = vadd.f32 %v485_v54, %v484_v3 }
 0x117   : > { %v796_v57 = vadd.f32 %v795_v62, %v794_v1 }
 0x118   : > { %v488_v26 = vadd.f32 %v487_v5, %v486_v11 }
 0x119   : > { %v798_v37 = vadd.f32 %v797_v15, %v796_v57 }
 0x11a   : > { %v490_v7 = vadd.f32 %v489_v23, %v488_v26 }
 0x11b   : > { %v800_v14 = vadd.f32 %v799_v27, %v798_v37 }
 0x11c   : > { %v492_v21 = vadd.f32 %v491_v34, %v490_v7 }
 0x11d   : > { %v802_v18 = vadd.f32 %v801_v42, %v800_v14 }
 0x11e   : > { %v494_v13 = vadd.f32 %v493_v43, %v492_v21 }
 0x11f   : > { %v804_v17 = vadd.f32 %v803_v51, %v802_v18 }
 0x120   : > { %v496_v31 = vadd.f32 %v495_v55, %v494_v13 }
 0x121   : > { %v806_v6 = vadd.f32 %v805_v63, %v804_v17 }
 0x122   : > { %v498_v9 = vadd.f32 %v497_v2, %v496_v31  ;;  %v3974_v31 = vld [vmem:[#allocation12_spill] sm:$0xff] }
 0x123   : > { %v808_v56 = vadd.f32 %v807_v61, %v806_v6  ;;  %v3978_v61 = vld [vmem:[#allocation20_spill] sm:$0xff] }
 0x124   : > { %v500_v0 = vadd.f32 %v499_v53, %v498_v9  ;;  %v3979_v53 = vld [vmem:[#allocation22_spill] sm:$0xff] }
 0x125   : > { %v810_v52 = vadd.f32 %v809_v41, %v808_v56  ;;  %v3980_v41 = vld [vmem:[#allocation2_spill] sm:$0xff] }
 0x126   : > { %v502_v10 = vadd.f32 %v501_v33, %v500_v0 }
 0x127   : > { %v812_v39 = vadd.f32 %v811_v29, %v810_v52  ;;  %v3981_v52 = vld [vmem:[#allocation3_spill] sm:$0xff]  ;;  %v3983_v29 = vld [vmem:[#allocation5_spill] sm:$0xff] }
 0x128   : > { %v504_v47 = vadd.f32 %v503_v19, %v502_v10  ;;  %v3984_v19 = vld [vmem:[#allocation6_spill] sm:$0xff] }
 0x129   : > { %v814_v58 = vadd.f32 %v813_v22, %v812_v39  ;;  %v3985_v22 = vld [vmem:[#allocation7_spill] sm:$0xff] }
 0x12a   : > { %v506_v49 = vadd.f32 %v505_v25, %v504_v47 }
 0x12b   : > { %v816_v38 = vadd.f32 %v815_v30, %v814_v58  ;;  %v3986_v58 = vld [vmem:[#allocation8_spill] sm:$0xff] }
 0x12c   : > { %v507_v59 = vrot.slane %v506_v49, 4 }
 0x12d   : > { %v817_v46 = vrot.slane %v816_v38, 4 }
 0x12e   : > { %v508_v44 = vadd.f32 %v507_v59, %v506_v49 }
 0x12f   : > { %v818_v3 = vadd.f32 %v817_v46, %v816_v38  ;;  %v3987_v38 = vld [vmem:[#allocation9_spill] sm:$0xff]  ;;  %v3988_v46 = vld [vmem:[#allocation10_spill] sm:$0xff] }
 0x130   : > { %v509_v54 = vrot.slane %v508_v44, 2 }
 0x131   : > { %v819_v1 = vrot.slane %v818_v3, 2 }
 0x132   : > { %v510_v50 = vadd.f32 %v509_v54, %v508_v44 }
 0x133   : > { %v820_v62 = vadd.f32 %v819_v1, %v818_v3  ;;  %v3989_v3 = vld [vmem:[#allocation11_spill] sm:$0xff]  ;;  %v3990_v1 = vld [vmem:[#allocation13_spill] sm:$0xff] }
 0x134   : > { %v511_v11 = vrot.slane %v510_v50, 1 }
 0x135   : > { %v821_v5 = vrot.slane %v820_v62, 1 }
 0x136   : > { %v512_v57 = vadd.f32 %v511_v11, %v510_v50 }
 0x137   : > { %v822_v15 = vadd.f32 %v821_v5, %v820_v62  ;;  %v3991_v62 = vld [vmem:[#allocation15_spill] sm:$0xff] }
 0x138   : > { %v2386_v26 = vmul.f32 0.00390625, %v512_v57  ;;  %v3992_v57 = vld [vmem:[#allocation17_spill] sm:$0xff] }
 0x139   : > { %v824_v23 = vmul.f32 0.00390625, %v822_v15 }
 0x13a   : > { %v825_v37 = vmul.f32 %v2386_v26, %v2386_v26  ;;  %v839_v21 = vsub.f32 %v1989_v4, %v2386_v26  ;;  %v840_v43 = vsub.f32 %v2004_v8, %v2386_v26  ;;  %v841_v18 = vsub.f32 %v2020_v12, %v2386_v26 }
 0x13b   : > { %v842_v13 = vsub.f32 %v2036_v16, %v2386_v26  ;;  %v843_v55 = vsub.f32 %v2052_v20, %v2386_v26  ;;  %v844_v17 = vsub.f32 %v2068_v24, %v2386_v26  ;;  %v845_v4 = vsub.f32 %v2084_v28, %v2386_v26  ;;  %v871_v24 = vld [vmem:[%s3883_s1] sm:$0x1] }
 0x13c   : > { %v826_v27 = vsub.f32 %v824_v23, %v825_v37  ;;  %v846_v8 = vsub.f32 %v2100_v32, %v2386_v26  ;;  %v847_v12 = vsub.f32 %v2116_v36, %v2386_v26  ;;  %v848_v16 = vsub.f32 %v2132_v40, %v2386_v26  ;;  %v3975_v28 = vld [vmem:[#allocation14_spill] sm:$0xff]  ;;  %v3976_v32 = vld [vmem:[#allocation16_spill] sm:$0xff]  ;;  %v3993_v23 = vld [vmem:[#allocation19_spill] sm:$0xff] }
 0x13d   : > { %v849_v20 = vsub.f32 %v3974_v31, %v2386_v26  ;;  %v850_v2 = vsub.f32 %v3975_v28, %v2386_v26  ;;  %v851_v6 = vsub.f32 %v3976_v32, %v2386_v26  ;;  %v3977_v36 = vld [vmem:[#allocation18_spill] sm:$0xff]  ;;  %v853_v40 = vsub.f32 %v3978_v61, %v2386_v26 }
 0x13e   : > { %v827_v7 = vmax.f32 %v826_v27, 0.0  ;;  %v852_v9 = vsub.f32 %v3977_v36, %v2386_v26  ;;  %v854_v0 = vsub.f32 %v3979_v53, %v2386_v26  ;;  %v855_v48 = vsub.f32 %v3980_v41, %v2386_v26  ;;  %v3994_v27 = vld [vmem:[#allocation21_spill] sm:$0xff] }
 0x13f   : > { %v856_v33 = vsub.f32 %v3981_v52, %v2386_v26  ;;  %v857_v10 = vsub.f32 %v3982_v35, %v2386_v26  ;;  %v858_v39 = vsub.f32 %v3983_v29, %v2386_v26  ;;  %v859_v25 = vsub.f32 %v3984_v19, %v2386_v26 }
 0x140   : > { %v828_v45 = vadd.f32 1e-06, %v827_v7  ;;  %v860_v30 = vsub.f32 %v3985_v22, %v2386_v26  ;;  %v861_v49 = vsub.f32 %v3986_v58, %v2386_v26  ;;  %v862_v59 = vsub.f32 %v3987_v38, %v2386_v26 }
 0x141   : > { %v863_v44 = vsub.f32 %v3988_v46, %v2386_v26  ;;  %v864_v54 = vsub.f32 %v3989_v3, %v2386_v26  ;;  %v865_v50 = vsub.f32 %v3990_v1, %v2386_v26  ;;  %v866_v11 = vsub.f32 %v3991_v62, %v2386_v26 }
 0x142   : > { %1795 = vrsqrt.f32 %v828_v45  ;;  %vm835_vm2 = vweird.f32 %v828_v45  ;;  %v867_v15 = vsub.f32 %v3992_v57, %v2386_v26  ;;  %v868_v37 = vsub.f32 %v3993_v23, %v2386_v26 }
 0x143   : > { %v869_v7 = vsub.f32 %v3994_v27, %v2386_v26 }
 0x148   : > { %v1796_v34 = vpop.eup %1795 }
 0x149   : > { %v830_v14 = vmul.f32 %v1796_v34, %v828_v45  ;;  %vm836_vm1 = vweird.f32 %v1796_v34  ;;  %v3995_v45 = vld [vmem:[#allocation23_spill] sm:$0xff] }
 0x14a   : > { %vm837_vm3 = vmor %vm835_vm2, %vm836_vm1 }
 0x14b   : > { %v831_v60 = vmul.f32 %v1796_v34, %v830_v14 }
 0x14d   : > { %v832_v42 = vmul.f32 0.5, %v831_v60 }
 0x14f   : > { %v833_v51 = vsub.f32 1.5, %v832_v42 }
 0x151   : > { %v834_v63 = vmul.f32 %v1796_v34, %v833_v51 }
 0x153   : > { %v838_v56 = vsel %vm837_vm3, %v1796_v34, %v834_v63  ;;  %v870_v34 = vsub.f32 %v3995_v45, %v2386_v26 }
 0x154   : > { %v872_v47 = vmul.f32 %v871_v24, %v838_v56 }
 0x156   : > { %v873_v5 = vperm.slane %v872_v47, 0 }
 0x158   : > { %v874_v14 = vmul.f32 %v873_v5, %v839_v21  ;;  %v875_v60 = vmul.f32 %v873_v5, %v840_v43  ;;  %v876_v42 = vmul.f32 %v873_v5, %v841_v18  ;;  %v877_v51 = vmul.f32 %v873_v5, %v842_v13 }
 0x159   : > { %v878_v63 = vmul.f32 %v873_v5, %v843_v55  ;;  %v879_v31 = vmul.f32 %v873_v5, %v844_v17  ;;  %v880_v24 = vmul.f32 %v873_v5, %v845_v4  ;;  %v881_v28 = vmul.f32 %v873_v5, %v846_v8 }
 0x15a   : > { %v882_v32 = vmul.f32 %v873_v5, %v847_v12  ;;  %v883_v36 = vmul.f32 %v873_v5, %v848_v16  ;;  %v884_v61 = vmul.f32 %v873_v5, %v849_v20  ;;  %v885_v56 = vmul.f32 %v873_v5, %v850_v2 }
 0x15b   : > { %v886_v53 = vmul.f32 %v873_v5, %v851_v6  ;;  %v887_v41 = vmul.f32 %v873_v5, %v852_v9  ;;  %v888_v52 = vmul.f32 %v873_v5, %v853_v40  ;;  %v889_v35 = vmul.f32 %v873_v5, %v854_v0  ;;  %v2486_v6 = vld [vmem:[%s3884_s2] ss:$0 sm:$0xff] }
 0x15c   : > { %v890_v29 = vmul.f32 %v873_v5, %v855_v48  ;;  %v891_v19 = vmul.f32 %v873_v5, %v856_v33  ;;  %v892_v47 = vmul.f32 %v873_v5, %v857_v10  ;;  %v2457_v26 = vmul.f32 %v873_v5, %v858_v39 }
 0x15d   : > { %v2459_v21 = vmul.f32 %v873_v5, %v859_v25  ;;  %v2461_v43 = vmul.f32 %v873_v5, %v860_v30  ;;  %v2463_v18 = vmul.f32 %v873_v5, %v861_v49  ;;  %v2465_v13 = vmul.f32 %v873_v5, %v862_v59 }
 0x15e   : > { %v2467_v55 = vmul.f32 %v873_v5, %v863_v44  ;;  %v2469_v17 = vmul.f32 %v873_v5, %v864_v54  ;;  %v2471_v4 = vmul.f32 %v873_v5, %v865_v50  ;;  %v2473_v8 = vmul.f32 %v873_v5, %v866_v11 }
 0x15f   : > { %v2475_v12 = vmul.f32 %v873_v5, %v867_v15  ;;  %v2477_v16 = vmul.f32 %v873_v5, %v868_v37  ;;  %v2479_v20 = vmul.f32 %v873_v5, %v869_v7  ;;  %v2481_v2 = vmul.f32 %v873_v5, %v870_v34 }
 0x160   : > { %v2489_v9 = vadd.f32 %v2486_v6, %v874_v14  ;;  %v2492_v40 = vadd.f32 %v2486_v6, %v875_v60  ;;  %v2495_v0 = vadd.f32 %v2486_v6, %v876_v42  ;;  %v2498_v48 = vadd.f32 %v2486_v6, %v877_v51 }
 0x161   : > { %v2501_v33 = vadd.f32 %v2486_v6, %v878_v63  ;;  %v2505_v39 = vadd.f32 %v2486_v6, %v879_v31  ;;  %v2509_v22 = vadd.f32 %v2486_v6, %v880_v24  ;;  %v2513_v58 = vadd.f32 %v2486_v6, %v881_v28 }
 0x162   : > { %3996 = vst [vmem:[#allocation12_spill] sm:$0xff] %v2489_v9  ;;  %v1742_v10 = vmul.f32 -1.442695, %v2489_v9  ;;  %v1743_v25 = vmul.f32 -1.442695, %v2492_v40  ;;  %v2517_v38 = vadd.f32 %v2486_v6, %v882_v32  ;;  %v2521_v46 = vadd.f32 %v2486_v6, %v883_v36 }
 0x163   : > { %3997 = vst [vmem:[#allocation14_spill] sm:$0xff] %v2492_v40  ;;  %v1744_v30 = vmul.f32 -1.442695, %v2495_v0  ;;  %v1745_v49 = vmul.f32 -1.442695, %v2498_v48  ;;  %v2525_v3 = vadd.f32 %v2486_v6, %v884_v61  ;;  %v2529_v1 = vadd.f32 %v2486_v6, %v885_v56 }
 0x164   : > { %3998 = vst [vmem:[#allocation16_spill] sm:$0xff] %v2495_v0  ;;  %1797 = vpow2.f32 %v1742_v10  ;;  %v1746_v59 = vmul.f32 -1.442695, %v2501_v33  ;;  %v1747_v44 = vmul.f32 -1.442695, %v2505_v39  ;;  %v2533_v62 = vadd.f32 %v2486_v6, %v886_v53 }
 0x165   : > { %3999 = vst [vmem:[#allocation18_spill] sm:$0xff] %v2498_v48  ;;  %1799 = vpow2.f32 %v1743_v25  ;;  %v1748_v54 = vmul.f32 -1.442695, %v2509_v22  ;;  %v1749_v50 = vmul.f32 -1.442695, %v2513_v58  ;;  %v2537_v5 = vadd.f32 %v2486_v6, %v887_v41 }
 0x166   : > { %4000 = vst [vmem:[#allocation20_spill] sm:$0xff] %v2501_v33  ;;  %1801 = vpow2.f32 %v1744_v30  ;;  %v1750_v11 = vmul.f32 -1.442695, %v2517_v38  ;;  %v1751_v57 = vmul.f32 -1.442695, %v2521_v46  ;;  %v2541_v23 = vadd.f32 %v2486_v6, %v888_v52 }
 0x167   : > { %4001 = vst [vmem:[#allocation22_spill] sm:$0xff] %v2505_v39  ;;  %1803 = vpow2.f32 %v1745_v49  ;;  %v1752_v37 = vmul.f32 -1.442695, %v2525_v3  ;;  %v2545_v7 = vadd.f32 %v2486_v6, %v889_v35  ;;  %v1753_v45 = vmul.f32 -1.442695, %v2529_v1 }
 0x168   : > { %4002 = vst [vmem:[#allocation2_spill] sm:$0xff] %v2509_v22  ;;  %1805 = vpow2.f32 %v1746_v59  ;;  %v2551_v14 = vadd.f32 %v2486_v6, %v890_v29  ;;  %v1754_v60 = vmul.f32 -1.442695, %v2533_v62  ;;  %v2557_v51 = vadd.f32 %v2486_v6, %v891_v19 }
 0x169   : > { %4003 = vst [vmem:[#allocation3_spill] sm:$0xff] %v2513_v58  ;;  %1807 = vpow2.f32 %v1747_v44  ;;  %v1755_v63 = vmul.f32 -1.442695, %v2537_v5  ;;  %v2563_v24 = vadd.f32 %v2486_v6, %v892_v47  ;;  %v1756_v28 = vmul.f32 -1.442695, %v2541_v23 }
 0x16a   : > { %4004 = vst [vmem:[#allocation4_spill] sm:$0xff] %v2517_v38  ;;  %v1798_v15 = vpop.eup %1797  ;;  %1809 = vpow2.f32 %v1748_v54  ;;  %v2570_v36 = vadd.f32 %v2486_v6, %v2457_v26  ;;  %v1757_v61 = vmul.f32 -1.442695, %v2545_v7  ;;  %v2577_v53 = vadd.f32 %v2486_v6, %v2459_v21 }
 0x16b   : > { %4005 = vst [vmem:[#allocation5_spill] sm:$0xff] %v2521_v46  ;;  %v1800_v27 = vpop.eup %1799  ;;  %1811 = vpow2.f32 %v1749_v50  ;;  %v1758_v41 = vmul.f32 -1.442695, %v2551_v14  ;;  %v2584_v35 = vadd.f32 %v2486_v6, %v2461_v43  ;;  %v1759_v29 = vmul.f32 -1.442695, %v2557_v51 }
 0x16c   : > { %4006 = vst [vmem:[#allocation6_spill] sm:$0xff] %v2525_v3  ;;  %v2548_v34 = vpop.eup %1801  ;;  %1813 = vpow2.f32 %v1750_v11  ;;  %v2591_v47 = vadd.f32 %v2486_v6, %v2463_v18  ;;  %v1760_v26 = vmul.f32 -1.442695, %v2563_v24  ;;  %v2598_v10 = vadd.f32 %v2486_v6, %v2465_v13 }
 0x16d   : > { %4007 = vst [vmem:[#allocation7_spill] sm:$0xff] %v2529_v1  ;;  %v2554_v42 = vpop.eup %1803  ;;  %1815 = vpow2.f32 %v1751_v57  ;;  %v1761_v43 = vmul.f32 -1.442695, %v2570_v36  ;;  %v2605_v30 = vadd.f32 %v2486_v6, %v2467_v55  ;;  %v1762_v18 = vmul.f32 -1.442695, %v2577_v53 }
 0x16e   : > { %4008 = vst [vmem:[#allocation8_spill] sm:$0xff] %v2533_v62  ;;  %v2560_v31 = vpop.eup %1805  ;;  %1817 = vpow2.f32 %v1752_v37  ;;  %v2612_v59 = vadd.f32 %v2486_v6, %v2469_v17  ;;  %v2616_v13 = vadd.f32 %v2486_v6, %v2471_v4  ;;  %v1763_v44 = vmul.f32 -1.442695, %v2584_v35 }
 0x16f   : > { %4009 = vst [vmem:[#allocation9_spill] sm:$0xff] %v2537_v5  ;;  %v2566_v32 = vpop.eup %1807  ;;  %1819 = vpow2.f32 %v1753_v45  ;;  %v2623_v55 = vadd.f32 %v2486_v6, %v2473_v8  ;;  %v2627_v50 = vadd.f32 %v2486_v6, %v2475_v12  ;;  %v1764_v17 = vmul.f32 -1.442695, %v2591_v47 }
 0x170   : > { %4010 = vst [vmem:[#allocation10_spill] sm:$0xff] %v2541_v23  ;;  %v2573_v56 = vpop.eup %1809  ;;  %1821 = vpow2.f32 %v1754_v60  ;;  %v2634_v4 = vadd.f32 %v2486_v6, %v2477_v16  ;;  %v1765_v57 = vmul.f32 -1.442695, %v2598_v10  ;;  %v2637_v37 = vadd.f32 1.0, %v1798_v15 }
 0x171   : > { %4011 = vst [vmem:[#allocation11_spill] sm:$0xff] %v2545_v7  ;;  %v2580_v52 = vpop.eup %1811  ;;  %1823 = vpow2.f32 %v1755_v63  ;;  %v2643_v12 = vadd.f32 %v2486_v6, %v2479_v20  ;;  %v1766_v45 = vmul.f32 -1.442695, %v2605_v30  ;;  %v2646_v60 = vadd.f32 1.0, %v1800_v27 }
 0x172   : > { %4012 = vst [vmem:[#allocation13_spill] sm:$0xff] %v2551_v14  ;;  %v2587_v19 = vpop.eup %1813  ;;  %1825 = vpow2.f32 %v1756_v28  ;;  %v2650_v16 = vadd.f32 %v2486_v6, %v2481_v2  ;;  %v1767_v15 = vmul.f32 -1.442695, %v2612_v59  ;;  %v1769_v20 = vmul.f32 -1.442695, %v2623_v55 }
 0x173   : > { %4013 = vst [vmem:[#allocation15_spill] sm:$0xff] %v2557_v51  ;;  %v2594_v21 = vpop.eup %1815  ;;  %1827 = vpow2.f32 %v1757_v61  ;;  %v1768_v61 = vmul.f32 -1.442695, %v2616_v13  ;;  %v2657_v27 = vmul.f32 -1.442695, %v2634_v4  ;;  %v1081_v2 = vand.u32 2147483648, %v2637_v37 }
 0x174   : > { %4014 = vst [vmem:[#allocation17_spill] sm:$0xff] %v2563_v24  ;;  %v2601_v25 = vpop.eup %1817  ;;  %1829 = vpow2.f32 %v1758_v41  ;;  %v1770_v41 = vmul.f32 -1.442695, %v2627_v50  ;;  %vm1075_vm4 = vweird.f32 %v2637_v37  ;;  %vm1090_vm5 = vweird.f32 %v2646_v60 }
 0x175   : > { %4015 = vst [vmem:[#allocation19_spill] sm:$0xff] %v2570_v36  ;;  %v2608_v49 = vpop.eup %1819  ;;  %1831 = vpow2.f32 %v1759_v29 }
 0x176   : > { %4016 = vst [vmem:[#allocation21_spill] sm:$0xff] %v2577_v53  ;;  %v2619_v54 = vpop.eup %1821  ;;  %1833 = vpow2.f32 %v1760_v26  ;;  %v2660_v26 = vadd.f32 1.0, %v2548_v34  ;;  %v2674_v34 = vadd.f32 1.0, %v2560_v31 }
 0x177   : > { %4017 = vst [vmem:[#allocation23_spill] sm:$0xff] %v2584_v35  ;;  %v2630_v11 = vpop.eup %1823  ;;  %1835 = vpow2.f32 %v1761_v43  ;;  %v2664_v43 = vmul.f32 -1.442695, %v2643_v12 }
 0x178   : > { %4018 = vst [vmem:[#allocation24_spill] sm:$0xff] %v2591_v47  ;;  %v2639_v8 = vpop.eup %1825  ;;  %1837 = vpow2.f32 %v1762_v18  ;;  %v2667_v18 = vadd.f32 1.0, %v2554_v42  ;;  %v2681_v42 = vadd.f32 1.0, %v2573_v56  ;;  %v1111_v31 = vand.u32 2147483648, %v2660_v26 }
 0x179   : > { %4019 = vst [vmem:[#allocation25_spill] sm:$0xff] %v2598_v10  ;;  %v1828_v63 = vpop.eup %1827  ;;  %1839 = vpow2.f32 %v1763_v44  ;;  %v1096_v44 = vand.u32 2147483648, %v2646_v60  ;;  %v2718_v47 = vadd.f32 1.0, %v2630_v11  ;;  %vm1105_vm6 = vweird.f32 %v2660_v26 }
 0x17a   : > { %4020 = vst [vmem:[#allocation26_spill] sm:$0xff] %v2605_v30  ;;  %v1830_v28 = vpop.eup %1829  ;;  %1841 = vpow2.f32 %v1764_v17  ;;  %v1126_v56 = vand.u32 2147483648, %v2667_v18  ;;  %vm1120_vm7 = vweird.f32 %v2667_v18  ;;  %vm1135_vm8 = vweird.f32 %v2674_v34 }
 0x17b   : > { %4021 = vst [vmem:[#allocation27_spill] sm:$0xff] %v2612_v59  ;;  %v1832_v29 = vpop.eup %1831  ;;  %1843 = vpow2.f32 %v1765_v57  ;;  %v2671_v57 = vmul.f32 -1.442695, %v2650_v16  ;;  %v1141_v59 = vand.u32 2147483648, %v2674_v34  ;;  %v2733_v11 = vadd.f32 1.0, %v1830_v28 }
 0x17c   : > { %4022 = vst [vmem:[#allocation28_spill] sm:$0xff] %v2616_v13  ;;  %v1834_v6 = vpop.eup %1833  ;;  %1845 = vpow2.f32 %v1766_v45  ;;  %v2678_v45 = vadd.f32 1.0, %v2566_v32  ;;  %v2694_v32 = vor.u32 1.1754944e-38, %v1096_v44 }
 0x17d   : > { %4023 = vst [vmem:[#allocation29_spill] sm:$0xff] %v2623_v55  ;;  %v1836_v17 = vpop.eup %1835  ;;  %1847 = vpow2.f32 %v1767_v15  ;;  %v2685_v15 = vadd.f32 1.0, %v2580_v52  ;;  %v2701_v52 = vadd.f32 1.0, %v2601_v25  ;;  %v2714_v25 = vor.u32 1.1754944e-38, %v1111_v31 }
 0x17e   : > { %4024 = vst [vmem:[#allocation30_spill] sm:$0xff] %v2627_v50  ;;  %v1838_v50 = vpop.eup %1837  ;;  %1849 = vpow2.f32 %v1768_v61  ;;  %v2691_v61 = vadd.f32 1.0, %v2587_v19  ;;  %v2706_v19 = vadd.f32 1.0, %v2608_v49  ;;  %v1156_v10 = vand.u32 2147483648, %v2678_v45 }
 0x17f   : > { %4025 = vst [vmem:[#allocation31_spill] sm:$0xff] %v2634_v4  ;;  %v1840_v55 = vpop.eup %1839  ;;  %1851 = vpow2.f32 %v1769_v20  ;;  %v2698_v20 = vadd.f32 1.0, %v2594_v21  ;;  %v2712_v21 = vadd.f32 1.0, %v2619_v54  ;;  %v2721_v49 = vor.u32 1.1754944e-38, %v1126_v56 }
 0x180   : > { %4026 = vst [vmem:[#allocation32_spill] sm:$0xff] %v2643_v12  ;;  %v1842_v4 = vpop.eup %1841  ;;  %1853 = vrcp.f32 %v2637_v37  ;;  %v2727_v54 = vadd.f32 1.0, %v1828_v63  ;;  %v2735_v36 = vor.u32 1.1754944e-38, %v1141_v59  ;;  %v1171_v56 = vand.u32 2147483648, %v2681_v42 }
 0x181   : > { %4027 = vst [vmem:[#allocation33_spill] sm:$0xff] %v2650_v16  ;;  %v2687_v16 = vor.u32 1.1754944e-38, %v1081_v2  ;;  %v1844_v12 = vpop.eup %1843  ;;  %1855 = vrcp.f32 %v2646_v60  ;;  %v2743_v63 = vadd.f32 1.0, %v1834_v6  ;;  %v2745_v24 = vor.u32 1.1754944e-38, %v1156_v10 }
 0x182   : > { %v1846_v13 = vpop.eup %1845  ;;  %1857 = vrcp.f32 %v2660_v26  ;;  %v2751_v59 = vadd.f32 1.0, %v1836_v17  ;;  %v1186_v51 = vand.u32 2147483648, %v2685_v15  ;;  %v2758_v6 = vadd.f32 1.0, %v1840_v55 }
 0x183   : > { %v1848_v30 = vpop.eup %1847  ;;  %1859 = vpow2.f32 %v1770_v41  ;;  %v2725_v41 = vadd.f32 1.0, %v2639_v8  ;;  %v2741_v8 = vadd.f32 1.0, %v1832_v29  ;;  %v2756_v29 = vadd.f32 1.0, %v1838_v50 }
 0x184   : > { %v1850_v2 = vpop.eup %1849  ;;  %1861 = vrcp.f32 %v2667_v18  ;;  %4028 = vst [vmem:[#allocation34_spill] sm:$0xff] %v2758_v6  ;;  %v2768_v28 = vor.u32 1.1754944e-38, %v1171_v56  ;;  %v2772_v50 = vadd.f32 1.0, %v1842_v4  ;;  %v2780_v10 = vadd.f32 1.0, %v1844_v12 }
 0x185   : > { %v1852_v35 = vpop.eup %1851  ;;  %1863 = vrcp.f32 %v2674_v34  ;;  %v2782_v5 = vor.u32 1.1754944e-38, %v1186_v51  ;;  %v2788_v4 = vadd.f32 1.0, %v1846_v13  ;;  %v2790_v1 = vadd.f32 1.0, %v1848_v30 }
 0x186   : > { %v2731_v53 = vpop.eup %1853  ;;  %1865 = vrcp.f32 %v2678_v45  ;;  %4029 = vst [vmem:[#allocation35_spill] sm:$0xff] %v2772_v50  ;;  %v1216_v3 = vand.u32 2147483648, %v2698_v20  ;;  %v2794_v38 = vadd.f32 1.0, %v1850_v2  ;;  %v2805_v48 = vadd.f32 1.0, %v1852_v35 }
 0x187   : > { %v2739_v44 = vpop.eup %1855  ;;  %1867 = vrcp.f32 %v2681_v42  ;;  %4030 = vst [vmem:[#allocation36_spill] sm:$0xff] %v2780_v10  ;;  %vm1076_vm9 = vweird.f32 %v2731_v53  ;;  %vm1180_vm2 = vweird.f32 %v2685_v15 }
 0x188   : > { %v2748_v31 = vpop.eup %1857  ;;  %1869 = vpow2.f32 %v2657_v27  ;;  %v1071_v27 = vmul.f32 %v2731_v53, %v2637_v37  ;;  %v1086_v17 = vmul.f32 %v2739_v44, %v2646_v60  ;;  %4031 = vst [vmem:[#allocation37_spill] sm:$0xff] %v2788_v4  ;;  %vm1091_vm11 = vweird.f32 %v2739_v44  ;;  %vm2883_vm3 = vmor %vm1075_vm4, %vm1076_vm9 }
 0x189   : > { %v1860_v14 = vpop.eup %1859  ;;  %1871 = vpow2.f32 %v2664_v43  ;;  %v1101_v55 = vmul.f32 %v2748_v31, %v2660_v26  ;;  %v1201_v43 = vand.u32 2147483648, %v2691_v61  ;;  %4032 = vst [vmem:[#allocation38_spill] sm:$0xff] %v2790_v1  ;;  %vm1106_vm13 = vweird.f32 %v2748_v31  ;;  %vm2897_vm14 = vmor %vm1090_vm5, %vm1091_vm11 }
 0x18a   : > { %v2761_v7 = vpop.eup %1861  ;;  %1873 = vpow2.f32 %v2671_v57  ;;  %4033 = vst [vmem:[#allocation39_spill] sm:$0xff] %v2794_v38  ;;  %v1072_v12 = vsub.f32 1.0, %v1071_v27  ;;  %v1087_v51 = vsub.f32 1.0, %v1086_v17  ;;  %v2807_v2 = vadd.f32 1.0, %v1860_v14  ;;  %vm2924_vm5 = vmor %vm1105_vm6, %vm1106_vm13 }
 0x18b   : > { %v2770_v23 = vpop.eup %1863  ;;  %1875 = vrcp.f32 %v2685_v15  ;;  %v1102_v39 = vsub.f32 1.0, %v1101_v55  ;;  %v1116_v56 = vmul.f32 %v2761_v7, %v2667_v18  ;;  %v2801_v13 = vor.u32 1.1754944e-38, %v1201_v43  ;;  %4034 = vst [vmem:[#allocation40_spill] sm:$0xff] %v2805_v48 }
 0x18c   : > { %v2778_v57 = vpop.eup %1865  ;;  %1877 = vrcp.f32 %v2691_v61  ;;  %v1131_v30 = vmul.f32 %v2770_v23, %v2674_v34  ;;  %4035 = vst [vmem:[#allocation41_spill] sm:$0xff] %v2807_v2  ;;  %v2819_v43 = vor.u32 1.1754944e-38, %v1216_v3  ;;  %v1073_v40 = vmul.f32 %v2731_v53, %v1072_v12 }
 0x18d   : > { %v2786_v62 = vpop.eup %1867  ;;  %1879 = vrcp.f32 %v2698_v20  ;;  %v1146_v27 = vmul.f32 %v2778_v57, %v2678_v45  ;;  %v1088_v9 = vmul.f32 %v2739_v44, %v1087_v51  ;;  %v1103_v3 = vmul.f32 %v2748_v31, %v1102_v39 }
 0x18e   : > { %v1870_v46 = vpop.eup %1869  ;;  %v1161_v17 = vmul.f32 %v2786_v62, %v2681_v42  ;;  %1881 = vrcp.f32 %v2701_v52  ;;  %v1117_v2 = vsub.f32 1.0, %v1116_v56  ;;  %v1132_v14 = vsub.f32 1.0, %v1131_v30 }
 0x18f   : > { %v1872_v22 = vpop.eup %1871  ;;  %v2816_v58 = vadd.f32 1.0, %v1870_v46  ;;  %v4038_v46 = vand.u32 2147483647, %v2637_v37  ;;  %v4041_v56 = vand.u32 2147483647, %v2646_v60  ;;  %vm1121_vm1 = vweird.f32 %v2761_v7 }
 0x190   : > { %v2803_v33 = vpop.eup %1873  ;;  %v2825_v0 = vadd.f32 1.0, %v1872_v22  ;;  %v1147_v22 = vsub.f32 1.0, %v1146_v27  ;;  %v1162_v12 = vsub.f32 1.0, %v1161_v17  ;;  %v1074_v17 = vadd.f32 %v2731_v53, %v1073_v40  ;;  %vm2945_vm6 = vmor %vm1120_vm7, %vm1121_vm1 }
 0x191   : > { %v2814_v55 = vpop.eup %1875  ;;  %4036 = vst [vmem:[#allocation42_spill] sm:$0xff] %v2816_v58  ;;  %vm2843_vm10 = vcmp.eq.f32.partialorder %v4038_v46, 8.507059e+37  ;;  %vm2850_vm12 = vcmp.eq.f32.partialorder %v4041_v56, 8.507059e+37  ;;  %v1089_v46 = vadd.f32 %v2739_v44, %v1088_v9  ;;  %v4044_v48 = vand.u32 2147483647, %v2660_v26 }
 0x192   : > { %v2823_v35 = vpop.eup %1877  ;;  %4037 = vst [vmem:[#allocation43_spill] sm:$0xff] %v2825_v0  ;;  %v1176_v51 = vmul.f32 %v2814_v55, %v2685_v15  ;;  %v1246_v0 = vand.u32 2147483648, %v2706_v19  ;;  %v1104_v4 = vadd.f32 %v2748_v31, %v1103_v3  ;;  %v1118_v40 = vmul.f32 %v2761_v7, %v1117_v2 }
 0x193   : > { %v2831_v58 = vpop.eup %1879  ;;  %v1191_v27 = vmul.f32 %v2823_v35, %v2691_v61  ;;  %vm2862_vm15 = vcmp.eq.f32.partialorder %v4044_v48, 8.507059e+37  ;;  %v1133_v9 = vmul.f32 %v2770_v23, %v1132_v14  ;;  %1883 = vrcp.f32 %v2706_v19 }
 0x194   : > { %v1206_v56 = vmul.f32 %v2831_v58, %v2698_v20  ;;  %v2870_v1 = vpop.eup %1881  ;;  %v1148_v48 = vmul.f32 %v2778_v57, %v1147_v22  ;;  %v1163_v10 = vmul.f32 %v2786_v62, %v1162_v12  ;;  %v1177_v50 = vsub.f32 1.0, %v1176_v51 }
 0x195   : > { %1885 = vrcp.f32 %v2712_v21  ;;  %vm1136_vm0 = vweird.f32 %v2770_v23  ;;  %v1192_v2 = vsub.f32 1.0, %v1191_v27  ;;  %v1078_v14 = vsel %vm2883_vm3, %v2731_v53, %v1074_v17 }
 0x196   : > { %1887 = vrcp.f32 %v2718_v47  ;;  %v4051_v3 = vand.u32 2147483647, %v2667_v18  ;;  %v4054_v12 = vand.u32 2147483647, %v2674_v34  ;;  %vm1166_vm3 = vweird.f32 %v2786_v62  ;;  %vm2968_vm7 = vmor %vm1135_vm8, %vm1136_vm0 }
 0x197   : > { %v1207_v53 = vsub.f32 1.0, %v1206_v56  ;;  %v1221_v60 = vmul.f32 %v2870_v1, %v2701_v52  ;;  %v1093_v6 = vsel %vm2897_vm14, %v2739_v44, %v1089_v46  ;;  %v1119_v17 = vadd.f32 %v2761_v7, %v1118_v40 }
 0x198   : > { %vm2903_vm4 = vcmp.eq.f32.partialorder %v4051_v3, 8.507059e+37  ;;  %vm2909_vm9 = vcmp.eq.f32.partialorder %v4054_v12, 8.507059e+37  ;;  %v1134_v3 = vadd.f32 %v2770_v23, %v1133_v9  ;;  %v4059_v56 = vand.u32 2147483647, %v2678_v45 }
 0x199   : > { %vm1195_vm14 = vweird.f32 %v2691_v61  ;;  %1889 = vrcp.f32 %v2725_v41  ;;  %v1108_v26 = vsel %vm2924_vm5, %v2748_v31, %v1104_v4  ;;  %v1149_v46 = vadd.f32 %v2778_v57, %v1148_v48  ;;  %v2959_v4 = vpop.eup %1883 }
 0x19a   : > { %vm2932_vm11 = vcmp.eq.f32.partialorder %v4059_v56, 8.507059e+37  ;;  %v1164_v40 = vadd.f32 %v2786_v62, %v1163_v10  ;;  %v4064_v9 = vand.u32 2147483647, %v2681_v42  ;;  %v1178_v31 = vmul.f32 %v2814_v55, %v1177_v50 }
 0x19b   : > { %v2962_v18 = vadd.f32 1.0, %v2803_v33  ;;  %v1193_v48 = vmul.f32 %v2823_v35, %v1192_v2  ;;  %v4069_v27 = vand.u32 2147483648, %v2701_v52  ;;  %v2977_v56 = vor.u32 1.1754944e-38, %v1246_v0 }
 0x19c   : > { %vm2953_vm13 = vcmp.eq.f32.partialorder %v4064_v9, 8.507059e+37  ;;  %v2979_v9 = vpop.eup %1885  ;;  %v2984_v33 = vsel %vm2843_vm10, %v2687_v16, %v1078_v14  ;;  %v2989_v34 = vsel %vm2850_vm12, %v2694_v32, %v1093_v6  ;;  %vm4070_vm0 = vweird.f32 %v2778_v57 }
 0x19d   : > { %v2975_v50 = vor.u32 1.1754944e-38, %v4069_v27  ;;  %vm4071_vm8 = vweird.f32 %v2678_v45  ;;  %v4074_v0 = vand.u32 2147483647, %v2685_v15  ;;  %v1208_v16 = vmul.f32 %v2831_v58, %v1207_v53  ;;  %v3006_v30 = vpop.eup %1887 }
 0x19e   : > { %vm2995_vm1 = vmor %vm4071_vm8, %vm4070_vm0  ;;  %v1222_v39 = vsub.f32 1.0, %v1221_v60  ;;  %v3011_v32 = vsel %vm2862_vm15, %v2714_v25, %v1108_v26  ;;  %v1123_v45 = vsel %vm2945_vm6, %v2761_v7, %v1119_v17  ;;  %v1138_v14 = vsel %vm2968_vm7, %v2770_v23, %v1134_v3 }
 0x19f   : > { %vm3001_vm5 = vcmp.eq.f32.partialorder %v4074_v0, 8.507059e+37  ;;  %vm4077_vm10 = vweird.f32 %v2681_v42  ;;  %vm1181_vm0 = vweird.f32 %v2814_v55  ;;  %v1153_v38 = vsel %vm2995_vm1, %v2778_v57, %v1149_v46 }
 0x1a0   : > { %vm3023_vm12 = vmor %vm4077_vm10, %vm1166_vm3  ;;  %v1179_v23 = vadd.f32 %v2814_v55, %v1178_v31  ;;  %v4080_v25 = vand.u32 2147483647, %v2691_v61  ;;  %v4083_v60 = vand.u32 2147483647, %v2698_v20  ;;  %vm1225_vm6 = vweird.f32 %v2701_v52 }
 0x1a1   : > { %v1168_v7 = vsel %vm3023_vm12, %v2786_v62, %v1164_v40  ;;  %v1236_v57 = vmul.f32 %v2959_v4, %v2706_v19  ;;  %v3050_v62 = vpop.eup %1889  ;;  %v1194_v17 = vadd.f32 %v2823_v35, %v1193_v48  ;;  %vm1196_vm7 = vweird.f32 %v2823_v35  ;;  %vm3076_vm1 = vmor %vm1180_vm2, %vm1181_vm0 }
 0x1a2   : > { %vm3037_vm15 = vcmp.eq.f32.partialorder %v4080_v25, 8.507059e+37  ;;  %vm3043_vm3 = vcmp.eq.f32.partialorder %v4083_v60, 8.507059e+37  ;;  %v1251_v3 = vmul.f32 %v2979_v9, %v2712_v21  ;;  %1891 = vrcp.f32 %v2727_v54 }
 0x1a3   : > { %v1209_v26 = vadd.f32 %v2831_v58, %v1208_v16  ;;  %vm1211_vm8 = vweird.f32 %v2831_v58  ;;  %v1223_v44 = vmul.f32 %v2870_v1, %v1222_v39  ;;  %v1266_v46 = vmul.f32 %v3006_v30, %v2718_v47 }
 0x1a4   : > { %v3065_v40 = vsel %vm2903_vm4, %v2721_v49, %v1123_v45  ;;  %v3070_v31 = vsel %vm2909_vm9, %v2735_v36, %v1138_v14  ;;  %v1261_v48 = vand.u32 2147483648, %v2712_v21  ;;  %1893 = vrcp.f32 %v2733_v11  ;;  %vm3092_vm4 = vmor %vm1195_vm14, %vm1196_vm7 }
 0x1a5   : > { %v3085_v49 = vsel %vm2932_vm11, %v2745_v24, %v1153_v38  ;;  %v1183_v36 = vsel %vm3076_vm1, %v2814_v55, %v1179_v23  ;;  %v4090_v22 = vand.u32 2147483647, %v2701_v52  ;;  %v1237_v2 = vsub.f32 1.0, %v1236_v57 }
 0x1a6   : > { %v1281_v24 = vmul.f32 %v3050_v62, %v2725_v41  ;;  %v3107_v55 = vsel %vm2953_vm13, %v2768_v28, %v1168_v7  ;;  %v1198_v61 = vsel %vm3092_vm4, %v2823_v35, %v1194_v17  ;;  %vm4093_vm9 = vweird.f32 %v2698_v20 }
 0x1a7   : > { %vm3098_vm2 = vcmp.eq.f32.partialorder %v4090_v22, 8.507059e+37  ;;  %vm3116_vm11 = vmor %vm4093_vm9, %vm1211_vm8  ;;  %vm1226_vm14 = vweird.f32 %v2870_v1  ;;  %v1252_v0 = vsub.f32 1.0, %v1251_v3  ;;  %v1224_v37 = vadd.f32 %v2870_v1, %v1223_v44 }
 0x1a8   : > { %v1213_v28 = vsel %vm3116_vm11, %v2831_v58, %v1209_v26  ;;  %vm1240_vm13 = vweird.f32 %v2706_v19  ;;  %v1267_v35 = vsub.f32 1.0, %v1266_v46  ;;  %1895 = vrcp.f32 %v2741_v8  ;;  %v3127_v16 = vpop.eup %1891 }
 0x1a9   : > { %v3132_v20 = vsel %vm3001_vm5, %v2782_v5, %v1183_v36  ;;  %vm1255_vm10 = vweird.f32 %v2712_v21  ;;  %v1259_v39 = vand.u32 2147483647, %v2712_v21  ;;  %v3136_v45 = vor.u32 1.1754944e-38, %v1261_v48  ;;  %vm3158_vm5 = vmor %vm1225_vm6, %vm1226_vm14 }
 0x1aa   : > { %v1238_v58 = vmul.f32 %v2959_v4, %v1237_v2  ;;  %vm1270_vm12 = vweird.f32 %v2718_v47  ;;  %v1274_v14 = vand.u32 2147483647, %v2718_v47  ;;  %v1276_v53 = vand.u32 2147483648, %v2718_v47  ;;  %v3142_v7 = vpop.eup %1893 }
 0x1ab   : > { %v1282_v38 = vsub.f32 1.0, %v1281_v24  ;;  %v3147_v5 = vsel %vm3037_vm15, %v2801_v13, %v1198_v61  ;;  %v3152_v27 = vsel %vm3043_vm3, %v2819_v43, %v1213_v28  ;;  %v1253_v25 = vmul.f32 %v2979_v9, %v1252_v0 }
 0x1ac   : > { %1897 = vrcp.f32 %v2743_v63  ;;  %v1228_v13 = vsel %vm3158_vm5, %v2870_v1, %v1224_v37  ;;  %vm1241_vm0 = vweird.f32 %v2959_v4  ;;  %v4098_v43 = vand.u32 2147483647, %v2706_v19 }
 0x1ad   : > { %v1268_v52 = vmul.f32 %v3006_v30, %v1267_v35  ;;  %v1296_v60 = vmul.f32 %v3127_v16, %v2727_v54  ;;  %vm1256_vm3 = vweird.f32 %v2979_v9  ;;  %vm3178_vm6 = vcmp.eq.f32.partialorder %v1259_v39, 8.507059e+37  ;;  %vm3212_vm4 = vmor %vm1240_vm13, %vm1241_vm0 }
 0x1ae   : > { %vm3170_vm15 = vcmp.eq.f32.partialorder %v4098_v43, 8.507059e+37  ;;  %v1289_v1 = vand.u32 2147483647, %v2725_v41  ;;  %v1291_v57 = vand.u32 2147483648, %v2725_v41  ;;  %1899 = vrcp.f32 %v2751_v59  ;;  %v3185_v17 = vpop.eup %1895  ;;  %vm3230_vm9 = vmor %vm1255_vm10, %vm1256_vm3  ;;  %v4116_v43 = vld [vmem:[#allocation35_spill] sm:$0xff] }
 0x1af   : > { %v1239_v3 = vadd.f32 %v2959_v4, %v1238_v58  ;;  %vm3188_vm7 = vcmp.eq.f32.partialorder %v1274_v14, 8.507059e+37  ;;  %v1277_v44 = vor.u32 1.1754944e-38, %v1276_v53  ;;  %v1283_v46 = vmul.f32 %v3050_v62, %v1282_v38 }
 0x1b0   : > { %v1311_v10 = vmul.f32 %v3142_v7, %v2733_v11  ;;  %v3198_v48 = vsel %vm3098_vm2, %v2975_v50, %v1228_v13  ;;  %v1254_v36 = vadd.f32 %v2979_v9, %v1253_v25  ;;  %vm1285_vm8 = vweird.f32 %v2725_v41  ;;  %v4113_v25 = vld [vmem:[#allocation34_spill] sm:$0xff] }
 0x1b1   : > { %v1306_v15 = vand.u32 2147483648, %v2727_v54  ;;  %v1269_v22 = vadd.f32 %v3006_v30, %v1268_v52  ;;  %vm1271_vm1 = vweird.f32 %v3006_v30  ;;  %v1297_v2 = vsub.f32 1.0, %v1296_v60 }
 0x1b2   : > { %1901 = vrcp.f32 %v2756_v29  ;;  %v3206_v24 = vpop.eup %1897  ;;  %vm3216_vm2 = vcmp.eq.f32.partialorder %v1289_v1, 8.507059e+37  ;;  %v1292_v61 = vor.u32 1.1754944e-38, %v1291_v57  ;;  %v1304_v12 = vand.u32 2147483647, %v2727_v54  ;;  %vm3246_vm13 = vmor %vm1270_vm12, %vm1271_vm1 }
 0x1b3   : > { %v1326_v0 = vmul.f32 %v3185_v17, %v2741_v8  ;;  %v1243_v28 = vsel %vm3212_vm4, %v2959_v4, %v1239_v3  ;;  %v1284_v37 = vadd.f32 %v3050_v62, %v1283_v46  ;;  %vm1286_vm11 = vweird.f32 %v3050_v62 }
 0x1b4   : > { %vm1300_vm14 = vweird.f32 %v2727_v54  ;;  %v1312_v35 = vsub.f32 1.0, %v1311_v10  ;;  %v3237_v39 = vpop.eup %1899  ;;  %v1258_v4 = vsel %vm3230_vm9, %v2979_v9, %v1254_v36  ;;  %v1307_v58 = vor.u32 1.1754944e-38, %v1306_v15  ;;  %vm3266_vm10 = vmor %vm1285_vm8, %vm1286_vm11 }
 0x1b5   : > { %v1319_v14 = vand.u32 2147483647, %v2733_v11  ;;  %v1321_v53 = vand.u32 2147483648, %v2733_v11  ;;  %v1273_v38 = vsel %vm3246_vm13, %v3006_v30, %v1269_v22  ;;  %v1298_v23 = vmul.f32 %v3127_v16, %v1297_v2 }
 0x1b6   : > { %v1341_v9 = vmul.f32 %v3206_v24, %v2743_v63  ;;  %1903 = vrcp.f32 %v4113_v25  ;;  %v3262_v47 = vsel %vm3170_vm15, %v2977_v56, %v1243_v28  ;;  %vm1315_vm12 = vweird.f32 %v2733_v11 }
 0x1b7   : > { %v1327_v30 = vsub.f32 1.0, %v1326_v0  ;;  %1905 = vrcp.f32 %v4116_v43  ;;  %v3277_v60 = vsel %vm3178_vm6, %v3136_v45, %v1258_v4  ;;  %v1288_v41 = vsel %vm3266_vm10, %v3050_v62, %v1284_v37  ;;  %v4125_v4 = vld [vmem:[#allocation36_spill] sm:$0xff] }
 0x1b8   : > { %v3272_v52 = vpop.eup %1901  ;;  %vm3282_vm5 = vcmp.eq.f32.partialorder %v1304_v12, 8.507059e+37  ;;  %v1313_v42 = vmul.f32 %v3142_v7, %v1312_v35  ;;  %v1356_v1 = vmul.f32 %v3237_v39, %v2751_v59  ;;  %v3291_v57 = vsel %vm3188_vm7, %v1277_v44, %v1273_v38  ;;  %v4128_v38 = vld [vmem:[#allocation37_spill] sm:$0xff] }
 0x1b9   : > { %vm1301_vm0 = vweird.f32 %v3127_v16  ;;  %v1334_v45 = vand.u32 2147483647, %v2741_v8  ;;  %v1336_v6 = vand.u32 2147483648, %v2741_v8  ;;  %v1299_v62 = vadd.f32 %v3127_v16, %v1298_v23 }
 0x1ba   : > { %vm3297_vm15 = vcmp.eq.f32.partialorder %v1319_v14, 8.507059e+37  ;;  %v1322_v46 = vor.u32 1.1754944e-38, %v1321_v53  ;;  %vm1330_vm3 = vweird.f32 %v2741_v8  ;;  %v1342_v10 = vsub.f32 1.0, %v1341_v9  ;;  %vm3322_vm8 = vmor %vm1300_vm14, %vm1301_vm0 }
 0x1bb   : > { %v3304_v26 = vsel %vm3216_vm2, %v1292_v61, %v1288_v41  ;;  %vm1316_vm6 = vweird.f32 %v3142_v7  ;;  %v1328_v44 = vmul.f32 %v3185_v17, %v1327_v30  ;;  %v1371_v36 = vmul.f32 %v3272_v52, %v2756_v29 }
 0x1bc   : > { %v3310_v15 = vpop.eup %1903  ;;  %v1314_v22 = vadd.f32 %v3142_v7, %v1313_v42  ;;  %vm1345_vm7 = vweird.f32 %v2743_v63  ;;  %v1349_v2 = vand.u32 2147483647, %v2743_v63  ;;  %v1351_v50 = vand.u32 2147483648, %v2743_v63  ;;  %vm3343_vm9 = vmor %vm1315_vm12, %vm1316_vm6 }
 0x1bd   : > { %v1357_v51 = vsub.f32 1.0, %v1356_v1  ;;  %v3316_v61 = vpop.eup %1905  ;;  %vm1331_vm1 = vweird.f32 %v3185_v17  ;;  %vm3327_vm4 = vcmp.eq.f32.partialorder %v1334_v45, 8.507059e+37  ;;  %v1337_v28 = vor.u32 1.1754944e-38, %v1336_v6 }
 0x1be   : > { %v1364_v19 = vand.u32 2147483647, %v2751_v59  ;;  %v1303_v37 = vsel %vm3322_vm8, %v3127_v16, %v1299_v62  ;;  %v1343_v35 = vmul.f32 %v3206_v24, %v1342_v10  ;;  %vm1360_vm2 = vweird.f32 %v2751_v59  ;;  %vm3372_vm13 = vmor %vm1330_vm3, %vm1331_vm1 }
 0x1bf   : > { %v1366_v54 = vand.u32 2147483648, %v2751_v59  ;;  %1907 = vrcp.f32 %v4125_v4  ;;  %v1329_v14 = vadd.f32 %v3185_v17, %v1328_v44  ;;  %v1372_v53 = vsub.f32 1.0, %v1371_v36 }
 0x1c0   : > { %v1386_v16 = vmul.f32 %v3310_v15, %v4113_v25  ;;  %1909 = vrcp.f32 %v4128_v38  ;;  %v1318_v23 = vsel %vm3343_vm9, %v3142_v7, %v1314_v22  ;;  %vm3354_vm11 = vcmp.eq.f32.partialorder %v1349_v2, 8.507059e+37  ;;  %v4135_v2 = vld [vmem:[#allocation38_spill] sm:$0xff] }
 0x1c1   : > { %v1352_v11 = vor.u32 1.1754944e-38, %v1351_v50  ;;  %v1358_v13 = vmul.f32 %v3237_v39, %v1357_v51  ;;  %v1401_v30 = vmul.f32 %v3316_v61, %v4116_v43  ;;  %v3363_v41 = vsel %vm3282_vm5, %v1307_v58, %v1303_v37 }
 0x1c2   : > { %vm1346_vm14 = vweird.f32 %v3206_v24  ;;  %v1379_v42 = vand.u32 2147483647, %v2756_v29  ;;  %v1381_v7 = vand.u32 2147483648, %v2756_v29  ;;  %v1344_v45 = vadd.f32 %v3206_v24, %v1343_v35 }
 0x1c3   : > { %vm3377_vm10 = vcmp.eq.f32.partialorder %v1364_v19, 8.507059e+37  ;;  %v1367_v58 = vor.u32 1.1754944e-38, %v1366_v54  ;;  %vm1375_vm12 = vweird.f32 %v2756_v29  ;;  %v3384_v6 = vsel %vm3297_vm15, %v1322_v46, %v1318_v23  ;;  %vm3401_vm0 = vmor %vm1345_vm7, %vm1346_vm14 }
 0x1c4   : > { %v1333_v8 = vsel %vm3372_vm13, %v3185_v17, %v1329_v14  ;;  %v1373_v62 = vmul.f32 %v3272_v52, %v1372_v53  ;;  %v1387_v10 = vsub.f32 1.0, %v1386_v16  ;;  %v1359_v36 = vadd.f32 %v3237_v39, %v1358_v13  ;;  %v4142_v53 = vld [vmem:[#allocation39_spill] sm:$0xff] }
 0x1c5   : > { %v3390_v44 = vpop.eup %1907  ;;  %vm1361_vm5 = vweird.f32 %v3237_v39  ;;  %v1402_v22 = vsub.f32 1.0, %v1401_v30  ;;  %1911 = vrcp.f32 %v4135_v2  ;;  %vm3405_vm15 = vcmp.eq.f32.partialorder %v1379_v42, 8.507059e+37 }
 0x1c6   : > { %v3395_v50 = vpop.eup %1909  ;;  %v1382_v46 = vor.u32 1.1754944e-38, %v1381_v7  ;;  %vm1390_vm3 = vweird.f32 %v4113_v25  ;;  %v1394_v51 = vand.u32 2147483647, %v4113_v25  ;;  %v1396_v12 = vand.u32 2147483648, %v4113_v25  ;;  %vm3423_vm6 = vmor %vm1360_vm2, %vm1361_vm5  ;;  %v4165_v25 = vld [vmem:[#allocation20_spill] sm:$0xff] }
 0x1c7   : > { %v3414_v19 = vsel %vm3327_vm4, %v1337_v28, %v1333_v8  ;;  %v1348_v63 = vsel %vm3401_vm0, %v3206_v24, %v1344_v45  ;;  %v1409_v37 = vand.u32 2147483647, %v4116_v43  ;;  %v1411_v35 = vand.u32 2147483648, %v4116_v43 }
 0x1c8   : > { %v1374_v21 = vadd.f32 %v3272_v52, %v1373_v62  ;;  %vm1376_vm7 = vweird.f32 %v3272_v52  ;;  %v1388_v0 = vmul.f32 %v3310_v15, %v1387_v10  ;;  %v1416_v28 = vmul.f32 %v3390_v44, %v4125_v4 }
 0x1c9   : > { %v1363_v24 = vsel %vm3423_vm6, %v3237_v39, %v1359_v36  ;;  %v1403_v14 = vmul.f32 %v3316_v61, %v1402_v22  ;;  %v1431_v59 = vmul.f32 %v3395_v50, %v4128_v38  ;;  %1913 = vrcp.f32 %v4142_v53  ;;  %vm3452_vm4 = vmor %vm1375_vm12, %vm1376_vm7 }
 0x1ca   : > { %v3441_v16 = vsel %vm3354_vm11, %v1352_v11, %v1348_v63  ;;  %vm3443_vm8 = vcmp.eq.f32.partialorder %v1394_v51, 8.507059e+37  ;;  %v1397_v13 = vor.u32 1.1754944e-38, %v1396_v12  ;;  %vm1405_vm1 = vweird.f32 %v4116_v43  ;;  %v4185_v43 = vld [vmem:[#allocation6_spill] sm:$0xff] }
 0x1cb   : > { %v3448_v30 = vpop.eup %1911  ;;  %vm1391_vm2 = vweird.f32 %v3310_v15  ;;  %vm3457_vm9 = vcmp.eq.f32.partialorder %v1409_v37, 8.507059e+37  ;;  %v1412_v11 = vor.u32 1.1754944e-38, %v1411_v35  ;;  %v1426_v42 = vand.u32 2147483648, %v4125_v4  ;;  %v4152_v37 = vld [vmem:[#allocation41_spill] sm:$0xff]  ;;  %v4155_v35 = vld [vmem:[#allocation42_spill] sm:$0xff] }
 0x1cc   : > { %v3464_v7 = vsel %vm3377_vm10, %v1367_v58, %v1363_v24  ;;  %v1378_v29 = vsel %vm3452_vm4, %v3272_v52, %v1374_v21  ;;  %v1389_v1 = vadd.f32 %v3310_v15, %v1388_v0  ;;  %v1417_v45 = vsub.f32 1.0, %v1416_v28  ;;  %v4149_v52 = vld [vmem:[#allocation40_spill] sm:$0xff]  ;;  %vm3489_vm13 = vmor %vm1390_vm3, %vm1391_vm2  ;;  %v4156_v0 = vld [vmem:[#allocation43_spill] sm:$0xff] }
 0x1cd   : > { %v1404_v8 = vadd.f32 %v3316_v61, %v1403_v14  ;;  %vm1406_vm11 = vweird.f32 %v3316_v61  ;;  %v1424_v62 = vand.u32 2147483647, %v4125_v4  ;;  %v1432_v10 = vsub.f32 1.0, %v1431_v59 }
 0x1ce   : > { %vm1420_vm14 = vweird.f32 %v4125_v4  ;;  %v1439_v56 = vand.u32 2147483647, %v4128_v38  ;;  %v1441_v58 = vand.u32 2147483648, %v4128_v38  ;;  %v1446_v36 = vmul.f32 %v3448_v30, %v4135_v2  ;;  %vm3505_vm12 = vmor %vm1405_vm1, %vm1406_vm11 }
 0x1cf   : > { %1915 = vrcp.f32 %v4149_v52  ;;  %v3479_v22 = vpop.eup %1913  ;;  %v3483_v17 = vsel %vm3405_vm15, %v1382_v46, %v1378_v29  ;;  %v3493_v12 = vor.u32 1.1754944e-38, %v1426_v42  ;;  %vm1435_vm10 = vweird.f32 %v4128_v38 }
 0x1d0   : > { %v1456_v63 = vand.u32 2147483648, %v4135_v2  ;;  %1917 = vrcp.f32 %v4152_v37  ;;  %v1393_v3 = vsel %vm3489_vm13, %v3310_v15, %v1389_v1  ;;  %v1418_v46 = vmul.f32 %v3390_v44, %v1417_v45 }
 0x1d1   : > { %vm1421_vm5 = vweird.f32 %v3390_v44  ;;  %1919 = vrcp.f32 %v4155_v35  ;;  %v1408_v54 = vsel %vm3505_vm12, %v3316_v61, %v1404_v8  ;;  %v1433_v15 = vmul.f32 %v3395_v50, %v1432_v10 }
 0x1d2   : > { %v1454_v21 = vand.u32 2147483647, %v4135_v2  ;;  %1921 = vrcp.f32 %v4156_v0  ;;  %vm3518_vm0 = vcmp.eq.f32.partialorder %v1424_v62, 8.507059e+37  ;;  %v3522_v28 = vor.u32 1.1754944e-38, %v1441_v58  ;;  %vm3580_vm1 = vmor %vm1420_vm14, %vm1421_vm5 }
 0x1d3   : > { %v1447_v24 = vsub.f32 1.0, %v1446_v36  ;;  %v1461_v14 = vmul.f32 %v3479_v22, %v4142_v53  ;;  %1923 = vrcp.f32 %v2962_v18  ;;  %v3536_v61 = vsel %vm3443_vm8, %v1397_v13, %v1393_v3  ;;  %v4161_v13 = vld [vmem:[#allocation12_spill] sm:$0xff]  ;;  %v4164_v3 = vld [vmem:[#allocation18_spill] sm:$0xff] }
 0x1d4   : > { %vm1436_vm15 = vweird.f32 %v3395_v50  ;;  %v3539_v59 = vor.u32 1.1754944e-38, %v1456_v63  ;;  %v1471_v39 = vand.u32 2147483648, %v4142_v53  ;;  %v3546_v29 = vsel %vm3457_vm9, %v1412_v11, %v1408_v54  ;;  %v4162_v11 = vld [vmem:[#allocation14_spill] sm:$0xff] }
 0x1d5   : > { %v3542_v42 = vpop.eup %1915  ;;  %v1419_v1 = vadd.f32 %v3390_v44, %v1418_v46  ;;  %vm3549_vm3 = vcmp.eq.f32.partialorder %v1439_v56, 8.507059e+37  ;;  %vm1450_vm6 = vweird.f32 %v4135_v2  ;;  %v1469_v23 = vand.u32 2147483647, %v4142_v53  ;;  %v4163_v56 = vld [vmem:[#allocation16_spill] sm:$0xff]  ;;  %vm3602_vm2 = vmor %vm1435_vm10, %vm1436_vm15 }
 0x1d6   : > { %v1550_v8 = vmul.f32 %v2984_v33, %v4161_v13  ;;  %v3557_v62 = vpop.eup %1917  ;;  %v1434_v9 = vadd.f32 %v3395_v50, %v1433_v15  ;;  %vm1451_vm7 = vweird.f32 %v3448_v30  ;;  %v1551_v10 = vmul.f32 %v2989_v34, %v4162_v11  ;;  %v4169_v15 = vld [vmem:[#allocation22_spill] sm:$0xff]  ;;  %v4177_v11 = vld [vmem:[#allocation3_spill] sm:$0xff] }
 0x1d7   : > { %v1552_v58 = vmul.f32 %v3011_v32, %v4163_v56  ;;  %v3565_v36 = vpop.eup %1919  ;;  %v1448_v51 = vmul.f32 %v3448_v30, %v1447_v24  ;;  %v1462_v63 = vsub.f32 1.0, %v1461_v14  ;;  %v1553_v33 = vmul.f32 %v3065_v40, %v4164_v3  ;;  %v4179_v3 = vld [vmem:[#allocation4_spill] sm:$0xff] }
 0x1d8   : > { %v1554_v46 = vmul.f32 %v3070_v31, %v4165_v25  ;;  %vm4166_vm8 = vcmask 261120   ;;  %v3574_v54 = vpop.eup %1921  ;;  %v3584_v32 = vor.u32 1.1754944e-38, %v1471_v39  ;;  %v1476_v40 = vmul.f32 %v3542_v42, %v4149_v52 }
 0x1d9   : > { %1582 = vst.msk [vmem:[%s3532_s9] sm:$0xff] %vm4166_vm8, %v1550_v8  ;;  %v1484_v31 = vand.u32 2147483647, %v4149_v52  ;;  %v1555_v24 = vmul.f32 %v3085_v49, %v4169_v15  ;;  %vm4170_vm4 = vmmov %vm4166_vm8  ;;  %v3593_v14 = vpop.eup %1923  ;;  %v1423_v4 = vsel %vm3580_vm1, %v3390_v44, %v1419_v1  ;;  %vm3606_vm9 = vcmp.eq.f32.partialorder %v1454_v21, 8.507059e+37  ;;  %v4175_v1 = vld [vmem:[#allocation2_spill] sm:$0xff]  ;;  %v4189_v15 = vld [vmem:[#allocation7_spill] sm:$0xff] }
 0x1da   : > { %1583 = vst.msk [vmem:[%s3532_s9 + $0x8] sm:$0xff] %vm4170_vm4, %v1551_v10  ;;  %vm1465_vm11 = vweird.f32 %v4142_v53  ;;  %v1486_v49 = vand.u32 2147483648, %v4149_v52  ;;  %v1491_v44 = vmul.f32 %v3557_v62, %v4152_v37  ;;  %v1556_v8 = vmul.f32 %v3107_v55, %v4175_v1  ;;  %vm4176_vm14 = vmmov %vm4170_vm4 }
 0x1db   : > { %1584 = vst.msk [vmem:[%s3532_s9 + $0x10] sm:$0xff] %vm4176_vm14, %v1552_v58  ;;  %v1438_v38 = vsel %vm3602_vm2, %v3395_v50, %v1434_v9  ;;  %vm1466_vm13 = vweird.f32 %v3479_v22  ;;  %v1506_v21 = vmul.f32 %v3565_v36, %v4155_v35  ;;  %v1557_v10 = vmul.f32 %v3132_v20, %v4177_v11  ;;  %vm4178_vm10 = vmmov %vm4170_vm4 }
 0x1dc   : > { %1585 = vst.msk [vmem:[%s3532_s9 + $0x18] sm:$0xff] %vm4178_vm10, %v1553_v33  ;;  %v1449_v55 = vadd.f32 %v3448_v30, %v1448_v51  ;;  %v1463_v56 = vmul.f32 %v3479_v22, %v1462_v63  ;;  %v1521_v58 = vmul.f32 %v3574_v54, %v4156_v0  ;;  %v1558_v50 = vmul.f32 %v3147_v5, %v4179_v3  ;;  %vm4180_vm12 = vmmov %vm4170_vm4  ;;  %v4181_v33 = vld [vmem:[#allocation5_spill] sm:$0xff] }
 0x1dd   : > { %1586 = vst.msk [vmem:[%s3532_s9 + $0x20] sm:$0xff] %vm4180_vm12, %v1554_v46  ;;  %v3639_v9 = vsel %vm3518_vm0, %v3493_v12, %v1423_v4  ;;  %v1477_v20 = vsub.f32 1.0, %v1476_v40  ;;  %v1536_v51 = vmul.f32 %v3593_v14, %v2962_v18  ;;  %v1559_v63 = vmul.f32 %v3152_v27, %v4181_v33  ;;  %vm4182_vm5 = vmmov %vm4170_vm4  ;;  %v4191_v4 = vld [vmem:[#allocation8_spill] sm:$0xff]  ;;  %v4209_v33 = vld [vmem:[#allocation17_spill] sm:$0xff] }
 0x1de   : > { %1587 = vst.msk [vmem:[%s3532_s9 + $0x28] sm:$0xff] %vm4182_vm5, %v1555_v24  ;;  %vm3647_vm15 = vcmp.eq.f32.partialorder %v1469_v23, 8.507059e+37  ;;  %v3651_v5 = vor.u32 1.1754944e-38, %v1486_v49  ;;  %v1492_v46 = vsub.f32 1.0, %v1491_v44  ;;  %v1501_v12 = vand.u32 2147483648, %v4152_v37  ;;  %vm4186_vm0 = vmmov %vm4170_vm4  ;;  %v4193_v44 = vld [vmem:[#allocation9_spill] sm:$0xff] }
 0x1df   : > { %v1560_v34 = vmul.f32 %v3198_v48, %v4185_v43  ;;  %1588 = vst.msk [vmem:[%s3532_s9 + $0x30] sm:$0xff] %vm4186_vm0, %v1556_v8  ;;  %v3661_v27 = vsel %vm3549_vm3, %v3522_v28, %v1438_v38  ;;  %vm3667_vm8 = vmor %vm1450_vm6, %vm1451_vm7  ;;  %vm1480_vm1 = vweird.f32 %v4149_v52  ;;  %v1499_v48 = vand.u32 2147483647, %v4152_v37 }
 0x1e0   : > { %v1507_v40 = vsub.f32 1.0, %v1506_v21  ;;  %v1561_v24 = vmul.f32 %v3262_v47, %v4189_v15  ;;  %vm4190_vm4 = vmmov %vm4186_vm0  ;;  %v1453_v2 = vsel %vm3667_vm8, %v3448_v30, %v1449_v55  ;;  %v1464_v28 = vadd.f32 %v3479_v22, %v1463_v56  ;;  %v4201_v55 = vld [vmem:[#allocation11_spill] sm:$0xff] }
 0x1e1   : > { %1589 = vst.msk [vmem:[%s3532_s9 + $0x38] sm:$0xff] %vm4190_vm4, %v1557_v10  ;;  %vm1495_vm3 = vweird.f32 %v4152_v37  ;;  %v1522_v45 = vsub.f32 1.0, %v1521_v58  ;;  %v1562_v39 = vmul.f32 %v3277_v60, %v4191_v4  ;;  %vm4192_vm6 = vmmov %vm4186_vm0  ;;  %v1478_v49 = vmul.f32 %v3542_v42, %v1477_v20  ;;  %v4195_v60 = vld [vmem:[#allocation10_spill] sm:$0xff]  ;;  %v4205_v58 = vld [vmem:[#allocation13_spill] sm:$0xff] }
 0x1e2   : > { %1590 = vst.msk [vmem:[%s3532_s9 + $0x40] sm:$0xff] %vm4192_vm6, %v1558_v50  ;;  %vm1481_vm7 = vweird.f32 %v3542_v42  ;;  %v1537_v47 = vsub.f32 1.0, %v1536_v51  ;;  %v1563_v1 = vmul.f32 %v3291_v57, %v4193_v44  ;;  %vm4194_vm2 = vmmov %vm4186_vm0  ;;  %v1493_v30 = vmul.f32 %v3557_v62, %v1492_v46  ;;  %v4207_v50 = vld [vmem:[#allocation15_spill] sm:$0xff]  ;;  %v4241_v57 = vld [vmem:[#allocation30_spill] sm:$0xff] }
 0x1e3   : > { %1591 = vst.msk [vmem:[%s3532_s9 + $0x48] sm:$0xff] %vm4194_vm2, %v1559_v63  ;;  %v3693_v8 = vor.u32 1.1754944e-38, %v1501_v12  ;;  %vm1510_vm14 = vweird.f32 %v4155_v35  ;;  %v1564_v38 = vmul.f32 %v3304_v26, %v4195_v60  ;;  %vm4196_vm10 = vmmov %vm4186_vm0  ;;  %v1458_v21 = vsel %vm3606_vm9, %v3539_v59, %v1453_v2  ;;  %v4211_v12 = vld [vmem:[#allocation19_spill] sm:$0xff]  ;;  %v4239_v60 = vld [vmem:[#allocation29_spill] sm:$0xff] }
 0x1e4   : > { %1592 = vst.msk [vmem:[%s3532_s9 + $0x50] sm:$0xff] %vm4196_vm10, %v1560_v34  ;;  %vm3707_vm12 = vmor %vm1465_vm11, %vm1466_vm13  ;;  %vm3711_vm5 = vcmp.eq.f32.partialorder %v1484_v31, 8.507059e+37  ;;  %v1508_v26 = vmul.f32 %v3565_v36, %v1507_v40  ;;  %v1514_v10 = vand.u32 2147483647, %v4155_v35  ;;  %v1565_v59 = vmul.f32 %v3363_v41, %v4201_v55  ;;  %v4215_v34 = vld [vmem:[#allocation21_spill] sm:$0xff]  ;;  %v4245_v55 = vld [vmem:[#allocation32_spill] sm:$0xff] }
 0x1e5   : > { %vm4202_vm9 = vmmov %vm4186_vm0  ;;  %v1468_v53 = vsel %vm3707_vm12, %v3479_v22, %v1464_v28  ;;  %vm3724_vm11 = vcmp.eq.f32.partialorder %v1499_v48, 8.507059e+37  ;;  %v1516_v31 = vand.u32 2147483648, %v4155_v35  ;;  %v1523_v56 = vmul.f32 %v3574_v54, %v1522_v45 }
 0x1e6   : > { %1593 = vst.msk [vmem:[%s3532_s9 + $0x58] sm:$0xff] %vm4202_vm9, %v1561_v24  ;;  %v1566_v3 = vmul.f32 %v3384_v6, %v4205_v58  ;;  %vm4206_vm13 = vmmov %vm4186_vm0  ;;  %v1479_v41 = vadd.f32 %v3542_v42, %v1478_v49  ;;  %vm1525_vm0 = vweird.f32 %v4156_v0  ;;  %v1538_v22 = vmul.f32 %v3593_v14, %v1537_v47  ;;  %v4225_v24 = vld [vmem:[#allocation24_spill] sm:$0xff]  ;;  %v4235_v47 = vld [vmem:[#allocation27_spill] sm:$0xff] }
 0x1e7   : > { %1594 = vst.msk [vmem:[%s3532_s9 + $0x60] sm:$0xff] %vm4206_vm13, %v1562_v39  ;;  %v1567_v20 = vmul.f32 %v3414_v19, %v4207_v50  ;;  %vm4208_vm8 = vmmov %vm4194_vm2  ;;  %v1494_v51 = vadd.f32 %v3557_v62, %v1493_v30  ;;  %vm1496_vm4 = vweird.f32 %v3557_v62  ;;  %v1529_v6 = vand.u32 2147483647, %v4156_v0  ;;  %v4237_v30 = vld [vmem:[#allocation28_spill] sm:$0xff] }
 0x1e8   : > { %1595 = vst.msk [vmem:[%s3532_s9 + $0x68] sm:$0xff] %vm4208_vm8, %v1563_v1  ;;  %v1568_v63 = vmul.f32 %v3441_v16, %v4209_v33  ;;  %vm4210_vm6 = vmmov %vm4194_vm2  ;;  %v1473_v46 = vsel %vm3647_vm15, %v3584_v32, %v1468_v53  ;;  %v1509_v19 = vadd.f32 %v3565_v36, %v1508_v26  ;;  %vm1511_vm2 = vweird.f32 %v3565_v36  ;;  %v4243_v26 = vld [vmem:[#allocation31_spill] sm:$0xff]  ;;  %v4247_v53 = vld [vmem:[#allocation33_spill] sm:$0xff] }
 0x1e9   : > { %1596 = vst.msk [vmem:[%s3532_s9 + $0x70] sm:$0xff] %vm4210_vm6, %v1564_v38  ;;  %v1569_v43 = vmul.f32 %v3464_v7, %v4211_v12  ;;  %vm4212_vm10 = vmmov %vm4210_vm6  ;;  %v1524_v32 = vadd.f32 %v3574_v54, %v1523_v56  ;;  %vm1526_vm15 = vweird.f32 %v3574_v54  ;;  %v1531_v25 = vand.u32 2147483648, %v4156_v0 }
 0x1ea   : > { %1597 = vst.msk [vmem:[%s3532_s9 + $0x78] sm:$0xff] %vm4212_vm10, %v1565_v59  ;;  %vm3761_vm12 = vmor %vm1480_vm1, %vm1481_vm7  ;;  %v1570_v7 = vmul.f32 %v3483_v17, %v4215_v34  ;;  %v1539_v48 = vadd.f32 %v3593_v14, %v1538_v22  ;;  %vm1541_vm7 = vweird.f32 %v3593_v14  ;;  %v4219_v17 = vld [vmem:[#allocation23_spill] sm:$0xff]  ;;  %vm3800_vm8 = vcmp.eq.f32.partialorder %v1514_v10, 8.507059e+37 }
 0x1eb   : > { %vm4216_vm9 = vmmov %vm4210_vm6  ;;  %v1483_v52 = vsel %vm3761_vm12, %v3542_v42, %v1479_v41  ;;  %v1571_v40 = vmul.f32 %v3536_v61, %v4219_v17  ;;  %v1546_v61 = vand.u32 2147483648, %v2962_v18  ;;  %v1572_v2 = vmul.f32 %v3546_v29, %v4225_v24  ;;  %v4229_v29 = vld [vmem:[#allocation25_spill] sm:$0xff] }
 0x1ec   : > { %1598 = vst.msk [vmem:[%s3532_s9 + $0x80] sm:$0xff] %vm4216_vm9, %v1566_v3  ;;  %vm3779_vm1 = vmor %vm1495_vm3, %vm1496_vm4  ;;  %v1544_v28 = vand.u32 2147483647, %v2962_v18  ;;  %v1573_v45 = vmul.f32 %v3639_v9, %v4229_v29  ;;  %v1517_v0 = vor.u32 1.1754944e-38, %v1516_v31  ;;  %v1532_v49 = vor.u32 1.1754944e-38, %v1531_v25 }
 0x1ed   : > { %vm4220_vm13 = vmmov %vm4210_vm6  ;;  %v1498_v42 = vsel %vm3779_vm1, %v3557_v62, %v1494_v51  ;;  %v1575_v44 = vmul.f32 %v1458_v21, %v4235_v47  ;;  %vm1530_vm12 = vcmp.eq.f32.partialorder %v1529_v6, 8.507059e+37  ;;  %v1547_v1 = vor.u32 1.1754944e-38, %v1546_v61 }
 0x1ee   : > { %1599 = vst.msk [vmem:[%s3532_s9 + $0x88] sm:$0xff] %vm4220_vm13, %v1567_v20  ;;  %vm3796_vm3 = vmor %vm1510_vm14, %vm1511_vm2 }
 0x1ef   : > { %vm4226_vm4 = vmmov %vm4210_vm6  ;;  %v1513_v35 = vsel %vm3796_vm3, %v3565_v36, %v1509_v19  ;;  %vm1540_vm6 = vweird.f32 %v2962_v18  ;;  %v1488_v36 = vsel %vm3711_vm5, %v3651_v5, %v1483_v52  ;;  %v4233_v18 = vld [vmem:[#allocation26_spill] sm:$0xff]  ;;  %v1503_v5 = vsel %vm3724_vm11, %v3693_v8, %v1498_v42 }
 0x1f0   : > { %1600 = vst.msk [vmem:[%s3532_s9 + $0x90] sm:$0xff] %vm4226_vm4, %v1568_v63  ;;  %vm3816_vm14 = vmor %vm1525_vm0, %vm1526_vm15  ;;  %v1574_v9 = vmul.f32 %v3661_v27, %v4233_v18  ;;  %v1518_v27 = vsel %vm3800_vm8, %v1517_v0, %v1513_v35  ;;  %v1576_v8 = vmul.f32 %v1473_v46, %v4237_v30  ;;  %vm1545_vm15 = vcmp.eq.f32.partialorder %v1544_v28, 8.507059e+37 }
 0x1f1   : > { %vm4230_vm2 = vmmov %vm4226_vm4  ;;  %v1528_v4 = vsel %vm3816_vm14, %v3574_v54, %v1524_v32  ;;  %v1577_v38 = vmul.f32 %v1488_v36, %v4239_v60  ;;  %v1578_v11 = vmul.f32 %v1503_v5, %v4241_v57  ;;  %v1579_v10 = vmul.f32 %v1518_v27, %v4243_v26 }
 0x1f2   : > { %1601 = vst.msk [vmem:[%s3532_s9 + $0x98] sm:$0xff] %vm4230_vm2, %v1569_v43  ;;  %vm3834_vm0 = vmor %vm1540_vm6, %vm1541_vm7 }
 0x1f3   : > { %vm4234_vm10 = vmmov %vm4230_vm2  ;;  %v1543_v54 = vsel %vm3834_vm0, %v3593_v14, %v1539_v48  ;;  %v1533_v14 = vsel %vm1530_vm12, %v1532_v49, %v1528_v4 }
 0x1f4   : > { %1602 = vst.msk [vmem:[%s3532_s9 + $0xa0] sm:$0xff] %vm4234_vm10, %v1570_v7  ;;  %vm4236_vm5 = vmmov %vm4230_vm2  ;;  %v1548_v21 = vsel %vm1545_vm15, %v1547_v1, %v1543_v54  ;;  %v1580_v59 = vmul.f32 %v1533_v14, %v4245_v55 }
 0x1f5   : > { %1603 = vst.msk [vmem:[%s3532_s9 + $0xa8] sm:$0xff] %vm4236_vm5, %v1571_v40  ;;  %vm4238_vm11 = vmmov %vm4230_vm2  ;;  %v1581_v13 = vmul.f32 %v1548_v21, %v4247_v53 }
 0x1f6   : > { %1604 = vst.msk [vmem:[%s3532_s9 + $0xb0] sm:$0xff] %vm4238_vm11, %v1572_v2  ;;  %vm4240_vm9 = vmmov %vm4230_vm2 }
 0x1f7   : > { %1605 = vst.msk [vmem:[%s3532_s9 + $0xb8] sm:$0xff] %vm4240_vm9, %v1573_v45  ;;  %vm4242_vm1 = vmmov %vm4230_vm2 }
 0x1f8   : > { %1606 = vst.msk [vmem:[%s3532_s9 + $0xc0] sm:$0xff] %vm4242_vm1, %v1574_v9  ;;  %vm4244_vm7 = vmmov %vm4242_vm1 }
 0x1f9   : > { %1607 = vst.msk [vmem:[%s3532_s9 + $0xc8] sm:$0xff] %vm4244_vm7, %v1575_v44  ;;  %vm4246_vm13 = vmmov %vm4242_vm1 }
 0x1fa   : > { %1608 = vst.msk [vmem:[%s3532_s9 + $0xd0] sm:$0xff] %vm4246_vm13, %v1576_v8  ;;  %vm4248_vm3 = vmmov %vm4242_vm1 }
 0x1fb   : > { %1609 = vst.msk [vmem:[%s3532_s9 + $0xd8] sm:$0xff] %vm4248_vm3, %v1577_v38  ;;  %vm4249_vm8 = vmmov %vm4242_vm1 }
 0x1fc   : > { %1610 = vst.msk [vmem:[%s3532_s9 + $0xe0] sm:$0xff] %vm4249_vm8, %v1578_v11  ;;  %vm4250_vm4 = vmmov %vm4242_vm1 }
 0x1fd   : > { %1611 = vst.msk [vmem:[%s3532_s9 + $0xe8] sm:$0xff] %vm4250_vm4, %v1579_v10  ;;  %vm4251_vm14 = vmmov %vm4242_vm1 }
 0x1fe   : > { %1612 = vst.msk [vmem:[%s3532_s9 + $0xf0] sm:$0xff] %vm4251_vm14, %v1580_v59  ;;  %vm4252_vm6 = vmmov %vm4242_vm1 }
 0x1ff   : > { %1613 = vst.msk [vmem:[%s3532_s9 + $0xf8] sm:$0xff] %vm4252_vm6, %v1581_v13 }
 0x200 PF: > { %s14_s15 = sadd.s32 1, %s1931_s15  }
 0x201   : > { %p11_p4 = scmp.ge.s32.totalorder %s14_s15, 4  }
 0x203   :  { %13 = sbr.rel (!%p11_p4) target bundleno = 1 (0x1), region = 66 }

// kernel: _lambda_.28
= control target key start
LH: loop header
LB: loop body
LE: loop exit
PB: predicated region body
PF: predicated region fallthrough
CT: control target
= control target key end

     0   :  { %s1293_s12 = smov 0   ;;  %s1925_s0 = inlined_call_operand.vmem [shape: f32[512,576], index: 0, kind: input, shape index: {}]   ;;  %s1926_s1 = inlined_call_operand.vmem [shape: f32[576,32], index: 1, kind: input, shape index: {}]   ;;  %s1927_s2 = inlined_call_operand.vmem [shape: f32[1,32], index: 2, kind: input, shape index: {}]   ;;  %s1928_s3 = inlined_call_operand.vmem [shape: f32[512,32], index: 3, kind: output, shape index: {}]  }
   0x1 LB: > { %s1164_s13 = sadd.s32 4294967295, %s1271_s12   ;;  %p1168_p0 = scmp.ge.s32.totalorder %s1271_s12, 1  ;;  %s1271_s12 = sphi %s1293_s12, %s13_s12  }
   0x2   : > { %p139_p1 = scmp.lt.s32.totalorder %s1271_s12, 3 }
   0x4   : > { %p140_p2 = pnand %p1168_p0, %p139_p1 }
   0x5   : > { %s1169_s28 = sshll.u32 (!%p140_p2), %s1164_s13, 5 }
   0x6   : > { %143 = sbr.rel (%p140_p2) target bundleno = 494 (0x1ee), region = 32  ;;  %p165_p3 = scmp.lt.s32.totalorder (!%p140_p2), %s1169_s28, 63 }
   0xb   : > { %v352_v0 = vld [vmem:[%s1926_s1 + $0x78] sm:$0xff]  ;;  %v351_v1 = vld [vmem:[%s1926_s1 + $0x70] sm:$0xff]  ;;  %v350_v2 = vld [vmem:[%s1926_s1 + $0x68] sm:$0xff]  ;;  %s1930_s28 = smov (!%p165_p3, %s1169_s28), 63  ;;  %vm413_vm0 = vcmask 523264   ;;  %vm1075_vm1 = vcmask 261120  }
   0xc   : > { %1207 = vmatpush.msra.mxu1 %v352_v0  ;;  %1208 = vmatpush.msra.mxu2 %v352_v0  ;;  %v349_v3 = vld [vmem:[%s1926_s1 + $0x60] sm:$0xff]  ;;  %v348_v4 = vld [vmem:[%s1926_s1 + $0x58] sm:$0xff]  ;;  %v347_v5 = vld [vmem:[%s1926_s1 + $0x50] sm:$0xff]  ;;  %s1255_s15 = smul.u32 40, %s1930_s28  ;;  %s1172_s18 = sshll.u32 %s1930_s28, 3 }
   0xd   : > { %1209 = vmatpush.msra.mxu3 %v352_v0  ;;  %510 = vmatpush.msra.mxu0 %v352_v0  ;;  %v346_v6 = vld [vmem:[%s1926_s1 + $0x48] sm:$0xff]  ;;  %v345_v7 = vld [vmem:[%s1926_s1 + $0x40] sm:$0xff]  ;;  %v344_v8 = vld [vmem:[%s1926_s1 + $0x38] sm:$0xff]  ;;  %s1737_s21 = scalar_lea.vmem %s1928_s3, %s1172_s18 }
   0xe   : > { %1210 = vmatpush.msra.mxu1 %v351_v1  ;;  %1211 = vmatpush.msra.mxu2 %v351_v1  ;;  %v343_v9 = vld [vmem:[%s1926_s1 + $0x30] sm:$0xff]  ;;  %v342_v10 = vld [vmem:[%s1926_s1 + $0x28] sm:$0xff]  ;;  %v341_v11 = vld [vmem:[%s1926_s1 + $0x20] sm:$0xff]  ;;  %s1354_s22 = scalar_lea.vmem %s1925_s0, %s1255_s15 }
   0xf   : > { %1212 = vmatpush.msra.mxu3 %v351_v1  ;;  %511 = vmatpush.msra.mxu0 %v351_v1  ;;  %v340_v12 = vld [vmem:[%s1926_s1 + $0x18] sm:$0xff]  ;;  %v339_v13 = vld [vmem:[%s1926_s1 + $0x10] sm:$0xff]  ;;  %v338_v14 = vld [vmem:[%s1926_s1 + $0x8] sm:$0xff] }
  0x10   : > { %1213 = vmatpush.msra.mxu1 %v350_v2  ;;  %1214 = vmatpush.msra.mxu2 %v350_v2  ;;  %v337_v15 = vld [vmem:[%s1926_s1] sm:$0xff]  ;;  %v384_v18 = vld [vmem:[%s1926_s1 + $0x178] sm:$0xff]  ;;  %v383_v22 = vld [vmem:[%s1926_s1 + $0x170] sm:$0xff] }
  0x11   : > { %1215 = vmatpush.msra.mxu3 %v350_v2  ;;  %512 = vmatpush.msra.mxu0 %v350_v2  ;;  %v217_v16 = vld [vmem:[%s1354_s22 + $0x140] sm:$0xff]  ;;  %v368_v20 = vld [vmem:[%s1926_s1 + $0xf8] sm:$0xff]  ;;  %v367_v23 = vld [vmem:[%s1926_s1 + $0xf0] sm:$0xff] }
  0x12   : > { %1216 = vmatpush.msra.mxu1 %v349_v3  ;;  %1217 = vmatpush.msra.mxu2 %v349_v3  ;;  %v257_v17 = vld [vmem:[%s1354_s22 + $0x280] sm:$0xff]  ;;  %v400_v21 = vld [vmem:[%s1926_s1 + $0x1f8] sm:$0xff]  ;;  %v399_v24 = vld [vmem:[%s1926_s1 + $0x1f0] sm:$0xff] }
  0x13   : > { %1218 = vmatpush.msra.mxu3 %v349_v3  ;;  %513 = vmatpush.msra.mxu0 %v349_v3  ;;  %v297_v19 = vld [vmem:[%s1354_s22 + $0x3c0] sm:$0xff]  ;;  %v382_v25 = vld [vmem:[%s1926_s1 + $0x168] sm:$0xff]  ;;  %v408_v29 = vld [vmem:[%s1926_s1 + $0x238] sm:$0xff] }
  0x14   : > { %1219 = vmatpush.msra.mxu1 %v348_v4  ;;  %1220 = vmatpush.msra.mxu2 %v348_v4  ;;  %v177_v26 = vld [vmem:[%s1354_s22] sm:$0xff]  ;;  %v366_v27 = vld [vmem:[%s1926_s1 + $0xe8] sm:$0xff]  ;;  %v380_v36 = vld [vmem:[%s1926_s1 + $0x158] sm:$0xff] }
  0x15   : > { %1221 = vmatpush.msra.mxu3 %v348_v4  ;;  %514 = vmatpush.msra.mxu0 %v348_v4  ;;  %v398_v28 = vld [vmem:[%s1926_s1 + $0x1e8] sm:$0xff]  ;;  %v381_v32 = vld [vmem:[%s1926_s1 + $0x160] sm:$0xff]  ;;  %v396_v37 = vld [vmem:[%s1926_s1 + $0x1d8] sm:$0xff] }
  0x16   : > { %1222 = vmatpush.msra.mxu1 %v347_v5  ;;  %1223 = vmatpush.msra.mxu2 %v347_v5  ;;  %v222_v30 = vld [vmem:[%s1354_s22 + $0x168] sm:$0xff]  ;;  %v397_v33 = vld [vmem:[%s1926_s1 + $0x1e0] sm:$0xff]  ;;  %v407_v38 = vld [vmem:[%s1926_s1 + $0x230] sm:$0xff] }
  0x17   : > { %1224 = vmatpush.msra.mxu3 %v347_v5  ;;  %515 = vmatpush.msra.mxu0 %v347_v5  ;;  %v262_v31 = vld [vmem:[%s1354_s22 + $0x2a8] sm:$0xff]  ;;  %v365_v35 = vld [vmem:[%s1926_s1 + $0xe0] sm:$0xff]  ;;  %v364_v39 = vld [vmem:[%s1926_s1 + $0xd8] sm:$0xff] }
  0x18   : > { %1225 = vmatpush.msra.mxu1 %v346_v6  ;;  %1226 = vmatpush.msra.mxu2 %v346_v6  ;;  %v302_v34 = vld [vmem:[%s1354_s22 + $0x3e8] sm:$0xff]  ;;  %v379_v40 = vld [vmem:[%s1926_s1 + $0x150] sm:$0xff]  ;;  %v377_v51 = vld [vmem:[%s1926_s1 + $0x140] sm:$0xff] }
  0x19   : > { %1227 = vmatpush.msra.mxu3 %v346_v6  ;;  %516 = vmatpush.msra.mxu0 %v346_v6  ;;  %v395_v41 = vld [vmem:[%s1926_s1 + $0x1d0] sm:$0xff]  ;;  %v182_v42 = vld [vmem:[%s1354_s22 + $0x28] sm:$0xff]  ;;  %v393_v52 = vld [vmem:[%s1926_s1 + $0x1c0] sm:$0xff] }
  0x1a   : > { %1228 = vmatpush.msra.mxu1 %v345_v7  ;;  %1229 = vmatpush.msra.mxu2 %v345_v7  ;;  %v363_v43 = vld [vmem:[%s1926_s1 + $0xd0] sm:$0xff]  ;;  %v378_v44 = vld [vmem:[%s1926_s1 + $0x148] sm:$0xff]  ;;  %v361_v53 = vld [vmem:[%s1926_s1 + $0xc0] sm:$0xff] }
  0x1b   : > { %1230 = vmatpush.msra.mxu3 %v345_v7  ;;  %517 = vmatpush.msra.mxu0 %v345_v7  ;;  %v394_v45 = vld [vmem:[%s1926_s1 + $0x1c8] sm:$0xff]  ;;  %v227_v46 = vld [vmem:[%s1354_s22 + $0x190] sm:$0xff]  ;;  %v376_v54 = vld [vmem:[%s1926_s1 + $0x138] sm:$0xff] }
  0x1c   : > { %1231 = vmatpush.msra.mxu1 %v344_v8  ;;  %1232 = vmatpush.msra.mxu2 %v344_v8  ;;  %v267_v47 = vld [vmem:[%s1354_s22 + $0x2d0] sm:$0xff]  ;;  %v406_v48 = vld [vmem:[%s1926_s1 + $0x228] sm:$0xff]  ;;  %v405_v55 = vld [vmem:[%s1926_s1 + $0x220] sm:$0xff] }
  0x1d   : > { %1233 = vmatpush.msra.mxu3 %v344_v8  ;;  %518 = vmatpush.msra.mxu0 %v344_v8  ;;  %v362_v49 = vld [vmem:[%s1926_s1 + $0xc8] sm:$0xff]  ;;  %v307_v50 = vld [vmem:[%s1354_s22 + $0x410] sm:$0xff]  ;;  %v392_v56 = vld [vmem:[%s1926_s1 + $0x1b8] sm:$0xff] }
  0x1e   : > { %1234 = vmatpush.msra.mxu1 %v343_v9  ;;  %1235 = vmatpush.msra.mxu2 %v343_v9  ;;  %v360_v57 = vld [vmem:[%s1926_s1 + $0xb8] sm:$0xff]  ;;  %v187_v58 = vld [vmem:[%s1354_s22 + $0x50] sm:$0xff]  ;;  %v374_v0 = vld [vmem:[%s1926_s1 + $0x128] sm:$0xff] }
  0x1f   : > { %1236 = vmatpush.msra.mxu3 %v343_v9  ;;  %519 = vmatpush.msra.mxu0 %v343_v9  ;;  %v375_v59 = vld [vmem:[%s1926_s1 + $0x130] sm:$0xff]  ;;  %v232_v62 = vld [vmem:[%s1354_s22 + $0x1b8] sm:$0xff]  ;;  %v390_v1 = vld [vmem:[%s1926_s1 + $0x1a8] sm:$0xff] }
  0x20   : > { %1237 = vmatpush.msra.mxu1 %v342_v10  ;;  %1238 = vmatpush.msra.mxu2 %v342_v10  ;;  %v391_v60 = vld [vmem:[%s1926_s1 + $0x1b0] sm:$0xff]  ;;  %v272_v63 = vld [vmem:[%s1354_s22 + $0x2f8] sm:$0xff]  ;;  %v358_v4 = vld [vmem:[%s1926_s1 + $0xa8] sm:$0xff] }
  0x21   : > { %1239 = vmatpush.msra.mxu3 %v342_v10  ;;  %520 = vmatpush.msra.mxu0 %v342_v10  ;;  %v359_v61 = vld [vmem:[%s1926_s1 + $0xb0] sm:$0xff]  ;;  %v312_v2 = vld [vmem:[%s1354_s22 + $0x438] sm:$0xff]  ;;  %v373_v5 = vld [vmem:[%s1926_s1 + $0x120] sm:$0xff] }
  0x22   : > { %1240 = vmatpush.msra.mxu1 %v341_v11  ;;  %1241 = vmatpush.msra.mxu2 %v341_v11  ;;  %v404_v3 = vld [vmem:[%s1926_s1 + $0x218] sm:$0xff]  ;;  %v389_v6 = vld [vmem:[%s1926_s1 + $0x1a0] sm:$0xff]  ;;  %v403_v7 = vld [vmem:[%s1926_s1 + $0x210] sm:$0xff] }
  0x23   : > { %1242 = vmatpush.msra.mxu3 %v341_v11  ;;  %521 = vmatpush.msra.mxu0 %v341_v11  ;;  %v357_v8 = vld [vmem:[%s1926_s1 + $0xa0] sm:$0xff]  ;;  %v372_v9 = vld [vmem:[%s1926_s1 + $0x118] sm:$0xff] }
  0x24   : > { %1243 = vmatpush.msra.mxu1 %v340_v12  ;;  %1244 = vmatpush.msra.mxu2 %v340_v12  ;;  %v192_v10 = vld [vmem:[%s1354_s22 + $0x78] sm:$0xff] }
  0x25   : > { %1245 = vmatpush.msra.mxu3 %v340_v12  ;;  %522 = vmatpush.msra.mxu0 %v340_v12  ;;  %v388_v11 = vld [vmem:[%s1926_s1 + $0x198] sm:$0xff] }
  0x26   : > { %1246 = vmatpush.msra.mxu1 %v339_v13  ;;  %1247 = vmatpush.msra.mxu2 %v339_v13  ;;  %v356_v12 = vld [vmem:[%s1926_s1 + $0x98] sm:$0xff] }
  0x27   : > { %1248 = vmatpush.msra.mxu3 %v339_v13  ;;  %523 = vmatpush.msra.mxu0 %v339_v13  ;;  %v371_v13 = vld [vmem:[%s1926_s1 + $0x110] sm:$0xff] }
  0x28   : > { %1249 = vmatpush.msra.mxu1 %v338_v14  ;;  %1250 = vmatpush.msra.mxu2 %v338_v14 }
  0x29   : > { %1251 = vmatpush.msra.mxu3 %v338_v14  ;;  %524 = vmatpush.msra.mxu0 %v338_v14  ;;  %v237_v14 = vld [vmem:[%s1354_s22 + $0x1e0] sm:$0xff] }
  0x2a   : > { %1252 = vmatpush.msra.mxu1 %v337_v15  ;;  %1253 = vmatpush.msra.mxu2 %v337_v15 }
  0x2b   : > { %550 = vmatmul.f32.vlgmr.msra.gmra.mxu1 %v217_v16  ;;  %574 = vmatmul.f32.vlgmr.msra.gmra.mxu2 %v257_v17  ;;  %v387_v16 = vld [vmem:[%s1926_s1 + $0x190] sm:$0xff] }
  0x2c   : > { %736 = vmatpush.msrb.mxu2 %v384_v18  ;;  %1254 = vmatpush.msra.mxu3 %v337_v15  ;;  %v355_v17 = vld [vmem:[%s1926_s1 + $0x90] sm:$0xff]  ;;  %v317_v18 = vld [vmem:[%s1354_s22 + $0x460] sm:$0xff] }
  0x2d   : > { %598 = vmatmul.f32.vlgmr.msra.gmra.mxu3 %v297_v19  ;;  %623 = vmatpush.msrb.mxu1 %v368_v20  ;;  %v370_v19 = vld [vmem:[%s1926_s1 + $0x108] sm:$0xff] }
  0x2e   : > { %849 = vmatpush.msrb.mxu3 %v400_v21  ;;  %737 = vmatpush.msrb.mxu2 %v383_v22  ;;  %v386_v20 = vld [vmem:[%s1926_s1 + $0x188] sm:$0xff] }
  0x2f   : > { %624 = vmatpush.msrb.mxu1 %v367_v23  ;;  %525 = vmatpush.msra.mxu0 %v337_v15  ;;  %v277_v15 = vld [vmem:[%s1354_s22 + $0x320] sm:$0xff]  ;;  %v402_v21 = vld [vmem:[%s1926_s1 + $0x208] sm:$0xff] }
  0x30   : > { %850 = vmatpush.msrb.mxu3 %v399_v24  ;;  %738 = vmatpush.msrb.mxu2 %v382_v25  ;;  %v354_v22 = vld [vmem:[%s1926_s1 + $0x88] sm:$0xff]  ;;  %v369_v23 = vld [vmem:[%s1926_s1 + $0x100] sm:$0xff] }
  0x31   : > { %526 = vmatmul.f32.vlgmr.msra.gmra.mxu0 %v177_v26  ;;  %625 = vmatpush.msrb.mxu1 %v366_v27  ;;  %v385_v24 = vld [vmem:[%s1926_s1 + $0x180] sm:$0xff] }
  0x32   : > { %851 = vmatpush.msrb.mxu3 %v398_v28  ;;  %970 = vmatpush.msrb.mxu0 %v408_v29  ;;  %v401_v25 = vld [vmem:[%s1926_s1 + $0x200] sm:$0xff]  ;;  %v242_v28 = vld [vmem:[%s1354_s22 + $0x208] sm:$0xff] }
  0x33   : > { %553 = vmatmul.f32.gmra.mxu1 %v222_v30  ;;  %577 = vmatmul.f32.gmra.mxu2 %v262_v31  ;;  %v197_v26 = vld [vmem:[%s1354_s22 + $0xa0] sm:$0xff]  ;;  %v282_v29 = vld [vmem:[%s1354_s22 + $0x348] sm:$0xff] }
  0x34   : > { %739 = vmatpush.msrb.mxu2 %v381_v32  ;;  %852 = vmatpush.msrb.mxu3 %v397_v33  ;;  %v353_v27 = vld [vmem:[%s1926_s1 + $0x80] sm:$0xff]  ;;  %v322_v30 = vld [vmem:[%s1354_s22 + $0x488] sm:$0xff]  ;;  %v247_v32 = vld [vmem:[%s1354_s22 + $0x230] sm:$0xff] }
  0x35   : > { %601 = vmatmul.f32.gmra.mxu3 %v302_v34  ;;  %626 = vmatpush.msrb.mxu1 %v365_v35  ;;  %v202_v31 = vld [vmem:[%s1354_s22 + $0xc8] sm:$0xff]  ;;  %v287_v33 = vld [vmem:[%s1354_s22 + $0x370] sm:$0xff] }
  0x36   : > { %740 = vmatpush.msrb.mxu2 %v380_v36  ;;  %853 = vmatpush.msrb.mxu3 %v396_v37  ;;  %v327_v34 = vld [vmem:[%s1354_s22 + $0x4b0] sm:$0xff]  ;;  %v252_v36 = vld [vmem:[%s1354_s22 + $0x258] sm:$0xff] }
  0x37   : > { %971 = vmatpush.msrb.mxu0 %v407_v38  ;;  %627 = vmatpush.msrb.mxu1 %v364_v39  ;;  %v207_v35 = vld [vmem:[%s1354_s22 + $0xf0] sm:$0xff]  ;;  %v292_v37 = vld [vmem:[%s1354_s22 + $0x398] sm:$0xff] }
  0x38   : > { %741 = vmatpush.msrb.mxu2 %v379_v40  ;;  %854 = vmatpush.msrb.mxu3 %v395_v41  ;;  %v332_v38 = vld [vmem:[%s1354_s22 + $0x4d8] sm:$0xff]  ;;  %v178_v40 = vld [vmem:[%s1354_s22 + $0x8] sm:$0xff]  ;;  %v179_v41 = vld [vmem:[%s1354_s22 + $0x10] sm:$0xff] }
  0x39   : > { %529 = vmatmul.f32.gmra.mxu0 %v182_v42  ;;  %628 = vmatpush.msrb.mxu1 %v363_v43  ;;  %v212_v39 = vld [vmem:[%s1354_s22 + $0x118] sm:$0xff]  ;;  %v181_v43 = vld [vmem:[%s1354_s22 + $0x20] sm:$0xff] }
  0x3a   : > { %742 = vmatpush.msrb.mxu2 %v378_v44  ;;  %855 = vmatpush.msrb.mxu3 %v394_v45  ;;  %v180_v42 = vld [vmem:[%s1354_s22 + $0x18] sm:$0xff]  ;;  %v183_v44 = vld [vmem:[%s1354_s22 + $0x30] sm:$0xff] }
  0x3b   : > { %556 = vmatmul.f32.gmra.mxu1 %v227_v46  ;;  %580 = vmatmul.f32.gmra.mxu2 %v267_v47  ;;  %v184_v45 = vld [vmem:[%s1354_s22 + $0x38] sm:$0xff]  ;;  %v185_v46 = vld [vmem:[%s1354_s22 + $0x40] sm:$0xff]  ;;  %v186_v47 = vld [vmem:[%s1354_s22 + $0x48] sm:$0xff] }
  0x3c   : > { %972 = vmatpush.msrb.mxu0 %v406_v48  ;;  %629 = vmatpush.msrb.mxu1 %v362_v49  ;;  %v188_v48 = vld [vmem:[%s1354_s22 + $0x58] sm:$0xff]  ;;  %v189_v49 = vld [vmem:[%s1354_s22 + $0x60] sm:$0xff] }
  0x3d   : > { %604 = vmatmul.f32.gmra.mxu3 %v307_v50  ;;  %743 = vmatpush.msrb.mxu2 %v377_v51  ;;  %v190_v50 = vld [vmem:[%s1354_s22 + $0x68] sm:$0xff]  ;;  %v191_v51 = vld [vmem:[%s1354_s22 + $0x70] sm:$0xff] }
  0x3e   : > { %856 = vmatpush.msrb.mxu3 %v393_v52  ;;  %630 = vmatpush.msrb.mxu1 %v361_v53  ;;  %v193_v52 = vld [vmem:[%s1354_s22 + $0x80] sm:$0xff]  ;;  %v194_v53 = vld [vmem:[%s1354_s22 + $0x88] sm:$0xff] }
  0x3f   : > { %744 = vmatpush.msrb.mxu2 %v376_v54  ;;  %973 = vmatpush.msrb.mxu0 %v405_v55  ;;  %v195_v54 = vld [vmem:[%s1354_s22 + $0x90] sm:$0xff]  ;;  %v196_v55 = vld [vmem:[%s1354_s22 + $0x98] sm:$0xff] }
  0x40   : > { %857 = vmatpush.msrb.mxu3 %v392_v56  ;;  %631 = vmatpush.msrb.mxu1 %v360_v57  ;;  %v198_v56 = vld [vmem:[%s1354_s22 + $0xa8] sm:$0xff]  ;;  %v199_v57 = vld [vmem:[%s1354_s22 + $0xb0] sm:$0xff] }
  0x41   : > { %532 = vmatmul.f32.gmra.mxu0 %v187_v58  ;;  %745 = vmatpush.msrb.mxu2 %v375_v59  ;;  %v200_v58 = vld [vmem:[%s1354_s22 + $0xb8] sm:$0xff]  ;;  %v201_v59 = vld [vmem:[%s1354_s22 + $0xc0] sm:$0xff] }
  0x42   : > { %858 = vmatpush.msrb.mxu3 %v391_v60  ;;  %632 = vmatpush.msrb.mxu1 %v359_v61  ;;  %v203_v60 = vld [vmem:[%s1354_s22 + $0xd0] sm:$0xff]  ;;  %v204_v61 = vld [vmem:[%s1354_s22 + $0xd8] sm:$0xff] }
  0x43   : > { %559 = vmatmul.f32.gmra.mxu1 %v232_v62  ;;  %583 = vmatmul.f32.gmra.mxu2 %v272_v63  ;;  %v205_v62 = vld [vmem:[%s1354_s22 + $0xe0] sm:$0xff]  ;;  %v206_v63 = vld [vmem:[%s1354_s22 + $0xe8] sm:$0xff] }
  0x44   : > { %746 = vmatpush.msrb.mxu2 %v374_v0  ;;  %859 = vmatpush.msrb.mxu3 %v390_v1  ;;  %v208_v0 = vld [vmem:[%s1354_s22 + $0xf8] sm:$0xff]  ;;  %v209_v1 = vld [vmem:[%s1354_s22 + $0x100] sm:$0xff] }
  0x45   : > { %607 = vmatmul.f32.gmra.mxu3 %v312_v2  ;;  %974 = vmatpush.msrb.mxu0 %v404_v3  ;;  %v210_v2 = vld [vmem:[%s1354_s22 + $0x108] sm:$0xff]  ;;  %v211_v3 = vld [vmem:[%s1354_s22 + $0x110] sm:$0xff] }
  0x46   : > { %633 = vmatpush.msrb.mxu1 %v358_v4  ;;  %747 = vmatpush.msrb.mxu2 %v373_v5  ;;  %v213_v4 = vld [vmem:[%s1354_s22 + $0x120] sm:$0xff]  ;;  %v214_v5 = vld [vmem:[%s1354_s22 + $0x128] sm:$0xff] }
  0x47   : > { %860 = vmatpush.msrb.mxu3 %v389_v6  ;;  %975 = vmatpush.msrb.mxu0 %v403_v7  ;;  %v215_v6 = vld [vmem:[%s1354_s22 + $0x130] sm:$0xff]  ;;  %v216_v7 = vld [vmem:[%s1354_s22 + $0x138] sm:$0xff] }
  0x48   : > { %634 = vmatpush.msrb.mxu1 %v357_v8  ;;  %748 = vmatpush.msrb.mxu2 %v372_v9  ;;  %v218_v9 = vld [vmem:[%s1354_s22 + $0x148] sm:$0xff] }
  0x49   : > { %535 = vmatmul.f32.gmra.mxu0 %v192_v10  ;;  %861 = vmatpush.msrb.mxu3 %v388_v11  ;;  %v219_v10 = vld [vmem:[%s1354_s22 + $0x150] sm:$0xff]  ;;  %v220_v11 = vld [vmem:[%s1354_s22 + $0x158] sm:$0xff] }
  0x4a   : > { %635 = vmatpush.msrb.mxu1 %v356_v12  ;;  %749 = vmatpush.msrb.mxu2 %v371_v13  ;;  %v1607_v12 = vld [vmem:[%s1927_s2] ss:$0 sm:$0xff] }
  0x4b   : > { %562 = vmatmul.f32.gmra.mxu1 %v237_v14  ;;  %586 = vmatmul.f32.gmra.mxu2 %v277_v15  ;;  %v221_v15 = vld [vmem:[%s1354_s22 + $0x160] sm:$0xff] }
  0x4c   : > { %862 = vmatpush.msrb.mxu3 %v387_v16  ;;  %636 = vmatpush.msrb.mxu1 %v355_v17 }
  0x4d   : > { %610 = vmatmul.f32.gmra.mxu3 %v317_v18  ;;  %750 = vmatpush.msrb.mxu2 %v370_v19  ;;  %v223_v19 = vld [vmem:[%s1354_s22 + $0x170] sm:$0xff] }
  0x4e   : > { %863 = vmatpush.msrb.mxu3 %v386_v20  ;;  %976 = vmatpush.msrb.mxu0 %v402_v21  ;;  %v224_v20 = vld [vmem:[%s1354_s22 + $0x178] sm:$0xff] }
  0x4f   : > { %637 = vmatpush.msrb.mxu1 %v354_v22  ;;  %751 = vmatpush.msrb.mxu2 %v369_v23  ;;  %v225_v22 = vld [vmem:[%s1354_s22 + $0x180] sm:$0xff] }
  0x50   : > { %864 = vmatpush.msrb.mxu3 %v385_v24  ;;  %977 = vmatpush.msrb.mxu0 %v401_v25  ;;  %v226_v25 = vld [vmem:[%s1354_s22 + $0x188] sm:$0xff] }
  0x51   : > { %538 = vmatmul.f32.gmra.mxu0 %v197_v26  ;;  %638 = vmatpush.msrb.mxu1 %v353_v27 }
  0x53   : > { %565 = vmatmul.f32.gmra.mxu1 %v242_v28  ;;  %589 = vmatmul.f32.gmra.mxu2 %v282_v29  ;;  %v228_v29 = vld [vmem:[%s1354_s22 + $0x198] sm:$0xff] }
  0x55   : > { %613 = vmatmul.f32.gmra.mxu3 %v322_v30  ;;  %v229_v30 = vld [vmem:[%s1354_s22 + $0x1a0] sm:$0xff] }
  0x59   : > { %541 = vmatmul.f32.gmra.mxu0 %v202_v31 }
  0x5b   : > { %568 = vmatmul.f32.gmra.mxu1 %v247_v32  ;;  %592 = vmatmul.f32.gmra.mxu2 %v287_v33  ;;  %v230_v32 = vld [vmem:[%s1354_s22 + $0x1a8] sm:$0xff] }
  0x5d   : > { %616 = vmatmul.f32.gmra.mxu3 %v327_v34 }
  0x61   : > { %544 = vmatmul.f32.gmra.mxu0 %v207_v35  ;;  %v231_v35 = vld [vmem:[%s1354_s22 + $0x1b0] sm:$0xff] }
  0x63   : > { %571 = vmatmul.f32.gmra.mxu1 %v252_v36  ;;  %595 = vmatmul.f32.gmra.mxu2 %v292_v37 }
  0x65   : > { %619 = vmatmul.f32.gmra.mxu3 %v332_v38 }
  0x69   : > { %547 = vmatmul.f32.gmra.mxu0 %v212_v39  ;;  %v233_v39 = vld [vmem:[%s1354_s22 + $0x1c0] sm:$0xff] }
  0x6b   : > { %639 = vmatmul.f32.vlgmr.msrb.gmra.mxu1 %v178_v40  ;;  %752 = vmatmul.f32.vlgmr.msrb.gmra.mxu2 %v179_v41  ;;  %v234_v40 = vld [vmem:[%s1354_s22 + $0x1c8] sm:$0xff] }
  0x6d   : > { %865 = vmatmul.f32.vlgmr.msrb.gmra.mxu3 %v180_v42  ;;  %v235_v42 = vld [vmem:[%s1354_s22 + $0x1d0] sm:$0xff] }
  0x71   : > { %1173 = vmatmul.msk.f32.vlgmr.msrb.gmra.mxu0 %vm413_vm0, %v181_v43 }
  0x73   : > { %642 = vmatmul.f32.gmra.mxu1 %v183_v44  ;;  %755 = vmatmul.f32.gmra.mxu2 %v184_v45  ;;  %v236_v45 = vld [vmem:[%s1354_s22 + $0x1d8] sm:$0xff] }
  0x75   : > { %868 = vmatmul.f32.gmra.mxu3 %v185_v46 }
  0x79   : > { %1174 = vmatmul.msk.f32.gmra.mxu0 %vm413_vm0, %v186_v47 }
  0x7b   : > { %645 = vmatmul.f32.gmra.mxu1 %v188_v48  ;;  %758 = vmatmul.f32.gmra.mxu2 %v189_v49  ;;  %v238_v49 = vld [vmem:[%s1354_s22 + $0x1e8] sm:$0xff] }
  0x7d   : > { %871 = vmatmul.f32.gmra.mxu3 %v190_v50  ;;  %v239_v50 = vld [vmem:[%s1354_s22 + $0x1f0] sm:$0xff] }
  0x81   : > { %1175 = vmatmul.msk.f32.gmra.mxu0 %vm413_vm0, %v191_v51 }
  0x83   : > { %648 = vmatmul.f32.gmra.mxu1 %v193_v52  ;;  %761 = vmatmul.f32.gmra.mxu2 %v194_v53  ;;  %v240_v52 = vld [vmem:[%s1354_s22 + $0x1f8] sm:$0xff] }
  0x85   : > { %874 = vmatmul.f32.gmra.mxu3 %v195_v54 }
  0x89   : > { %1176 = vmatmul.msk.f32.gmra.mxu0 %vm413_vm0, %v196_v55  ;;  %v241_v55 = vld [vmem:[%s1354_s22 + $0x200] sm:$0xff] }
  0x8b   : > { %651 = vmatmul.f32.gmra.mxu1 %v198_v56  ;;  %764 = vmatmul.f32.gmra.mxu2 %v199_v57 }
  0x8d   : > { %877 = vmatmul.f32.gmra.mxu3 %v200_v58 }
  0x91   : > { %1177 = vmatmul.msk.f32.gmra.mxu0 %vm413_vm0, %v201_v59  ;;  %v243_v59 = vld [vmem:[%s1354_s22 + $0x210] sm:$0xff] }
  0x93   : > { %654 = vmatmul.f32.gmra.mxu1 %v203_v60  ;;  %767 = vmatmul.f32.gmra.mxu2 %v204_v61  ;;  %v244_v60 = vld [vmem:[%s1354_s22 + $0x218] sm:$0xff] }
  0x95   : > { %880 = vmatmul.f32.gmra.mxu3 %v205_v62  ;;  %v245_v62 = vld [vmem:[%s1354_s22 + $0x220] sm:$0xff] }
  0x99   : > { %1178 = vmatmul.msk.f32.gmra.mxu0 %vm413_vm0, %v206_v63 }
  0x9b   : > { %657 = vmatmul.f32.gmra.mxu1 %v208_v0  ;;  %770 = vmatmul.f32.gmra.mxu2 %v209_v1  ;;  %v246_v1 = vld [vmem:[%s1354_s22 + $0x228] sm:$0xff] }
  0x9d   : > { %883 = vmatmul.f32.gmra.mxu3 %v210_v2 }
  0xa1   : > { %1179 = vmatmul.msk.f32.gmra.mxu0 %vm413_vm0, %v211_v3 }
  0xa3   : > { %660 = vmatmul.f32.gmra.mxu1 %v213_v4  ;;  %773 = vmatmul.f32.gmra.mxu2 %v214_v5  ;;  %v248_v5 = vld [vmem:[%s1354_s22 + $0x238] sm:$0xff] }
  0xa5   : > { %886 = vmatmul.f32.gmra.mxu3 %v215_v6  ;;  %v249_v6 = vld [vmem:[%s1354_s22 + $0x240] sm:$0xff] }
  0xa8   : > { %v1598_v8 = vpop.f32.mrf.mxu1 }
  0xa9   : > { %1180 = vmatmul.msk.f32.gmra.mxu0 %vm413_vm0, %v216_v7 }
  0xab   : > { %663 = vmatmul.f32.gmra.mxu1 %v218_v9  ;;  %776 = vmatmul.f32.gmra.mxu2 %v219_v10  ;;  %v250_v9 = vld [vmem:[%s1354_s22 + $0x248] sm:$0xff] }
  0xad   : > { %889 = vmatmul.f32.gmra.mxu3 %v220_v11 }
  0xae   : > { %v575_v13 = vpop.f32.mrf.mxu2  ;;  %v1609_v14 = vpop.f32.mrf.mxu0 }
  0xaf   : > { %v1613_v16 = vadd.f32 %v1607_v12, %v575_v13  ;;  %v251_v13 = vld [vmem:[%s1354_s22 + $0x250] sm:$0xff] }
  0xb0   : > { %v1615_v17 = vpop.f32.mrf.mxu1  ;;  %v599_v18 = vpop.f32.mrf.mxu3 }
  0xb1   : > { %v1620_v21 = vadd.f32 %v1607_v12, %v599_v18  ;;  %1181 = vmatmul.msk.f32.gmra.mxu0 %vm413_vm0, %v221_v15 }
  0xb3   : > { %666 = vmatmul.f32.gmra.mxu1 %v223_v19  ;;  %779 = vmatmul.f32.gmra.mxu2 %v224_v20  ;;  %v253_v20 = vld [vmem:[%s1354_s22 + $0x260] sm:$0xff] }
  0xb5   : > { %892 = vmatmul.f32.gmra.mxu3 %v225_v22  ;;  %v254_v22 = vld [vmem:[%s1354_s22 + $0x268] sm:$0xff] }
  0xb6   : > { %v578_v23 = vpop.f32.mrf.mxu2  ;;  %v1624_v24 = vpop.f32.mrf.mxu0 }
  0xb7   : > { %v1628_v26 = vadd.f32 %v1607_v12, %v578_v23 }
  0xb8   : > { %v1630_v27 = vpop.f32.mrf.mxu1  ;;  %v602_v28 = vpop.f32.mrf.mxu3 }
  0xb9   : > { %v1635_v31 = vadd.f32 %v1607_v12, %v602_v28  ;;  %1182 = vmatmul.msk.f32.gmra.mxu0 %vm413_vm0, %v226_v25  ;;  %v255_v25 = vld [vmem:[%s1354_s22 + $0x270] sm:$0xff] }
  0xbb   : > { %669 = vmatmul.f32.gmra.mxu1 %v228_v29  ;;  %782 = vmatmul.f32.gmra.mxu2 %v229_v30  ;;  %v256_v30 = vld [vmem:[%s1354_s22 + $0x278] sm:$0xff] }
  0xbd   : > { %895 = vmatmul.f32.gmra.mxu3 %v230_v32 }
  0xbe   : > { %v581_v33 = vpop.f32.mrf.mxu2  ;;  %v1639_v34 = vpop.f32.mrf.mxu0 }
  0xbf   : > { %v1643_v36 = vadd.f32 %v1607_v12, %v581_v33 }
  0xc0   : > { %v1645_v37 = vpop.f32.mrf.mxu1  ;;  %v605_v38 = vpop.f32.mrf.mxu3 }
  0xc1   : > { %v1650_v41 = vadd.f32 %v1607_v12, %v605_v38  ;;  %1183 = vmatmul.msk.f32.gmra.mxu0 %vm413_vm0, %v231_v35  ;;  %v258_v38 = vld [vmem:[%s1354_s22 + $0x288] sm:$0xff] }
  0xc3   : > { %672 = vmatmul.f32.gmra.mxu1 %v233_v39  ;;  %785 = vmatmul.f32.gmra.mxu2 %v234_v40  ;;  %v259_v39 = vld [vmem:[%s1354_s22 + $0x290] sm:$0xff] }
  0xc5   : > { %898 = vmatmul.f32.gmra.mxu3 %v235_v42  ;;  %v260_v42 = vld [vmem:[%s1354_s22 + $0x298] sm:$0xff] }
  0xc6   : > { %v584_v43 = vpop.f32.mrf.mxu2  ;;  %v1654_v44 = vpop.f32.mrf.mxu0 }
  0xc7   : > { %v1658_v46 = vadd.f32 %v1607_v12, %v584_v43  ;;  %v528_v43 = vadd.f32 %v1607_v12, %v1609_v14  ;;  %v265_v14 = vld [vmem:[%s1354_s22 + $0x2c0] sm:$0xff] }
  0xc8   : > { %v1660_v47 = vpop.f32.mrf.mxu1  ;;  %v608_v48 = vpop.f32.mrf.mxu3 }
  0xc9   : > { %v1665_v51 = vadd.f32 %v1607_v12, %v608_v48  ;;  %1184 = vmatmul.msk.f32.gmra.mxu0 %vm413_vm0, %v236_v45 }
  0xcb   : > { %675 = vmatmul.f32.gmra.mxu1 %v238_v49  ;;  %788 = vmatmul.f32.gmra.mxu2 %v239_v50  ;;  %v261_v50 = vld [vmem:[%s1354_s22 + $0x2a0] sm:$0xff] }
  0xcd   : > { %901 = vmatmul.f32.gmra.mxu3 %v240_v52 }
  0xce   : > { %v587_v53 = vpop.f32.mrf.mxu2  ;;  %v1669_v54 = vpop.f32.mrf.mxu0 }
  0xcf   : > { %v1673_v56 = vadd.f32 %v1607_v12, %v587_v53 }
  0xd0   : > { %v1675_v57 = vpop.f32.mrf.mxu1  ;;  %v611_v58 = vpop.f32.mrf.mxu3 }
  0xd1   : > { %v1680_v61 = vadd.f32 %v1607_v12, %v611_v58  ;;  %1185 = vmatmul.msk.f32.gmra.mxu0 %vm413_vm0, %v241_v55  ;;  %v263_v58 = vld [vmem:[%s1354_s22 + $0x2b0] sm:$0xff] }
  0xd3   : > { %678 = vmatmul.f32.gmra.mxu1 %v243_v59  ;;  %791 = vmatmul.f32.gmra.mxu2 %v244_v60  ;;  %v264_v59 = vld [vmem:[%s1354_s22 + $0x2b8] sm:$0xff] }
  0xd5   : > { %904 = vmatmul.f32.gmra.mxu3 %v245_v62  ;;  %v531_v62 = vadd.f32 %v1607_v12, %v1624_v24  ;;  %v270_v24 = vld [vmem:[%s1354_s22 + $0x2e8] sm:$0xff] }
  0xd6   : > { %v590_v63 = vpop.f32.mrf.mxu2  ;;  %v1684_v0 = vpop.f32.mrf.mxu0 }
  0xd7   : > { %v1688_v2 = vadd.f32 %v1607_v12, %v590_v63 }
  0xd8   : > { %v1690_v3 = vpop.f32.mrf.mxu1  ;;  %v614_v4 = vpop.f32.mrf.mxu3 }
  0xd9   : > { %v1695_v7 = vadd.f32 %v1607_v12, %v614_v4  ;;  %1186 = vmatmul.msk.f32.gmra.mxu0 %vm413_vm0, %v246_v1 }
  0xdb   : > { %681 = vmatmul.f32.gmra.mxu1 %v248_v5  ;;  %794 = vmatmul.f32.gmra.mxu2 %v249_v6  ;;  %v266_v6 = vld [vmem:[%s1354_s22 + $0x2c8] sm:$0xff] }
  0xdd   : > { %907 = vmatmul.f32.gmra.mxu3 %v250_v9 }
  0xde   : > { %v593_v10 = vpop.f32.mrf.mxu2  ;;  %v1699_v11 = vpop.f32.mrf.mxu0 }
  0xdf   : > { %v1703_v15 = vadd.f32 %v1607_v12, %v593_v10 }
  0xe0   : > { %v1705_v18 = vpop.f32.mrf.mxu1  ;;  %v617_v19 = vpop.f32.mrf.mxu3 }
  0xe1   : > { %v1710_v23 = vadd.f32 %v1607_v12, %v617_v19  ;;  %1187 = vmatmul.msk.f32.gmra.mxu0 %vm413_vm0, %v251_v13  ;;  %v268_v19 = vld [vmem:[%s1354_s22 + $0x2d8] sm:$0xff] }
  0xe3   : > { %684 = vmatmul.f32.gmra.mxu1 %v253_v20  ;;  %797 = vmatmul.f32.gmra.mxu2 %v254_v22  ;;  %v269_v20 = vld [vmem:[%s1354_s22 + $0x2e0] sm:$0xff] }
  0xe5   : > { %910 = vmatmul.f32.gmra.mxu3 %v255_v25  ;;  %v534_v25 = vadd.f32 %v1607_v12, %v1639_v34  ;;  %v275_v34 = vld [vmem:[%s1354_s22 + $0x310] sm:$0xff] }
  0xe6   : > { %v596_v28 = vpop.f32.mrf.mxu2  ;;  %v1714_v29 = vpop.f32.mrf.mxu0 }
  0xe7   : > { %v1718_v32 = vadd.f32 %v1607_v12, %v596_v28 }
  0xe8   : > { %v620_v33 = vpop.f32.mrf.mxu3  ;;  %v640_v35 = vpop.f32.mrf.mxu1 }
  0xe9   : > { %v1723_v40 = vadd.f32 %v1607_v12, %v620_v33  ;;  %1188 = vmatmul.msk.f32.gmra.mxu0 %vm413_vm0, %v256_v30  ;;  %v641_v45 = vadd.f32 %v640_v35, %v528_v43 }
  0xeb   : > { %687 = vmatmul.f32.gmra.mxu1 %v258_v38  ;;  %800 = vmatmul.f32.gmra.mxu2 %v259_v39  ;;  %v271_v38 = vld [vmem:[%s1354_s22 + $0x2f0] sm:$0xff] }
  0xed   : > { %913 = vmatmul.f32.gmra.mxu3 %v260_v42 }
  0xee   : > { %v753_v48 = vpop.f32.mrf.mxu2  ;;  %v979_v49 = vpop.f32.mrf.mxu0 }
  0xef   : > { %v754_v52 = vadd.f32 %v753_v48, %v641_v45  ;;  %v273_v45 = vld [vmem:[%s1354_s22 + $0x300] sm:$0xff]  ;;  %v274_v48 = vld [vmem:[%s1354_s22 + $0x308] sm:$0xff] }
  0xf0   : > { %v643_v53 = vpop.f32.mrf.mxu1  ;;  %v866_v55 = vpop.f32.mrf.mxu3 }
  0xf1   : > { %v867_v60 = vadd.f32 %v866_v55, %v754_v52  ;;  %1189 = vmatmul.msk.f32.gmra.mxu0 %vm413_vm0, %v261_v50  ;;  %v644_v1 = vadd.f32 %v643_v53, %v531_v62  ;;  %v537_v50 = vadd.f32 %v1607_v12, %v1654_v44  ;;  %v280_v44 = vld [vmem:[%s1354_s22 + $0x338] sm:$0xff] }
  0xf3   : > { %v980_v63 = vadd.f32 %v979_v49, %v867_v60  ;;  %690 = vmatmul.f32.gmra.mxu1 %v263_v58  ;;  %803 = vmatmul.f32.gmra.mxu2 %v264_v59  ;;  %v276_v59 = vld [vmem:[%s1354_s22 + $0x318] sm:$0xff] }
  0xf5   : > { %1076 = vst.msk [vmem:[%s1737_s21] sm:$0xff] %vm1075_vm1, %v980_v63  ;;  %916 = vmatmul.f32.gmra.mxu3 %v265_v14  ;;  %v278_v63 = vld [vmem:[%s1354_s22 + $0x328] sm:$0xff] }
  0xf6   : > { %v756_v4 = vpop.f32.mrf.mxu2  ;;  %v982_v5 = vpop.f32.mrf.mxu0 }
  0xf7   : > { %v757_v9 = vadd.f32 %v756_v4, %v644_v1  ;;  %v279_v1 = vld [vmem:[%s1354_s22 + $0x330] sm:$0xff] }
  0xf8   : > { %v646_v10 = vpop.f32.mrf.mxu1  ;;  %v869_v13 = vpop.f32.mrf.mxu3 }
  0xf9   : > { %v870_v22 = vadd.f32 %v869_v13, %v757_v9  ;;  %1190 = vmatmul.msk.f32.gmra.mxu0 %vm413_vm0, %v266_v6  ;;  %v647_v30 = vadd.f32 %v646_v10, %v534_v25  ;;  %v283_v25 = vld [vmem:[%s1354_s22 + $0x350] sm:$0xff] }
  0xfb   : > { %v983_v28 = vadd.f32 %v982_v5, %v870_v22  ;;  %693 = vmatmul.f32.gmra.mxu1 %v268_v19  ;;  %806 = vmatmul.f32.gmra.mxu2 %v269_v20  ;;  %v540_v5 = vadd.f32 %v1607_v12, %v1669_v54  ;;  %v281_v19 = vld [vmem:[%s1354_s22 + $0x340] sm:$0xff] }
  0xfc   : > { %v285_v54 = vld [vmem:[%s1354_s22 + $0x360] sm:$0xff] }
  0xfd   : > { %1077 = vst.msk [vmem:[%s1737_s21 + $0x8] sm:$0xff] %vm1075_vm1, %v983_v28  ;;  %919 = vmatmul.f32.gmra.mxu3 %v270_v24  ;;  %v284_v28 = vld [vmem:[%s1354_s22 + $0x358] sm:$0xff] }
  0xfe   : > { %v759_v33 = vpop.f32.mrf.mxu2  ;;  %v985_v35 = vpop.f32.mrf.mxu0 }
  0xff   : > { %v760_v39 = vadd.f32 %v759_v33, %v647_v30  ;;  %v543_v33 = vadd.f32 %v1607_v12, %v1684_v0  ;;  %v290_v0 = vld [vmem:[%s1354_s22 + $0x388] sm:$0xff] }
 0x100   : > { %v649_v42 = vpop.f32.mrf.mxu1  ;;  %v872_v43 = vpop.f32.mrf.mxu3 }
 0x101   : > { %v873_v49 = vadd.f32 %v872_v43, %v760_v39  ;;  %1191 = vmatmul.msk.f32.gmra.mxu0 %vm413_vm0, %v271_v38  ;;  %v650_v53 = vadd.f32 %v649_v42, %v537_v50  ;;  %v286_v43 = vld [vmem:[%s1354_s22 + $0x368] sm:$0xff]  ;;  %v289_v50 = vld [vmem:[%s1354_s22 + $0x380] sm:$0xff] }
 0x103   : > { %v986_v52 = vadd.f32 %v985_v35, %v873_v49  ;;  %696 = vmatmul.f32.gmra.mxu1 %v273_v45  ;;  %809 = vmatmul.f32.gmra.mxu2 %v274_v48 }
 0x105   : > { %1078 = vst.msk [vmem:[%s1737_s21 + $0x10] sm:$0xff] %vm1075_vm1, %v986_v52  ;;  %922 = vmatmul.f32.gmra.mxu3 %v275_v34  ;;  %v288_v34 = vld [vmem:[%s1354_s22 + $0x378] sm:$0xff] }
 0x106   : > { %v762_v55 = vpop.f32.mrf.mxu2  ;;  %v988_v58 = vpop.f32.mrf.mxu0 }
 0x107   : > { %v763_v60 = vadd.f32 %v762_v55, %v650_v53  ;;  %v546_v53 = vadd.f32 %v1607_v12, %v1699_v11  ;;  %v295_v11 = vld [vmem:[%s1354_s22 + $0x3b0] sm:$0xff] }
 0x108   : > { %v652_v14 = vpop.f32.mrf.mxu1  ;;  %v875_v62 = vpop.f32.mrf.mxu3 }
 0x109   : > { %v876_v4 = vadd.f32 %v875_v62, %v763_v60  ;;  %1192 = vmatmul.msk.f32.gmra.mxu0 %vm413_vm0, %v276_v59  ;;  %v653_v9 = vadd.f32 %v652_v14, %v540_v5  ;;  %v291_v14 = vld [vmem:[%s1354_s22 + $0x390] sm:$0xff] }
 0x10b   : > { %v989_v6 = vadd.f32 %v988_v58, %v876_v4  ;;  %699 = vmatmul.f32.gmra.mxu1 %v278_v63  ;;  %812 = vmatmul.f32.gmra.mxu2 %v279_v1  ;;  %v293_v4 = vld [vmem:[%s1354_s22 + $0x3a0] sm:$0xff] }
 0x10d   : > { %1079 = vst.msk [vmem:[%s1737_s21 + $0x18] sm:$0xff] %vm1075_vm1, %v989_v6  ;;  %925 = vmatmul.f32.gmra.mxu3 %v280_v44  ;;  %v294_v44 = vld [vmem:[%s1354_s22 + $0x3a8] sm:$0xff]  ;;  %v549_v6 = vadd.f32 %v1607_v12, %v1714_v29  ;;  %v300_v29 = vld [vmem:[%s1354_s22 + $0x3d8] sm:$0xff] }
 0x10e   : > { %v765_v10 = vpop.f32.mrf.mxu2  ;;  %v991_v13 = vpop.f32.mrf.mxu0 }
 0x10f   : > { %v766_v20 = vadd.f32 %v765_v10, %v653_v9 }
 0x110   : > { %v655_v22 = vpop.f32.mrf.mxu1  ;;  %v878_v24 = vpop.f32.mrf.mxu3 }
 0x111   : > { %v879_v30 = vadd.f32 %v878_v24, %v766_v20  ;;  %1193 = vmatmul.msk.f32.gmra.mxu0 %vm413_vm0, %v281_v19  ;;  %v656_v38 = vadd.f32 %v655_v22, %v543_v33  ;;  %v296_v20 = vld [vmem:[%s1354_s22 + $0x3b8] sm:$0xff]  ;;  %v552_v33 = vadd.f32 %v1607_v12, %v1598_v8  ;;  %v305_v8 = vld [vmem:[%s1354_s22 + $0x400] sm:$0xff] }
 0x113   : > { %v992_v35 = vadd.f32 %v991_v13, %v879_v30  ;;  %702 = vmatmul.f32.gmra.mxu1 %v283_v25  ;;  %815 = vmatmul.f32.gmra.mxu2 %v284_v28  ;;  %v298_v28 = vld [vmem:[%s1354_s22 + $0x3c8] sm:$0xff]  ;;  %v299_v30 = vld [vmem:[%s1354_s22 + $0x3d0] sm:$0xff] }
 0x115   : > { %1080 = vst.msk [vmem:[%s1737_s21 + $0x20] sm:$0xff] %vm1075_vm1, %v992_v35  ;;  %928 = vmatmul.f32.gmra.mxu3 %v285_v54 }
 0x116   : > { %v768_v39 = vpop.f32.mrf.mxu2  ;;  %v994_v42 = vpop.f32.mrf.mxu0 }
 0x117   : > { %v769_v45 = vadd.f32 %v768_v39, %v656_v38 }
 0x118   : > { %v658_v48 = vpop.f32.mrf.mxu1  ;;  %v881_v49 = vpop.f32.mrf.mxu3 }
 0x119   : > { %v882_v52 = vadd.f32 %v881_v49, %v769_v45  ;;  %1194 = vmatmul.msk.f32.gmra.mxu0 %vm413_vm0, %v286_v43  ;;  %v659_v58 = vadd.f32 %v658_v48, %v546_v53  ;;  %v301_v43 = vld [vmem:[%s1354_s22 + $0x3e0] sm:$0xff] }
 0x11b   : > { %v995_v55 = vadd.f32 %v994_v42, %v882_v52  ;;  %705 = vmatmul.f32.gmra.mxu1 %v288_v34  ;;  %818 = vmatmul.f32.gmra.mxu2 %v289_v50  ;;  %v303_v34 = vld [vmem:[%s1354_s22 + $0x3f0] sm:$0xff]  ;;  %v304_v50 = vld [vmem:[%s1354_s22 + $0x3f8] sm:$0xff] }
 0x11d   : > { %1081 = vst.msk [vmem:[%s1737_s21 + $0x28] sm:$0xff] %vm1075_vm1, %v995_v55  ;;  %931 = vmatmul.f32.gmra.mxu3 %v290_v0  ;;  %v555_v0 = vadd.f32 %v1607_v12, %v1615_v17  ;;  %v310_v17 = vld [vmem:[%s1354_s22 + $0x428] sm:$0xff] }
 0x11e   : > { %v771_v59 = vpop.f32.mrf.mxu2  ;;  %v997_v60 = vpop.f32.mrf.mxu0 }
 0x11f   : > { %v772_v62 = vadd.f32 %v771_v59, %v659_v58 }
 0x120   : > { %v661_v63 = vpop.f32.mrf.mxu1  ;;  %v884_v1 = vpop.f32.mrf.mxu3 }
 0x121   : > { %v885_v5 = vadd.f32 %v884_v1, %v772_v62  ;;  %1195 = vmatmul.msk.f32.gmra.mxu0 %vm413_vm0, %v291_v14  ;;  %v662_v10 = vadd.f32 %v661_v63, %v549_v6  ;;  %v308_v1 = vld [vmem:[%s1354_s22 + $0x418] sm:$0xff] }
 0x123   : > { %v998_v9 = vadd.f32 %v997_v60, %v885_v5  ;;  %708 = vmatmul.f32.gmra.mxu1 %v293_v4  ;;  %821 = vmatmul.f32.gmra.mxu2 %v294_v44  ;;  %v306_v60 = vld [vmem:[%s1354_s22 + $0x408] sm:$0xff]  ;;  %v309_v4 = vld [vmem:[%s1354_s22 + $0x420] sm:$0xff]  ;;  %v558_v5 = vadd.f32 %v1607_v12, %v1630_v27  ;;  %v315_v27 = vld [vmem:[%s1354_s22 + $0x450] sm:$0xff] }
 0x125   : > { %1082 = vst.msk [vmem:[%s1737_s21 + $0x30] sm:$0xff] %vm1075_vm1, %v998_v9  ;;  %934 = vmatmul.f32.gmra.mxu3 %v295_v11 }
 0x126   : > { %v774_v13 = vpop.f32.mrf.mxu2  ;;  %v1000_v19 = vpop.f32.mrf.mxu0 }
 0x127   : > { %v775_v22 = vadd.f32 %v774_v13, %v662_v10  ;;  %v311_v13 = vld [vmem:[%s1354_s22 + $0x430] sm:$0xff] }
 0x128   : > { %v664_v24 = vpop.f32.mrf.mxu1  ;;  %v887_v25 = vpop.f32.mrf.mxu3 }
 0x129   : > { %v888_v54 = vadd.f32 %v887_v25, %v775_v22  ;;  %1196 = vmatmul.msk.f32.gmra.mxu0 %vm413_vm0, %v296_v20  ;;  %v665_v38 = vadd.f32 %v664_v24, %v552_v33  ;;  %v313_v24 = vld [vmem:[%s1354_s22 + $0x440] sm:$0xff]  ;;  %v314_v25 = vld [vmem:[%s1354_s22 + $0x448] sm:$0xff] }
 0x12b   : > { %v1001_v35 = vadd.f32 %v1000_v19, %v888_v54  ;;  %711 = vmatmul.f32.gmra.mxu1 %v298_v28  ;;  %824 = vmatmul.f32.gmra.mxu2 %v299_v30  ;;  %v561_v30 = vadd.f32 %v1607_v12, %v1645_v37  ;;  %v320_v37 = vld [vmem:[%s1354_s22 + $0x478] sm:$0xff] }
 0x12d   : > { %1083 = vst.msk [vmem:[%s1737_s21 + $0x38] sm:$0xff] %vm1075_vm1, %v1001_v35  ;;  %937 = vmatmul.f32.gmra.mxu3 %v300_v29 }
 0x12e   : > { %v777_v39 = vpop.f32.mrf.mxu2  ;;  %v1003_v42 = vpop.f32.mrf.mxu0 }
 0x12f   : > { %v778_v45 = vadd.f32 %v777_v39, %v665_v38  ;;  %v316_v38 = vld [vmem:[%s1354_s22 + $0x458] sm:$0xff] }
 0x130   : > { %v667_v48 = vpop.f32.mrf.mxu1  ;;  %v890_v49 = vpop.f32.mrf.mxu3 }
 0x131   : > { %v891_v52 = vadd.f32 %v890_v49, %v778_v45  ;;  %1197 = vmatmul.msk.f32.gmra.mxu0 %vm413_vm0, %v301_v43  ;;  %v668_v55 = vadd.f32 %v667_v48, %v555_v0  ;;  %v318_v45 = vld [vmem:[%s1354_s22 + $0x468] sm:$0xff]  ;;  %v319_v48 = vld [vmem:[%s1354_s22 + $0x470] sm:$0xff] }
 0x133   : > { %v1004_v53 = vadd.f32 %v1003_v42, %v891_v52  ;;  %714 = vmatmul.f32.gmra.mxu1 %v303_v34  ;;  %827 = vmatmul.f32.gmra.mxu2 %v304_v50  ;;  %v564_v34 = vadd.f32 %v1607_v12, %v1660_v47  ;;  %v325_v47 = vld [vmem:[%s1354_s22 + $0x4a0] sm:$0xff] }
 0x135   : > { %1084 = vst.msk [vmem:[%s1737_s21 + $0x40] sm:$0xff] %vm1075_vm1, %v1004_v53  ;;  %940 = vmatmul.f32.gmra.mxu3 %v305_v8  ;;  %v321_v53 = vld [vmem:[%s1354_s22 + $0x480] sm:$0xff] }
 0x136   : > { %v780_v58 = vpop.f32.mrf.mxu2  ;;  %v1006_v59 = vpop.f32.mrf.mxu0 }
 0x137   : > { %v781_v14 = vadd.f32 %v780_v58, %v668_v55 }
 0x138   : > { %v670_v62 = vpop.f32.mrf.mxu1  ;;  %v893_v63 = vpop.f32.mrf.mxu3 }
 0x139   : > { %v894_v44 = vadd.f32 %v893_v63, %v781_v14  ;;  %1198 = vmatmul.msk.f32.gmra.mxu0 %vm413_vm0, %v306_v60  ;;  %v671_v6 = vadd.f32 %v670_v62, %v558_v5  ;;  %v323_v60 = vld [vmem:[%s1354_s22 + $0x490] sm:$0xff]  ;;  %v324_v14 = vld [vmem:[%s1354_s22 + $0x498] sm:$0xff]  ;;  %v567_v63 = vadd.f32 %v1607_v12, %v1675_v57  ;;  %v326_v5 = vld [vmem:[%s1354_s22 + $0x4a8] sm:$0xff] }
 0x13a   : > { %v330_v57 = vld [vmem:[%s1354_s22 + $0x4c8] sm:$0xff] }
 0x13b   : > { %v1007_v11 = vadd.f32 %v1006_v59, %v894_v44  ;;  %717 = vmatmul.f32.gmra.mxu1 %v308_v1  ;;  %830 = vmatmul.f32.gmra.mxu2 %v309_v4 }
 0x13d   : > { %1085 = vst.msk [vmem:[%s1737_s21 + $0x48] sm:$0xff] %vm1075_vm1, %v1007_v11  ;;  %943 = vmatmul.f32.gmra.mxu3 %v310_v17 }
 0x13e   : > { %v783_v9 = vpop.f32.mrf.mxu2  ;;  %v1009_v10 = vpop.f32.mrf.mxu0 }
 0x13f   : > { %v784_v19 = vadd.f32 %v783_v9, %v671_v6 }
 0x140   : > { %v673_v20 = vpop.f32.mrf.mxu1  ;;  %v896_v22 = vpop.f32.mrf.mxu3 }
 0x141   : > { %v897_v28 = vadd.f32 %v896_v22, %v784_v19  ;;  %1199 = vmatmul.msk.f32.gmra.mxu0 %vm413_vm0, %v311_v13  ;;  %v674_v29 = vadd.f32 %v673_v20, %v561_v30  ;;  %v329_v13 = vld [vmem:[%s1354_s22 + $0x4c0] sm:$0xff]  ;;  %v570_v20 = vadd.f32 %v1607_v12, %v1690_v3  ;;  %v335_v3 = vld [vmem:[%s1354_s22 + $0x4f0] sm:$0xff] }
 0x143   : > { %v1010_v54 = vadd.f32 %v1009_v10, %v897_v28  ;;  %720 = vmatmul.f32.gmra.mxu1 %v313_v24  ;;  %833 = vmatmul.f32.gmra.mxu2 %v314_v25  ;;  %v328_v10 = vld [vmem:[%s1354_s22 + $0x4b8] sm:$0xff] }
 0x145   : > { %1086 = vst.msk [vmem:[%s1737_s21 + $0x50] sm:$0xff] %vm1075_vm1, %v1010_v54  ;;  %946 = vmatmul.f32.gmra.mxu3 %v315_v27  ;;  %v331_v27 = vld [vmem:[%s1354_s22 + $0x4d0] sm:$0xff] }
 0x146   : > { %v786_v33 = vpop.f32.mrf.mxu2  ;;  %v1012_v35 = vpop.f32.mrf.mxu0 }
 0x147   : > { %v787_v39 = vadd.f32 %v786_v33, %v674_v29  ;;  %v333_v33 = vld [vmem:[%s1354_s22 + $0x4e0] sm:$0xff] }
 0x148   : > { %v676_v42 = vpop.f32.mrf.mxu1  ;;  %v899_v43 = vpop.f32.mrf.mxu3 }
 0x149   : > { %v900_v49 = vadd.f32 %v899_v43, %v787_v39  ;;  %1200 = vmatmul.msk.f32.gmra.mxu0 %vm413_vm0, %v316_v38  ;;  %v677_v52 = vadd.f32 %v676_v42, %v564_v34  ;;  %v573_v39 = vadd.f32 %v1607_v12, %v1705_v18 }
 0x14b   : > { %v1013_v50 = vadd.f32 %v1012_v35, %v900_v49  ;;  %723 = vmatmul.f32.gmra.mxu1 %v318_v45  ;;  %836 = vmatmul.f32.gmra.mxu2 %v319_v48  ;;  %v334_v35 = vld [vmem:[%s1354_s22 + $0x4e8] sm:$0xff]  ;;  %v336_v49 = vld [vmem:[%s1354_s22 + $0x4f8] sm:$0xff] }
 0x14d   : > { %1087 = vst.msk [vmem:[%s1737_s21 + $0x58] sm:$0xff] %vm1075_vm1, %v1013_v50  ;;  %949 = vmatmul.f32.gmra.mxu3 %v320_v37 }
 0x14e   : > { %v789_v8 = vpop.f32.mrf.mxu2  ;;  %v1015_v0 = vpop.f32.mrf.mxu0 }
 0x14f   : > { %v790_v55 = vadd.f32 %v789_v8, %v677_v52 }
 0x150   : > { %v679_v58 = vpop.f32.mrf.mxu1  ;;  %v902_v59 = vpop.f32.mrf.mxu3 }
 0x151   : > { %v903_v62 = vadd.f32 %v902_v59, %v790_v55  ;;  %1201 = vmatmul.msk.f32.gmra.mxu0 %vm413_vm0, %v321_v53  ;;  %v680_v4 = vadd.f32 %v679_v58, %v567_v63 }
 0x153   : > { %v1016_v1 = vadd.f32 %v1015_v0, %v903_v62  ;;  %726 = vmatmul.f32.gmra.mxu1 %v323_v60  ;;  %839 = vmatmul.f32.gmra.mxu2 %v324_v14 }
 0x155   : > { %1088 = vst.msk [vmem:[%s1737_s21 + $0x60] sm:$0xff] %vm1075_vm1, %v1016_v1  ;;  %952 = vmatmul.f32.gmra.mxu3 %v325_v47 }
 0x156   : > { %v792_v44 = vpop.f32.mrf.mxu2  ;;  %v1018_v17 = vpop.f32.mrf.mxu0 }
 0x157   : > { %v793_v11 = vadd.f32 %v792_v44, %v680_v4 }
 0x158   : > { %v682_v6 = vpop.f32.mrf.mxu1  ;;  %v905_v9 = vpop.f32.mrf.mxu3 }
 0x159   : > { %v906_v19 = vadd.f32 %v905_v9, %v793_v11  ;;  %1202 = vmatmul.msk.f32.gmra.mxu0 %vm413_vm0, %v326_v5  ;;  %v683_v24 = vadd.f32 %v682_v6, %v570_v20 }
 0x15b   : > { %v1019_v22 = vadd.f32 %v1018_v17, %v906_v19  ;;  %729 = vmatmul.f32.gmra.mxu1 %v328_v10  ;;  %842 = vmatmul.f32.gmra.mxu2 %v329_v13 }
 0x15d   : > { %1089 = vst.msk [vmem:[%s1737_s21 + $0x68] sm:$0xff] %vm1075_vm1, %v1019_v22  ;;  %955 = vmatmul.f32.gmra.mxu3 %v330_v57 }
 0x15e   : > { %v795_v25 = vpop.f32.mrf.mxu2  ;;  %v1021_v28 = vpop.f32.mrf.mxu0 }
 0x15f   : > { %v796_v30 = vadd.f32 %v795_v25, %v683_v24 }
 0x160   : > { %v685_v54 = vpop.f32.mrf.mxu1  ;;  %v908_v29 = vpop.f32.mrf.mxu3 }
 0x161   : > { %v909_v38 = vadd.f32 %v908_v29, %v796_v30  ;;  %1203 = vmatmul.msk.f32.gmra.mxu0 %vm413_vm0, %v331_v27  ;;  %v686_v43 = vadd.f32 %v685_v54, %v573_v39 }
 0x163   : > { %v1022_v42 = vadd.f32 %v1021_v28, %v909_v38  ;;  %732 = vmatmul.f32.gmra.mxu1 %v333_v33  ;;  %845 = vmatmul.f32.gmra.mxu2 %v334_v35 }
 0x165   : > { %1090 = vst.msk [vmem:[%s1737_s21 + $0x70] sm:$0xff] %vm1075_vm1, %v1022_v42  ;;  %958 = vmatmul.f32.gmra.mxu3 %v335_v3 }
 0x166   : > { %v798_v45 = vpop.f32.mrf.mxu2  ;;  %v1024_v48 = vpop.f32.mrf.mxu0 }
 0x167   : > { %v799_v37 = vadd.f32 %v798_v45, %v686_v43 }
 0x168   : > { %v688_v34 = vpop.f32.mrf.mxu1  ;;  %v911_v50 = vpop.f32.mrf.mxu3 }
 0x169   : > { %v912_v52 = vadd.f32 %v911_v50, %v799_v37  ;;  %1204 = vmatmul.msk.f32.gmra.mxu0 %vm413_vm0, %v336_v49  ;;  %v689_v12 = vadd.f32 %v688_v34, %v1613_v16 }
 0x16b   : > { %v1025_v8 = vadd.f32 %v1024_v48, %v912_v52 }
 0x16d   : > { %1091 = vst.msk [vmem:[%s1737_s21 + $0x78] sm:$0xff] %vm1075_vm1, %v1025_v8 }
 0x16e   : > { %v801_v18 = vpop.f32.mrf.mxu2  ;;  %v1027_v0 = vpop.f32.mrf.mxu0 }
 0x16f   : > { %v802_v53 = vadd.f32 %v801_v18, %v689_v12 }
 0x170   : > { %v691_v55 = vpop.f32.mrf.mxu1  ;;  %v914_v58 = vpop.f32.mrf.mxu3 }
 0x171   : > { %v915_v59 = vadd.f32 %v914_v58, %v802_v53  ;;  %v692_v14 = vadd.f32 %v691_v55, %v1628_v26 }
 0x173   : > { %v1028_v60 = vadd.f32 %v1027_v0, %v915_v59 }
 0x175   : > { %1092 = vst.msk [vmem:[%s1737_s21 + $0x80] sm:$0xff] %vm1075_vm1, %v1028_v60 }
 0x176   : > { %v804_v62 = vpop.f32.mrf.mxu2  ;;  %v1030_v47 = vpop.f32.mrf.mxu0 }
 0x177   : > { %v805_v63 = vadd.f32 %v804_v62, %v692_v14 }
 0x178   : > { %v694_v1 = vpop.f32.mrf.mxu1  ;;  %v917_v16 = vpop.f32.mrf.mxu3 }
 0x179   : > { %v918_v4 = vadd.f32 %v917_v16, %v805_v63  ;;  %v695_v17 = vadd.f32 %v694_v1, %v1643_v36 }
 0x17b   : > { %v1031_v44 = vadd.f32 %v1030_v47, %v918_v4 }
 0x17d   : > { %1093 = vst.msk [vmem:[%s1737_s21 + $0x88] sm:$0xff] %vm1075_vm1, %v1031_v44 }
 0x17e   : > { %v807_v5 = vpop.f32.mrf.mxu2  ;;  %v1033_v11 = vpop.f32.mrf.mxu0 }
 0x17f   : > { %v808_v6 = vadd.f32 %v807_v5, %v695_v17 }
 0x180   : > { %v697_v9 = vpop.f32.mrf.mxu1  ;;  %v920_v26 = vpop.f32.mrf.mxu3 }
 0x181   : > { %v921_v10 = vadd.f32 %v920_v26, %v808_v6  ;;  %v698_v19 = vadd.f32 %v697_v9, %v1658_v46 }
 0x183   : > { %v1034_v13 = vadd.f32 %v1033_v11, %v921_v10 }
 0x185   : > { %1094 = vst.msk [vmem:[%s1737_s21 + $0x90] sm:$0xff] %vm1075_vm1, %v1034_v13 }
 0x186   : > { %v810_v57 = vpop.f32.mrf.mxu2  ;;  %v1036_v20 = vpop.f32.mrf.mxu0 }
 0x187   : > { %v811_v22 = vadd.f32 %v810_v57, %v698_v19 }
 0x188   : > { %v700_v24 = vpop.f32.mrf.mxu1  ;;  %v923_v36 = vpop.f32.mrf.mxu3 }
 0x189   : > { %v924_v25 = vadd.f32 %v923_v36, %v811_v22  ;;  %v701_v27 = vadd.f32 %v700_v24, %v1673_v56 }
 0x18b   : > { %v1037_v28 = vadd.f32 %v1036_v20, %v924_v25 }
 0x18d   : > { %1095 = vst.msk [vmem:[%s1737_s21 + $0x98] sm:$0xff] %vm1075_vm1, %v1037_v28 }
 0x18e   : > { %v813_v30 = vpop.f32.mrf.mxu2  ;;  %v1039_v54 = vpop.f32.mrf.mxu0 }
 0x18f   : > { %v814_v29 = vadd.f32 %v813_v30, %v701_v27 }
 0x190   : > { %v703_v33 = vpop.f32.mrf.mxu1  ;;  %v926_v46 = vpop.f32.mrf.mxu3 }
 0x191   : > { %v927_v35 = vadd.f32 %v926_v46, %v814_v29  ;;  %v704_v3 = vadd.f32 %v703_v33, %v1688_v2 }
 0x193   : > { %v1040_v38 = vadd.f32 %v1039_v54, %v927_v35 }
 0x195   : > { %1096 = vst.msk [vmem:[%s1737_s21 + $0xa0] sm:$0xff] %vm1075_vm1, %v1040_v38 }
 0x196   : > { %v816_v39 = vpop.f32.mrf.mxu2  ;;  %v1042_v42 = vpop.f32.mrf.mxu0 }
 0x197   : > { %v817_v43 = vadd.f32 %v816_v39, %v704_v3 }
 0x198   : > { %v706_v45 = vpop.f32.mrf.mxu1  ;;  %v929_v56 = vpop.f32.mrf.mxu3 }
 0x199   : > { %v930_v48 = vadd.f32 %v929_v56, %v817_v43  ;;  %v707_v37 = vadd.f32 %v706_v45, %v1703_v15 }
 0x19b   : > { %v1043_v49 = vadd.f32 %v1042_v42, %v930_v48 }
 0x19d   : > { %1097 = vst.msk [vmem:[%s1737_s21 + $0xa8] sm:$0xff] %vm1075_vm1, %v1043_v49 }
 0x19e   : > { %v819_v34 = vpop.f32.mrf.mxu2  ;;  %v1045_v50 = vpop.f32.mrf.mxu0 }
 0x19f   : > { %v820_v52 = vadd.f32 %v819_v34, %v707_v37 }
 0x1a0   : > { %v709_v8 = vpop.f32.mrf.mxu1  ;;  %v932_v2 = vpop.f32.mrf.mxu3 }
 0x1a1   : > { %v933_v12 = vadd.f32 %v932_v2, %v820_v52  ;;  %v710_v0 = vadd.f32 %v709_v8, %v1718_v32 }
 0x1a3   : > { %v1046_v18 = vadd.f32 %v1045_v50, %v933_v12 }
 0x1a5   : > { %1098 = vst.msk [vmem:[%s1737_s21 + $0xb0] sm:$0xff] %vm1075_vm1, %v1046_v18 }
 0x1a6   : > { %v822_v53 = vpop.f32.mrf.mxu2  ;;  %v1048_v55 = vpop.f32.mrf.mxu0 }
 0x1a7   : > { %v823_v58 = vadd.f32 %v822_v53, %v710_v0 }
 0x1a8   : > { %v712_v59 = vpop.f32.mrf.mxu1  ;;  %v935_v15 = vpop.f32.mrf.mxu3 }
 0x1a9   : > { %v936_v60 = vadd.f32 %v935_v15, %v823_v58  ;;  %v713_v62 = vadd.f32 %v712_v59, %v1620_v21 }
 0x1ab   : > { %v1049_v14 = vadd.f32 %v1048_v55, %v936_v60 }
 0x1ad   : > { %1099 = vst.msk [vmem:[%s1737_s21 + $0xb8] sm:$0xff] %vm1075_vm1, %v1049_v14 }
 0x1ae   : > { %v825_v47 = vpop.f32.mrf.mxu2  ;;  %v1051_v63 = vpop.f32.mrf.mxu0 }
 0x1af   : > { %v826_v1 = vadd.f32 %v825_v47, %v713_v62 }
 0x1b0   : > { %v715_v16 = vpop.f32.mrf.mxu1  ;;  %v938_v32 = vpop.f32.mrf.mxu3 }
 0x1b1   : > { %v939_v4 = vadd.f32 %v938_v32, %v826_v1  ;;  %v716_v17 = vadd.f32 %v715_v16, %v1635_v31 }
 0x1b3   : > { %v1052_v44 = vadd.f32 %v1051_v63, %v939_v4 }
 0x1b5   : > { %1100 = vst.msk [vmem:[%s1737_s21 + $0xc0] sm:$0xff] %vm1075_vm1, %v1052_v44 }
 0x1b6   : > { %v828_v5 = vpop.f32.mrf.mxu2  ;;  %v1054_v11 = vpop.f32.mrf.mxu0 }
 0x1b7   : > { %v829_v6 = vadd.f32 %v828_v5, %v716_v17 }
 0x1b8   : > { %v718_v9 = vpop.f32.mrf.mxu1  ;;  %v941_v21 = vpop.f32.mrf.mxu3 }
 0x1b9   : > { %v942_v26 = vadd.f32 %v941_v21, %v829_v6  ;;  %v719_v13 = vadd.f32 %v718_v9, %v1650_v41 }
 0x1bb   : > { %v1055_v10 = vadd.f32 %v1054_v11, %v942_v26 }
 0x1bd   : > { %1101 = vst.msk [vmem:[%s1737_s21 + $0xc8] sm:$0xff] %vm1075_vm1, %v1055_v10 }
 0x1be   : > { %v831_v19 = vpop.f32.mrf.mxu2  ;;  %v1057_v57 = vpop.f32.mrf.mxu0 }
 0x1bf   : > { %v832_v20 = vadd.f32 %v831_v19, %v719_v13 }
 0x1c0   : > { %v721_v22 = vpop.f32.mrf.mxu1  ;;  %v944_v31 = vpop.f32.mrf.mxu3 }
 0x1c1   : > { %v945_v24 = vadd.f32 %v944_v31, %v832_v20  ;;  %v722_v25 = vadd.f32 %v721_v22, %v1665_v51 }
 0x1c3   : > { %v1058_v36 = vadd.f32 %v1057_v57, %v945_v24 }
 0x1c5   : > { %1102 = vst.msk [vmem:[%s1737_s21 + $0xd0] sm:$0xff] %vm1075_vm1, %v1058_v36 }
 0x1c6   : > { %v834_v28 = vpop.f32.mrf.mxu2  ;;  %v1060_v27 = vpop.f32.mrf.mxu0 }
 0x1c7   : > { %v835_v30 = vadd.f32 %v834_v28, %v722_v25 }
 0x1c8   : > { %v724_v54 = vpop.f32.mrf.mxu1  ;;  %v947_v41 = vpop.f32.mrf.mxu3 }
 0x1c9   : > { %v948_v29 = vadd.f32 %v947_v41, %v835_v30  ;;  %v725_v46 = vadd.f32 %v724_v54, %v1680_v61 }
 0x1cb   : > { %v1061_v33 = vadd.f32 %v1060_v27, %v948_v29 }
 0x1cd   : > { %1103 = vst.msk [vmem:[%s1737_s21 + $0xd8] sm:$0xff] %vm1075_vm1, %v1061_v33 }
 0x1ce   : > { %v837_v35 = vpop.f32.mrf.mxu2  ;;  %v1063_v38 = vpop.f32.mrf.mxu0 }
 0x1cf   : > { %v838_v3 = vadd.f32 %v837_v35, %v725_v46 }
 0x1d0   : > { %v727_v39 = vpop.f32.mrf.mxu1  ;;  %v950_v51 = vpop.f32.mrf.mxu3 }
 0x1d1   : > { %v951_v42 = vadd.f32 %v950_v51, %v838_v3  ;;  %v728_v45 = vadd.f32 %v727_v39, %v1695_v7 }
 0x1d3   : > { %v1064_v43 = vadd.f32 %v1063_v38, %v951_v42 }
 0x1d5   : > { %1104 = vst.msk [vmem:[%s1737_s21 + $0xe0] sm:$0xff] %vm1075_vm1, %v1064_v43 }
 0x1d6   : > { %v840_v56 = vpop.f32.mrf.mxu2  ;;  %v1066_v48 = vpop.f32.mrf.mxu0 }
 0x1d7   : > { %v841_v49 = vadd.f32 %v840_v56, %v728_v45 }
 0x1d8   : > { %v730_v37 = vpop.f32.mrf.mxu1  ;;  %v953_v61 = vpop.f32.mrf.mxu3 }
 0x1d9   : > { %v954_v34 = vadd.f32 %v953_v61, %v841_v49  ;;  %v731_v52 = vadd.f32 %v730_v37, %v1710_v23 }
 0x1db   : > { %v1067_v50 = vadd.f32 %v1066_v48, %v954_v34 }
 0x1dd   : > { %1105 = vst.msk [vmem:[%s1737_s21 + $0xe8] sm:$0xff] %vm1075_vm1, %v1067_v50 }
 0x1de   : > { %v843_v8 = vpop.f32.mrf.mxu2  ;;  %v1069_v2 = vpop.f32.mrf.mxu0 }
 0x1df   : > { %v844_v12 = vadd.f32 %v843_v8, %v731_v52 }
 0x1e0   : > { %v956_v18 = vpop.f32.mrf.mxu3  ;;  %v733_v0 = vpop.f32.mrf.mxu1 }
 0x1e1   : > { %v957_v7 = vadd.f32 %v956_v18, %v844_v12  ;;  %v734_v55 = vadd.f32 %v733_v0, %v1723_v40 }
 0x1e3   : > { %v1070_v53 = vadd.f32 %v1069_v2, %v957_v7 }
 0x1e5   : > { %1106 = vst.msk [vmem:[%s1737_s21 + $0xf0] sm:$0xff] %vm1075_vm1, %v1070_v53 }
 0x1e6   : > { %v846_v58 = vpop.f32.mrf.mxu2  ;;  %v1072_v60 = vpop.f32.mrf.mxu0 }
 0x1e7   : > { %v847_v59 = vadd.f32 %v846_v58, %v734_v55 }
 0x1e8   : > { %v959_v15 = vpop.f32.mrf.mxu3 }
 0x1e9   : > { %v960_v14 = vadd.f32 %v959_v15, %v847_v59 }
 0x1eb   : > { %v1073_v23 = vadd.f32 %v1072_v60, %v960_v14 }
 0x1ed   : > { %1107 = vst.msk [vmem:[%s1737_s21 + $0xf8] sm:$0xff] %vm1075_vm1, %v1073_v23 }
 0x1ee PF: > { %s13_s12 = sadd.s32 1, %s1271_s12  }
 0x1ef   : > { %p10_p4 = scmp.ge.s32.totalorder %s13_s12, 4  }
 0x1f1   :  { %12 = sbr.rel (!%p10_p4) target bundleno = 1 (0x1), region = 62 }

// kernel: _lambda_.30
= control target key start
LH: loop header
LB: loop body
LE: loop exit
PB: predicated region body
PF: predicated region fallthrough
CT: control target
= control target key end

     0   :  { %s954_s12 = smov 0   ;;  %s1413_s0 = inlined_call_operand.vmem [shape: f32[512,288], index: 0, kind: input, shape index: {}]   ;;  %s1414_s1 = inlined_call_operand.vmem [shape: f32[288,32], index: 1, kind: input, shape index: {}]   ;;  %s1415_s2 = inlined_call_operand.vmem [shape: f32[1,32], index: 2, kind: input, shape index: {}]   ;;  %s1416_s3 = inlined_call_operand.vmem [shape: f32[512,32], index: 3, kind: output, shape index: {}]  }
   0x1 LB: > { %s837_s13 = sadd.s32 4294967295, %s932_s12   ;;  %p841_p0 = scmp.ge.s32.totalorder %s932_s12, 1  ;;  %s932_s12 = sphi %s954_s12, %s13_s12  }
   0x2   : > { %p139_p1 = scmp.lt.s32.totalorder %s932_s12, 3 }
   0x4   : > { %p140_p2 = pnand %p841_p0, %p139_p1 }
   0x5   : > { %s842_s20 = sshll.u32 (!%p140_p2), %s837_s13, 5 }
   0x6   : > { %143 = sbr.rel (%p140_p2) target bundleno = 364 (0x16c), region = 32  ;;  %p165_p3 = scmp.lt.s32.totalorder (!%p140_p2), %s842_s20, 63 }
   0xb   : > { %v288_v0 = vld [vmem:[%s1414_s1 + $0x78] sm:$0xff]  ;;  %v287_v2 = vld [vmem:[%s1414_s1 + $0x70] sm:$0xff]  ;;  %v286_v5 = vld [vmem:[%s1414_s1 + $0x68] sm:$0xff]  ;;  %s1418_s20 = smov (!%p165_p3, %s842_s20), 63  ;;  %vm313_vm0 = vcmask 261120  }
   0xc   : > { %v968_v1 = vld [vmem:[%s1414_s1 + $0x118] sm:$0xff]  ;;  %410 = vmatpush.msra.mxu0 %v288_v0  ;;  %880 = vmatpush.msra.mxu3 %v288_v0  ;;  %v981_v4 = vld [vmem:[%s1414_s1 + $0x110] sm:$0xff]  ;;  %v996_v7 = vld [vmem:[%s1414_s1 + $0x108] sm:$0xff]  ;;  %s916_s13 = smul.u32 24, %s1418_s20  ;;  %s845_s19 = sshll.u32 %s1418_s20, 3 }
   0xd   : > { %v976_v3 = vld [vmem:[%s1414_s1 + $0xf8] sm:$0xff]  ;;  %648 = vmatpush.msra.mxu2 %v968_v1  ;;  %v991_v6 = vld [vmem:[%s1414_s1 + $0xf0] sm:$0xff]  ;;  %v1001_v8 = vld [vmem:[%s1414_s1 + $0xe8] sm:$0xff]  ;;  %s1243_s23 = scalar_lea.vmem %s1416_s3, %s845_s19 }
   0xe   : > { %523 = vmatpush.msra.mxu1 %v976_v3  ;;  %411 = vmatpush.msra.mxu0 %v287_v2  ;;  %v285_v9 = vld [vmem:[%s1414_s1 + $0x60] sm:$0xff]  ;;  %v284_v12 = vld [vmem:[%s1414_s1 + $0x58] sm:$0xff]  ;;  %s1029_s18 = scalar_lea.vmem %s1413_s0, %s916_s13  ;;  %v283_v15 = vld [vmem:[%s1414_s1 + $0x50] sm:$0xff] }
   0xf   : > { %881 = vmatpush.msra.mxu3 %v287_v2  ;;  %649 = vmatpush.msra.mxu2 %v981_v4  ;;  %v1013_v10 = vld [vmem:[%s1414_s1 + $0x100] sm:$0xff]  ;;  %v1034_v13 = vld [vmem:[%s1414_s1 + $0xd8] sm:$0xff]  ;;  %v179_v14 = vld [vmem:[%s1029_s18 + $0x10] sm:$0xff] }
  0x10   : > { %524 = vmatpush.msra.mxu1 %v991_v6  ;;  %412 = vmatpush.msra.mxu0 %v286_v5  ;;  %v1018_v11 = vld [vmem:[%s1414_s1 + $0xe0] sm:$0xff]  ;;  %v1045_v16 = vld [vmem:[%s1414_s1 + $0xd0] sm:$0xff]  ;;  %v282_v17 = vld [vmem:[%s1414_s1 + $0x48] sm:$0xff] }
  0x11   : > { %882 = vmatpush.msra.mxu3 %v286_v5  ;;  %650 = vmatpush.msra.mxu2 %v996_v7  ;;  %v1055_v18 = vld [vmem:[%s1414_s1 + $0xc8] sm:$0xff]  ;;  %v281_v19 = vld [vmem:[%s1414_s1 + $0x40] sm:$0xff]  ;;  %v280_v21 = vld [vmem:[%s1414_s1 + $0x38] sm:$0xff] }
  0x12   : > { %525 = vmatpush.msra.mxu1 %v1001_v8  ;;  %413 = vmatpush.msra.mxu0 %v285_v9  ;;  %v1064_v20 = vld [vmem:[%s1414_s1 + $0xc0] sm:$0xff]  ;;  %v182_v22 = vld [vmem:[%s1029_s18 + $0x28] sm:$0xff]  ;;  %v1074_v23 = vld [vmem:[%s1414_s1 + $0xb8] sm:$0xff] }
  0x13   : > { %883 = vmatpush.msra.mxu3 %v285_v9  ;;  %651 = vmatpush.msra.mxu2 %v1013_v10  ;;  %v279_v24 = vld [vmem:[%s1414_s1 + $0x30] sm:$0xff]  ;;  %v278_v26 = vld [vmem:[%s1414_s1 + $0x28] sm:$0xff]  ;;  %v277_v28 = vld [vmem:[%s1414_s1 + $0x20] sm:$0xff] }
  0x14   : > { %526 = vmatpush.msra.mxu1 %v1018_v11  ;;  %414 = vmatpush.msra.mxu0 %v284_v12  ;;  %v1083_v25 = vld [vmem:[%s1414_s1 + $0xb0] sm:$0xff]  ;;  %v1093_v27 = vld [vmem:[%s1414_s1 + $0xa8] sm:$0xff]  ;;  %v1102_v29 = vld [vmem:[%s1414_s1 + $0xa0] sm:$0xff] }
  0x15   : > { %884 = vmatpush.msra.mxu3 %v284_v12  ;;  %846 = vmatmul.msk.f32.vlgmr.msra.gmra.mxu2 %vm313_vm0, %v179_v14  ;;  %v276_v30 = vld [vmem:[%s1414_s1 + $0x18] sm:$0xff]  ;;  %v185_v31 = vld [vmem:[%s1029_s18 + $0x40] sm:$0xff]  ;;  %v275_v33 = vld [vmem:[%s1414_s1 + $0x10] sm:$0xff] }
  0x16   : > { %527 = vmatpush.msra.mxu1 %v1034_v13  ;;  %415 = vmatpush.msra.mxu0 %v283_v15  ;;  %v292_v32 = vld [vmem:[%s1414_s1 + $0x98] sm:$0xff]  ;;  %v291_v34 = vld [vmem:[%s1414_s1 + $0x90] sm:$0xff]  ;;  %v274_v35 = vld [vmem:[%s1414_s1 + $0x8] sm:$0xff] }
  0x17   : > { %885 = vmatpush.msra.mxu3 %v283_v15  ;;  %v290_v36 = vld [vmem:[%s1414_s1 + $0x88] sm:$0xff]  ;;  %v273_v37 = vld [vmem:[%s1414_s1] sm:$0xff]  ;;  %v188_v41 = vld [vmem:[%s1029_s18 + $0x58] sm:$0xff] }
  0x18   : > { %528 = vmatpush.msra.mxu1 %v1045_v16  ;;  %416 = vmatpush.msra.mxu0 %v282_v17  ;;  %v177_v38 = vld [vmem:[%s1029_s18] sm:$0xff]  ;;  %v178_v42 = vld [vmem:[%s1029_s18 + $0x8] sm:$0xff]  ;;  %v180_v43 = vld [vmem:[%s1029_s18 + $0x18] sm:$0xff] }
  0x19   : > { %886 = vmatpush.msra.mxu3 %v282_v17  ;;  %v249_v39 = vld [vmem:[%s1029_s18 + $0x240] sm:$0xff]  ;;  %v252_v44 = vld [vmem:[%s1029_s18 + $0x258] sm:$0xff]  ;;  %v191_v45 = vld [vmem:[%s1029_s18 + $0x70] sm:$0xff] }
  0x1a   : > { %529 = vmatpush.msra.mxu1 %v1055_v18  ;;  %417 = vmatpush.msra.mxu0 %v281_v19  ;;  %v289_v40 = vld [vmem:[%s1414_s1 + $0x80] sm:$0xff]  ;;  %v183_v47 = vld [vmem:[%s1029_s18 + $0x30] sm:$0xff]  ;;  %v194_v49 = vld [vmem:[%s1029_s18 + $0x88] sm:$0xff] }
  0x1b   : > { %887 = vmatpush.msra.mxu3 %v281_v19  ;;  %v181_v46 = vld [vmem:[%s1029_s18 + $0x20] sm:$0xff]  ;;  %v255_v48 = vld [vmem:[%s1029_s18 + $0x270] sm:$0xff]  ;;  %v184_v50 = vld [vmem:[%s1029_s18 + $0x38] sm:$0xff] }
  0x1c   : > { %530 = vmatpush.msra.mxu1 %v1064_v20  ;;  %418 = vmatpush.msra.mxu0 %v280_v21  ;;  %v186_v51 = vld [vmem:[%s1029_s18 + $0x48] sm:$0xff]  ;;  %v197_v53 = vld [vmem:[%s1029_s18 + $0xa0] sm:$0xff]  ;;  %v187_v54 = vld [vmem:[%s1029_s18 + $0x50] sm:$0xff] }
  0x1d   : > { %888 = vmatpush.msra.mxu3 %v280_v21  ;;  %847 = vmatmul.msk.f32.gmra.mxu2 %vm313_vm0, %v182_v22  ;;  %v258_v52 = vld [vmem:[%s1029_s18 + $0x288] sm:$0xff]  ;;  %v189_v55 = vld [vmem:[%s1029_s18 + $0x60] sm:$0xff]  ;;  %v200_v57 = vld [vmem:[%s1029_s18 + $0xb8] sm:$0xff] }
  0x1e   : > { %531 = vmatpush.msra.mxu1 %v1074_v23  ;;  %419 = vmatpush.msra.mxu0 %v279_v24  ;;  %v261_v56 = vld [vmem:[%s1029_s18 + $0x2a0] sm:$0xff]  ;;  %v190_v58 = vld [vmem:[%s1029_s18 + $0x68] sm:$0xff]  ;;  %v192_v59 = vld [vmem:[%s1029_s18 + $0x78] sm:$0xff] }
  0x1f   : > { %889 = vmatpush.msra.mxu3 %v279_v24  ;;  %v264_v60 = vld [vmem:[%s1029_s18 + $0x2b8] sm:$0xff]  ;;  %v203_v61 = vld [vmem:[%s1029_s18 + $0xd0] sm:$0xff]  ;;  %v193_v62 = vld [vmem:[%s1029_s18 + $0x80] sm:$0xff] }
  0x20   : > { %532 = vmatpush.msra.mxu1 %v1083_v25  ;;  %420 = vmatpush.msra.mxu0 %v278_v26  ;;  %v195_v63 = vld [vmem:[%s1029_s18 + $0x90] sm:$0xff]  ;;  %v196_v2 = vld [vmem:[%s1029_s18 + $0x98] sm:$0xff]  ;;  %v209_v5 = vld [vmem:[%s1029_s18 + $0x100] sm:$0xff] }
  0x21   : > { %890 = vmatpush.msra.mxu3 %v278_v26  ;;  %v267_v0 = vld [vmem:[%s1029_s18 + $0x2d0] sm:$0xff]  ;;  %v212_v9 = vld [vmem:[%s1029_s18 + $0x118] sm:$0xff]  ;;  %v253_v12 = vld [vmem:[%s1029_s18 + $0x260] sm:$0xff] }
  0x22   : > { %533 = vmatpush.msra.mxu1 %v1093_v27  ;;  %421 = vmatpush.msra.mxu0 %v277_v28  ;;  %v205_v14 = vld [vmem:[%s1029_s18 + $0xe0] sm:$0xff]  ;;  %v207_v15 = vld [vmem:[%s1029_s18 + $0xf0] sm:$0xff]  ;;  %v218_v17 = vld [vmem:[%s1029_s18 + $0x148] sm:$0xff] }
  0x23   : > { %891 = vmatpush.msra.mxu3 %v277_v28  ;;  %v210_v19 = vld [vmem:[%s1029_s18 + $0x108] sm:$0xff]  ;;  %v221_v21 = vld [vmem:[%s1029_s18 + $0x160] sm:$0xff]  ;;  %v211_v22 = vld [vmem:[%s1029_s18 + $0x110] sm:$0xff] }
  0x24   : > { %534 = vmatpush.msra.mxu1 %v1102_v29  ;;  %422 = vmatpush.msra.mxu0 %v276_v30  ;;  %v262_v24 = vld [vmem:[%s1029_s18 + $0x2a8] sm:$0xff]  ;;  %v265_v28 = vld [vmem:[%s1029_s18 + $0x2c0] sm:$0xff] }
  0x25   : > { %892 = vmatpush.msra.mxu3 %v276_v30  ;;  %848 = vmatmul.msk.f32.gmra.mxu2 %vm313_vm0, %v185_v31  ;;  %v214_v26 = vld [vmem:[%s1029_s18 + $0x128] sm:$0xff]  ;;  %v217_v30 = vld [vmem:[%s1029_s18 + $0x140] sm:$0xff] }
  0x26   : > { %535 = vmatpush.msra.mxu1 %v292_v32  ;;  %423 = vmatpush.msra.mxu0 %v275_v33 }
  0x27   : > { %893 = vmatpush.msra.mxu3 %v275_v33  ;;  %v268_v33 = vld [vmem:[%s1029_s18 + $0x2d8] sm:$0xff] }
  0x28   : > { %536 = vmatpush.msra.mxu1 %v291_v34  ;;  %424 = vmatpush.msra.mxu0 %v274_v35 }
  0x29   : > { %894 = vmatpush.msra.mxu3 %v274_v35  ;;  %v220_v35 = vld [vmem:[%s1029_s18 + $0x158] sm:$0xff] }
  0x2a   : > { %537 = vmatpush.msra.mxu1 %v290_v36  ;;  %425 = vmatpush.msra.mxu0 %v273_v37 }
  0x2b   : > { %895 = vmatpush.msra.mxu3 %v273_v37  ;;  %426 = vmatmul.f32.vlgmr.msra.gmra.mxu0 %v177_v38  ;;  %v222_v37 = vld [vmem:[%s1029_s18 + $0x168] sm:$0xff]  ;;  %v271_v38 = vld [vmem:[%s1029_s18 + $0x2f0] sm:$0xff] }
  0x2c   : > { %498 = vmatmul.f32.vlgmr.msra.gmra.mxu3 %v249_v39  ;;  %538 = vmatpush.msra.mxu1 %v289_v40  ;;  %v233_v39 = vld [vmem:[%s1029_s18 + $0x1c0] sm:$0xff] }
  0x2d   : > { %896 = vmatpush.msrb.mxu3 %v976_v3  ;;  %849 = vmatmul.msk.f32.gmra.mxu2 %vm313_vm0, %v188_v41  ;;  %v198_v3 = vld [vmem:[%s1029_s18 + $0xa8] sm:$0xff]  ;;  %v1231_v41 = vld [vmem:[%s1415_s2] ss:$0 sm:$0xff] }
  0x2e   : > { %539 = vmatmul.f32.vlgmr.msra.gmra.mxu1 %v178_v42 }
  0x2f   : > { %897 = vmatpush.msrb.mxu3 %v991_v6  ;;  %v199_v6 = vld [vmem:[%s1029_s18 + $0xb0] sm:$0xff] }
  0x31   : > { %898 = vmatpush.msrb.mxu3 %v1001_v8  ;;  %v250_v8 = vld [vmem:[%s1029_s18 + $0x248] sm:$0xff] }
  0x33   : > { %899 = vmatpush.msrb.mxu3 %v1018_v11  ;;  %429 = vmatmul.f32.gmra.mxu0 %v180_v43  ;;  %v204_v11 = vld [vmem:[%s1029_s18 + $0xd8] sm:$0xff] }
  0x34   : > { %501 = vmatmul.f32.gmra.mxu3 %v252_v44  ;;  %v225_v44 = vld [vmem:[%s1029_s18 + $0x180] sm:$0xff] }
  0x35   : > { %900 = vmatpush.msrb.mxu3 %v1034_v13  ;;  %850 = vmatmul.msk.f32.gmra.mxu2 %vm313_vm0, %v191_v45  ;;  %v215_v13 = vld [vmem:[%s1029_s18 + $0x130] sm:$0xff]  ;;  %v260_v45 = vld [vmem:[%s1029_s18 + $0x298] sm:$0xff] }
  0x36   : > { %542 = vmatmul.f32.gmra.mxu1 %v181_v46 }
  0x37   : > { %901 = vmatpush.msrb.mxu3 %v1045_v16  ;;  %v256_v16 = vld [vmem:[%s1029_s18 + $0x278] sm:$0xff] }
  0x39   : > { %902 = vmatpush.msrb.mxu3 %v1055_v18  ;;  %v208_v18 = vld [vmem:[%s1029_s18 + $0xf8] sm:$0xff] }
  0x3b   : > { %903 = vmatpush.msrb.mxu3 %v1064_v20  ;;  %432 = vmatmul.f32.gmra.mxu0 %v183_v47  ;;  %v259_v20 = vld [vmem:[%s1029_s18 + $0x290] sm:$0xff] }
  0x3c   : > { %504 = vmatmul.f32.gmra.mxu3 %v255_v48  ;;  %v236_v48 = vld [vmem:[%s1029_s18 + $0x1d8] sm:$0xff] }
  0x3d   : > { %904 = vmatpush.msrb.mxu3 %v1074_v23  ;;  %851 = vmatmul.msk.f32.gmra.mxu2 %vm313_vm0, %v194_v49  ;;  %v213_v23 = vld [vmem:[%s1029_s18 + $0x120] sm:$0xff]  ;;  %v226_v49 = vld [vmem:[%s1029_s18 + $0x188] sm:$0xff] }
  0x3e   : > { %545 = vmatmul.f32.gmra.mxu1 %v184_v50 }
  0x3f   : > { %905 = vmatpush.msrb.mxu3 %v1083_v25  ;;  %v224_v25 = vld [vmem:[%s1029_s18 + $0x178] sm:$0xff] }
  0x41   : > { %906 = vmatpush.msrb.mxu3 %v1093_v27  ;;  %v216_v27 = vld [vmem:[%s1029_s18 + $0x138] sm:$0xff] }
  0x43   : > { %907 = vmatpush.msrb.mxu3 %v1102_v29  ;;  %435 = vmatmul.f32.gmra.mxu0 %v186_v51  ;;  %v227_v29 = vld [vmem:[%s1029_s18 + $0x190] sm:$0xff] }
  0x44   : > { %507 = vmatmul.f32.gmra.mxu3 %v258_v52 }
  0x45   : > { %908 = vmatpush.msrb.mxu3 %v292_v32  ;;  %852 = vmatmul.msk.f32.gmra.mxu2 %vm313_vm0, %v197_v53  ;;  %v219_v32 = vld [vmem:[%s1029_s18 + $0x150] sm:$0xff] }
  0x46   : > { %548 = vmatmul.f32.gmra.mxu1 %v187_v54 }
  0x47   : > { %909 = vmatpush.msrb.mxu3 %v291_v34  ;;  %v230_v34 = vld [vmem:[%s1029_s18 + $0x1a8] sm:$0xff] }
  0x49   : > { %910 = vmatpush.msrb.mxu3 %v290_v36 }
  0x4b   : > { %911 = vmatpush.msrb.mxu3 %v289_v40  ;;  %438 = vmatmul.f32.gmra.mxu0 %v189_v55  ;;  %v223_v40 = vld [vmem:[%s1029_s18 + $0x170] sm:$0xff]  ;;  %v228_v55 = vld [vmem:[%s1029_s18 + $0x198] sm:$0xff] }
  0x4c   : > { %510 = vmatmul.f32.gmra.mxu3 %v261_v56  ;;  %v263_v56 = vld [vmem:[%s1029_s18 + $0x2b0] sm:$0xff] }
  0x4d   : > { %912 = vmatpush.msra.mxu3 %v968_v1  ;;  %853 = vmatmul.msk.f32.gmra.mxu2 %vm313_vm0, %v200_v57  ;;  %v206_v1 = vld [vmem:[%s1029_s18 + $0xe8] sm:$0xff] }
  0x4e   : > { %551 = vmatmul.f32.gmra.mxu1 %v190_v58 }
  0x4f   : > { %913 = vmatpush.msra.mxu3 %v981_v4  ;;  %v270_v4 = vld [vmem:[%s1029_s18 + $0x2e8] sm:$0xff] }
  0x51   : > { %914 = vmatpush.msra.mxu3 %v996_v7  ;;  %v201_v7 = vld [vmem:[%s1029_s18 + $0xc0] sm:$0xff] }
  0x53   : > { %915 = vmatpush.msra.mxu3 %v1013_v10  ;;  %441 = vmatmul.f32.gmra.mxu0 %v192_v59  ;;  %v202_v10 = vld [vmem:[%s1029_s18 + $0xc8] sm:$0xff]  ;;  %v239_v59 = vld [vmem:[%s1029_s18 + $0x1f0] sm:$0xff] }
  0x54   : > { %513 = vmatmul.f32.gmra.mxu3 %v264_v60  ;;  %v229_v60 = vld [vmem:[%s1029_s18 + $0x1a0] sm:$0xff] }
  0x55   : > { %854 = vmatmul.msk.f32.gmra.mxu2 %vm313_vm0, %v203_v61 }
  0x56   : > { %554 = vmatmul.f32.gmra.mxu1 %v193_v62 }
  0x5b   : > { %444 = vmatmul.f32.gmra.mxu0 %v195_v63 }
  0x5c   : > { %516 = vmatmul.f32.gmra.mxu3 %v267_v0 }
  0x5d   : > { %855 = vmatmul.msk.f32.gmra.mxu2 %vm313_vm0, %v206_v1 }
  0x5e   : > { %557 = vmatmul.f32.gmra.mxu1 %v196_v2  ;;  %v231_v2 = vld [vmem:[%s1029_s18 + $0x1b0] sm:$0xff] }
  0x63   : > { %447 = vmatmul.f32.gmra.mxu0 %v198_v3  ;;  %v266_v3 = vld [vmem:[%s1029_s18 + $0x2c8] sm:$0xff] }
  0x64   : > { %519 = vmatmul.f32.gmra.mxu3 %v270_v4 }
  0x65   : > { %856 = vmatmul.msk.f32.gmra.mxu2 %vm313_vm0, %v209_v5 }
  0x66   : > { %560 = vmatmul.f32.gmra.mxu1 %v199_v6  ;;  %v242_v6 = vld [vmem:[%s1029_s18 + $0x208] sm:$0xff] }
  0x6b   : > { %450 = vmatmul.f32.gmra.mxu0 %v201_v7  ;;  %v232_v7 = vld [vmem:[%s1029_s18 + $0x1b8] sm:$0xff] }
  0x6c   : > { %611 = vmatmul.f32.vlgmr.msrb.gmra.mxu3 %v250_v8 }
  0x6d   : > { %857 = vmatmul.msk.f32.gmra.mxu2 %vm313_vm0, %v212_v9 }
  0x6e   : > { %563 = vmatmul.f32.gmra.mxu1 %v202_v10 }
  0x73   : > { %453 = vmatmul.f32.gmra.mxu0 %v204_v11 }
  0x74   : > { %614 = vmatmul.f32.gmra.mxu3 %v253_v12 }
  0x75   : > { %858 = vmatmul.msk.f32.gmra.mxu2 %vm313_vm0, %v215_v13  ;;  %v234_v13 = vld [vmem:[%s1029_s18 + $0x1c8] sm:$0xff] }
  0x76   : > { %566 = vmatmul.f32.gmra.mxu1 %v205_v14  ;;  %v269_v14 = vld [vmem:[%s1029_s18 + $0x2e0] sm:$0xff] }
  0x7b   : > { %456 = vmatmul.f32.gmra.mxu0 %v207_v15 }
  0x7c   : > { %617 = vmatmul.f32.gmra.mxu3 %v256_v16 }
  0x7d   : > { %859 = vmatmul.msk.f32.gmra.mxu2 %vm313_vm0, %v218_v17  ;;  %v245_v17 = vld [vmem:[%s1029_s18 + $0x220] sm:$0xff] }
  0x7e   : > { %569 = vmatmul.f32.gmra.mxu1 %v208_v18  ;;  %v235_v18 = vld [vmem:[%s1029_s18 + $0x1d0] sm:$0xff] }
  0x83   : > { %459 = vmatmul.f32.gmra.mxu0 %v210_v19 }
  0x84   : > { %620 = vmatmul.f32.gmra.mxu3 %v259_v20 }
  0x85   : > { %860 = vmatmul.msk.f32.gmra.mxu2 %vm313_vm0, %v221_v21 }
  0x86   : > { %572 = vmatmul.f32.gmra.mxu1 %v211_v22 }
  0x8b   : > { %462 = vmatmul.f32.gmra.mxu0 %v213_v23 }
  0x8c   : > { %623 = vmatmul.f32.gmra.mxu3 %v262_v24  ;;  %v237_v24 = vld [vmem:[%s1029_s18 + $0x1e0] sm:$0xff] }
  0x8d   : > { %861 = vmatmul.msk.f32.gmra.mxu2 %vm313_vm0, %v224_v25  ;;  %v272_v25 = vld [vmem:[%s1029_s18 + $0x2f8] sm:$0xff] }
  0x8e   : > { %575 = vmatmul.f32.gmra.mxu1 %v214_v26 }
  0x93   : > { %465 = vmatmul.f32.gmra.mxu0 %v216_v27 }
  0x94   : > { %626 = vmatmul.f32.gmra.mxu3 %v265_v28  ;;  %v248_v28 = vld [vmem:[%s1029_s18 + $0x238] sm:$0xff] }
  0x95   : > { %862 = vmatmul.msk.f32.gmra.mxu2 %vm313_vm0, %v227_v29  ;;  %v238_v29 = vld [vmem:[%s1029_s18 + $0x1e8] sm:$0xff] }
  0x96   : > { %578 = vmatmul.f32.gmra.mxu1 %v217_v30 }
  0x98   : > { %v653_v31 = vpop.f32.mrf.mxu2 }
  0x9b   : > { %468 = vmatmul.f32.gmra.mxu0 %v219_v32 }
  0x9c   : > { %629 = vmatmul.f32.gmra.mxu3 %v268_v33 }
  0x9d   : > { %863 = vmatmul.msk.f32.gmra.mxu2 %vm313_vm0, %v230_v34 }
  0x9e   : > { %581 = vmatmul.f32.gmra.mxu1 %v220_v35  ;;  %v240_v35 = vld [vmem:[%s1029_s18 + $0x1f8] sm:$0xff] }
  0xa0   : > { %v656_v36 = vpop.f32.mrf.mxu2 }
  0xa3   : > { %471 = vmatmul.f32.gmra.mxu0 %v222_v37 }
  0xa4   : > { %632 = vmatmul.f32.gmra.mxu3 %v271_v38  ;;  %v251_v38 = vld [vmem:[%s1029_s18 + $0x250] sm:$0xff] }
  0xa5   : > { %864 = vmatmul.msk.f32.gmra.mxu2 %vm313_vm0, %v233_v39  ;;  %v241_v39 = vld [vmem:[%s1029_s18 + $0x200] sm:$0xff] }
  0xa6   : > { %584 = vmatmul.f32.gmra.mxu1 %v223_v40 }
  0xa8   : > { %v659_v42 = vpop.f32.mrf.mxu2  ;;  %v427_v43 = vpop.f32.mrf.mxu0 }
  0xa9   : > { %v428_v46 = vadd.f32 %v1231_v41, %v427_v43 }
  0xab   : > { %v540_v47 = vpop.f32.mrf.mxu1  ;;  %474 = vmatmul.f32.gmra.mxu0 %v225_v44 }
  0xac   : > { %v541_v50 = vadd.f32 %v540_v47, %v428_v46  ;;  %873 = vmatmul.msk.f32.vlgmr.msra.gmra.mxu3 %vm313_vm0, %v260_v45  ;;  %v243_v46 = vld [vmem:[%s1029_s18 + $0x210] sm:$0xff] }
  0xad   : > { %865 = vmatmul.msk.f32.gmra.mxu2 %vm313_vm0, %v236_v48 }
  0xae   : > { %v654_v51 = vadd.f32 %v653_v31, %v541_v50  ;;  %587 = vmatmul.f32.gmra.mxu1 %v226_v49  ;;  %v254_v49 = vld [vmem:[%s1029_s18 + $0x268] sm:$0xff]  ;;  %v244_v50 = vld [vmem:[%s1029_s18 + $0x218] sm:$0xff] }
  0xaf   : > { %v1246_v52 = vpop.f32.mrf.mxu3 }
  0xb0   : > { %749 = vst.msk [vmem:[%s1243_s23] sm:$0xff] %vm313_vm0, %v654_v51  ;;  %v662_v53 = vpop.f32.mrf.mxu2  ;;  %v430_v54 = vpop.f32.mrf.mxu0 }
  0xb1   : > { %v431_v57 = vadd.f32 %v1231_v41, %v430_v54 }
  0xb3   : > { %v543_v58 = vpop.f32.mrf.mxu1  ;;  %477 = vmatmul.f32.gmra.mxu0 %v228_v55 }
  0xb4   : > { %v544_v61 = vadd.f32 %v543_v58, %v431_v57  ;;  %874 = vmatmul.msk.f32.gmra.mxu3 %vm313_vm0, %v263_v56  ;;  %v246_v57 = vld [vmem:[%s1029_s18 + $0x228] sm:$0xff] }
  0xb5   : > { %866 = vmatmul.msk.f32.gmra.mxu2 %vm313_vm0, %v239_v59 }
  0xb6   : > { %v657_v62 = vadd.f32 %v656_v36, %v544_v61  ;;  %590 = vmatmul.f32.gmra.mxu1 %v229_v60  ;;  %v257_v60 = vld [vmem:[%s1029_s18 + $0x280] sm:$0xff]  ;;  %v247_v61 = vld [vmem:[%s1029_s18 + $0x230] sm:$0xff] }
  0xb7   : > { %v1257_v63 = vpop.f32.mrf.mxu3 }
  0xb8   : > { %750 = vst.msk [vmem:[%s1243_s23 + $0x8] sm:$0xff] %vm313_vm0, %v657_v62  ;;  %v665_v0 = vpop.f32.mrf.mxu2  ;;  %v433_v1 = vpop.f32.mrf.mxu0 }
  0xb9   : > { %v434_v4 = vadd.f32 %v1231_v41, %v433_v1 }
  0xbb   : > { %v546_v5 = vpop.f32.mrf.mxu1  ;;  %480 = vmatmul.f32.gmra.mxu0 %v231_v2 }
  0xbc   : > { %v547_v8 = vadd.f32 %v546_v5, %v434_v4  ;;  %875 = vmatmul.msk.f32.gmra.mxu3 %vm313_vm0, %v266_v3 }
  0xbd   : > { %867 = vmatmul.msk.f32.gmra.mxu2 %vm313_vm0, %v242_v6 }
  0xbe   : > { %v660_v9 = vadd.f32 %v659_v42, %v547_v8  ;;  %593 = vmatmul.f32.gmra.mxu1 %v232_v7  ;;  %v500_v7 = vadd.f32 %v1231_v41, %v1246_v52 }
  0xbf   : > { %v1268_v10 = vpop.f32.mrf.mxu3 }
  0xc0   : > { %751 = vst.msk [vmem:[%s1243_s23 + $0x10] sm:$0xff] %vm313_vm0, %v660_v9  ;;  %v668_v11 = vpop.f32.mrf.mxu2  ;;  %v436_v12 = vpop.f32.mrf.mxu0 }
  0xc1   : > { %v437_v15 = vadd.f32 %v1231_v41, %v436_v12 }
  0xc3   : > { %v549_v16 = vpop.f32.mrf.mxu1  ;;  %483 = vmatmul.f32.gmra.mxu0 %v234_v13 }
  0xc4   : > { %v550_v19 = vadd.f32 %v549_v16, %v437_v15  ;;  %876 = vmatmul.msk.f32.gmra.mxu3 %vm313_vm0, %v269_v14 }
  0xc5   : > { %868 = vmatmul.msk.f32.gmra.mxu2 %vm313_vm0, %v245_v17  ;;  %v503_v17 = vadd.f32 %v1231_v41, %v1257_v63 }
  0xc6   : > { %v663_v20 = vadd.f32 %v662_v53, %v550_v19  ;;  %596 = vmatmul.f32.gmra.mxu1 %v235_v18 }
  0xc7   : > { %v1279_v21 = vpop.f32.mrf.mxu3 }
  0xc8   : > { %752 = vst.msk [vmem:[%s1243_s23 + $0x18] sm:$0xff] %vm313_vm0, %v663_v20  ;;  %v671_v22 = vpop.f32.mrf.mxu2  ;;  %v439_v23 = vpop.f32.mrf.mxu0 }
  0xc9   : > { %v440_v26 = vadd.f32 %v1231_v41, %v439_v23 }
  0xcb   : > { %v552_v27 = vpop.f32.mrf.mxu1  ;;  %486 = vmatmul.f32.gmra.mxu0 %v237_v24 }
  0xcc   : > { %v553_v30 = vadd.f32 %v552_v27, %v440_v26  ;;  %877 = vmatmul.msk.f32.gmra.mxu3 %vm313_vm0, %v272_v25  ;;  %v506_v26 = vadd.f32 %v1231_v41, %v1268_v10 }
  0xcd   : > { %869 = vmatmul.msk.f32.gmra.mxu2 %vm313_vm0, %v248_v28 }
  0xce   : > { %v666_v31 = vadd.f32 %v665_v0, %v553_v30  ;;  %599 = vmatmul.f32.gmra.mxu1 %v238_v29 }
  0xcf   : > { %v1290_v32 = vpop.f32.mrf.mxu3 }
  0xd0   : > { %753 = vst.msk [vmem:[%s1243_s23 + $0x20] sm:$0xff] %vm313_vm0, %v666_v31  ;;  %v674_v33 = vpop.f32.mrf.mxu2  ;;  %v442_v34 = vpop.f32.mrf.mxu0 }
  0xd1   : > { %v443_v36 = vadd.f32 %v1231_v41, %v442_v34 }
  0xd3   : > { %v555_v37 = vpop.f32.mrf.mxu1  ;;  %489 = vmatmul.f32.gmra.mxu0 %v240_v35 }
  0xd4   : > { %v556_v40 = vadd.f32 %v555_v37, %v443_v36 }
  0xd5   : > { %870 = vmatmul.msk.f32.gmra.mxu2 %vm313_vm0, %v251_v38 }
  0xd6   : > { %v669_v42 = vadd.f32 %v668_v11, %v556_v40  ;;  %602 = vmatmul.f32.gmra.mxu1 %v241_v39 }
  0xd7   : > { %v1299_v43 = vpop.f32.mrf.mxu3 }
  0xd8   : > { %754 = vst.msk [vmem:[%s1243_s23 + $0x28] sm:$0xff] %vm313_vm0, %v669_v42  ;;  %v677_v44 = vpop.f32.mrf.mxu2  ;;  %v445_v45 = vpop.f32.mrf.mxu0 }
  0xd9   : > { %v446_v47 = vadd.f32 %v1231_v41, %v445_v45 }
  0xdb   : > { %v558_v48 = vpop.f32.mrf.mxu1  ;;  %492 = vmatmul.f32.gmra.mxu0 %v243_v46 }
  0xdc   : > { %v559_v51 = vadd.f32 %v558_v48, %v446_v47 }
  0xdd   : > { %871 = vmatmul.msk.f32.gmra.mxu2 %vm313_vm0, %v254_v49 }
  0xde   : > { %v672_v53 = vadd.f32 %v671_v22, %v559_v51  ;;  %605 = vmatmul.f32.gmra.mxu1 %v244_v50 }
  0xdf   : > { %v1308_v54 = vpop.f32.mrf.mxu3 }
  0xe0   : > { %755 = vst.msk [vmem:[%s1243_s23 + $0x30] sm:$0xff] %vm313_vm0, %v672_v53  ;;  %v680_v55 = vpop.f32.mrf.mxu2  ;;  %v448_v56 = vpop.f32.mrf.mxu0 }
  0xe1   : > { %v449_v58 = vadd.f32 %v1231_v41, %v448_v56 }
  0xe3   : > { %v561_v59 = vpop.f32.mrf.mxu1  ;;  %495 = vmatmul.f32.gmra.mxu0 %v246_v57 }
  0xe4   : > { %v562_v62 = vadd.f32 %v561_v59, %v449_v58 }
  0xe5   : > { %872 = vmatmul.msk.f32.gmra.mxu2 %vm313_vm0, %v257_v60 }
  0xe6   : > { %v675_v0 = vadd.f32 %v674_v33, %v562_v62  ;;  %608 = vmatmul.f32.gmra.mxu1 %v247_v61 }
  0xe7   : > { %v1317_v1 = vpop.f32.mrf.mxu3 }
  0xe8   : > { %756 = vst.msk [vmem:[%s1243_s23 + $0x38] sm:$0xff] %vm313_vm0, %v675_v0  ;;  %v683_v2 = vpop.f32.mrf.mxu2  ;;  %v451_v3 = vpop.f32.mrf.mxu0 }
  0xe9   : > { %v452_v4 = vadd.f32 %v1231_v41, %v451_v3 }
  0xeb   : > { %v564_v5 = vpop.f32.mrf.mxu1 }
  0xec   : > { %v565_v6 = vadd.f32 %v564_v5, %v452_v4 }
  0xee   : > { %v678_v8 = vadd.f32 %v677_v44, %v565_v6 }
  0xef   : > { %v612_v9 = vpop.f32.mrf.mxu3 }
  0xf0   : > { %757 = vst.msk [vmem:[%s1243_s23 + $0x40] sm:$0xff] %vm313_vm0, %v678_v8  ;;  %v1326_v11 = vadd.f32 %v612_v9, %v500_v7  ;;  %v686_v12 = vpop.f32.mrf.mxu2  ;;  %v454_v13 = vpop.f32.mrf.mxu0 }
  0xf1   : > { %v455_v14 = vadd.f32 %v1231_v41, %v454_v13 }
  0xf3   : > { %v567_v15 = vpop.f32.mrf.mxu1 }
  0xf4   : > { %v568_v16 = vadd.f32 %v567_v15, %v455_v14 }
  0xf6   : > { %v681_v18 = vadd.f32 %v680_v55, %v568_v16 }
  0xf7   : > { %v615_v19 = vpop.f32.mrf.mxu3 }
  0xf8   : > { %758 = vst.msk [vmem:[%s1243_s23 + $0x48] sm:$0xff] %vm313_vm0, %v681_v18  ;;  %v1333_v52 = vadd.f32 %v615_v19, %v503_v17  ;;  %v689_v20 = vpop.f32.mrf.mxu2  ;;  %v457_v22 = vpop.f32.mrf.mxu0 }
  0xf9   : > { %v458_v23 = vadd.f32 %v1231_v41, %v457_v22 }
  0xfb   : > { %v570_v24 = vpop.f32.mrf.mxu1 }
  0xfc   : > { %v571_v25 = vadd.f32 %v570_v24, %v458_v23  ;;  %v512_v23 = vadd.f32 %v1231_v41, %v1290_v32 }
  0xfe   : > { %v684_v27 = vadd.f32 %v683_v2, %v571_v25 }
  0xff   : > { %v618_v28 = vpop.f32.mrf.mxu3 }
 0x100   : > { %759 = vst.msk [vmem:[%s1243_s23 + $0x50] sm:$0xff] %vm313_vm0, %v684_v27  ;;  %v1340_v63 = vadd.f32 %v618_v28, %v506_v26  ;;  %v692_v29 = vpop.f32.mrf.mxu2  ;;  %v460_v30 = vpop.f32.mrf.mxu0 }
 0x101   : > { %v461_v31 = vadd.f32 %v1231_v41, %v460_v30 }
 0x103   : > { %v573_v33 = vpop.f32.mrf.mxu1 }
 0x104   : > { %v574_v34 = vadd.f32 %v573_v33, %v461_v31  ;;  %v515_v33 = vadd.f32 %v1231_v41, %v1299_v43 }
 0x106   : > { %v687_v35 = vadd.f32 %v686_v12, %v574_v34  ;;  %v509_v12 = vadd.f32 %v1231_v41, %v1279_v21 }
 0x107   : > { %v621_v36 = vpop.f32.mrf.mxu3 }
 0x108   : > { %760 = vst.msk [vmem:[%s1243_s23 + $0x58] sm:$0xff] %vm313_vm0, %v687_v35  ;;  %v695_v37 = vpop.f32.mrf.mxu2  ;;  %v463_v10 = vpop.f32.mrf.mxu0  ;;  %v622_v14 = vadd.f32 %v621_v36, %v509_v12 }
 0x109   : > { %v464_v38 = vadd.f32 %v1231_v41, %v463_v10 }
 0x10b   : > { %v576_v39 = vpop.f32.mrf.mxu1 }
 0x10c   : > { %v577_v40 = vadd.f32 %v576_v39, %v464_v38 }
 0x10e   : > { %v690_v42 = vadd.f32 %v689_v20, %v577_v40 }
 0x10f   : > { %v624_v44 = vpop.f32.mrf.mxu3 }
 0x110   : > { %761 = vst.msk [vmem:[%s1243_s23 + $0x60] sm:$0xff] %vm313_vm0, %v690_v42  ;;  %v698_v45 = vpop.f32.mrf.mxu2  ;;  %v466_v46 = vpop.f32.mrf.mxu0  ;;  %v625_v24 = vadd.f32 %v624_v44, %v512_v23  ;;  %v518_v42 = vadd.f32 %v1231_v41, %v1308_v54  ;;  %v521_v54 = vadd.f32 %v1231_v41, %v1317_v1 }
 0x111   : > { %v467_v47 = vadd.f32 %v1231_v41, %v466_v46 }
 0x113   : > { %v579_v48 = vpop.f32.mrf.mxu1 }
 0x114   : > { %v580_v49 = vadd.f32 %v579_v48, %v467_v47 }
 0x116   : > { %v693_v50 = vadd.f32 %v692_v29, %v580_v49 }
 0x117   : > { %v627_v51 = vpop.f32.mrf.mxu3 }
 0x118   : > { %762 = vst.msk [vmem:[%s1243_s23 + $0x68] sm:$0xff] %vm313_vm0, %v693_v50  ;;  %v701_v53 = vpop.f32.mrf.mxu2  ;;  %v469_v55 = vpop.f32.mrf.mxu0  ;;  %v628_v34 = vadd.f32 %v627_v51, %v515_v33 }
 0x119   : > { %v470_v56 = vadd.f32 %v1231_v41, %v469_v55 }
 0x11b   : > { %v582_v57 = vpop.f32.mrf.mxu1 }
 0x11c   : > { %v583_v58 = vadd.f32 %v582_v57, %v470_v56 }
 0x11e   : > { %v696_v59 = vadd.f32 %v695_v37, %v583_v58 }
 0x11f   : > { %v630_v60 = vpop.f32.mrf.mxu3 }
 0x120   : > { %763 = vst.msk [vmem:[%s1243_s23 + $0x70] sm:$0xff] %vm313_vm0, %v696_v59  ;;  %v704_v61 = vpop.f32.mrf.mxu2  ;;  %v472_v62 = vpop.f32.mrf.mxu0  ;;  %v631_v44 = vadd.f32 %v630_v60, %v518_v42 }
 0x121   : > { %v473_v0 = vadd.f32 %v1231_v41, %v472_v62 }
 0x123   : > { %v585_v2 = vpop.f32.mrf.mxu1 }
 0x124   : > { %v586_v3 = vadd.f32 %v585_v2, %v473_v0 }
 0x126   : > { %v699_v4 = vadd.f32 %v698_v45, %v586_v3 }
 0x127   : > { %v633_v5 = vpop.f32.mrf.mxu3 }
 0x128   : > { %764 = vst.msk [vmem:[%s1243_s23 + $0x78] sm:$0xff] %vm313_vm0, %v699_v4  ;;  %v707_v6 = vpop.f32.mrf.mxu2  ;;  %v475_v7 = vpop.f32.mrf.mxu0  ;;  %v634_v55 = vadd.f32 %v633_v5, %v521_v54 }
 0x129   : > { %v476_v8 = vadd.f32 %v1231_v41, %v475_v7 }
 0x12b   : > { %v588_v9 = vpop.f32.mrf.mxu1 }
 0x12c   : > { %v589_v13 = vadd.f32 %v588_v9, %v476_v8 }
 0x12e   : > { %v702_v15 = vadd.f32 %v701_v53, %v589_v13 }
 0x12f   : > { %v734_v16 = vpop.f32.mrf.mxu3 }
 0x130   : > { %765 = vst.msk [vmem:[%s1243_s23 + $0x80] sm:$0xff] %vm313_vm0, %v702_v15  ;;  %v735_v17 = vadd.f32 %v734_v16, %v622_v14  ;;  %v710_v18 = vpop.f32.mrf.mxu2  ;;  %v478_v19 = vpop.f32.mrf.mxu0 }
 0x131   : > { %v479_v20 = vadd.f32 %v1231_v41, %v478_v19 }
 0x132   : > { %776 = vst.msk [vmem:[%s1243_s23 + $0xd8] sm:$0xff] %vm313_vm0, %v735_v17 }
 0x133   : > { %v591_v22 = vpop.f32.mrf.mxu1 }
 0x134   : > { %v592_v21 = vadd.f32 %v591_v22, %v479_v20 }
 0x136   : > { %v705_v25 = vadd.f32 %v704_v61, %v592_v21 }
 0x137   : > { %v737_v26 = vpop.f32.mrf.mxu3 }
 0x138   : > { %766 = vst.msk [vmem:[%s1243_s23 + $0x88] sm:$0xff] %vm313_vm0, %v705_v25  ;;  %v738_v27 = vadd.f32 %v737_v26, %v625_v24  ;;  %v713_v28 = vpop.f32.mrf.mxu2  ;;  %v481_v29 = vpop.f32.mrf.mxu0 }
 0x139   : > { %v482_v30 = vadd.f32 %v1231_v41, %v481_v29 }
 0x13a   : > { %777 = vst.msk [vmem:[%s1243_s23 + $0xe0] sm:$0xff] %vm313_vm0, %v738_v27 }
 0x13b   : > { %v594_v31 = vpop.f32.mrf.mxu1 }
 0x13c   : > { %v595_v32 = vadd.f32 %v594_v31, %v482_v30 }
 0x13e   : > { %v708_v35 = vadd.f32 %v707_v6, %v595_v32 }
 0x13f   : > { %v740_v36 = vpop.f32.mrf.mxu3 }
 0x140   : > { %767 = vst.msk [vmem:[%s1243_s23 + $0x90] sm:$0xff] %vm313_vm0, %v708_v35  ;;  %v741_v37 = vadd.f32 %v740_v36, %v628_v34  ;;  %v716_v10 = vpop.f32.mrf.mxu2  ;;  %v484_v38 = vpop.f32.mrf.mxu0 }
 0x141   : > { %v485_v39 = vadd.f32 %v1231_v41, %v484_v38 }
 0x142   : > { %778 = vst.msk [vmem:[%s1243_s23 + $0xe8] sm:$0xff] %vm313_vm0, %v741_v37 }
 0x143   : > { %v597_v40 = vpop.f32.mrf.mxu1 }
 0x144   : > { %v598_v43 = vadd.f32 %v597_v40, %v485_v39 }
 0x146   : > { %v711_v45 = vadd.f32 %v710_v18, %v598_v43 }
 0x147   : > { %v743_v46 = vpop.f32.mrf.mxu3 }
 0x148   : > { %768 = vst.msk [vmem:[%s1243_s23 + $0x98] sm:$0xff] %vm313_vm0, %v711_v45  ;;  %v744_v47 = vadd.f32 %v743_v46, %v631_v44  ;;  %v719_v48 = vpop.f32.mrf.mxu2  ;;  %v487_v49 = vpop.f32.mrf.mxu0 }
 0x149   : > { %v488_v50 = vadd.f32 %v1231_v41, %v487_v49 }
 0x14a   : > { %779 = vst.msk [vmem:[%s1243_s23 + $0xf0] sm:$0xff] %vm313_vm0, %v744_v47 }
 0x14b   : > { %v600_v51 = vpop.f32.mrf.mxu1 }
 0x14c   : > { %v601_v53 = vadd.f32 %v600_v51, %v488_v50 }
 0x14e   : > { %v714_v56 = vadd.f32 %v713_v28, %v601_v53 }
 0x14f   : > { %v746_v57 = vpop.f32.mrf.mxu3 }
 0x150   : > { %769 = vst.msk [vmem:[%s1243_s23 + $0xa0] sm:$0xff] %vm313_vm0, %v714_v56  ;;  %v747_v58 = vadd.f32 %v746_v57, %v634_v55  ;;  %v722_v59 = vpop.f32.mrf.mxu2  ;;  %v490_v60 = vpop.f32.mrf.mxu0 }
 0x151   : > { %v491_v61 = vadd.f32 %v1231_v41, %v490_v60 }
 0x152   : > { %780 = vst.msk [vmem:[%s1243_s23 + $0xf8] sm:$0xff] %vm313_vm0, %v747_v58 }
 0x153   : > { %v603_v62 = vpop.f32.mrf.mxu1 }
 0x154   : > { %v604_v0 = vadd.f32 %v603_v62, %v491_v61 }
 0x156   : > { %v717_v2 = vadd.f32 %v716_v10, %v604_v0 }
 0x158   : > { %770 = vst.msk [vmem:[%s1243_s23 + $0xa8] sm:$0xff] %vm313_vm0, %v717_v2  ;;  %v725_v1 = vpop.f32.mrf.mxu2  ;;  %v493_v3 = vpop.f32.mrf.mxu0 }
 0x159   : > { %v726_v4 = vadd.f32 %v725_v1, %v1326_v11  ;;  %v494_v5 = vadd.f32 %v1231_v41, %v493_v3 }
 0x15b   : > { %v606_v6 = vpop.f32.mrf.mxu1  ;;  %773 = vst.msk [vmem:[%s1243_s23 + $0xc0] sm:$0xff] %vm313_vm0, %v726_v4 }
 0x15c   : > { %v607_v7 = vadd.f32 %v606_v6, %v494_v5 }
 0x15e   : > { %v720_v8 = vadd.f32 %v719_v48, %v607_v7 }
 0x160   : > { %771 = vst.msk [vmem:[%s1243_s23 + $0xb0] sm:$0xff] %vm313_vm0, %v720_v8  ;;  %v728_v9 = vpop.f32.mrf.mxu2  ;;  %v496_v12 = vpop.f32.mrf.mxu0 }
 0x161   : > { %v729_v13 = vadd.f32 %v728_v9, %v1333_v52  ;;  %v497_v14 = vadd.f32 %v1231_v41, %v496_v12 }
 0x163   : > { %v609_v15 = vpop.f32.mrf.mxu1  ;;  %774 = vst.msk [vmem:[%s1243_s23 + $0xc8] sm:$0xff] %vm313_vm0, %v729_v13 }
 0x164   : > { %v610_v11 = vadd.f32 %v609_v15, %v497_v14 }
 0x166   : > { %v723_v16 = vadd.f32 %v722_v59, %v610_v11 }
 0x168   : > { %772 = vst.msk [vmem:[%s1243_s23 + $0xb8] sm:$0xff] %vm313_vm0, %v723_v16  ;;  %v731_v17 = vpop.f32.mrf.mxu2 }
 0x169   : > { %v732_v18 = vadd.f32 %v731_v17, %v1340_v63 }
 0x16b   : > { %775 = vst.msk [vmem:[%s1243_s23 + $0xd0] sm:$0xff] %vm313_vm0, %v732_v18 }
 0x16c PF: > { %s13_s12 = sadd.s32 1, %s932_s12  }
 0x16d   : > { %p10_p4 = scmp.ge.s32.totalorder %s13_s12, 4  }
 0x16f   :  { %12 = sbr.rel (!%p10_p4) target bundleno = 1 (0x1), region = 62 }

// kernel: _lambda_.31
= control target key start
LH: loop header
LB: loop body
LE: loop exit
PB: predicated region body
PF: predicated region fallthrough
CT: control target
= control target key end

     0   :  { %s604_s12 = smov 0   ;;  %s809_s0 = inlined_call_operand.vmem [shape: f32[512,32], index: 0, kind: input, shape index: {}]   ;;  %s810_s1 = inlined_call_operand.vmem [shape: f32[32,32], index: 1, kind: input, shape index: {}]   ;;  %s811_s2 = inlined_call_operand.vmem [shape: f32[1,32], index: 2, kind: input, shape index: {}]   ;;  %s812_s3 = inlined_call_operand.vmem [shape: f32[512,32], index: 3, kind: output, shape index: {}]  }
   0x1 LB: > { %s512_s13 = sadd.s32 4294967295, %s582_s12   ;;  %p516_p0 = scmp.ge.s32.totalorder %s582_s12, 1  ;;  %s582_s12 = sphi %s604_s12, %s13_s12  }
   0x2   : > { %p138_p1 = scmp.lt.s32.totalorder %s582_s12, 3 }
   0x4   : > { %p139_p2 = pnand %p516_p0, %p138_p1 }
   0x5   : > { %s517_s18 = sshll.u32 (!%p139_p2), %s512_s13, 5 }
   0x6   : > { %142 = sbr.rel (%p139_p2) target bundleno = 211 (0xd3), region = 32  ;;  %p163_p3 = scmp.lt.s32.totalorder (!%p139_p2), %s517_s18, 63 }
   0xb   : > { %v209_v0 = vld [vmem:[%s810_s1 + $0x18] sm:$0xff]  ;;  %v208_v1 = vld [vmem:[%s810_s1 + $0x10] sm:$0xff]  ;;  %v207_v2 = vld [vmem:[%s810_s1 + $0x8] sm:$0xff]  ;;  %s814_s18 = smov (!%p163_p3, %s517_s18), 63  ;;  %vm214_vm0 = vcmask 261120  }
   0xc   : > { %556 = vmatpush.msra.mxu2 %v209_v0  ;;  %557 = vmatpush.msra.mxu3 %v209_v0  ;;  %v206_v3 = vld [vmem:[%s810_s1] sm:$0xff]  ;;  %s518_s23 = sshll.u32 %s814_s18, 3 }
   0xd   : > { %323 = vmatpush.msra.mxu0 %v209_v0  ;;  %555 = vmatpush.msra.mxu1 %v209_v0  ;;  %s632_s26 = scalar_lea.vmem %s809_s0, %s518_s23  ;;  %v701_v36 = vld [vmem:[%s811_s2] ss:$0 sm:$0xff]  ;;  %s708_s4 = scalar_lea.vmem %s812_s3, %s518_s23 }
   0xe   : > { %559 = vmatpush.msra.mxu2 %v208_v1  ;;  %560 = vmatpush.msra.mxu3 %v208_v1  ;;  %v190_v4 = vld [vmem:[%s632_s26 + $0x80] sm:$0xff]  ;;  %v191_v8 = vld [vmem:[%s632_s26 + $0x88] sm:$0xff]  ;;  %v192_v12 = vld [vmem:[%s632_s26 + $0x90] sm:$0xff] }
   0xf   : > { %324 = vmatpush.msra.mxu0 %v208_v1  ;;  %558 = vmatpush.msra.mxu1 %v208_v1  ;;  %v198_v5 = vld [vmem:[%s632_s26 + $0xc0] sm:$0xff]  ;;  %v199_v9 = vld [vmem:[%s632_s26 + $0xc8] sm:$0xff]  ;;  %v200_v13 = vld [vmem:[%s632_s26 + $0xd0] sm:$0xff] }
  0x10   : > { %562 = vmatpush.msra.mxu2 %v207_v2  ;;  %563 = vmatpush.msra.mxu3 %v207_v2  ;;  %v174_v6 = vld [vmem:[%s632_s26] sm:$0xff]  ;;  %v175_v10 = vld [vmem:[%s632_s26 + $0x8] sm:$0xff]  ;;  %v176_v14 = vld [vmem:[%s632_s26 + $0x10] sm:$0xff] }
  0x11   : > { %325 = vmatpush.msra.mxu0 %v207_v2  ;;  %561 = vmatpush.msra.mxu1 %v207_v2  ;;  %v182_v7 = vld [vmem:[%s632_s26 + $0x40] sm:$0xff]  ;;  %v183_v11 = vld [vmem:[%s632_s26 + $0x48] sm:$0xff]  ;;  %v184_v15 = vld [vmem:[%s632_s26 + $0x50] sm:$0xff] }
  0x12   : > { %565 = vmatpush.msra.mxu2 %v206_v3  ;;  %566 = vmatpush.msra.mxu3 %v206_v3  ;;  %v193_v16 = vld [vmem:[%s632_s26 + $0x98] sm:$0xff]  ;;  %v194_v20 = vld [vmem:[%s632_s26 + $0xa0] sm:$0xff]  ;;  %v195_v24 = vld [vmem:[%s632_s26 + $0xa8] sm:$0xff] }
  0x13   : > { %537 = vmatmul.msk.f32.vlgmr.msra.gmra.mxu2 %vm214_vm0, %v190_v4  ;;  %545 = vmatmul.msk.f32.vlgmr.msra.gmra.mxu3 %vm214_vm0, %v198_v5  ;;  %v201_v17 = vld [vmem:[%s632_s26 + $0xd8] sm:$0xff]  ;;  %v202_v21 = vld [vmem:[%s632_s26 + $0xe0] sm:$0xff]  ;;  %v203_v25 = vld [vmem:[%s632_s26 + $0xe8] sm:$0xff] }
  0x14   : > { %326 = vmatpush.msra.mxu0 %v206_v3  ;;  %564 = vmatpush.msra.mxu1 %v206_v3  ;;  %v177_v18 = vld [vmem:[%s632_s26 + $0x18] sm:$0xff]  ;;  %v178_v22 = vld [vmem:[%s632_s26 + $0x20] sm:$0xff]  ;;  %v179_v26 = vld [vmem:[%s632_s26 + $0x28] sm:$0xff] }
  0x15   : > { %521 = vmatmul.msk.f32.vlgmr.msra.gmra.mxu0 %vm214_vm0, %v174_v6  ;;  %529 = vmatmul.msk.f32.vlgmr.msra.gmra.mxu1 %vm214_vm0, %v182_v7  ;;  %v185_v19 = vld [vmem:[%s632_s26 + $0x58] sm:$0xff]  ;;  %v186_v23 = vld [vmem:[%s632_s26 + $0x60] sm:$0xff]  ;;  %v187_v27 = vld [vmem:[%s632_s26 + $0x68] sm:$0xff] }
  0x16   : > { %v196_v28 = vld [vmem:[%s632_s26 + $0xb0] sm:$0xff]  ;;  %v197_v32 = vld [vmem:[%s632_s26 + $0xb8] sm:$0xff] }
  0x17   : > { %v204_v29 = vld [vmem:[%s632_s26 + $0xf0] sm:$0xff]  ;;  %v205_v33 = vld [vmem:[%s632_s26 + $0xf8] sm:$0xff] }
  0x18   : > { %v180_v30 = vld [vmem:[%s632_s26 + $0x30] sm:$0xff]  ;;  %v181_v34 = vld [vmem:[%s632_s26 + $0x38] sm:$0xff] }
  0x19   : > { %v188_v31 = vld [vmem:[%s632_s26 + $0x70] sm:$0xff]  ;;  %v189_v35 = vld [vmem:[%s632_s26 + $0x78] sm:$0xff] }
  0x1b   : > { %538 = vmatmul.msk.f32.gmra.mxu2 %vm214_vm0, %v191_v8  ;;  %546 = vmatmul.msk.f32.gmra.mxu3 %vm214_vm0, %v199_v9 }
  0x1d   : > { %522 = vmatmul.msk.f32.gmra.mxu0 %vm214_vm0, %v175_v10  ;;  %530 = vmatmul.msk.f32.gmra.mxu1 %vm214_vm0, %v183_v11 }
  0x23   : > { %539 = vmatmul.msk.f32.gmra.mxu2 %vm214_vm0, %v192_v12  ;;  %547 = vmatmul.msk.f32.gmra.mxu3 %vm214_vm0, %v200_v13 }
  0x25   : > { %523 = vmatmul.msk.f32.gmra.mxu0 %vm214_vm0, %v176_v14  ;;  %531 = vmatmul.msk.f32.gmra.mxu1 %vm214_vm0, %v184_v15 }
  0x2b   : > { %540 = vmatmul.msk.f32.gmra.mxu2 %vm214_vm0, %v193_v16  ;;  %548 = vmatmul.msk.f32.gmra.mxu3 %vm214_vm0, %v201_v17 }
  0x2d   : > { %524 = vmatmul.msk.f32.gmra.mxu0 %vm214_vm0, %v177_v18  ;;  %532 = vmatmul.msk.f32.gmra.mxu1 %vm214_vm0, %v185_v19 }
  0x33   : > { %541 = vmatmul.msk.f32.gmra.mxu2 %vm214_vm0, %v194_v20  ;;  %549 = vmatmul.msk.f32.gmra.mxu3 %vm214_vm0, %v202_v21 }
  0x35   : > { %525 = vmatmul.msk.f32.gmra.mxu0 %vm214_vm0, %v178_v22  ;;  %533 = vmatmul.msk.f32.gmra.mxu1 %vm214_vm0, %v186_v23 }
  0x3b   : > { %542 = vmatmul.msk.f32.gmra.mxu2 %vm214_vm0, %v195_v24  ;;  %550 = vmatmul.msk.f32.gmra.mxu3 %vm214_vm0, %v203_v25 }
  0x3d   : > { %526 = vmatmul.msk.f32.gmra.mxu0 %vm214_vm0, %v179_v26  ;;  %534 = vmatmul.msk.f32.gmra.mxu1 %vm214_vm0, %v187_v27 }
  0x43   : > { %543 = vmatmul.msk.f32.gmra.mxu2 %vm214_vm0, %v196_v28  ;;  %551 = vmatmul.msk.f32.gmra.mxu3 %vm214_vm0, %v204_v29 }
  0x45   : > { %527 = vmatmul.msk.f32.gmra.mxu0 %vm214_vm0, %v180_v30  ;;  %535 = vmatmul.msk.f32.gmra.mxu1 %vm214_vm0, %v188_v31 }
  0x4b   : > { %544 = vmatmul.msk.f32.gmra.mxu2 %vm214_vm0, %v197_v32  ;;  %552 = vmatmul.msk.f32.gmra.mxu3 %vm214_vm0, %v205_v33 }
  0x4d   : > { %528 = vmatmul.msk.f32.gmra.mxu0 %vm214_vm0, %v181_v34  ;;  %536 = vmatmul.msk.f32.gmra.mxu1 %vm214_vm0, %v189_v35 }
  0x92   : > { %v328_v37 = vpop.f32.mrf.mxu0  ;;  %v352_v38 = vpop.f32.mrf.mxu1 }
  0x93   : > { %v329_v39 = vadd.f32 %v701_v36, %v328_v37  ;;  %v353_v40 = vadd.f32 %v701_v36, %v352_v38 }
  0x95   : > { %424 = vst.msk [vmem:[%s708_s4] sm:$0xff] %vm214_vm0, %v329_v39 }
  0x96   : > { %432 = vst.msk [vmem:[%s708_s4 + $0x40] sm:$0xff] %vm214_vm0, %v353_v40  ;;  %v376_v41 = vpop.f32.mrf.mxu2  ;;  %v400_v42 = vpop.f32.mrf.mxu3 }
  0x97   : > { %v377_v43 = vadd.f32 %v701_v36, %v376_v41  ;;  %v401_v44 = vadd.f32 %v701_v36, %v400_v42 }
  0x99   : > { %440 = vst.msk [vmem:[%s708_s4 + $0x80] sm:$0xff] %vm214_vm0, %v377_v43 }
  0x9a   : > { %448 = vst.msk [vmem:[%s708_s4 + $0xc0] sm:$0xff] %vm214_vm0, %v401_v44  ;;  %v331_v45 = vpop.f32.mrf.mxu0  ;;  %v355_v46 = vpop.f32.mrf.mxu1 }
  0x9b   : > { %v332_v47 = vadd.f32 %v701_v36, %v331_v45  ;;  %v356_v48 = vadd.f32 %v701_v36, %v355_v46 }
  0x9d   : > { %425 = vst.msk [vmem:[%s708_s4 + $0x8] sm:$0xff] %vm214_vm0, %v332_v47 }
  0x9e   : > { %433 = vst.msk [vmem:[%s708_s4 + $0x48] sm:$0xff] %vm214_vm0, %v356_v48  ;;  %v379_v49 = vpop.f32.mrf.mxu2  ;;  %v403_v50 = vpop.f32.mrf.mxu3 }
  0x9f   : > { %v380_v51 = vadd.f32 %v701_v36, %v379_v49  ;;  %v404_v52 = vadd.f32 %v701_v36, %v403_v50 }
  0xa1   : > { %441 = vst.msk [vmem:[%s708_s4 + $0x88] sm:$0xff] %vm214_vm0, %v380_v51 }
  0xa2   : > { %449 = vst.msk [vmem:[%s708_s4 + $0xc8] sm:$0xff] %vm214_vm0, %v404_v52  ;;  %v334_v53 = vpop.f32.mrf.mxu0  ;;  %v358_v54 = vpop.f32.mrf.mxu1 }
  0xa3   : > { %v335_v55 = vadd.f32 %v701_v36, %v334_v53  ;;  %v359_v56 = vadd.f32 %v701_v36, %v358_v54 }
  0xa5   : > { %426 = vst.msk [vmem:[%s708_s4 + $0x10] sm:$0xff] %vm214_vm0, %v335_v55 }
  0xa6   : > { %434 = vst.msk [vmem:[%s708_s4 + $0x50] sm:$0xff] %vm214_vm0, %v359_v56  ;;  %v382_v57 = vpop.f32.mrf.mxu2  ;;  %v406_v58 = vpop.f32.mrf.mxu3 }
  0xa7   : > { %v383_v59 = vadd.f32 %v701_v36, %v382_v57  ;;  %v407_v60 = vadd.f32 %v701_v36, %v406_v58 }
  0xa9   : > { %442 = vst.msk [vmem:[%s708_s4 + $0x90] sm:$0xff] %vm214_vm0, %v383_v59 }
  0xaa   : > { %450 = vst.msk [vmem:[%s708_s4 + $0xd0] sm:$0xff] %vm214_vm0, %v407_v60  ;;  %v337_v61 = vpop.f32.mrf.mxu0  ;;  %v361_v62 = vpop.f32.mrf.mxu1 }
  0xab   : > { %v338_v63 = vadd.f32 %v701_v36, %v337_v61  ;;  %v362_v0 = vadd.f32 %v701_v36, %v361_v62 }
  0xad   : > { %427 = vst.msk [vmem:[%s708_s4 + $0x18] sm:$0xff] %vm214_vm0, %v338_v63 }
  0xae   : > { %435 = vst.msk [vmem:[%s708_s4 + $0x58] sm:$0xff] %vm214_vm0, %v362_v0  ;;  %v385_v1 = vpop.f32.mrf.mxu2  ;;  %v409_v2 = vpop.f32.mrf.mxu3 }
  0xaf   : > { %v386_v3 = vadd.f32 %v701_v36, %v385_v1  ;;  %v410_v4 = vadd.f32 %v701_v36, %v409_v2 }
  0xb1   : > { %443 = vst.msk [vmem:[%s708_s4 + $0x98] sm:$0xff] %vm214_vm0, %v386_v3 }
  0xb2   : > { %451 = vst.msk [vmem:[%s708_s4 + $0xd8] sm:$0xff] %vm214_vm0, %v410_v4  ;;  %v340_v5 = vpop.f32.mrf.mxu0  ;;  %v364_v6 = vpop.f32.mrf.mxu1 }
  0xb3   : > { %v341_v7 = vadd.f32 %v701_v36, %v340_v5  ;;  %v365_v8 = vadd.f32 %v701_v36, %v364_v6 }
  0xb5   : > { %428 = vst.msk [vmem:[%s708_s4 + $0x20] sm:$0xff] %vm214_vm0, %v341_v7 }
  0xb6   : > { %436 = vst.msk [vmem:[%s708_s4 + $0x60] sm:$0xff] %vm214_vm0, %v365_v8  ;;  %v388_v9 = vpop.f32.mrf.mxu2  ;;  %v412_v10 = vpop.f32.mrf.mxu3 }
  0xb7   : > { %v389_v11 = vadd.f32 %v701_v36, %v388_v9  ;;  %v413_v12 = vadd.f32 %v701_v36, %v412_v10 }
  0xb9   : > { %444 = vst.msk [vmem:[%s708_s4 + $0xa0] sm:$0xff] %vm214_vm0, %v389_v11 }
  0xba   : > { %452 = vst.msk [vmem:[%s708_s4 + $0xe0] sm:$0xff] %vm214_vm0, %v413_v12  ;;  %v343_v13 = vpop.f32.mrf.mxu0  ;;  %v367_v14 = vpop.f32.mrf.mxu1 }
  0xbb   : > { %v344_v15 = vadd.f32 %v701_v36, %v343_v13  ;;  %v368_v16 = vadd.f32 %v701_v36, %v367_v14 }
  0xbd   : > { %429 = vst.msk [vmem:[%s708_s4 + $0x28] sm:$0xff] %vm214_vm0, %v344_v15 }
  0xbe   : > { %437 = vst.msk [vmem:[%s708_s4 + $0x68] sm:$0xff] %vm214_vm0, %v368_v16  ;;  %v391_v17 = vpop.f32.mrf.mxu2  ;;  %v415_v18 = vpop.f32.mrf.mxu3 }
  0xbf   : > { %v392_v19 = vadd.f32 %v701_v36, %v391_v17  ;;  %v416_v20 = vadd.f32 %v701_v36, %v415_v18 }
  0xc1   : > { %445 = vst.msk [vmem:[%s708_s4 + $0xa8] sm:$0xff] %vm214_vm0, %v392_v19 }
  0xc2   : > { %453 = vst.msk [vmem:[%s708_s4 + $0xe8] sm:$0xff] %vm214_vm0, %v416_v20  ;;  %v346_v21 = vpop.f32.mrf.mxu0  ;;  %v370_v22 = vpop.f32.mrf.mxu1 }
  0xc3   : > { %v347_v23 = vadd.f32 %v701_v36, %v346_v21  ;;  %v371_v24 = vadd.f32 %v701_v36, %v370_v22 }
  0xc5   : > { %430 = vst.msk [vmem:[%s708_s4 + $0x30] sm:$0xff] %vm214_vm0, %v347_v23 }
  0xc6   : > { %438 = vst.msk [vmem:[%s708_s4 + $0x70] sm:$0xff] %vm214_vm0, %v371_v24  ;;  %v394_v25 = vpop.f32.mrf.mxu2  ;;  %v418_v26 = vpop.f32.mrf.mxu3 }
  0xc7   : > { %v395_v27 = vadd.f32 %v701_v36, %v394_v25  ;;  %v419_v28 = vadd.f32 %v701_v36, %v418_v26 }
  0xc9   : > { %446 = vst.msk [vmem:[%s708_s4 + $0xb0] sm:$0xff] %vm214_vm0, %v395_v27 }
  0xca   : > { %454 = vst.msk [vmem:[%s708_s4 + $0xf0] sm:$0xff] %vm214_vm0, %v419_v28  ;;  %v349_v29 = vpop.f32.mrf.mxu0  ;;  %v373_v30 = vpop.f32.mrf.mxu1 }
  0xcb   : > { %v350_v31 = vadd.f32 %v701_v36, %v349_v29  ;;  %v374_v32 = vadd.f32 %v701_v36, %v373_v30 }
  0xcd   : > { %431 = vst.msk [vmem:[%s708_s4 + $0x38] sm:$0xff] %vm214_vm0, %v350_v31 }
  0xce   : > { %439 = vst.msk [vmem:[%s708_s4 + $0x78] sm:$0xff] %vm214_vm0, %v374_v32  ;;  %v397_v33 = vpop.f32.mrf.mxu2  ;;  %v421_v34 = vpop.f32.mrf.mxu3 }
  0xcf   : > { %v398_v35 = vadd.f32 %v701_v36, %v397_v33  ;;  %v422_v37 = vadd.f32 %v701_v36, %v421_v34 }
  0xd1   : > { %447 = vst.msk [vmem:[%s708_s4 + $0xb8] sm:$0xff] %vm214_vm0, %v398_v35 }
  0xd2   : > { %455 = vst.msk [vmem:[%s708_s4 + $0xf8] sm:$0xff] %vm214_vm0, %v422_v37 }
  0xd3 PF: > { %s13_s12 = sadd.s32 1, %s582_s12  }
  0xd4   : > { %p10_p4 = scmp.ge.s32.totalorder %s13_s12, 4  }
  0xd6   :  { %12 = sbr.rel (!%p10_p4) target bundleno = 1 (0x1), region = 62 }

// kernel: _lambda_.33
= control target key start
LH: loop header
LB: loop body
LE: loop exit
PB: predicated region body
PF: predicated region fallthrough
CT: control target
= control target key end

     0   :  { %s955_s12 = smov 0   ;;  %s1414_s0 = inlined_call_operand.vmem [shape: f32[512,288], index: 0, kind: input, shape index: {}]   ;;  %s1415_s1 = inlined_call_operand.vmem [shape: f32[288,3], index: 1, kind: input, shape index: {}]   ;;  %s1416_s2 = inlined_call_operand.vmem [shape: f32[1,3], index: 2, kind: input, shape index: {}]   ;;  %s1417_s3 = inlined_call_operand.vmem [shape: f32[512,3], index: 3, kind: output, shape index: {}]  }
   0x1 LB: > { %s838_s13 = sadd.s32 4294967295, %s933_s12   ;;  %p842_p0 = scmp.ge.s32.totalorder %s933_s12, 1  ;;  %s933_s12 = sphi %s955_s12, %s13_s12  }
   0x2   : > { %p139_p1 = scmp.lt.s32.totalorder %s933_s12, 3 }
   0x4   : > { %p140_p2 = pnand %p842_p0, %p139_p1 }
   0x5   : > { %s843_s20 = sshll.u32 (!%p140_p2), %s838_s13, 5 }
   0x6   : > { %143 = sbr.rel (%p140_p2) target bundleno = 364 (0x16c), region = 32  ;;  %p165_p3 = scmp.lt.s32.totalorder (!%p140_p2), %s843_s20, 63 }
   0xb   : > { %v288_v0 = vld [vmem:[%s1415_s1 + $0x78] sm:$0xff]  ;;  %v287_v2 = vld [vmem:[%s1415_s1 + $0x70] sm:$0xff]  ;;  %v286_v5 = vld [vmem:[%s1415_s1 + $0x68] sm:$0xff]  ;;  %s1419_s20 = smov (!%p165_p3, %s843_s20), 63  ;;  %vm313_vm0 = vcmask 261120   ;;  %vm749_vm1 = vcmask 23552  }
   0xc   : > { %v969_v1 = vld [vmem:[%s1415_s1 + $0x118] sm:$0xff]  ;;  %410 = vmatpush.msra.mxu0 %v288_v0  ;;  %881 = vmatpush.msra.mxu3 %v288_v0  ;;  %v982_v4 = vld [vmem:[%s1415_s1 + $0x110] sm:$0xff]  ;;  %v997_v7 = vld [vmem:[%s1415_s1 + $0x108] sm:$0xff]  ;;  %s917_s13 = smul.u32 24, %s1419_s20  ;;  %s846_s19 = sshll.u32 %s1419_s20, 3 }
   0xd   : > { %v977_v3 = vld [vmem:[%s1415_s1 + $0xf8] sm:$0xff]  ;;  %648 = vmatpush.msra.mxu2 %v969_v1  ;;  %v992_v6 = vld [vmem:[%s1415_s1 + $0xf0] sm:$0xff]  ;;  %v1002_v8 = vld [vmem:[%s1415_s1 + $0xe8] sm:$0xff]  ;;  %s1244_s23 = scalar_lea.vmem %s1417_s3, %s846_s19 }
   0xe   : > { %523 = vmatpush.msra.mxu1 %v977_v3  ;;  %411 = vmatpush.msra.mxu0 %v287_v2  ;;  %v285_v9 = vld [vmem:[%s1415_s1 + $0x60] sm:$0xff]  ;;  %v284_v12 = vld [vmem:[%s1415_s1 + $0x58] sm:$0xff]  ;;  %s1030_s18 = scalar_lea.vmem %s1414_s0, %s917_s13  ;;  %v283_v15 = vld [vmem:[%s1415_s1 + $0x50] sm:$0xff] }
   0xf   : > { %882 = vmatpush.msra.mxu3 %v287_v2  ;;  %649 = vmatpush.msra.mxu2 %v982_v4  ;;  %v1014_v10 = vld [vmem:[%s1415_s1 + $0x100] sm:$0xff]  ;;  %v1035_v13 = vld [vmem:[%s1415_s1 + $0xd8] sm:$0xff]  ;;  %v179_v14 = vld [vmem:[%s1030_s18 + $0x10] sm:$0xff] }
  0x10   : > { %524 = vmatpush.msra.mxu1 %v992_v6  ;;  %412 = vmatpush.msra.mxu0 %v286_v5  ;;  %v1019_v11 = vld [vmem:[%s1415_s1 + $0xe0] sm:$0xff]  ;;  %v1046_v16 = vld [vmem:[%s1415_s1 + $0xd0] sm:$0xff]  ;;  %v282_v17 = vld [vmem:[%s1415_s1 + $0x48] sm:$0xff] }
  0x11   : > { %883 = vmatpush.msra.mxu3 %v286_v5  ;;  %650 = vmatpush.msra.mxu2 %v997_v7  ;;  %v1056_v18 = vld [vmem:[%s1415_s1 + $0xc8] sm:$0xff]  ;;  %v281_v19 = vld [vmem:[%s1415_s1 + $0x40] sm:$0xff]  ;;  %v280_v21 = vld [vmem:[%s1415_s1 + $0x38] sm:$0xff] }
  0x12   : > { %525 = vmatpush.msra.mxu1 %v1002_v8  ;;  %413 = vmatpush.msra.mxu0 %v285_v9  ;;  %v1065_v20 = vld [vmem:[%s1415_s1 + $0xc0] sm:$0xff]  ;;  %v182_v22 = vld [vmem:[%s1030_s18 + $0x28] sm:$0xff]  ;;  %v1075_v23 = vld [vmem:[%s1415_s1 + $0xb8] sm:$0xff] }
  0x13   : > { %884 = vmatpush.msra.mxu3 %v285_v9  ;;  %651 = vmatpush.msra.mxu2 %v1014_v10  ;;  %v279_v24 = vld [vmem:[%s1415_s1 + $0x30] sm:$0xff]  ;;  %v278_v26 = vld [vmem:[%s1415_s1 + $0x28] sm:$0xff]  ;;  %v277_v28 = vld [vmem:[%s1415_s1 + $0x20] sm:$0xff] }
  0x14   : > { %526 = vmatpush.msra.mxu1 %v1019_v11  ;;  %414 = vmatpush.msra.mxu0 %v284_v12  ;;  %v1084_v25 = vld [vmem:[%s1415_s1 + $0xb0] sm:$0xff]  ;;  %v1094_v27 = vld [vmem:[%s1415_s1 + $0xa8] sm:$0xff]  ;;  %v1103_v29 = vld [vmem:[%s1415_s1 + $0xa0] sm:$0xff] }
  0x15   : > { %885 = vmatpush.msra.mxu3 %v284_v12  ;;  %847 = vmatmul.msk.f32.vlgmr.msra.gmra.mxu2 %vm313_vm0, %v179_v14  ;;  %v276_v30 = vld [vmem:[%s1415_s1 + $0x18] sm:$0xff]  ;;  %v185_v31 = vld [vmem:[%s1030_s18 + $0x40] sm:$0xff]  ;;  %v275_v33 = vld [vmem:[%s1415_s1 + $0x10] sm:$0xff] }
  0x16   : > { %527 = vmatpush.msra.mxu1 %v1035_v13  ;;  %415 = vmatpush.msra.mxu0 %v283_v15  ;;  %v292_v32 = vld [vmem:[%s1415_s1 + $0x98] sm:$0xff]  ;;  %v291_v34 = vld [vmem:[%s1415_s1 + $0x90] sm:$0xff]  ;;  %v274_v35 = vld [vmem:[%s1415_s1 + $0x8] sm:$0xff] }
  0x17   : > { %886 = vmatpush.msra.mxu3 %v283_v15  ;;  %v290_v36 = vld [vmem:[%s1415_s1 + $0x88] sm:$0xff]  ;;  %v273_v37 = vld [vmem:[%s1415_s1] sm:$0xff]  ;;  %v188_v41 = vld [vmem:[%s1030_s18 + $0x58] sm:$0xff] }
  0x18   : > { %528 = vmatpush.msra.mxu1 %v1046_v16  ;;  %416 = vmatpush.msra.mxu0 %v282_v17  ;;  %v177_v38 = vld [vmem:[%s1030_s18] sm:$0xff]  ;;  %v178_v42 = vld [vmem:[%s1030_s18 + $0x8] sm:$0xff]  ;;  %v180_v43 = vld [vmem:[%s1030_s18 + $0x18] sm:$0xff] }
  0x19   : > { %887 = vmatpush.msra.mxu3 %v282_v17  ;;  %v249_v39 = vld [vmem:[%s1030_s18 + $0x240] sm:$0xff]  ;;  %v252_v44 = vld [vmem:[%s1030_s18 + $0x258] sm:$0xff]  ;;  %v191_v45 = vld [vmem:[%s1030_s18 + $0x70] sm:$0xff] }
  0x1a   : > { %529 = vmatpush.msra.mxu1 %v1056_v18  ;;  %417 = vmatpush.msra.mxu0 %v281_v19  ;;  %v289_v40 = vld [vmem:[%s1415_s1 + $0x80] sm:$0xff]  ;;  %v183_v47 = vld [vmem:[%s1030_s18 + $0x30] sm:$0xff]  ;;  %v194_v49 = vld [vmem:[%s1030_s18 + $0x88] sm:$0xff] }
  0x1b   : > { %888 = vmatpush.msra.mxu3 %v281_v19  ;;  %v181_v46 = vld [vmem:[%s1030_s18 + $0x20] sm:$0xff]  ;;  %v255_v48 = vld [vmem:[%s1030_s18 + $0x270] sm:$0xff]  ;;  %v184_v50 = vld [vmem:[%s1030_s18 + $0x38] sm:$0xff] }
  0x1c   : > { %530 = vmatpush.msra.mxu1 %v1065_v20  ;;  %418 = vmatpush.msra.mxu0 %v280_v21  ;;  %v186_v51 = vld [vmem:[%s1030_s18 + $0x48] sm:$0xff]  ;;  %v197_v53 = vld [vmem:[%s1030_s18 + $0xa0] sm:$0xff]  ;;  %v187_v54 = vld [vmem:[%s1030_s18 + $0x50] sm:$0xff] }
  0x1d   : > { %889 = vmatpush.msra.mxu3 %v280_v21  ;;  %848 = vmatmul.msk.f32.gmra.mxu2 %vm313_vm0, %v182_v22  ;;  %v258_v52 = vld [vmem:[%s1030_s18 + $0x288] sm:$0xff]  ;;  %v189_v55 = vld [vmem:[%s1030_s18 + $0x60] sm:$0xff]  ;;  %v200_v57 = vld [vmem:[%s1030_s18 + $0xb8] sm:$0xff] }
  0x1e   : > { %531 = vmatpush.msra.mxu1 %v1075_v23  ;;  %419 = vmatpush.msra.mxu0 %v279_v24  ;;  %v261_v56 = vld [vmem:[%s1030_s18 + $0x2a0] sm:$0xff]  ;;  %v190_v58 = vld [vmem:[%s1030_s18 + $0x68] sm:$0xff]  ;;  %v192_v59 = vld [vmem:[%s1030_s18 + $0x78] sm:$0xff] }
  0x1f   : > { %890 = vmatpush.msra.mxu3 %v279_v24  ;;  %v264_v60 = vld [vmem:[%s1030_s18 + $0x2b8] sm:$0xff]  ;;  %v203_v61 = vld [vmem:[%s1030_s18 + $0xd0] sm:$0xff]  ;;  %v193_v62 = vld [vmem:[%s1030_s18 + $0x80] sm:$0xff] }
  0x20   : > { %532 = vmatpush.msra.mxu1 %v1084_v25  ;;  %420 = vmatpush.msra.mxu0 %v278_v26  ;;  %v195_v63 = vld [vmem:[%s1030_s18 + $0x90] sm:$0xff]  ;;  %v196_v2 = vld [vmem:[%s1030_s18 + $0x98] sm:$0xff]  ;;  %v209_v5 = vld [vmem:[%s1030_s18 + $0x100] sm:$0xff] }
  0x21   : > { %891 = vmatpush.msra.mxu3 %v278_v26  ;;  %v267_v0 = vld [vmem:[%s1030_s18 + $0x2d0] sm:$0xff]  ;;  %v212_v9 = vld [vmem:[%s1030_s18 + $0x118] sm:$0xff]  ;;  %v253_v12 = vld [vmem:[%s1030_s18 + $0x260] sm:$0xff] }
  0x22   : > { %533 = vmatpush.msra.mxu1 %v1094_v27  ;;  %421 = vmatpush.msra.mxu0 %v277_v28  ;;  %v205_v14 = vld [vmem:[%s1030_s18 + $0xe0] sm:$0xff]  ;;  %v207_v15 = vld [vmem:[%s1030_s18 + $0xf0] sm:$0xff]  ;;  %v218_v17 = vld [vmem:[%s1030_s18 + $0x148] sm:$0xff] }
  0x23   : > { %892 = vmatpush.msra.mxu3 %v277_v28  ;;  %v210_v19 = vld [vmem:[%s1030_s18 + $0x108] sm:$0xff]  ;;  %v221_v21 = vld [vmem:[%s1030_s18 + $0x160] sm:$0xff]  ;;  %v211_v22 = vld [vmem:[%s1030_s18 + $0x110] sm:$0xff] }
  0x24   : > { %534 = vmatpush.msra.mxu1 %v1103_v29  ;;  %422 = vmatpush.msra.mxu0 %v276_v30  ;;  %v262_v24 = vld [vmem:[%s1030_s18 + $0x2a8] sm:$0xff]  ;;  %v265_v28 = vld [vmem:[%s1030_s18 + $0x2c0] sm:$0xff] }
  0x25   : > { %893 = vmatpush.msra.mxu3 %v276_v30  ;;  %849 = vmatmul.msk.f32.gmra.mxu2 %vm313_vm0, %v185_v31  ;;  %v214_v26 = vld [vmem:[%s1030_s18 + $0x128] sm:$0xff]  ;;  %v217_v30 = vld [vmem:[%s1030_s18 + $0x140] sm:$0xff] }
  0x26   : > { %535 = vmatpush.msra.mxu1 %v292_v32  ;;  %423 = vmatpush.msra.mxu0 %v275_v33 }
  0x27   : > { %894 = vmatpush.msra.mxu3 %v275_v33  ;;  %v268_v33 = vld [vmem:[%s1030_s18 + $0x2d8] sm:$0xff] }
  0x28   : > { %536 = vmatpush.msra.mxu1 %v291_v34  ;;  %424 = vmatpush.msra.mxu0 %v274_v35 }
  0x29   : > { %895 = vmatpush.msra.mxu3 %v274_v35  ;;  %v220_v35 = vld [vmem:[%s1030_s18 + $0x158] sm:$0xff] }
  0x2a   : > { %537 = vmatpush.msra.mxu1 %v290_v36  ;;  %425 = vmatpush.msra.mxu0 %v273_v37 }
  0x2b   : > { %896 = vmatpush.msra.mxu3 %v273_v37  ;;  %426 = vmatmul.f32.vlgmr.msra.gmra.mxu0 %v177_v38  ;;  %v222_v37 = vld [vmem:[%s1030_s18 + $0x168] sm:$0xff]  ;;  %v271_v38 = vld [vmem:[%s1030_s18 + $0x2f0] sm:$0xff] }
  0x2c   : > { %498 = vmatmul.f32.vlgmr.msra.gmra.mxu3 %v249_v39  ;;  %538 = vmatpush.msra.mxu1 %v289_v40  ;;  %v233_v39 = vld [vmem:[%s1030_s18 + $0x1c0] sm:$0xff] }
  0x2d   : > { %897 = vmatpush.msrb.mxu3 %v977_v3  ;;  %850 = vmatmul.msk.f32.gmra.mxu2 %vm313_vm0, %v188_v41  ;;  %v198_v3 = vld [vmem:[%s1030_s18 + $0xa8] sm:$0xff]  ;;  %v1232_v41 = vld [vmem:[%s1416_s2] ss:$0 sm:$0xff] }
  0x2e   : > { %539 = vmatmul.f32.vlgmr.msra.gmra.mxu1 %v178_v42 }
  0x2f   : > { %898 = vmatpush.msrb.mxu3 %v992_v6  ;;  %v199_v6 = vld [vmem:[%s1030_s18 + $0xb0] sm:$0xff] }
  0x31   : > { %899 = vmatpush.msrb.mxu3 %v1002_v8  ;;  %v250_v8 = vld [vmem:[%s1030_s18 + $0x248] sm:$0xff] }
  0x33   : > { %900 = vmatpush.msrb.mxu3 %v1019_v11  ;;  %429 = vmatmul.f32.gmra.mxu0 %v180_v43  ;;  %v204_v11 = vld [vmem:[%s1030_s18 + $0xd8] sm:$0xff] }
  0x34   : > { %501 = vmatmul.f32.gmra.mxu3 %v252_v44  ;;  %v225_v44 = vld [vmem:[%s1030_s18 + $0x180] sm:$0xff] }
  0x35   : > { %901 = vmatpush.msrb.mxu3 %v1035_v13  ;;  %851 = vmatmul.msk.f32.gmra.mxu2 %vm313_vm0, %v191_v45  ;;  %v215_v13 = vld [vmem:[%s1030_s18 + $0x130] sm:$0xff]  ;;  %v260_v45 = vld [vmem:[%s1030_s18 + $0x298] sm:$0xff] }
  0x36   : > { %542 = vmatmul.f32.gmra.mxu1 %v181_v46 }
  0x37   : > { %902 = vmatpush.msrb.mxu3 %v1046_v16  ;;  %v256_v16 = vld [vmem:[%s1030_s18 + $0x278] sm:$0xff] }
  0x39   : > { %903 = vmatpush.msrb.mxu3 %v1056_v18  ;;  %v208_v18 = vld [vmem:[%s1030_s18 + $0xf8] sm:$0xff] }
  0x3b   : > { %904 = vmatpush.msrb.mxu3 %v1065_v20  ;;  %432 = vmatmul.f32.gmra.mxu0 %v183_v47  ;;  %v259_v20 = vld [vmem:[%s1030_s18 + $0x290] sm:$0xff] }
  0x3c   : > { %504 = vmatmul.f32.gmra.mxu3 %v255_v48  ;;  %v236_v48 = vld [vmem:[%s1030_s18 + $0x1d8] sm:$0xff] }
  0x3d   : > { %905 = vmatpush.msrb.mxu3 %v1075_v23  ;;  %852 = vmatmul.msk.f32.gmra.mxu2 %vm313_vm0, %v194_v49  ;;  %v213_v23 = vld [vmem:[%s1030_s18 + $0x120] sm:$0xff]  ;;  %v226_v49 = vld [vmem:[%s1030_s18 + $0x188] sm:$0xff] }
  0x3e   : > { %545 = vmatmul.f32.gmra.mxu1 %v184_v50 }
  0x3f   : > { %906 = vmatpush.msrb.mxu3 %v1084_v25  ;;  %v224_v25 = vld [vmem:[%s1030_s18 + $0x178] sm:$0xff] }
  0x41   : > { %907 = vmatpush.msrb.mxu3 %v1094_v27  ;;  %v216_v27 = vld [vmem:[%s1030_s18 + $0x138] sm:$0xff] }
  0x43   : > { %908 = vmatpush.msrb.mxu3 %v1103_v29  ;;  %435 = vmatmul.f32.gmra.mxu0 %v186_v51  ;;  %v227_v29 = vld [vmem:[%s1030_s18 + $0x190] sm:$0xff] }
  0x44   : > { %507 = vmatmul.f32.gmra.mxu3 %v258_v52 }
  0x45   : > { %909 = vmatpush.msrb.mxu3 %v292_v32  ;;  %853 = vmatmul.msk.f32.gmra.mxu2 %vm313_vm0, %v197_v53  ;;  %v219_v32 = vld [vmem:[%s1030_s18 + $0x150] sm:$0xff] }
  0x46   : > { %548 = vmatmul.f32.gmra.mxu1 %v187_v54 }
  0x47   : > { %910 = vmatpush.msrb.mxu3 %v291_v34  ;;  %v230_v34 = vld [vmem:[%s1030_s18 + $0x1a8] sm:$0xff] }
  0x49   : > { %911 = vmatpush.msrb.mxu3 %v290_v36 }
  0x4b   : > { %912 = vmatpush.msrb.mxu3 %v289_v40  ;;  %438 = vmatmul.f32.gmra.mxu0 %v189_v55  ;;  %v223_v40 = vld [vmem:[%s1030_s18 + $0x170] sm:$0xff]  ;;  %v228_v55 = vld [vmem:[%s1030_s18 + $0x198] sm:$0xff] }
  0x4c   : > { %510 = vmatmul.f32.gmra.mxu3 %v261_v56  ;;  %v263_v56 = vld [vmem:[%s1030_s18 + $0x2b0] sm:$0xff] }
  0x4d   : > { %913 = vmatpush.msra.mxu3 %v969_v1  ;;  %854 = vmatmul.msk.f32.gmra.mxu2 %vm313_vm0, %v200_v57  ;;  %v206_v1 = vld [vmem:[%s1030_s18 + $0xe8] sm:$0xff] }
  0x4e   : > { %551 = vmatmul.f32.gmra.mxu1 %v190_v58 }
  0x4f   : > { %914 = vmatpush.msra.mxu3 %v982_v4  ;;  %v270_v4 = vld [vmem:[%s1030_s18 + $0x2e8] sm:$0xff] }
  0x51   : > { %915 = vmatpush.msra.mxu3 %v997_v7  ;;  %v201_v7 = vld [vmem:[%s1030_s18 + $0xc0] sm:$0xff] }
  0x53   : > { %916 = vmatpush.msra.mxu3 %v1014_v10  ;;  %441 = vmatmul.f32.gmra.mxu0 %v192_v59  ;;  %v202_v10 = vld [vmem:[%s1030_s18 + $0xc8] sm:$0xff]  ;;  %v239_v59 = vld [vmem:[%s1030_s18 + $0x1f0] sm:$0xff] }
  0x54   : > { %513 = vmatmul.f32.gmra.mxu3 %v264_v60  ;;  %v229_v60 = vld [vmem:[%s1030_s18 + $0x1a0] sm:$0xff] }
  0x55   : > { %855 = vmatmul.msk.f32.gmra.mxu2 %vm313_vm0, %v203_v61 }
  0x56   : > { %554 = vmatmul.f32.gmra.mxu1 %v193_v62 }
  0x5b   : > { %444 = vmatmul.f32.gmra.mxu0 %v195_v63 }
  0x5c   : > { %516 = vmatmul.f32.gmra.mxu3 %v267_v0 }
  0x5d   : > { %856 = vmatmul.msk.f32.gmra.mxu2 %vm313_vm0, %v206_v1 }
  0x5e   : > { %557 = vmatmul.f32.gmra.mxu1 %v196_v2  ;;  %v231_v2 = vld [vmem:[%s1030_s18 + $0x1b0] sm:$0xff] }
  0x63   : > { %447 = vmatmul.f32.gmra.mxu0 %v198_v3  ;;  %v266_v3 = vld [vmem:[%s1030_s18 + $0x2c8] sm:$0xff] }
  0x64   : > { %519 = vmatmul.f32.gmra.mxu3 %v270_v4 }
  0x65   : > { %857 = vmatmul.msk.f32.gmra.mxu2 %vm313_vm0, %v209_v5 }
  0x66   : > { %560 = vmatmul.f32.gmra.mxu1 %v199_v6  ;;  %v242_v6 = vld [vmem:[%s1030_s18 + $0x208] sm:$0xff] }
  0x6b   : > { %450 = vmatmul.f32.gmra.mxu0 %v201_v7  ;;  %v232_v7 = vld [vmem:[%s1030_s18 + $0x1b8] sm:$0xff] }
  0x6c   : > { %611 = vmatmul.f32.vlgmr.msrb.gmra.mxu3 %v250_v8 }
  0x6d   : > { %858 = vmatmul.msk.f32.gmra.mxu2 %vm313_vm0, %v212_v9 }
  0x6e   : > { %563 = vmatmul.f32.gmra.mxu1 %v202_v10 }
  0x73   : > { %453 = vmatmul.f32.gmra.mxu0 %v204_v11 }
  0x74   : > { %614 = vmatmul.f32.gmra.mxu3 %v253_v12 }
  0x75   : > { %859 = vmatmul.msk.f32.gmra.mxu2 %vm313_vm0, %v215_v13  ;;  %v234_v13 = vld [vmem:[%s1030_s18 + $0x1c8] sm:$0xff] }
  0x76   : > { %566 = vmatmul.f32.gmra.mxu1 %v205_v14  ;;  %v269_v14 = vld [vmem:[%s1030_s18 + $0x2e0] sm:$0xff] }
  0x7b   : > { %456 = vmatmul.f32.gmra.mxu0 %v207_v15 }
  0x7c   : > { %617 = vmatmul.f32.gmra.mxu3 %v256_v16 }
  0x7d   : > { %860 = vmatmul.msk.f32.gmra.mxu2 %vm313_vm0, %v218_v17  ;;  %v245_v17 = vld [vmem:[%s1030_s18 + $0x220] sm:$0xff] }
  0x7e   : > { %569 = vmatmul.f32.gmra.mxu1 %v208_v18  ;;  %v235_v18 = vld [vmem:[%s1030_s18 + $0x1d0] sm:$0xff] }
  0x83   : > { %459 = vmatmul.f32.gmra.mxu0 %v210_v19 }
  0x84   : > { %620 = vmatmul.f32.gmra.mxu3 %v259_v20 }
  0x85   : > { %861 = vmatmul.msk.f32.gmra.mxu2 %vm313_vm0, %v221_v21 }
  0x86   : > { %572 = vmatmul.f32.gmra.mxu1 %v211_v22 }
  0x8b   : > { %462 = vmatmul.f32.gmra.mxu0 %v213_v23 }
  0x8c   : > { %623 = vmatmul.f32.gmra.mxu3 %v262_v24  ;;  %v237_v24 = vld [vmem:[%s1030_s18 + $0x1e0] sm:$0xff] }
  0x8d   : > { %862 = vmatmul.msk.f32.gmra.mxu2 %vm313_vm0, %v224_v25  ;;  %v272_v25 = vld [vmem:[%s1030_s18 + $0x2f8] sm:$0xff] }
  0x8e   : > { %575 = vmatmul.f32.gmra.mxu1 %v214_v26 }
  0x93   : > { %465 = vmatmul.f32.gmra.mxu0 %v216_v27 }
  0x94   : > { %626 = vmatmul.f32.gmra.mxu3 %v265_v28  ;;  %v248_v28 = vld [vmem:[%s1030_s18 + $0x238] sm:$0xff] }
  0x95   : > { %863 = vmatmul.msk.f32.gmra.mxu2 %vm313_vm0, %v227_v29  ;;  %v238_v29 = vld [vmem:[%s1030_s18 + $0x1e8] sm:$0xff] }
  0x96   : > { %578 = vmatmul.f32.gmra.mxu1 %v217_v30 }
  0x98   : > { %v653_v31 = vpop.f32.mrf.mxu2 }
  0x9b   : > { %468 = vmatmul.f32.gmra.mxu0 %v219_v32 }
  0x9c   : > { %629 = vmatmul.f32.gmra.mxu3 %v268_v33 }
  0x9d   : > { %864 = vmatmul.msk.f32.gmra.mxu2 %vm313_vm0, %v230_v34 }
  0x9e   : > { %581 = vmatmul.f32.gmra.mxu1 %v220_v35  ;;  %v240_v35 = vld [vmem:[%s1030_s18 + $0x1f8] sm:$0xff] }
  0xa0   : > { %v656_v36 = vpop.f32.mrf.mxu2 }
  0xa3   : > { %471 = vmatmul.f32.gmra.mxu0 %v222_v37 }
  0xa4   : > { %632 = vmatmul.f32.gmra.mxu3 %v271_v38  ;;  %v251_v38 = vld [vmem:[%s1030_s18 + $0x250] sm:$0xff] }
  0xa5   : > { %865 = vmatmul.msk.f32.gmra.mxu2 %vm313_vm0, %v233_v39  ;;  %v241_v39 = vld [vmem:[%s1030_s18 + $0x200] sm:$0xff] }
  0xa6   : > { %584 = vmatmul.f32.gmra.mxu1 %v223_v40 }
  0xa8   : > { %v659_v42 = vpop.f32.mrf.mxu2  ;;  %v427_v43 = vpop.f32.mrf.mxu0 }
  0xa9   : > { %v428_v46 = vadd.f32 %v1232_v41, %v427_v43 }
  0xab   : > { %v540_v47 = vpop.f32.mrf.mxu1  ;;  %474 = vmatmul.f32.gmra.mxu0 %v225_v44 }
  0xac   : > { %v541_v50 = vadd.f32 %v540_v47, %v428_v46  ;;  %874 = vmatmul.msk.f32.vlgmr.msra.gmra.mxu3 %vm313_vm0, %v260_v45  ;;  %v243_v46 = vld [vmem:[%s1030_s18 + $0x210] sm:$0xff] }
  0xad   : > { %866 = vmatmul.msk.f32.gmra.mxu2 %vm313_vm0, %v236_v48 }
  0xae   : > { %v654_v51 = vadd.f32 %v653_v31, %v541_v50  ;;  %587 = vmatmul.f32.gmra.mxu1 %v226_v49  ;;  %v254_v49 = vld [vmem:[%s1030_s18 + $0x268] sm:$0xff]  ;;  %v244_v50 = vld [vmem:[%s1030_s18 + $0x218] sm:$0xff] }
  0xaf   : > { %v1247_v52 = vpop.f32.mrf.mxu3 }
  0xb0   : > { %750 = vst.msk [vmem:[%s1244_s23] sm:$0xff] %vm749_vm1, %v654_v51  ;;  %v662_v53 = vpop.f32.mrf.mxu2  ;;  %v430_v54 = vpop.f32.mrf.mxu0 }
  0xb1   : > { %v431_v57 = vadd.f32 %v1232_v41, %v430_v54 }
  0xb3   : > { %v543_v58 = vpop.f32.mrf.mxu1  ;;  %477 = vmatmul.f32.gmra.mxu0 %v228_v55 }
  0xb4   : > { %v544_v61 = vadd.f32 %v543_v58, %v431_v57  ;;  %875 = vmatmul.msk.f32.gmra.mxu3 %vm313_vm0, %v263_v56  ;;  %v246_v57 = vld [vmem:[%s1030_s18 + $0x228] sm:$0xff] }
  0xb5   : > { %867 = vmatmul.msk.f32.gmra.mxu2 %vm313_vm0, %v239_v59 }
  0xb6   : > { %v657_v62 = vadd.f32 %v656_v36, %v544_v61  ;;  %590 = vmatmul.f32.gmra.mxu1 %v229_v60  ;;  %v257_v60 = vld [vmem:[%s1030_s18 + $0x280] sm:$0xff]  ;;  %v247_v61 = vld [vmem:[%s1030_s18 + $0x230] sm:$0xff] }
  0xb7   : > { %v1258_v63 = vpop.f32.mrf.mxu3 }
  0xb8   : > { %751 = vst.msk [vmem:[%s1244_s23 + $0x8] sm:$0xff] %vm749_vm1, %v657_v62  ;;  %v665_v0 = vpop.f32.mrf.mxu2  ;;  %v433_v1 = vpop.f32.mrf.mxu0 }
  0xb9   : > { %v434_v4 = vadd.f32 %v1232_v41, %v433_v1 }
  0xbb   : > { %v546_v5 = vpop.f32.mrf.mxu1  ;;  %480 = vmatmul.f32.gmra.mxu0 %v231_v2 }
  0xbc   : > { %v547_v8 = vadd.f32 %v546_v5, %v434_v4  ;;  %876 = vmatmul.msk.f32.gmra.mxu3 %vm313_vm0, %v266_v3 }
  0xbd   : > { %868 = vmatmul.msk.f32.gmra.mxu2 %vm313_vm0, %v242_v6 }
  0xbe   : > { %v660_v9 = vadd.f32 %v659_v42, %v547_v8  ;;  %593 = vmatmul.f32.gmra.mxu1 %v232_v7  ;;  %v500_v7 = vadd.f32 %v1232_v41, %v1247_v52 }
  0xbf   : > { %v1269_v10 = vpop.f32.mrf.mxu3 }
  0xc0   : > { %752 = vst.msk [vmem:[%s1244_s23 + $0x10] sm:$0xff] %vm749_vm1, %v660_v9  ;;  %v668_v11 = vpop.f32.mrf.mxu2  ;;  %v436_v12 = vpop.f32.mrf.mxu0 }
  0xc1   : > { %v437_v15 = vadd.f32 %v1232_v41, %v436_v12 }
  0xc3   : > { %v549_v16 = vpop.f32.mrf.mxu1  ;;  %483 = vmatmul.f32.gmra.mxu0 %v234_v13 }
  0xc4   : > { %v550_v19 = vadd.f32 %v549_v16, %v437_v15  ;;  %877 = vmatmul.msk.f32.gmra.mxu3 %vm313_vm0, %v269_v14 }
  0xc5   : > { %869 = vmatmul.msk.f32.gmra.mxu2 %vm313_vm0, %v245_v17  ;;  %v503_v17 = vadd.f32 %v1232_v41, %v1258_v63 }
  0xc6   : > { %v663_v20 = vadd.f32 %v662_v53, %v550_v19  ;;  %596 = vmatmul.f32.gmra.mxu1 %v235_v18 }
  0xc7   : > { %v1280_v21 = vpop.f32.mrf.mxu3 }
  0xc8   : > { %753 = vst.msk [vmem:[%s1244_s23 + $0x18] sm:$0xff] %vm749_vm1, %v663_v20  ;;  %v671_v22 = vpop.f32.mrf.mxu2  ;;  %v439_v23 = vpop.f32.mrf.mxu0 }
  0xc9   : > { %v440_v26 = vadd.f32 %v1232_v41, %v439_v23 }
  0xcb   : > { %v552_v27 = vpop.f32.mrf.mxu1  ;;  %486 = vmatmul.f32.gmra.mxu0 %v237_v24 }
  0xcc   : > { %v553_v30 = vadd.f32 %v552_v27, %v440_v26  ;;  %878 = vmatmul.msk.f32.gmra.mxu3 %vm313_vm0, %v272_v25  ;;  %v506_v26 = vadd.f32 %v1232_v41, %v1269_v10 }
  0xcd   : > { %870 = vmatmul.msk.f32.gmra.mxu2 %vm313_vm0, %v248_v28 }
  0xce   : > { %v666_v31 = vadd.f32 %v665_v0, %v553_v30  ;;  %599 = vmatmul.f32.gmra.mxu1 %v238_v29 }
  0xcf   : > { %v1291_v32 = vpop.f32.mrf.mxu3 }
  0xd0   : > { %754 = vst.msk [vmem:[%s1244_s23 + $0x20] sm:$0xff] %vm749_vm1, %v666_v31  ;;  %v674_v33 = vpop.f32.mrf.mxu2  ;;  %v442_v34 = vpop.f32.mrf.mxu0 }
  0xd1   : > { %v443_v36 = vadd.f32 %v1232_v41, %v442_v34 }
  0xd3   : > { %v555_v37 = vpop.f32.mrf.mxu1  ;;  %489 = vmatmul.f32.gmra.mxu0 %v240_v35 }
  0xd4   : > { %v556_v40 = vadd.f32 %v555_v37, %v443_v36 }
  0xd5   : > { %871 = vmatmul.msk.f32.gmra.mxu2 %vm313_vm0, %v251_v38 }
  0xd6   : > { %v669_v42 = vadd.f32 %v668_v11, %v556_v40  ;;  %602 = vmatmul.f32.gmra.mxu1 %v241_v39 }
  0xd7   : > { %v1300_v43 = vpop.f32.mrf.mxu3 }
  0xd8   : > { %755 = vst.msk [vmem:[%s1244_s23 + $0x28] sm:$0xff] %vm749_vm1, %v669_v42  ;;  %v677_v44 = vpop.f32.mrf.mxu2  ;;  %v445_v45 = vpop.f32.mrf.mxu0 }
  0xd9   : > { %v446_v47 = vadd.f32 %v1232_v41, %v445_v45 }
  0xdb   : > { %v558_v48 = vpop.f32.mrf.mxu1  ;;  %492 = vmatmul.f32.gmra.mxu0 %v243_v46 }
  0xdc   : > { %v559_v51 = vadd.f32 %v558_v48, %v446_v47 }
  0xdd   : > { %872 = vmatmul.msk.f32.gmra.mxu2 %vm313_vm0, %v254_v49 }
  0xde   : > { %v672_v53 = vadd.f32 %v671_v22, %v559_v51  ;;  %605 = vmatmul.f32.gmra.mxu1 %v244_v50 }
  0xdf   : > { %v1309_v54 = vpop.f32.mrf.mxu3 }
  0xe0   : > { %756 = vst.msk [vmem:[%s1244_s23 + $0x30] sm:$0xff] %vm749_vm1, %v672_v53  ;;  %v680_v55 = vpop.f32.mrf.mxu2  ;;  %v448_v56 = vpop.f32.mrf.mxu0 }
  0xe1   : > { %v449_v58 = vadd.f32 %v1232_v41, %v448_v56 }
  0xe3   : > { %v561_v59 = vpop.f32.mrf.mxu1  ;;  %495 = vmatmul.f32.gmra.mxu0 %v246_v57 }
  0xe4   : > { %v562_v62 = vadd.f32 %v561_v59, %v449_v58 }
  0xe5   : > { %873 = vmatmul.msk.f32.gmra.mxu2 %vm313_vm0, %v257_v60 }
  0xe6   : > { %v675_v0 = vadd.f32 %v674_v33, %v562_v62  ;;  %608 = vmatmul.f32.gmra.mxu1 %v247_v61 }
  0xe7   : > { %v1318_v1 = vpop.f32.mrf.mxu3 }
  0xe8   : > { %757 = vst.msk [vmem:[%s1244_s23 + $0x38] sm:$0xff] %vm749_vm1, %v675_v0  ;;  %v683_v2 = vpop.f32.mrf.mxu2  ;;  %v451_v3 = vpop.f32.mrf.mxu0 }
  0xe9   : > { %v452_v4 = vadd.f32 %v1232_v41, %v451_v3 }
  0xeb   : > { %v564_v5 = vpop.f32.mrf.mxu1 }
  0xec   : > { %v565_v6 = vadd.f32 %v564_v5, %v452_v4 }
  0xee   : > { %v678_v8 = vadd.f32 %v677_v44, %v565_v6 }
  0xef   : > { %v612_v9 = vpop.f32.mrf.mxu3 }
  0xf0   : > { %758 = vst.msk [vmem:[%s1244_s23 + $0x40] sm:$0xff] %vm749_vm1, %v678_v8  ;;  %v1327_v11 = vadd.f32 %v612_v9, %v500_v7  ;;  %v686_v12 = vpop.f32.mrf.mxu2  ;;  %v454_v13 = vpop.f32.mrf.mxu0 }
  0xf1   : > { %v455_v14 = vadd.f32 %v1232_v41, %v454_v13 }
  0xf3   : > { %v567_v15 = vpop.f32.mrf.mxu1 }
  0xf4   : > { %v568_v16 = vadd.f32 %v567_v15, %v455_v14 }
  0xf6   : > { %v681_v18 = vadd.f32 %v680_v55, %v568_v16 }
  0xf7   : > { %v615_v19 = vpop.f32.mrf.mxu3 }
  0xf8   : > { %759 = vst.msk [vmem:[%s1244_s23 + $0x48] sm:$0xff] %vm749_vm1, %v681_v18  ;;  %v1334_v52 = vadd.f32 %v615_v19, %v503_v17  ;;  %v689_v20 = vpop.f32.mrf.mxu2  ;;  %v457_v22 = vpop.f32.mrf.mxu0 }
  0xf9   : > { %v458_v23 = vadd.f32 %v1232_v41, %v457_v22 }
  0xfb   : > { %v570_v24 = vpop.f32.mrf.mxu1 }
  0xfc   : > { %v571_v25 = vadd.f32 %v570_v24, %v458_v23  ;;  %v512_v23 = vadd.f32 %v1232_v41, %v1291_v32 }
  0xfe   : > { %v684_v27 = vadd.f32 %v683_v2, %v571_v25 }
  0xff   : > { %v618_v28 = vpop.f32.mrf.mxu3 }
 0x100   : > { %760 = vst.msk [vmem:[%s1244_s23 + $0x50] sm:$0xff] %vm749_vm1, %v684_v27  ;;  %v1341_v63 = vadd.f32 %v618_v28, %v506_v26  ;;  %v692_v29 = vpop.f32.mrf.mxu2  ;;  %v460_v30 = vpop.f32.mrf.mxu0 }
 0x101   : > { %v461_v31 = vadd.f32 %v1232_v41, %v460_v30 }
 0x103   : > { %v573_v33 = vpop.f32.mrf.mxu1 }
 0x104   : > { %v574_v34 = vadd.f32 %v573_v33, %v461_v31  ;;  %v515_v33 = vadd.f32 %v1232_v41, %v1300_v43 }
 0x106   : > { %v687_v35 = vadd.f32 %v686_v12, %v574_v34  ;;  %v509_v12 = vadd.f32 %v1232_v41, %v1280_v21 }
 0x107   : > { %v621_v36 = vpop.f32.mrf.mxu3 }
 0x108   : > { %761 = vst.msk [vmem:[%s1244_s23 + $0x58] sm:$0xff] %vm749_vm1, %v687_v35  ;;  %v695_v37 = vpop.f32.mrf.mxu2  ;;  %v463_v10 = vpop.f32.mrf.mxu0  ;;  %v622_v14 = vadd.f32 %v621_v36, %v509_v12 }
 0x109   : > { %v464_v38 = vadd.f32 %v1232_v41, %v463_v10 }
 0x10b   : > { %v576_v39 = vpop.f32.mrf.mxu1 }
 0x10c   : > { %v577_v40 = vadd.f32 %v576_v39, %v464_v38 }
 0x10e   : > { %v690_v42 = vadd.f32 %v689_v20, %v577_v40 }
 0x10f   : > { %v624_v44 = vpop.f32.mrf.mxu3 }
 0x110   : > { %762 = vst.msk [vmem:[%s1244_s23 + $0x60] sm:$0xff] %vm749_vm1, %v690_v42  ;;  %v698_v45 = vpop.f32.mrf.mxu2  ;;  %v466_v46 = vpop.f32.mrf.mxu0  ;;  %v625_v24 = vadd.f32 %v624_v44, %v512_v23  ;;  %v518_v42 = vadd.f32 %v1232_v41, %v1309_v54  ;;  %v521_v54 = vadd.f32 %v1232_v41, %v1318_v1 }
 0x111   : > { %v467_v47 = vadd.f32 %v1232_v41, %v466_v46 }
 0x113   : > { %v579_v48 = vpop.f32.mrf.mxu1 }
 0x114   : > { %v580_v49 = vadd.f32 %v579_v48, %v467_v47 }
 0x116   : > { %v693_v50 = vadd.f32 %v692_v29, %v580_v49 }
 0x117   : > { %v627_v51 = vpop.f32.mrf.mxu3 }
 0x118   : > { %763 = vst.msk [vmem:[%s1244_s23 + $0x68] sm:$0xff] %vm749_vm1, %v693_v50  ;;  %v701_v53 = vpop.f32.mrf.mxu2  ;;  %v469_v55 = vpop.f32.mrf.mxu0  ;;  %v628_v34 = vadd.f32 %v627_v51, %v515_v33 }
 0x119   : > { %v470_v56 = vadd.f32 %v1232_v41, %v469_v55 }
 0x11b   : > { %v582_v57 = vpop.f32.mrf.mxu1 }
 0x11c   : > { %v583_v58 = vadd.f32 %v582_v57, %v470_v56 }
 0x11e   : > { %v696_v59 = vadd.f32 %v695_v37, %v583_v58 }
 0x11f   : > { %v630_v60 = vpop.f32.mrf.mxu3 }
 0x120   : > { %764 = vst.msk [vmem:[%s1244_s23 + $0x70] sm:$0xff] %vm749_vm1, %v696_v59  ;;  %v704_v61 = vpop.f32.mrf.mxu2  ;;  %v472_v62 = vpop.f32.mrf.mxu0  ;;  %v631_v44 = vadd.f32 %v630_v60, %v518_v42 }
 0x121   : > { %v473_v0 = vadd.f32 %v1232_v41, %v472_v62 }
 0x123   : > { %v585_v2 = vpop.f32.mrf.mxu1 }
 0x124   : > { %v586_v3 = vadd.f32 %v585_v2, %v473_v0 }
 0x126   : > { %v699_v4 = vadd.f32 %v698_v45, %v586_v3 }
 0x127   : > { %v633_v5 = vpop.f32.mrf.mxu3 }
 0x128   : > { %765 = vst.msk [vmem:[%s1244_s23 + $0x78] sm:$0xff] %vm749_vm1, %v699_v4  ;;  %v707_v6 = vpop.f32.mrf.mxu2  ;;  %v475_v7 = vpop.f32.mrf.mxu0  ;;  %v634_v55 = vadd.f32 %v633_v5, %v521_v54 }
 0x129   : > { %v476_v8 = vadd.f32 %v1232_v41, %v475_v7 }
 0x12b   : > { %v588_v9 = vpop.f32.mrf.mxu1 }
 0x12c   : > { %v589_v13 = vadd.f32 %v588_v9, %v476_v8 }
 0x12e   : > { %v702_v15 = vadd.f32 %v701_v53, %v589_v13 }
 0x12f   : > { %v734_v16 = vpop.f32.mrf.mxu3 }
 0x130   : > { %766 = vst.msk [vmem:[%s1244_s23 + $0x80] sm:$0xff] %vm749_vm1, %v702_v15  ;;  %v735_v17 = vadd.f32 %v734_v16, %v622_v14  ;;  %v710_v18 = vpop.f32.mrf.mxu2  ;;  %v478_v19 = vpop.f32.mrf.mxu0 }
 0x131   : > { %v479_v20 = vadd.f32 %v1232_v41, %v478_v19 }
 0x132   : > { %777 = vst.msk [vmem:[%s1244_s23 + $0xd8] sm:$0xff] %vm749_vm1, %v735_v17 }
 0x133   : > { %v591_v22 = vpop.f32.mrf.mxu1 }
 0x134   : > { %v592_v21 = vadd.f32 %v591_v22, %v479_v20 }
 0x136   : > { %v705_v25 = vadd.f32 %v704_v61, %v592_v21 }
 0x137   : > { %v737_v26 = vpop.f32.mrf.mxu3 }
 0x138   : > { %767 = vst.msk [vmem:[%s1244_s23 + $0x88] sm:$0xff] %vm749_vm1, %v705_v25  ;;  %v738_v27 = vadd.f32 %v737_v26, %v625_v24  ;;  %v713_v28 = vpop.f32.mrf.mxu2  ;;  %v481_v29 = vpop.f32.mrf.mxu0 }
 0x139   : > { %v482_v30 = vadd.f32 %v1232_v41, %v481_v29 }
 0x13a   : > { %778 = vst.msk [vmem:[%s1244_s23 + $0xe0] sm:$0xff] %vm749_vm1, %v738_v27 }
 0x13b   : > { %v594_v31 = vpop.f32.mrf.mxu1 }
 0x13c   : > { %v595_v32 = vadd.f32 %v594_v31, %v482_v30 }
 0x13e   : > { %v708_v35 = vadd.f32 %v707_v6, %v595_v32 }
 0x13f   : > { %v740_v36 = vpop.f32.mrf.mxu3 }
 0x140   : > { %768 = vst.msk [vmem:[%s1244_s23 + $0x90] sm:$0xff] %vm749_vm1, %v708_v35  ;;  %v741_v37 = vadd.f32 %v740_v36, %v628_v34  ;;  %v716_v10 = vpop.f32.mrf.mxu2  ;;  %v484_v38 = vpop.f32.mrf.mxu0 }
 0x141   : > { %v485_v39 = vadd.f32 %v1232_v41, %v484_v38 }
 0x142   : > { %779 = vst.msk [vmem:[%s1244_s23 + $0xe8] sm:$0xff] %vm749_vm1, %v741_v37 }
 0x143   : > { %v597_v40 = vpop.f32.mrf.mxu1 }
 0x144   : > { %v598_v43 = vadd.f32 %v597_v40, %v485_v39 }
 0x146   : > { %v711_v45 = vadd.f32 %v710_v18, %v598_v43 }
 0x147   : > { %v743_v46 = vpop.f32.mrf.mxu3 }
 0x148   : > { %769 = vst.msk [vmem:[%s1244_s23 + $0x98] sm:$0xff] %vm749_vm1, %v711_v45  ;;  %v744_v47 = vadd.f32 %v743_v46, %v631_v44  ;;  %v719_v48 = vpop.f32.mrf.mxu2  ;;  %v487_v49 = vpop.f32.mrf.mxu0 }
 0x149   : > { %v488_v50 = vadd.f32 %v1232_v41, %v487_v49 }
 0x14a   : > { %780 = vst.msk [vmem:[%s1244_s23 + $0xf0] sm:$0xff] %vm749_vm1, %v744_v47 }
 0x14b   : > { %v600_v51 = vpop.f32.mrf.mxu1 }
 0x14c   : > { %v601_v53 = vadd.f32 %v600_v51, %v488_v50 }
 0x14e   : > { %v714_v56 = vadd.f32 %v713_v28, %v601_v53 }
 0x14f   : > { %v746_v57 = vpop.f32.mrf.mxu3 }
 0x150   : > { %770 = vst.msk [vmem:[%s1244_s23 + $0xa0] sm:$0xff] %vm749_vm1, %v714_v56  ;;  %v747_v58 = vadd.f32 %v746_v57, %v634_v55  ;;  %v722_v59 = vpop.f32.mrf.mxu2  ;;  %v490_v60 = vpop.f32.mrf.mxu0 }
 0x151   : > { %v491_v61 = vadd.f32 %v1232_v41, %v490_v60 }
 0x152   : > { %781 = vst.msk [vmem:[%s1244_s23 + $0xf8] sm:$0xff] %vm749_vm1, %v747_v58 }
 0x153   : > { %v603_v62 = vpop.f32.mrf.mxu1 }
 0x154   : > { %v604_v0 = vadd.f32 %v603_v62, %v491_v61 }
 0x156   : > { %v717_v2 = vadd.f32 %v716_v10, %v604_v0 }
 0x158   : > { %771 = vst.msk [vmem:[%s1244_s23 + $0xa8] sm:$0xff] %vm749_vm1, %v717_v2  ;;  %v725_v1 = vpop.f32.mrf.mxu2  ;;  %v493_v3 = vpop.f32.mrf.mxu0 }
 0x159   : > { %v726_v4 = vadd.f32 %v725_v1, %v1327_v11  ;;  %v494_v5 = vadd.f32 %v1232_v41, %v493_v3 }
 0x15b   : > { %v606_v6 = vpop.f32.mrf.mxu1  ;;  %774 = vst.msk [vmem:[%s1244_s23 + $0xc0] sm:$0xff] %vm749_vm1, %v726_v4 }
 0x15c   : > { %v607_v7 = vadd.f32 %v606_v6, %v494_v5 }
 0x15e   : > { %v720_v8 = vadd.f32 %v719_v48, %v607_v7 }
 0x160   : > { %772 = vst.msk [vmem:[%s1244_s23 + $0xb0] sm:$0xff] %vm749_vm1, %v720_v8  ;;  %v728_v9 = vpop.f32.mrf.mxu2  ;;  %v496_v12 = vpop.f32.mrf.mxu0 }
 0x161   : > { %v729_v13 = vadd.f32 %v728_v9, %v1334_v52  ;;  %v497_v14 = vadd.f32 %v1232_v41, %v496_v12 }
 0x163   : > { %v609_v15 = vpop.f32.mrf.mxu1  ;;  %775 = vst.msk [vmem:[%s1244_s23 + $0xc8] sm:$0xff] %vm749_vm1, %v729_v13 }
 0x164   : > { %v610_v11 = vadd.f32 %v609_v15, %v497_v14 }
 0x166   : > { %v723_v16 = vadd.f32 %v722_v59, %v610_v11 }
 0x168   : > { %773 = vst.msk [vmem:[%s1244_s23 + $0xb8] sm:$0xff] %vm749_vm1, %v723_v16  ;;  %v731_v17 = vpop.f32.mrf.mxu2 }
 0x169   : > { %v732_v18 = vadd.f32 %v731_v17, %v1341_v63 }
 0x16b   : > { %776 = vst.msk [vmem:[%s1244_s23 + $0xd0] sm:$0xff] %vm749_vm1, %v732_v18 }
 0x16c PF: > { %s13_s12 = sadd.s32 1, %s933_s12  }
 0x16d   : > { %p10_p4 = scmp.ge.s32.totalorder %s13_s12, 4  }
 0x16f   :  { %12 = sbr.rel (!%p10_p4) target bundleno = 1 (0x1), region = 62 }

</bundles_post_ra>
